<compile_context>
chip_gen: v7x
topology: tpu7x:2x2x1
jax: 0.10.0
libtpu: 0.0.40
codegen_flags: <defaults>
</compile_context>

<pallas_src>
import functools
import math

import numpy as np

import jax
import jax.numpy as jnp
from jax.experimental import pallas as pl
from jax.experimental.pallas import tpu as pltpu


# Tap column-offsets used by the depthwise convs (dilations 1, 2, 4).
_DJ_OFFSETS = (-4, -2, -1, 0, 1, 2, 4)


# ----------------------------------------------------------------------------
# In-kernel helpers (all operate on (C, L) lane-flattened float32 tiles).
# ----------------------------------------------------------------------------
def _leaky(x):
    return jnp.where(x >= 0, x, 0.2 * x)


def _prelu(x, a):  # a: (C, 1)
    return jnp.where(x >= 0, x, a * x)


def _shift_lanes(x, s):
    """y[:, l] = x[:, l + s] if 0 <= l + s < L else 0 (static shift s)."""
    if s == 0:
        return x
    c, l = x.shape
    z = jnp.zeros((c, abs(s)), x.dtype)
    if s > 0:
        return jnp.concatenate([x[:, s:], z], axis=1)
    return jnp.concatenate([z, x[:, : l + s]], axis=1)


def _dwconv3x3_flat(x, w9, d, wu, masks):
    """Depthwise 3x3 conv, dilation d, SAME zero padding, on a lane-flattened
    (C, H*W) tile.

    x: (C, L), w9: (C, 9) (row-major 3x3 taps), masks[dj]: (1, L) column
    validity mask (None for dj == 0).  Row validity is handled implicitly by
    the zero-filled lane shift; column wrap-around is removed by the mask.
    """
    out = None
    for ti in range(3):
        di = (ti - 1) * d
        for tj in range(3):
            dj = (tj - 1) * d
            xs = _shift_lanes(x, di * wu + dj)
            m = masks[dj]
            if m is not None:
                xs = xs * m
            tap = w9[:, ti * 3 + tj:ti * 3 + tj + 1] * xs
            out = tap if out is None else out + tap
    return out


# ----------------------------------------------------------------------------
# The fused kernel: one batch element per grid step.
# ----------------------------------------------------------------------------
def _msb_kernel(
    wu,                                   # static (bound via functools.partial)
    hid_ref, en_ref, nz1_ref, nz2_ref,
    s_up_ref, s1_ref, s2_ref, s3_ref, d1_ref, d2_ref,
    idwt_ref, colmask_ref,
    c1_dw_ref, c1_pw_ref, c1_b_ref,
    c2_dw_ref, c2_pw_ref, c2_b_ref,
    ti_w_ref, ti_b_ref,
    ep_proj_w_ref, ep_proj_a_ref, ep_dw_ref, ep_cat_a_ref, ep_exp_w_ref,
    ep_out_a_ref, eca_ref,
    o_hidden_ref, o_img_ref,
):
    cin, hw = hid_ref.shape[1], hid_ref.shape[2]
    c4 = cin // 4
    cout = en_ref.shape[1]
    n = cout // 3
    cn = 3 * n

    hp = jax.lax.Precision.HIGHEST

    def mm(a, b):  # MXU matmul with f32 accumulation
        return jnp.dot(a, b, precision=hp, preferred_element_type=jnp.float32)

    # Column-validity masks, one (1, L) row per dj offset (precomputed host-side).
    masks = {}
    for idx, dj in enumerate(_DJ_OFFSETS):
        masks[dj] = None if dj == 0 else colmask_ref[idx:idx + 1, :]

    # ---- IDWTUpsaplme: style modulation + inverse Haar via scatter matmuls --
    xm = hid_ref[0] * s_up_ref[0]                                 # (Cin, HW)
    h = mm(xm[0 * c4:1 * c4], idwt_ref[0 * hw:1 * hw, :])
    h = h + mm(xm[1 * c4:2 * c4], idwt_ref[1 * hw:2 * hw, :])
    h = h + mm(xm[2 * c4:3 * c4], idwt_ref[2 * hw:3 * hw, :])
    h = h + mm(xm[3 * c4:4 * c4], idwt_ref[3 * hw:4 * hw, :])     # (C4, L)

    # ---- conv1: modulate -> dw3x3 -> pw1x1 -> demod -> noise -> bias -> lrelu
    h = mm(c1_pw_ref[...],
           _dwconv3x3_flat(h * s1_ref[0], c1_dw_ref[...], 1, wu, masks))
    h = h * d1_ref[0] + nz1_ref[0]
    h = _leaky(h + c1_b_ref[...])

    # ---- skip connection from encoder features ------------------------------
    h = h + en_ref[0]

    # ---- 3 x EESP_V4 residual blocks ----------------------------------------
    proj_w = ep_proj_w_ref[...]
    proj_a = ep_proj_a_ref[...]
    dw9 = ep_dw_ref[...]
    cat_a = ep_cat_a_ref[...]
    exp_w = ep_exp_w_ref[...]
    out_a = ep_out_a_ref[...]
    for i in range(3):
        resid = h
        p = _prelu(mm(proj_w[i * n:(i + 1) * n], h),
                   proj_a[i * n:(i + 1) * n])
        prev = None
        branches = []
        for k, d in enumerate((1, 2, 4)):
            widx = i * 3 + k
            bk = _dwconv3x3_flat(p, dw9[widx * n:(widx + 1) * n], d, wu, masks)
            if prev is not None:
                bk = bk + prev                 # hierarchical feature fusion
            prev = bk
            branches.append(bk)
        cat = _prelu(jnp.concatenate(branches, axis=0),
                     cat_a[i * cn:(i + 1) * cn])
        h = _prelu(mm(exp_w[i * cout:(i + 1) * cout], cat) + resid,
                   out_a[i * cout:(i + 1) * cout])

    # ---- ECAAttention: GAP -> 1D conv (k=3) over channels -> sigmoid -> scale
    eca = eca_ref[...]                                  # (1, 4): w0, w1, w2, b
    m = jnp.mean(h, axis=1, keepdims=True)              # (Cout, 1)
    z1 = jnp.zeros((1, 1), jnp.float32)
    m_prev = jnp.concatenate([z1, m[:-1]], axis=0)
    m_next = jnp.concatenate([m[1:], z1], axis=0)
    z = (eca[0:1, 0:1] * m_prev + eca[0:1, 1:2] * m
         + eca[0:1, 2:3] * m_next + eca[0:1, 3:4])
    h = h * jax.nn.sigmoid(z)

    # ---- conv2 ---------------------------------------------------------------
    g = mm(c2_pw_ref[...],
           _dwconv3x3_flat(h * s2_ref[0], c2_dw_ref[...], 1, wu, masks))
    g = g * d2_ref[0] + nz2_ref[0]
    g = _leaky(g + c2_b_ref[...])
    o_hidden_ref[0] = g

    # ---- to_img: modulated 1x1 conv, no demodulation -------------------------
    o_img_ref[0] = mm(ti_w_ref[...], g * s3_ref[0]) + ti_b_ref[...]


# ----------------------------------------------------------------------------
# Plain-JAX glue (style affines, demod coefficients, constant tables, reshapes).
# ----------------------------------------------------------------------------
def _eq_linear(sty, w, b):
    # EqualLinear: runtime weight scale 1/sqrt(fan_in), bias init 1.
    return sty @ (w.T * (1.0 / math.sqrt(w.shape[1]))) + b[None, :]


def _style_scales(params, style, c4, cout):
    sty0 = style if style.ndim == 2 else style[:, 0, :]
    sty1 = style if style.ndim == 2 else style[:, 1, :]
    sty2 = style if style.ndim == 2 else style[:, 2, :]
    s_up = _eq_linear(sty0, params["up_aff_w"], params["up_aff_b"])
    s1 = _eq_linear(sty0, params["c1_aff_w"], params["c1_aff_b"]) / math.sqrt(c4 * 9)
    s2 = _eq_linear(sty1, params["c2_aff_w"], params["c2_aff_b"]) / math.sqrt(cout * 9)
    s3 = _eq_linear(sty2, params["ti_aff_w"], params["ti_aff_b"]) / math.sqrt(cout)
    return s_up, s1, s2, s3


def _build_idwt_mats(h, w):
    """(4*H*W, 4*H*W) stacked scatter matrices for ll/lh/hl/hh -> 2x IDWT."""
    hu, wu = 2 * h, 2 * w
    hw, l = h * w, hu * wu
    t = np.zeros((4, hw, l), np.float32)
    for i in range(h):
        for j in range(w):
            p = i * w + j
            for r in range(2):
                for c in range(2):
                    q = (2 * i + r) * wu + (2 * j + c)
                    sr = -1.0 if r else 1.0
                    sc = -1.0 if c else 1.0
                    t[0, p, q] = 0.5
                    t[1, p, q] = 0.5 * sc
                    t[2, p, q] = 0.5 * sr
                    t[3, p, q] = 0.5 * sr * sc
    return jnp.asarray(t.reshape(4 * hw, l))


def _build_col_masks(hu, wu):
    """(len(_DJ_OFFSETS), Hu*Wu) column-validity masks for the flat dw convs."""
    l = hu * wu
    col = np.arange(l, dtype=np.int64) % wu
    rows = []
    for dj in _DJ_OFFSETS:
        valid = (col + dj >= 0) & (col + dj < wu)
        rows.append(valid.astype(np.float32))
    return jnp.asarray(np.stack(rows, axis=0))


def _batch_spec(shape):
    nd = len(shape)
    return pl.BlockSpec((1,) + tuple(shape[1:]),
                        lambda b: (b,) + (0,) * (nd - 1))


def _full_spec(shape):
    nd = len(shape)
    return pl.BlockSpec(tuple(shape), lambda b: (0,) * nd)


@jax.jit
def mobile_synthesis_block_v5(params, hidden, style, en_feat, noise):
    N, cin, H, W = hidden.shape
    c4 = cin // 4
    cout = params["c2_pw"].shape[0]
    Hu, Wu = 2 * H, 2 * W
    HW, L = H * W, Hu * Wu
    f32 = jnp.float32
    hp = jax.lax.Precision.HIGHEST

    # Per-batch style scales and demodulation coefficients (tiny, plain JAX).
    s_up, s1, s2, s3 = _style_scales(params, style, c4, cout)
    dwsq1 = jnp.sum(params["c1_dw"] ** 2, axis=(1, 2))            # (c4,)
    dwsq2 = jnp.sum(params["c2_dw"] ** 2, axis=(1, 2))            # (cout,)
    d1 = jax.lax.rsqrt(
        jnp.einsum("nc,c,oc->no", s1 ** 2, dwsq1, params["c1_pw"] ** 2,
                   precision=hp) + 1e-8)
    d2 = jax.lax.rsqrt(
        jnp.einsum("nc,c,oc->no", s2 ** 2, dwsq2, params["c2_pw"] ** 2,
                   precision=hp) + 1e-8)

    def col(a):  # (N, C) -> (N, C, 1) column broadcast form
        return a[:, :, None].astype(f32)

    s_up_c, s1_c, s2_c, s3_c = col(s_up), col(s1), col(s2), col(s3)
    d1_c, d2_c = col(d1), col(d2)

    # Lane-dense (N, C, H*W) activations; noise strength folded in host-side.
    hid_flat = hidden.reshape(N, cin, HW).astype(f32)
    en_flat = en_feat.reshape(N, cout, L).astype(f32)
    nz1 = (params["c1_noise_w"] * noise[0]).reshape(N, 1, L).astype(f32)
    nz2 = (params["c2_noise_w"] * noise[1]).reshape(N, 1, L).astype(f32)

    # Static constant tables (built at trace time).
    idwt_T = _build_idwt_mats(H, W)                     # (4*HW, L)
    colmask = _build_col_masks(Hu, Wu)                  # (7, L)

    # Weights reshaped to kernel-friendly 2D layouts.
    c1_dw9 = params["c1_dw"].reshape(c4, 9)
    c2_dw9 = params["c2_dw"].reshape(cout, 9)
    ep_dw9 = params["eesp_dw"].reshape(-1, 9)
    c1_b = params["c1_bias"].reshape(cout, 1)
    c2_b = params["c2_bias"].reshape(cout, 1)
    ti_b = params["ti_bias"].reshape(12, 1)
    ep_proj_a = params["eesp_proj_a"].reshape(-1, 1)
    ep_cat_a = params["eesp_cat_a"].reshape(-1, 1)
    ep_out_a = params["eesp_out_a"].reshape(-1, 1)
    eca = jnp.concatenate([params["eca_w"], params["eca_b"][None]]).reshape(1, 4)

    batch_inputs = [hid_flat, en_flat, nz1, nz2,
                    s_up_c, s1_c, s2_c, s3_c, d1_c, d2_c]
    weight_inputs = [idwt_T, colmask,
                     c1_dw9, params["c1_pw"], c1_b,
                     c2_dw9, params["c2_pw"], c2_b,
                     params["ti_w"], ti_b,
                     params["eesp_proj_w"], ep_proj_a, ep_dw9,
                     ep_cat_a, params["eesp_exp_w"], ep_out_a,
                     eca]

    out_shape = (jax.ShapeDtypeStruct((N, cout, L), f32),
                 jax.ShapeDtypeStruct((N, 12, L), f32))

    kernel = functools.partial(_msb_kernel, Wu)

    hidden_out, img = pl.pallas_call(
        kernel,
        out_shape=out_shape,
        grid=(N,),
        in_specs=[_batch_spec(a.shape) for a in batch_inputs]
                 + [_full_spec(a.shape) for a in weight_inputs],
        out_specs=(_batch_spec((N, cout, L)), _batch_spec((N, 12, L))),
        compiler_params=pltpu.CompilerParams(
            dimension_semantics=("parallel",)),
    )(*batch_inputs, *weight_inputs)

    return (hidden_out.reshape(N, cout, Hu, Wu),
            img.reshape(N, 12, Hu, Wu))


# ----------------------------------------------------------------------------
# Deterministic parameter initialization (shapes follow the module __init__).
# ----------------------------------------------------------------------------
def init_params(key, channels_in, channels_out, style_dim):
    assert channels_in % 4 == 0 and channels_out % 3 == 0
    c4 = channels_in // 4
    n = channels_out // 3
    keys = iter(jax.random.split(key, 64))

    def nrm(shape, scale=1.0):
        return (scale * jax.random.normal(next(keys), shape)).astype(jnp.float32)

    p = {}
    # IDWTUpsaplme style modulation (EqualLinear, bias init 1)
    p["up_aff_w"] = nrm((channels_in, style_dim))
    p["up_aff_b"] = jnp.ones((channels_in,), jnp.float32)
    # conv1: ModulatedDWConv2d c4 -> Cout, k=3
    p["c1_aff_w"] = nrm((c4, style_dim))
    p["c1_aff_b"] = jnp.ones((c4,), jnp.float32)
    p["c1_dw"] = nrm((c4, 3, 3))
    p["c1_pw"] = nrm((channels_out, c4))
    p["c1_bias"] = jnp.zeros((channels_out, 1, 1), jnp.float32)
    p["c1_noise_w"] = jnp.float32(0.1)
    # conv2: ModulatedDWConv2d Cout -> Cout, k=3
    p["c2_aff_w"] = nrm((channels_out, style_dim))
    p["c2_aff_b"] = jnp.ones((channels_out,), jnp.float32)
    p["c2_dw"] = nrm((channels_out, 3, 3))
    p["c2_pw"] = nrm((channels_out, channels_out))
    p["c2_bias"] = jnp.zeros((channels_out, 1, 1), jnp.float32)
    p["c2_noise_w"] = jnp.float32(0.1)
    # to_img: MultichannelIamge Cout -> 12, k=1, demodulate=False
    p["ti_aff_w"] = nrm((channels_out, style_dim))
    p["ti_aff_b"] = jnp.ones((channels_out,), jnp.float32)
    p["ti_w"] = nrm((12, channels_out))
    p["ti_bias"] = jnp.zeros((12, 1, 1), jnp.float32)
    # 3 x EESP_V4 (stacked along the leading/channel axis)
    proj_w, proj_a, dw_w, cat_a, exp_w, out_a = [], [], [], [], [], []
    for _ in range(3):
        proj_w.append(nrm((n, channels_out), 1.0 / math.sqrt(channels_out)))
        proj_a.append(0.25 * jnp.ones((n, 1, 1), jnp.float32))
        for _ in range(3):
            dw_w.append(nrm((n, 3, 3), 1.0 / 3.0))
        cat_a.append(0.25 * jnp.ones((3 * n, 1, 1), jnp.float32))
        exp_w.append(nrm((channels_out, 3 * n), 1.0 / math.sqrt(3 * n)))
        out_a.append(0.25 * jnp.ones((channels_out, 1, 1), jnp.float32))
    p["eesp_proj_w"] = jnp.concatenate(proj_w, 0)   # (3n, Cout)
    p["eesp_proj_a"] = jnp.concatenate(proj_a, 0)   # (3n, 1, 1)
    p["eesp_dw"] = jnp.concatenate(dw_w, 0)         # (9n, 3, 3)
    p["eesp_cat_a"] = jnp.concatenate(cat_a, 0)     # (3*3n, 1, 1)
    p["eesp_exp_w"] = jnp.concatenate(exp_w, 0)     # (3*Cout, 3n)
    p["eesp_out_a"] = jnp.concatenate(out_a, 0)     # (3*Cout, 1, 1)
    # ECAAttention: Conv1d(1, 1, 3, padding=1) weight + bias
    p["eca_w"] = nrm((3,), 0.5)
    p["eca_b"] = nrm((), 0.1)
    return p


# ----------------------------------------------------------------------------
# Pure-JAX reference (uses lax.conv) for cross-checking the kernel.
# ----------------------------------------------------------------------------
def reference_forward(params, hidden, style, en_feat, noise):
    N, cin, H, W = hidden.shape
    c4 = cin // 4
    cout = params["c2_pw"].shape[0]
    n = cout // 3
    s_up, s1, s2, s3 = _style_scales(params, style, c4, cout)

    # IDWT upsample
    xm = hidden * s_up[:, :, None, None]
    ll, lh, hl, hh = jnp.split(xm, 4, axis=1)
    up = jnp.zeros((N, c4, 2 * H, 2 * W), jnp.float32)
    up = up.at[:, :, 0::2, 0::2].set(0.5 * (ll + lh + hl + hh))
    up = up.at[:, :, 0::2, 1::2].set(0.5 * (ll - lh + hl - hh))
    up = up.at[:, :, 1::2, 0::2].set(0.5 * (ll + lh - hl - hh))
    up = up.at[:, :, 1::2, 1::2].set(0.5 * (ll - lh - hl + hh))

    hp = jax.lax.Precision.HIGHEST

    def dw(x, w, d):
        C = x.shape[1]
        return jax.lax.conv_general_dilated(
            x, w.reshape(C, 1, 3, 3), (1, 1), [(d, d), (d, d)],
            rhs_dilation=(d, d), dimension_numbers=("NCHW", "OIHW", "NCHW"),
            feature_group_count=C, precision=hp)

    def pw(x, w):
        co, ci = w.shape
        return jax.lax.conv_general_dilated(
            x, w.reshape(co, ci, 1, 1), (1, 1), "VALID",
            dimension_numbers=("NCHW", "OIHW", "NCHW"), precision=hp)

    def leaky(x):
        return jnp.where(x >= 0, x, 0.2 * x)

    def prelu(x, a):
        return jnp.where(x >= 0, x, a[None] * x)

    def styled_conv(x, s, w_dw, w_pw, bias, nz, nz_w):
        y = pw(dw(x * s[:, :, None, None], w_dw, 1), w_pw)
        dwsq = jnp.sum(w_dw ** 2, axis=(1, 2))
        den = jnp.einsum("nc,c,oc->no", s ** 2, dwsq, w_pw ** 2, precision=hp)
        y = y * jax.lax.rsqrt(den + 1e-8)[:, :, None, None]
        y = y + nz_w * nz
        return leaky(y + bias[None])

    h = styled_conv(up, s1, params["c1_dw"], params["c1_pw"], params["c1_bias"],
                    noise[0], params["c1_noise_w"])
    h = h + en_feat

    for i in range(3):
        resid = h
        p = prelu(pw(h, params["eesp_proj_w"][i * n:(i + 1) * n]),
                  params["eesp_proj_a"][i * n:(i + 1) * n])
        prev = None
        branches = []
        for k, d in enumerate((1, 2, 4)):
            widx = i * 3 + k
            bk = dw(p, params["eesp_dw"][widx * n:(widx + 1) * n], d)
            if prev is not None:
                bk = bk + prev
            prev = bk
            branches.append(bk)
        cat = prelu(jnp.concatenate(branches, axis=1),
                    params["eesp_cat_a"][i * cout:(i + 1) * cout])
        h = prelu(pw(cat, params["eesp_exp_w"][i * cout:(i + 1) * cout]) + resid,
                  params["eesp_out_a"][i * cout:(i + 1) * cout])

    # ECA
    m = jnp.mean(h, axis=(2, 3))
    mp = jnp.pad(m, ((0, 0), (1, 1)))
    w = params["eca_w"]
    z = w[0] * mp[:, 0:cout] + w[1] * mp[:, 1:cout + 1] + w[2] * mp[:, 2:cout + 2]
    att = jax.nn.sigmoid(z + params["eca_b"])
    h = h * att[:, :, None, None]

    h = styled_conv(h, s2, params["c2_dw"], params["c2_pw"], params["c2_bias"],
                    noise[1], params["c2_noise_w"])
    img = pw(h * s3[:, :, None, None], params["ti_w"]) + params["ti_bias"][None]
    return h, img


if __name__ == "__main__":
    N, CIN, COUT, STYLE_DIM, H, W = 2, 16, 12, 8, 8, 8
    key = jax.random.PRNGKey(0)
    kp, kh, ks, ke, kn1, kn2 = jax.random.split(key, 6)

    params = init_params(kp, CIN, COUT, STYLE_DIM)
    hidden = jax.random.normal(kh, (N, CIN, H, W), jnp.float32)
    style = jax.random.normal(ks, (N, 3, STYLE_DIM), jnp.float32)  # wsize() == 3
    en_feat = jax.random.normal(ke, (N, COUT, 2 * H, 2 * W), jnp.float32)
    noise = (jax.random.normal(kn1, (N, 1, 2 * H, 2 * W), jnp.float32),
             jax.random.normal(kn2, (N, 1, 2 * H, 2 * W), jnp.float32))

    hidden_out, img = mobile_synthesis_block_v5(params, hidden, style, en_feat, noise)
    hidden_out, img = jax.block_until_ready((hidden_out, img))

    ref_hidden, ref_img = reference_forward(params, hidden, style, en_feat, noise)
    assert hidden_out.shape == (N, COUT, 2 * H, 2 * W) and img.shape == (N, 12, 2 * H, 2 * W)
    ok_h = bool(jnp.allclose(hidden_out, ref_hidden, rtol=5e-3, atol=5e-3))
    ok_i = bool(jnp.allclose(img, ref_img, rtol=5e-3, atol=5e-3))
    assert ok_h and ok_i, (
        float(jnp.max(jnp.abs(hidden_out - ref_hidden))),
        float(jnp.max(jnp.abs(img - ref_img))),
    )
    print("KERNEL_OK")
</pallas_src>

<mosaic_0001>
module attributes {stable_mosaic.version = 11 : i64} {
  func.func @_msb_kernel(%arg0: i32, %arg1: memref<1x16x64xf32, #tpu.memory_space<vmem>>, %arg2: memref<1x12x256xf32, #tpu.memory_space<vmem>>, %arg3: memref<1x1x256xf32, #tpu.memory_space<vmem>>, %arg4: memref<1x1x256xf32, #tpu.memory_space<vmem>>, %arg5: memref<1x16x1xf32, #tpu.memory_space<vmem>>, %arg6: memref<1x4x1xf32, #tpu.memory_space<vmem>>, %arg7: memref<1x12x1xf32, #tpu.memory_space<vmem>>, %arg8: memref<1x12x1xf32, #tpu.memory_space<vmem>>, %arg9: memref<1x12x1xf32, #tpu.memory_space<vmem>>, %arg10: memref<1x12x1xf32, #tpu.memory_space<vmem>>, %arg11: memref<256x256xf32, #tpu.memory_space<vmem>>, %arg12: memref<7x256xf32, #tpu.memory_space<vmem>>, %arg13: memref<4x9xf32, #tpu.memory_space<vmem>>, %arg14: memref<12x4xf32, #tpu.memory_space<vmem>>, %arg15: memref<12x1xf32, #tpu.memory_space<vmem>>, %arg16: memref<12x9xf32, #tpu.memory_space<vmem>>, %arg17: memref<12x12xf32, #tpu.memory_space<vmem>>, %arg18: memref<12x1xf32, #tpu.memory_space<vmem>>, %arg19: memref<12x12xf32, #tpu.memory_space<vmem>>, %arg20: memref<12x1xf32, #tpu.memory_space<vmem>>, %arg21: memref<12x12xf32, #tpu.memory_space<vmem>>, %arg22: memref<12x1xf32, #tpu.memory_space<vmem>>, %arg23: memref<36x9xf32, #tpu.memory_space<vmem>>, %arg24: memref<36x1xf32, #tpu.memory_space<vmem>>, %arg25: memref<36x12xf32, #tpu.memory_space<vmem>>, %arg26: memref<36x1xf32, #tpu.memory_space<vmem>>, %arg27: memref<1x4xf32, #tpu.memory_space<vmem>>, %arg28: memref<1x12x256xf32, #tpu.memory_space<vmem>>, %arg29: memref<1x12x256xf32, #tpu.memory_space<vmem>>) attributes {dimension_semantics = [#tpu.dimension_semantics<parallel>], iteration_bounds = array<i64: 2>, scalar_prefetch = 0 : i64, scratch_operands = 0 : i64, tpu.core_type = #tpu.core_type<tc>, window_params = [{transform_indices = @transform_0, window_bounds = array<i64: 1, 16, 64>}, {transform_indices = @transform_1, window_bounds = array<i64: 1, 12, 256>}, {transform_indices = @transform_2, window_bounds = array<i64: 1, 1, 256>}, {transform_indices = @transform_3, window_bounds = array<i64: 1, 1, 256>}, {transform_indices = @transform_4, window_bounds = array<i64: 1, 16, 1>}, {transform_indices = @transform_5, window_bounds = array<i64: 1, 4, 1>}, {transform_indices = @transform_6, window_bounds = array<i64: 1, 12, 1>}, {transform_indices = @transform_7, window_bounds = array<i64: 1, 12, 1>}, {transform_indices = @transform_8, window_bounds = array<i64: 1, 12, 1>}, {transform_indices = @transform_9, window_bounds = array<i64: 1, 12, 1>}, {pipeline_mode = #tpu.pipeline_mode<synchronous>, transform_indices = @transform_10, window_bounds = array<i64: 256, 256>}, {pipeline_mode = #tpu.pipeline_mode<synchronous>, transform_indices = @transform_11, window_bounds = array<i64: 7, 256>}, {pipeline_mode = #tpu.pipeline_mode<synchronous>, transform_indices = @transform_12, window_bounds = array<i64: 4, 9>}, {pipeline_mode = #tpu.pipeline_mode<synchronous>, transform_indices = @transform_13, window_bounds = array<i64: 12, 4>}, {pipeline_mode = #tpu.pipeline_mode<synchronous>, transform_indices = @transform_14, window_bounds = array<i64: 12, 1>}, {pipeline_mode = #tpu.pipeline_mode<synchronous>, transform_indices = @transform_15, window_bounds = array<i64: 12, 9>}, {pipeline_mode = #tpu.pipeline_mode<synchronous>, transform_indices = @transform_16, window_bounds = array<i64: 12, 12>}, {pipeline_mode = #tpu.pipeline_mode<synchronous>, transform_indices = @transform_17, window_bounds = array<i64: 12, 1>}, {pipeline_mode = #tpu.pipeline_mode<synchronous>, transform_indices = @transform_18, window_bounds = array<i64: 12, 12>}, {pipeline_mode = #tpu.pipeline_mode<synchronous>, transform_indices = @transform_19, window_bounds = array<i64: 12, 1>}, {pipeline_mode = #tpu.pipeline_mode<synchronous>, transform_indices = @transform_20, window_bounds = array<i64: 12, 12>}, {pipeline_mode = #tpu.pipeline_mode<synchronous>, transform_indices = @transform_21, window_bounds = array<i64: 12, 1>}, {pipeline_mode = #tpu.pipeline_mode<synchronous>, transform_indices = @transform_22, window_bounds = array<i64: 36, 9>}, {pipeline_mode = #tpu.pipeline_mode<synchronous>, transform_indices = @transform_23, window_bounds = array<i64: 36, 1>}, {pipeline_mode = #tpu.pipeline_mode<synchronous>, transform_indices = @transform_24, window_bounds = array<i64: 36, 12>}, {pipeline_mode = #tpu.pipeline_mode<synchronous>, transform_indices = @transform_25, window_bounds = array<i64: 36, 1>}, {pipeline_mode = #tpu.pipeline_mode<synchronous>, transform_indices = @transform_26, window_bounds = array<i64: 1, 4>}, {transform_indices = @transform_27, window_bounds = array<i64: 1, 12, 256>}, {transform_indices = @transform_28, window_bounds = array<i64: 1, 12, 256>}]} {
    %c0 = arith.constant 0 : index
    %c0_0 = arith.constant 0 : index
    %0 = vector.load %arg12[%c0, %c0_0] : memref<7x256xf32, #tpu.memory_space<vmem>>, vector<1x256xf32>
    %c1 = arith.constant 1 : index
    %c0_1 = arith.constant 0 : index
    %1 = vector.load %arg12[%c1, %c0_1] : memref<7x256xf32, #tpu.memory_space<vmem>>, vector<1x256xf32>
    %c2 = arith.constant 2 : index
    %c0_2 = arith.constant 0 : index
    %2 = vector.load %arg12[%c2, %c0_2] : memref<7x256xf32, #tpu.memory_space<vmem>>, vector<1x256xf32>
    %c4 = arith.constant 4 : index
    %c0_3 = arith.constant 0 : index
    %3 = vector.load %arg12[%c4, %c0_3] : memref<7x256xf32, #tpu.memory_space<vmem>>, vector<1x256xf32>
    %c5 = arith.constant 5 : index
    %c0_4 = arith.constant 0 : index
    %4 = vector.load %arg12[%c5, %c0_4] : memref<7x256xf32, #tpu.memory_space<vmem>>, vector<1x256xf32>
    %c6 = arith.constant 6 : index
    %c0_5 = arith.constant 0 : index
    %5 = vector.load %arg12[%c6, %c0_5] : memref<7x256xf32, #tpu.memory_space<vmem>>, vector<1x256xf32>
    %c0_6 = arith.constant 0 : index
    %c0_7 = arith.constant 0 : index
    %c0_8 = arith.constant 0 : index
    %6 = vector.load %arg1[%c0_6, %c0_7, %c0_8] : memref<1x16x64xf32, #tpu.memory_space<vmem>>, vector<1x16x64xf32>
    %7 = vector.shape_cast %6 : vector<1x16x64xf32> to vector<16x64xf32>
    %c0_9 = arith.constant 0 : index
    %c0_10 = arith.constant 0 : index
    %c0_11 = arith.constant 0 : index
    %8 = vector.load %arg5[%c0_9, %c0_10, %c0_11] : memref<1x16x1xf32, #tpu.memory_space<vmem>>, vector<1x16x1xf32>
    %9 = vector.shape_cast %8 : vector<1x16x1xf32> to vector<16x1xf32>
    %10 = vector.broadcast %9 : vector<16x1xf32> to vector<16x64xf32>
    %11 = arith.mulf %7, %10 : vector<16x64xf32>
    %12 = vector.extract_strided_slice %11 {offsets = [0, 0], sizes = [4, 64], strides = [1, 1]} : vector<16x64xf32> to vector<4x64xf32>
    %c0_12 = arith.constant 0 : index
    %c0_13 = arith.constant 0 : index
    %13 = vector.load %arg11[%c0_12, %c0_13] : memref<256x256xf32, #tpu.memory_space<vmem>>, vector<64x256xf32>
    %cst = arith.constant dense<0.000000e+00> : vector<4x256xf32>
    %14 = tpu.matmul %12, %13, %cst {dimension_numbers = #tpu.dot_dimension_numbers<[1], [0], [0], [1], [0, 0, 1, 1], [], []>, precision = #tpu.contract_precision<fp32>} : vector<4x64xf32>, vector<64x256xf32>, vector<4x256xf32> -> vector<4x256xf32>
    %15 = vector.extract_strided_slice %11 {offsets = [4, 0], sizes = [4, 64], strides = [1, 1]} : vector<16x64xf32> to vector<4x64xf32>
    %c64 = arith.constant 64 : index
    %c0_14 = arith.constant 0 : index
    %16 = vector.load %arg11[%c64, %c0_14] : memref<256x256xf32, #tpu.memory_space<vmem>>, vector<64x256xf32>
    %cst_15 = arith.constant dense<0.000000e+00> : vector<4x256xf32>
    %17 = tpu.matmul %15, %16, %cst_15 {dimension_numbers = #tpu.dot_dimension_numbers<[1], [0], [0], [1], [0, 0, 1, 1], [], []>, precision = #tpu.contract_precision<fp32>} : vector<4x64xf32>, vector<64x256xf32>, vector<4x256xf32> -> vector<4x256xf32>
    %18 = arith.addf %14, %17 : vector<4x256xf32>
    %19 = vector.extract_strided_slice %11 {offsets = [8, 0], sizes = [4, 64], strides = [1, 1]} : vector<16x64xf32> to vector<4x64xf32>
    %c128 = arith.constant 128 : index
    %c0_16 = arith.constant 0 : index
    %20 = vector.load %arg11[%c128, %c0_16] : memref<256x256xf32, #tpu.memory_space<vmem>>, vector<64x256xf32>
    %cst_17 = arith.constant dense<0.000000e+00> : vector<4x256xf32>
    %21 = tpu.matmul %19, %20, %cst_17 {dimension_numbers = #tpu.dot_dimension_numbers<[1], [0], [0], [1], [0, 0, 1, 1], [], []>, precision = #tpu.contract_precision<fp32>} : vector<4x64xf32>, vector<64x256xf32>, vector<4x256xf32> -> vector<4x256xf32>
    %22 = arith.addf %18, %21 : vector<4x256xf32>
    %23 = vector.extract_strided_slice %11 {offsets = [12, 0], sizes = [4, 64], strides = [1, 1]} : vector<16x64xf32> to vector<4x64xf32>
    %c192 = arith.constant 192 : index
    %c0_18 = arith.constant 0 : index
    %24 = vector.load %arg11[%c192, %c0_18] : memref<256x256xf32, #tpu.memory_space<vmem>>, vector<64x256xf32>
    %cst_19 = arith.constant dense<0.000000e+00> : vector<4x256xf32>
    %25 = tpu.matmul %23, %24, %cst_19 {dimension_numbers = #tpu.dot_dimension_numbers<[1], [0], [0], [1], [0, 0, 1, 1], [], []>, precision = #tpu.contract_precision<fp32>} : vector<4x64xf32>, vector<64x256xf32>, vector<4x256xf32> -> vector<4x256xf32>
    %26 = arith.addf %22, %25 : vector<4x256xf32>
    %c0_20 = arith.constant 0 : index
    %c0_21 = arith.constant 0 : index
    %27 = vector.load %arg14[%c0_20, %c0_21] : memref<12x4xf32, #tpu.memory_space<vmem>>, vector<12x4xf32>
    %c0_22 = arith.constant 0 : index
    %c0_23 = arith.constant 0 : index
    %c0_24 = arith.constant 0 : index
    %28 = vector.load %arg6[%c0_22, %c0_23, %c0_24] : memref<1x4x1xf32, #tpu.memory_space<vmem>>, vector<1x4x1xf32>
    %29 = vector.shape_cast %28 : vector<1x4x1xf32> to vector<4x1xf32>
    %30 = vector.broadcast %29 : vector<4x1xf32> to vector<4x256xf32>
    %31 = arith.mulf %26, %30 : vector<4x256xf32>
    %c0_25 = arith.constant 0 : index
    %c0_26 = arith.constant 0 : index
    %32 = vector.load %arg13[%c0_25, %c0_26] : memref<4x9xf32, #tpu.memory_space<vmem>>, vector<4x9xf32>
    %cst_27 = arith.constant 0.000000e+00 : f32
    %33 = vector.broadcast %cst_27 : f32 to vector<4x17xf32>
    %34 = vector.extract_strided_slice %31 {offsets = [0, 0], sizes = [4, 239], strides = [1, 1]} : vector<4x256xf32> to vector<4x239xf32>
    %35 = tpu.concatenate %33, %34 in 1 : vector<4x17xf32>, vector<4x239xf32> -> vector<4x256xf32>
    %36 = vector.broadcast %2 : vector<1x256xf32> to vector<4x256xf32>
    %37 = arith.mulf %35, %36 : vector<4x256xf32>
    %38 = vector.extract_strided_slice %32 {offsets = [0, 0], sizes = [4, 1], strides = [1, 1]} : vector<4x9xf32> to vector<4x1xf32>
    %39 = vector.broadcast %38 : vector<4x1xf32> to vector<4x256xf32>
    %40 = arith.mulf %39, %37 : vector<4x256xf32>
    %cst_28 = arith.constant 0.000000e+00 : f32
    %41 = vector.broadcast %cst_28 : f32 to vector<4x16xf32>
    %42 = vector.extract_strided_slice %31 {offsets = [0, 0], sizes = [4, 240], strides = [1, 1]} : vector<4x256xf32> to vector<4x240xf32>
    %43 = tpu.concatenate %41, %42 in 1 : vector<4x16xf32>, vector<4x240xf32> -> vector<4x256xf32>
    %44 = vector.extract_strided_slice %32 {offsets = [0, 1], sizes = [4, 1], strides = [1, 1]} : vector<4x9xf32> to vector<4x1xf32>
    %45 = vector.broadcast %44 : vector<4x1xf32> to vector<4x256xf32>
    %46 = arith.mulf %45, %43 : vector<4x256xf32>
    %47 = arith.addf %40, %46 : vector<4x256xf32>
    %cst_29 = arith.constant 0.000000e+00 : f32
    %48 = vector.broadcast %cst_29 : f32 to vector<4x15xf32>
    %49 = vector.extract_strided_slice %31 {offsets = [0, 0], sizes = [4, 241], strides = [1, 1]} : vector<4x256xf32> to vector<4x241xf32>
    %50 = tpu.concatenate %48, %49 in 1 : vector<4x15xf32>, vector<4x241xf32> -> vector<4x256xf32>
    %51 = vector.broadcast %3 : vector<1x256xf32> to vector<4x256xf32>
    %52 = arith.mulf %50, %51 : vector<4x256xf32>
    %53 = vector.extract_strided_slice %32 {offsets = [0, 2], sizes = [4, 1], strides = [1, 1]} : vector<4x9xf32> to vector<4x1xf32>
    %54 = vector.broadcast %53 : vector<4x1xf32> to vector<4x256xf32>
    %55 = arith.mulf %54, %52 : vector<4x256xf32>
    %56 = arith.addf %47, %55 : vector<4x256xf32>
    %cst_30 = arith.constant 0.000000e+00 : f32
    %57 = vector.broadcast %cst_30 : f32 to vector<4x1xf32>
    %58 = vector.extract_strided_slice %31 {offsets = [0, 0], sizes = [4, 255], strides = [1, 1]} : vector<4x256xf32> to vector<4x255xf32>
    %59 = tpu.concatenate %57, %58 in 1 : vector<4x1xf32>, vector<4x255xf32> -> vector<4x256xf32>
    %60 = vector.broadcast %2 : vector<1x256xf32> to vector<4x256xf32>
    %61 = arith.mulf %59, %60 : vector<4x256xf32>
    %62 = vector.extract_strided_slice %32 {offsets = [0, 3], sizes = [4, 1], strides = [1, 1]} : vector<4x9xf32> to vector<4x1xf32>
    %63 = vector.broadcast %62 : vector<4x1xf32> to vector<4x256xf32>
    %64 = arith.mulf %63, %61 : vector<4x256xf32>
    %65 = arith.addf %56, %64 : vector<4x256xf32>
    %66 = vector.extract_strided_slice %32 {offsets = [0, 4], sizes = [4, 1], strides = [1, 1]} : vector<4x9xf32> to vector<4x1xf32>
    %67 = vector.broadcast %66 : vector<4x1xf32> to vector<4x256xf32>
    %68 = arith.mulf %67, %31 : vector<4x256xf32>
    %69 = arith.addf %65, %68 : vector<4x256xf32>
    %cst_31 = arith.constant 0.000000e+00 : f32
    %70 = vector.broadcast %cst_31 : f32 to vector<4x1xf32>
    %71 = vector.extract_strided_slice %31 {offsets = [0, 1], sizes = [4, 255], strides = [1, 1]} : vector<4x256xf32> to vector<4x255xf32>
    %72 = tpu.concatenate %71, %70 in 1 : vector<4x255xf32>, vector<4x1xf32> -> vector<4x256xf32>
    %73 = vector.broadcast %3 : vector<1x256xf32> to vector<4x256xf32>
    %74 = arith.mulf %72, %73 : vector<4x256xf32>
    %75 = vector.extract_strided_slice %32 {offsets = [0, 5], sizes = [4, 1], strides = [1, 1]} : vector<4x9xf32> to vector<4x1xf32>
    %76 = vector.broadcast %75 : vector<4x1xf32> to vector<4x256xf32>
    %77 = arith.mulf %76, %74 : vector<4x256xf32>
    %78 = arith.addf %69, %77 : vector<4x256xf32>
    %cst_32 = arith.constant 0.000000e+00 : f32
    %79 = vector.broadcast %cst_32 : f32 to vector<4x15xf32>
    %80 = vector.extract_strided_slice %31 {offsets = [0, 15], sizes = [4, 241], strides = [1, 1]} : vector<4x256xf32> to vector<4x241xf32>
    %81 = tpu.concatenate %80, %79 in 1 : vector<4x241xf32>, vector<4x15xf32> -> vector<4x256xf32>
    %82 = vector.broadcast %2 : vector<1x256xf32> to vector<4x256xf32>
    %83 = arith.mulf %81, %82 : vector<4x256xf32>
    %84 = vector.extract_strided_slice %32 {offsets = [0, 6], sizes = [4, 1], strides = [1, 1]} : vector<4x9xf32> to vector<4x1xf32>
    %85 = vector.broadcast %84 : vector<4x1xf32> to vector<4x256xf32>
    %86 = arith.mulf %85, %83 : vector<4x256xf32>
    %87 = arith.addf %78, %86 : vector<4x256xf32>
    %cst_33 = arith.constant 0.000000e+00 : f32
    %88 = vector.broadcast %cst_33 : f32 to vector<4x16xf32>
    %89 = vector.extract_strided_slice %31 {offsets = [0, 16], sizes = [4, 240], strides = [1, 1]} : vector<4x256xf32> to vector<4x240xf32>
    %90 = tpu.concatenate %89, %88 in 1 : vector<4x240xf32>, vector<4x16xf32> -> vector<4x256xf32>
    %91 = vector.extract_strided_slice %32 {offsets = [0, 7], sizes = [4, 1], strides = [1, 1]} : vector<4x9xf32> to vector<4x1xf32>
    %92 = vector.broadcast %91 : vector<4x1xf32> to vector<4x256xf32>
    %93 = arith.mulf %92, %90 : vector<4x256xf32>
    %94 = arith.addf %87, %93 : vector<4x256xf32>
    %cst_34 = arith.constant 0.000000e+00 : f32
    %95 = vector.broadcast %cst_34 : f32 to vector<4x17xf32>
    %96 = vector.extract_strided_slice %31 {offsets = [0, 17], sizes = [4, 239], strides = [1, 1]} : vector<4x256xf32> to vector<4x239xf32>
    %97 = tpu.concatenate %96, %95 in 1 : vector<4x239xf32>, vector<4x17xf32> -> vector<4x256xf32>
    %98 = vector.broadcast %3 : vector<1x256xf32> to vector<4x256xf32>
    %99 = arith.mulf %97, %98 : vector<4x256xf32>
    %100 = vector.extract_strided_slice %32 {offsets = [0, 8], sizes = [4, 1], strides = [1, 1]} : vector<4x9xf32> to vector<4x1xf32>
    %101 = vector.broadcast %100 : vector<4x1xf32> to vector<4x256xf32>
    %102 = arith.mulf %101, %99 : vector<4x256xf32>
    %103 = arith.addf %94, %102 : vector<4x256xf32>
    %cst_35 = arith.constant dense<0.000000e+00> : vector<12x256xf32>
    %104 = tpu.matmul %27, %103, %cst_35 {dimension_numbers = #tpu.dot_dimension_numbers<[1], [0], [0], [1], [0, 0, 1, 1], [], []>, precision = #tpu.contract_precision<fp32>} : vector<12x4xf32>, vector<4x256xf32>, vector<12x256xf32> -> vector<12x256xf32>
    %c0_36 = arith.constant 0 : index
    %c0_37 = arith.constant 0 : index
    %c0_38 = arith.constant 0 : index
    %105 = vector.load %arg9[%c0_36, %c0_37, %c0_38] : memref<1x12x1xf32, #tpu.memory_space<vmem>>, vector<1x12x1xf32>
    %106 = vector.shape_cast %105 : vector<1x12x1xf32> to vector<12x1xf32>
    %107 = vector.broadcast %106 : vector<12x1xf32> to vector<12x256xf32>
    %108 = arith.mulf %104, %107 : vector<12x256xf32>
    %c0_39 = arith.constant 0 : index
    %c0_40 = arith.constant 0 : index
    %c0_41 = arith.constant 0 : index
    %109 = vector.load %arg3[%c0_39, %c0_40, %c0_41] : memref<1x1x256xf32, #tpu.memory_space<vmem>>, vector<1x1x256xf32>
    %110 = vector.shape_cast %109 : vector<1x1x256xf32> to vector<1x256xf32>
    %111 = vector.broadcast %110 : vector<1x256xf32> to vector<12x256xf32>
    %112 = arith.addf %108, %111 : vector<12x256xf32>
    %c0_42 = arith.constant 0 : index
    %c0_43 = arith.constant 0 : index
    %113 = vector.load %arg15[%c0_42, %c0_43] : memref<12x1xf32, #tpu.memory_space<vmem>>, vector<12x1xf32>
    %114 = vector.broadcast %113 : vector<12x1xf32> to vector<12x256xf32>
    %115 = arith.addf %112, %114 : vector<12x256xf32>
    %cst_44 = arith.constant 0.000000e+00 : f32
    %116 = vector.broadcast %cst_44 : f32 to vector<12x256xf32>
    %117 = arith.cmpf oge, %115, %116 : vector<12x256xf32>
    %cst_45 = arith.constant 2.000000e-01 : f32
    %118 = vector.broadcast %cst_45 : f32 to vector<12x256xf32>
    %119 = arith.mulf %118, %115 : vector<12x256xf32>
    %120 = arith.select %117, %115, %119 : vector<12x256xi1>, vector<12x256xf32>
    %c0_46 = arith.constant 0 : index
    %c0_47 = arith.constant 0 : index
    %c0_48 = arith.constant 0 : index
    %121 = vector.load %arg2[%c0_46, %c0_47, %c0_48] : memref<1x12x256xf32, #tpu.memory_space<vmem>>, vector<1x12x256xf32>
    %122 = vector.shape_cast %121 : vector<1x12x256xf32> to vector<12x256xf32>
    %123 = arith.addf %120, %122 : vector<12x256xf32>
    %c0_49 = arith.constant 0 : index
    %c0_50 = arith.constant 0 : index
    %124 = vector.load %arg21[%c0_49, %c0_50] : memref<12x12xf32, #tpu.memory_space<vmem>>, vector<12x12xf32>
    %c0_51 = arith.constant 0 : index
    %c0_52 = arith.constant 0 : index
    %125 = vector.load %arg22[%c0_51, %c0_52] : memref<12x1xf32, #tpu.memory_space<vmem>>, vector<12x1xf32>
    %c0_53 = arith.constant 0 : index
    %c0_54 = arith.constant 0 : index
    %126 = vector.load %arg23[%c0_53, %c0_54] : memref<36x9xf32, #tpu.memory_space<vmem>>, vector<36x9xf32>
    %c0_55 = arith.constant 0 : index
    %c0_56 = arith.constant 0 : index
    %127 = vector.load %arg24[%c0_55, %c0_56] : memref<36x1xf32, #tpu.memory_space<vmem>>, vector<36x1xf32>
    %c0_57 = arith.constant 0 : index
    %c0_58 = arith.constant 0 : index
    %128 = vector.load %arg25[%c0_57, %c0_58] : memref<36x12xf32, #tpu.memory_space<vmem>>, vector<36x12xf32>
    %c0_59 = arith.constant 0 : index
    %c0_60 = arith.constant 0 : index
    %129 = vector.load %arg26[%c0_59, %c0_60] : memref<36x1xf32, #tpu.memory_space<vmem>>, vector<36x1xf32>
    %130 = vector.extract_strided_slice %124 {offsets = [0, 0], sizes = [4, 12], strides = [1, 1]} : vector<12x12xf32> to vector<4x12xf32>
    %cst_61 = arith.constant dense<0.000000e+00> : vector<4x256xf32>
    %131 = tpu.matmul %130, %123, %cst_61 {dimension_numbers = #tpu.dot_dimension_numbers<[1], [0], [0], [1], [0, 0, 1, 1], [], []>, precision = #tpu.contract_precision<fp32>} : vector<4x12xf32>, vector<12x256xf32>, vector<4x256xf32> -> vector<4x256xf32>
    %132 = vector.extract_strided_slice %125 {offsets = [0, 0], sizes = [4, 1], strides = [1, 1]} : vector<12x1xf32> to vector<4x1xf32>
    %cst_62 = arith.constant 0.000000e+00 : f32
    %133 = vector.broadcast %cst_62 : f32 to vector<4x256xf32>
    %134 = arith.cmpf oge, %131, %133 : vector<4x256xf32>
    %135 = vector.broadcast %132 : vector<4x1xf32> to vector<4x256xf32>
    %136 = arith.mulf %135, %131 : vector<4x256xf32>
    %137 = arith.select %134, %131, %136 : vector<4x256xi1>, vector<4x256xf32>
    %138 = vector.extract_strided_slice %126 {offsets = [0, 0], sizes = [4, 9], strides = [1, 1]} : vector<36x9xf32> to vector<4x9xf32>
    %cst_63 = arith.constant 0.000000e+00 : f32
    %139 = vector.broadcast %cst_63 : f32 to vector<4x17xf32>
    %140 = vector.extract_strided_slice %137 {offsets = [0, 0], sizes = [4, 239], strides = [1, 1]} : vector<4x256xf32> to vector<4x239xf32>
    %141 = tpu.concatenate %139, %140 in 1 : vector<4x17xf32>, vector<4x239xf32> -> vector<4x256xf32>
    %142 = vector.broadcast %2 : vector<1x256xf32> to vector<4x256xf32>
    %143 = arith.mulf %141, %142 : vector<4x256xf32>
    %144 = vector.extract_strided_slice %138 {offsets = [0, 0], sizes = [4, 1], strides = [1, 1]} : vector<4x9xf32> to vector<4x1xf32>
    %145 = vector.broadcast %144 : vector<4x1xf32> to vector<4x256xf32>
    %146 = arith.mulf %145, %143 : vector<4x256xf32>
    %cst_64 = arith.constant 0.000000e+00 : f32
    %147 = vector.broadcast %cst_64 : f32 to vector<4x16xf32>
    %148 = vector.extract_strided_slice %137 {offsets = [0, 0], sizes = [4, 240], strides = [1, 1]} : vector<4x256xf32> to vector<4x240xf32>
    %149 = tpu.concatenate %147, %148 in 1 : vector<4x16xf32>, vector<4x240xf32> -> vector<4x256xf32>
    %150 = vector.extract_strided_slice %138 {offsets = [0, 1], sizes = [4, 1], strides = [1, 1]} : vector<4x9xf32> to vector<4x1xf32>
    %151 = vector.broadcast %150 : vector<4x1xf32> to vector<4x256xf32>
    %152 = arith.mulf %151, %149 : vector<4x256xf32>
    %153 = arith.addf %146, %152 : vector<4x256xf32>
    %cst_65 = arith.constant 0.000000e+00 : f32
    %154 = vector.broadcast %cst_65 : f32 to vector<4x15xf32>
    %155 = vector.extract_strided_slice %137 {offsets = [0, 0], sizes = [4, 241], strides = [1, 1]} : vector<4x256xf32> to vector<4x241xf32>
    %156 = tpu.concatenate %154, %155 in 1 : vector<4x15xf32>, vector<4x241xf32> -> vector<4x256xf32>
    %157 = vector.broadcast %3 : vector<1x256xf32> to vector<4x256xf32>
    %158 = arith.mulf %156, %157 : vector<4x256xf32>
    %159 = vector.extract_strided_slice %138 {offsets = [0, 2], sizes = [4, 1], strides = [1, 1]} : vector<4x9xf32> to vector<4x1xf32>
    %160 = vector.broadcast %159 : vector<4x1xf32> to vector<4x256xf32>
    %161 = arith.mulf %160, %158 : vector<4x256xf32>
    %162 = arith.addf %153, %161 : vector<4x256xf32>
    %cst_66 = arith.constant 0.000000e+00 : f32
    %163 = vector.broadcast %cst_66 : f32 to vector<4x1xf32>
    %164 = vector.extract_strided_slice %137 {offsets = [0, 0], sizes = [4, 255], strides = [1, 1]} : vector<4x256xf32> to vector<4x255xf32>
    %165 = tpu.concatenate %163, %164 in 1 : vector<4x1xf32>, vector<4x255xf32> -> vector<4x256xf32>
    %166 = vector.broadcast %2 : vector<1x256xf32> to vector<4x256xf32>
    %167 = arith.mulf %165, %166 : vector<4x256xf32>
    %168 = vector.extract_strided_slice %138 {offsets = [0, 3], sizes = [4, 1], strides = [1, 1]} : vector<4x9xf32> to vector<4x1xf32>
    %169 = vector.broadcast %168 : vector<4x1xf32> to vector<4x256xf32>
    %170 = arith.mulf %169, %167 : vector<4x256xf32>
    %171 = arith.addf %162, %170 : vector<4x256xf32>
    %172 = vector.extract_strided_slice %138 {offsets = [0, 4], sizes = [4, 1], strides = [1, 1]} : vector<4x9xf32> to vector<4x1xf32>
    %173 = vector.broadcast %172 : vector<4x1xf32> to vector<4x256xf32>
    %174 = arith.mulf %173, %137 : vector<4x256xf32>
    %175 = arith.addf %171, %174 : vector<4x256xf32>
    %cst_67 = arith.constant 0.000000e+00 : f32
    %176 = vector.broadcast %cst_67 : f32 to vector<4x1xf32>
    %177 = vector.extract_strided_slice %137 {offsets = [0, 1], sizes = [4, 255], strides = [1, 1]} : vector<4x256xf32> to vector<4x255xf32>
    %178 = tpu.concatenate %177, %176 in 1 : vector<4x255xf32>, vector<4x1xf32> -> vector<4x256xf32>
    %179 = vector.broadcast %3 : vector<1x256xf32> to vector<4x256xf32>
    %180 = arith.mulf %178, %179 : vector<4x256xf32>
    %181 = vector.extract_strided_slice %138 {offsets = [0, 5], sizes = [4, 1], strides = [1, 1]} : vector<4x9xf32> to vector<4x1xf32>
    %182 = vector.broadcast %181 : vector<4x1xf32> to vector<4x256xf32>
    %183 = arith.mulf %182, %180 : vector<4x256xf32>
    %184 = arith.addf %175, %183 : vector<4x256xf32>
    %cst_68 = arith.constant 0.000000e+00 : f32
    %185 = vector.broadcast %cst_68 : f32 to vector<4x15xf32>
    %186 = vector.extract_strided_slice %137 {offsets = [0, 15], sizes = [4, 241], strides = [1, 1]} : vector<4x256xf32> to vector<4x241xf32>
    %187 = tpu.concatenate %186, %185 in 1 : vector<4x241xf32>, vector<4x15xf32> -> vector<4x256xf32>
    %188 = vector.broadcast %2 : vector<1x256xf32> to vector<4x256xf32>
    %189 = arith.mulf %187, %188 : vector<4x256xf32>
    %190 = vector.extract_strided_slice %138 {offsets = [0, 6], sizes = [4, 1], strides = [1, 1]} : vector<4x9xf32> to vector<4x1xf32>
    %191 = vector.broadcast %190 : vector<4x1xf32> to vector<4x256xf32>
    %192 = arith.mulf %191, %189 : vector<4x256xf32>
    %193 = arith.addf %184, %192 : vector<4x256xf32>
    %cst_69 = arith.constant 0.000000e+00 : f32
    %194 = vector.broadcast %cst_69 : f32 to vector<4x16xf32>
    %195 = vector.extract_strided_slice %137 {offsets = [0, 16], sizes = [4, 240], strides = [1, 1]} : vector<4x256xf32> to vector<4x240xf32>
    %196 = tpu.concatenate %195, %194 in 1 : vector<4x240xf32>, vector<4x16xf32> -> vector<4x256xf32>
    %197 = vector.extract_strided_slice %138 {offsets = [0, 7], sizes = [4, 1], strides = [1, 1]} : vector<4x9xf32> to vector<4x1xf32>
    %198 = vector.broadcast %197 : vector<4x1xf32> to vector<4x256xf32>
    %199 = arith.mulf %198, %196 : vector<4x256xf32>
    %200 = arith.addf %193, %199 : vector<4x256xf32>
    %cst_70 = arith.constant 0.000000e+00 : f32
    %201 = vector.broadcast %cst_70 : f32 to vector<4x17xf32>
    %202 = vector.extract_strided_slice %137 {offsets = [0, 17], sizes = [4, 239], strides = [1, 1]} : vector<4x256xf32> to vector<4x239xf32>
    %203 = tpu.concatenate %202, %201 in 1 : vector<4x239xf32>, vector<4x17xf32> -> vector<4x256xf32>
    %204 = vector.broadcast %3 : vector<1x256xf32> to vector<4x256xf32>
    %205 = arith.mulf %203, %204 : vector<4x256xf32>
    %206 = vector.extract_strided_slice %138 {offsets = [0, 8], sizes = [4, 1], strides = [1, 1]} : vector<4x9xf32> to vector<4x1xf32>
    %207 = vector.broadcast %206 : vector<4x1xf32> to vector<4x256xf32>
    %208 = arith.mulf %207, %205 : vector<4x256xf32>
    %209 = arith.addf %200, %208 : vector<4x256xf32>
    %210 = vector.extract_strided_slice %126 {offsets = [4, 0], sizes = [4, 9], strides = [1, 1]} : vector<36x9xf32> to vector<4x9xf32>
    %cst_71 = arith.constant 0.000000e+00 : f32
    %211 = vector.broadcast %cst_71 : f32 to vector<4x34xf32>
    %212 = vector.extract_strided_slice %137 {offsets = [0, 0], sizes = [4, 222], strides = [1, 1]} : vector<4x256xf32> to vector<4x222xf32>
    %213 = tpu.concatenate %211, %212 in 1 : vector<4x34xf32>, vector<4x222xf32> -> vector<4x256xf32>
    %214 = vector.broadcast %1 : vector<1x256xf32> to vector<4x256xf32>
    %215 = arith.mulf %213, %214 : vector<4x256xf32>
    %216 = vector.extract_strided_slice %210 {offsets = [0, 0], sizes = [4, 1], strides = [1, 1]} : vector<4x9xf32> to vector<4x1xf32>
    %217 = vector.broadcast %216 : vector<4x1xf32> to vector<4x256xf32>
    %218 = arith.mulf %217, %215 : vector<4x256xf32>
    %cst_72 = arith.constant 0.000000e+00 : f32
    %219 = vector.broadcast %cst_72 : f32 to vector<4x32xf32>
    %220 = vector.extract_strided_slice %137 {offsets = [0, 0], sizes = [4, 224], strides = [1, 1]} : vector<4x256xf32> to vector<4x224xf32>
    %221 = tpu.concatenate %219, %220 in 1 : vector<4x32xf32>, vector<4x224xf32> -> vector<4x256xf32>
    %222 = vector.extract_strided_slice %210 {offsets = [0, 1], sizes = [4, 1], strides = [1, 1]} : vector<4x9xf32> to vector<4x1xf32>
    %223 = vector.broadcast %222 : vector<4x1xf32> to vector<4x256xf32>
    %224 = arith.mulf %223, %221 : vector<4x256xf32>
    %225 = arith.addf %218, %224 : vector<4x256xf32>
    %cst_73 = arith.constant 0.000000e+00 : f32
    %226 = vector.broadcast %cst_73 : f32 to vector<4x30xf32>
    %227 = vector.extract_strided_slice %137 {offsets = [0, 0], sizes = [4, 226], strides = [1, 1]} : vector<4x256xf32> to vector<4x226xf32>
    %228 = tpu.concatenate %226, %227 in 1 : vector<4x30xf32>, vector<4x226xf32> -> vector<4x256xf32>
    %229 = vector.broadcast %4 : vector<1x256xf32> to vector<4x256xf32>
    %230 = arith.mulf %228, %229 : vector<4x256xf32>
    %231 = vector.extract_strided_slice %210 {offsets = [0, 2], sizes = [4, 1], strides = [1, 1]} : vector<4x9xf32> to vector<4x1xf32>
    %232 = vector.broadcast %231 : vector<4x1xf32> to vector<4x256xf32>
    %233 = arith.mulf %232, %230 : vector<4x256xf32>
    %234 = arith.addf %225, %233 : vector<4x256xf32>
    %cst_74 = arith.constant 0.000000e+00 : f32
    %235 = vector.broadcast %cst_74 : f32 to vector<4x2xf32>
    %236 = vector.extract_strided_slice %137 {offsets = [0, 0], sizes = [4, 254], strides = [1, 1]} : vector<4x256xf32> to vector<4x254xf32>
    %237 = tpu.concatenate %235, %236 in 1 : vector<4x2xf32>, vector<4x254xf32> -> vector<4x256xf32>
    %238 = vector.broadcast %1 : vector<1x256xf32> to vector<4x256xf32>
    %239 = arith.mulf %237, %238 : vector<4x256xf32>
    %240 = vector.extract_strided_slice %210 {offsets = [0, 3], sizes = [4, 1], strides = [1, 1]} : vector<4x9xf32> to vector<4x1xf32>
    %241 = vector.broadcast %240 : vector<4x1xf32> to vector<4x256xf32>
    %242 = arith.mulf %241, %239 : vector<4x256xf32>
    %243 = arith.addf %234, %242 : vector<4x256xf32>
    %244 = vector.extract_strided_slice %210 {offsets = [0, 4], sizes = [4, 1], strides = [1, 1]} : vector<4x9xf32> to vector<4x1xf32>
    %245 = vector.broadcast %244 : vector<4x1xf32> to vector<4x256xf32>
    %246 = arith.mulf %245, %137 : vector<4x256xf32>
    %247 = arith.addf %243, %246 : vector<4x256xf32>
    %cst_75 = arith.constant 0.000000e+00 : f32
    %248 = vector.broadcast %cst_75 : f32 to vector<4x2xf32>
    %249 = vector.extract_strided_slice %137 {offsets = [0, 2], sizes = [4, 254], strides = [1, 1]} : vector<4x256xf32> to vector<4x254xf32>
    %250 = tpu.concatenate %249, %248 in 1 : vector<4x254xf32>, vector<4x2xf32> -> vector<4x256xf32>
    %251 = vector.broadcast %4 : vector<1x256xf32> to vector<4x256xf32>
    %252 = arith.mulf %250, %251 : vector<4x256xf32>
    %253 = vector.extract_strided_slice %210 {offsets = [0, 5], sizes = [4, 1], strides = [1, 1]} : vector<4x9xf32> to vector<4x1xf32>
    %254 = vector.broadcast %253 : vector<4x1xf32> to vector<4x256xf32>
    %255 = arith.mulf %254, %252 : vector<4x256xf32>
    %256 = arith.addf %247, %255 : vector<4x256xf32>
    %cst_76 = arith.constant 0.000000e+00 : f32
    %257 = vector.broadcast %cst_76 : f32 to vector<4x30xf32>
    %258 = vector.extract_strided_slice %137 {offsets = [0, 30], sizes = [4, 226], strides = [1, 1]} : vector<4x256xf32> to vector<4x226xf32>
    %259 = tpu.concatenate %258, %257 in 1 : vector<4x226xf32>, vector<4x30xf32> -> vector<4x256xf32>
    %260 = vector.broadcast %1 : vector<1x256xf32> to vector<4x256xf32>
    %261 = arith.mulf %259, %260 : vector<4x256xf32>
    %262 = vector.extract_strided_slice %210 {offsets = [0, 6], sizes = [4, 1], strides = [1, 1]} : vector<4x9xf32> to vector<4x1xf32>
    %263 = vector.broadcast %262 : vector<4x1xf32> to vector<4x256xf32>
    %264 = arith.mulf %263, %261 : vector<4x256xf32>
    %265 = arith.addf %256, %264 : vector<4x256xf32>
    %cst_77 = arith.constant 0.000000e+00 : f32
    %266 = vector.broadcast %cst_77 : f32 to vector<4x32xf32>
    %267 = vector.extract_strided_slice %137 {offsets = [0, 32], sizes = [4, 224], strides = [1, 1]} : vector<4x256xf32> to vector<4x224xf32>
    %268 = tpu.concatenate %267, %266 in 1 : vector<4x224xf32>, vector<4x32xf32> -> vector<4x256xf32>
    %269 = vector.extract_strided_slice %210 {offsets = [0, 7], sizes = [4, 1], strides = [1, 1]} : vector<4x9xf32> to vector<4x1xf32>
    %270 = vector.broadcast %269 : vector<4x1xf32> to vector<4x256xf32>
    %271 = arith.mulf %270, %268 : vector<4x256xf32>
    %272 = arith.addf %265, %271 : vector<4x256xf32>
    %cst_78 = arith.constant 0.000000e+00 : f32
    %273 = vector.broadcast %cst_78 : f32 to vector<4x34xf32>
    %274 = vector.extract_strided_slice %137 {offsets = [0, 34], sizes = [4, 222], strides = [1, 1]} : vector<4x256xf32> to vector<4x222xf32>
    %275 = tpu.concatenate %274, %273 in 1 : vector<4x222xf32>, vector<4x34xf32> -> vector<4x256xf32>
    %276 = vector.broadcast %4 : vector<1x256xf32> to vector<4x256xf32>
    %277 = arith.mulf %275, %276 : vector<4x256xf32>
    %278 = vector.extract_strided_slice %210 {offsets = [0, 8], sizes = [4, 1], strides = [1, 1]} : vector<4x9xf32> to vector<4x1xf32>
    %279 = vector.broadcast %278 : vector<4x1xf32> to vector<4x256xf32>
    %280 = arith.mulf %279, %277 : vector<4x256xf32>
    %281 = arith.addf %272, %280 : vector<4x256xf32>
    %282 = arith.addf %281, %209 : vector<4x256xf32>
    %283 = vector.extract_strided_slice %126 {offsets = [8, 0], sizes = [4, 9], strides = [1, 1]} : vector<36x9xf32> to vector<4x9xf32>
    %cst_79 = arith.constant 0.000000e+00 : f32
    %284 = vector.broadcast %cst_79 : f32 to vector<4x68xf32>
    %285 = vector.extract_strided_slice %137 {offsets = [0, 0], sizes = [4, 188], strides = [1, 1]} : vector<4x256xf32> to vector<4x188xf32>
    %286 = tpu.concatenate %284, %285 in 1 : vector<4x68xf32>, vector<4x188xf32> -> vector<4x256xf32>
    %287 = vector.broadcast %0 : vector<1x256xf32> to vector<4x256xf32>
    %288 = arith.mulf %286, %287 : vector<4x256xf32>
    %289 = vector.extract_strided_slice %283 {offsets = [0, 0], sizes = [4, 1], strides = [1, 1]} : vector<4x9xf32> to vector<4x1xf32>
    %290 = vector.broadcast %289 : vector<4x1xf32> to vector<4x256xf32>
    %291 = arith.mulf %290, %288 : vector<4x256xf32>
    %cst_80 = arith.constant 0.000000e+00 : f32
    %292 = vector.broadcast %cst_80 : f32 to vector<4x64xf32>
    %293 = vector.extract_strided_slice %137 {offsets = [0, 0], sizes = [4, 192], strides = [1, 1]} : vector<4x256xf32> to vector<4x192xf32>
    %294 = tpu.concatenate %292, %293 in 1 : vector<4x64xf32>, vector<4x192xf32> -> vector<4x256xf32>
    %295 = vector.extract_strided_slice %283 {offsets = [0, 1], sizes = [4, 1], strides = [1, 1]} : vector<4x9xf32> to vector<4x1xf32>
    %296 = vector.broadcast %295 : vector<4x1xf32> to vector<4x256xf32>
    %297 = arith.mulf %296, %294 : vector<4x256xf32>
    %298 = arith.addf %291, %297 : vector<4x256xf32>
    %cst_81 = arith.constant 0.000000e+00 : f32
    %299 = vector.broadcast %cst_81 : f32 to vector<4x60xf32>
    %300 = vector.extract_strided_slice %137 {offsets = [0, 0], sizes = [4, 196], strides = [1, 1]} : vector<4x256xf32> to vector<4x196xf32>
    %301 = tpu.concatenate %299, %300 in 1 : vector<4x60xf32>, vector<4x196xf32> -> vector<4x256xf32>
    %302 = vector.broadcast %5 : vector<1x256xf32> to vector<4x256xf32>
    %303 = arith.mulf %301, %302 : vector<4x256xf32>
    %304 = vector.extract_strided_slice %283 {offsets = [0, 2], sizes = [4, 1], strides = [1, 1]} : vector<4x9xf32> to vector<4x1xf32>
    %305 = vector.broadcast %304 : vector<4x1xf32> to vector<4x256xf32>
    %306 = arith.mulf %305, %303 : vector<4x256xf32>
    %307 = arith.addf %298, %306 : vector<4x256xf32>
    %cst_82 = arith.constant 0.000000e+00 : f32
    %308 = vector.broadcast %cst_82 : f32 to vector<4x4xf32>
    %309 = vector.extract_strided_slice %137 {offsets = [0, 0], sizes = [4, 252], strides = [1, 1]} : vector<4x256xf32> to vector<4x252xf32>
    %310 = tpu.concatenate %308, %309 in 1 : vector<4x4xf32>, vector<4x252xf32> -> vector<4x256xf32>
    %311 = vector.broadcast %0 : vector<1x256xf32> to vector<4x256xf32>
    %312 = arith.mulf %310, %311 : vector<4x256xf32>
    %313 = vector.extract_strided_slice %283 {offsets = [0, 3], sizes = [4, 1], strides = [1, 1]} : vector<4x9xf32> to vector<4x1xf32>
    %314 = vector.broadcast %313 : vector<4x1xf32> to vector<4x256xf32>
    %315 = arith.mulf %314, %312 : vector<4x256xf32>
    %316 = arith.addf %307, %315 : vector<4x256xf32>
    %317 = vector.extract_strided_slice %283 {offsets = [0, 4], sizes = [4, 1], strides = [1, 1]} : vector<4x9xf32> to vector<4x1xf32>
    %318 = vector.broadcast %317 : vector<4x1xf32> to vector<4x256xf32>
    %319 = arith.mulf %318, %137 : vector<4x256xf32>
    %320 = arith.addf %316, %319 : vector<4x256xf32>
    %cst_83 = arith.constant 0.000000e+00 : f32
    %321 = vector.broadcast %cst_83 : f32 to vector<4x4xf32>
    %322 = vector.extract_strided_slice %137 {offsets = [0, 4], sizes = [4, 252], strides = [1, 1]} : vector<4x256xf32> to vector<4x252xf32>
    %323 = tpu.concatenate %322, %321 in 1 : vector<4x252xf32>, vector<4x4xf32> -> vector<4x256xf32>
    %324 = vector.broadcast %5 : vector<1x256xf32> to vector<4x256xf32>
    %325 = arith.mulf %323, %324 : vector<4x256xf32>
    %326 = vector.extract_strided_slice %283 {offsets = [0, 5], sizes = [4, 1], strides = [1, 1]} : vector<4x9xf32> to vector<4x1xf32>
    %327 = vector.broadcast %326 : vector<4x1xf32> to vector<4x256xf32>
    %328 = arith.mulf %327, %325 : vector<4x256xf32>
    %329 = arith.addf %320, %328 : vector<4x256xf32>
    %cst_84 = arith.constant 0.000000e+00 : f32
    %330 = vector.broadcast %cst_84 : f32 to vector<4x60xf32>
    %331 = vector.extract_strided_slice %137 {offsets = [0, 60], sizes = [4, 196], strides = [1, 1]} : vector<4x256xf32> to vector<4x196xf32>
    %332 = tpu.concatenate %331, %330 in 1 : vector<4x196xf32>, vector<4x60xf32> -> vector<4x256xf32>
    %333 = vector.broadcast %0 : vector<1x256xf32> to vector<4x256xf32>
    %334 = arith.mulf %332, %333 : vector<4x256xf32>
    %335 = vector.extract_strided_slice %283 {offsets = [0, 6], sizes = [4, 1], strides = [1, 1]} : vector<4x9xf32> to vector<4x1xf32>
    %336 = vector.broadcast %335 : vector<4x1xf32> to vector<4x256xf32>
    %337 = arith.mulf %336, %334 : vector<4x256xf32>
    %338 = arith.addf %329, %337 : vector<4x256xf32>
    %cst_85 = arith.constant 0.000000e+00 : f32
    %339 = vector.broadcast %cst_85 : f32 to vector<4x64xf32>
    %340 = vector.extract_strided_slice %137 {offsets = [0, 64], sizes = [4, 192], strides = [1, 1]} : vector<4x256xf32> to vector<4x192xf32>
    %341 = tpu.concatenate %340, %339 in 1 : vector<4x192xf32>, vector<4x64xf32> -> vector<4x256xf32>
    %342 = vector.extract_strided_slice %283 {offsets = [0, 7], sizes = [4, 1], strides = [1, 1]} : vector<4x9xf32> to vector<4x1xf32>
    %343 = vector.broadcast %342 : vector<4x1xf32> to vector<4x256xf32>
    %344 = arith.mulf %343, %341 : vector<4x256xf32>
    %345 = arith.addf %338, %344 : vector<4x256xf32>
    %cst_86 = arith.constant 0.000000e+00 : f32
    %346 = vector.broadcast %cst_86 : f32 to vector<4x68xf32>
    %347 = vector.extract_strided_slice %137 {offsets = [0, 68], sizes = [4, 188], strides = [1, 1]} : vector<4x256xf32> to vector<4x188xf32>
    %348 = tpu.concatenate %347, %346 in 1 : vector<4x188xf32>, vector<4x68xf32> -> vector<4x256xf32>
    %349 = vector.broadcast %5 : vector<1x256xf32> to vector<4x256xf32>
    %350 = arith.mulf %348, %349 : vector<4x256xf32>
    %351 = vector.extract_strided_slice %283 {offsets = [0, 8], sizes = [4, 1], strides = [1, 1]} : vector<4x9xf32> to vector<4x1xf32>
    %352 = vector.broadcast %351 : vector<4x1xf32> to vector<4x256xf32>
    %353 = arith.mulf %352, %350 : vector<4x256xf32>
    %354 = arith.addf %345, %353 : vector<4x256xf32>
    %355 = arith.addf %354, %282 : vector<4x256xf32>
    %356 = tpu.concatenate %209, %282, %355 in 0 : vector<4x256xf32>, vector<4x256xf32>, vector<4x256xf32> -> vector<12x256xf32>
    %357 = vector.extract_strided_slice %127 {offsets = [0, 0], sizes = [12, 1], strides = [1, 1]} : vector<36x1xf32> to vector<12x1xf32>
    %cst_87 = arith.constant 0.000000e+00 : f32
    %358 = vector.broadcast %cst_87 : f32 to vector<12x256xf32>
    %359 = arith.cmpf oge, %356, %358 : vector<12x256xf32>
    %360 = vector.broadcast %357 : vector<12x1xf32> to vector<12x256xf32>
    %361 = arith.mulf %360, %356 : vector<12x256xf32>
    %362 = arith.select %359, %356, %361 : vector<12x256xi1>, vector<12x256xf32>
    %363 = vector.extract_strided_slice %128 {offsets = [0, 0], sizes = [12, 12], strides = [1, 1]} : vector<36x12xf32> to vector<12x12xf32>
    %cst_88 = arith.constant dense<0.000000e+00> : vector<12x256xf32>
    %364 = tpu.matmul %363, %362, %cst_88 {dimension_numbers = #tpu.dot_dimension_numbers<[1], [0], [0], [1], [0, 0, 1, 1], [], []>, precision = #tpu.contract_precision<fp32>} : vector<12x12xf32>, vector<12x256xf32>, vector<12x256xf32> -> vector<12x256xf32>
    %365 = arith.addf %364, %123 : vector<12x256xf32>
    %366 = vector.extract_strided_slice %129 {offsets = [0, 0], sizes = [12, 1], strides = [1, 1]} : vector<36x1xf32> to vector<12x1xf32>
    %cst_89 = arith.constant 0.000000e+00 : f32
    %367 = vector.broadcast %cst_89 : f32 to vector<12x256xf32>
    %368 = arith.cmpf oge, %365, %367 : vector<12x256xf32>
    %369 = vector.broadcast %366 : vector<12x1xf32> to vector<12x256xf32>
    %370 = arith.mulf %369, %365 : vector<12x256xf32>
    %371 = arith.select %368, %365, %370 : vector<12x256xi1>, vector<12x256xf32>
    %372 = vector.extract_strided_slice %124 {offsets = [4, 0], sizes = [4, 12], strides = [1, 1]} : vector<12x12xf32> to vector<4x12xf32>
    %cst_90 = arith.constant dense<0.000000e+00> : vector<4x256xf32>
    %373 = tpu.matmul %372, %371, %cst_90 {dimension_numbers = #tpu.dot_dimension_numbers<[1], [0], [0], [1], [0, 0, 1, 1], [], []>, precision = #tpu.contract_precision<fp32>} : vector<4x12xf32>, vector<12x256xf32>, vector<4x256xf32> -> vector<4x256xf32>
    %374 = vector.extract_strided_slice %125 {offsets = [4, 0], sizes = [4, 1], strides = [1, 1]} : vector<12x1xf32> to vector<4x1xf32>
    %cst_91 = arith.constant 0.000000e+00 : f32
    %375 = vector.broadcast %cst_91 : f32 to vector<4x256xf32>
    %376 = arith.cmpf oge, %373, %375 : vector<4x256xf32>
    %377 = vector.broadcast %374 : vector<4x1xf32> to vector<4x256xf32>
    %378 = arith.mulf %377, %373 : vector<4x256xf32>
    %379 = arith.select %376, %373, %378 : vector<4x256xi1>, vector<4x256xf32>
    %380 = vector.extract_strided_slice %126 {offsets = [12, 0], sizes = [4, 9], strides = [1, 1]} : vector<36x9xf32> to vector<4x9xf32>
    %cst_92 = arith.constant 0.000000e+00 : f32
    %381 = vector.broadcast %cst_92 : f32 to vector<4x17xf32>
    %382 = vector.extract_strided_slice %379 {offsets = [0, 0], sizes = [4, 239], strides = [1, 1]} : vector<4x256xf32> to vector<4x239xf32>
    %383 = tpu.concatenate %381, %382 in 1 : vector<4x17xf32>, vector<4x239xf32> -> vector<4x256xf32>
    %384 = vector.broadcast %2 : vector<1x256xf32> to vector<4x256xf32>
    %385 = arith.mulf %383, %384 : vector<4x256xf32>
    %386 = vector.extract_strided_slice %380 {offsets = [0, 0], sizes = [4, 1], strides = [1, 1]} : vector<4x9xf32> to vector<4x1xf32>
    %387 = vector.broadcast %386 : vector<4x1xf32> to vector<4x256xf32>
    %388 = arith.mulf %387, %385 : vector<4x256xf32>
    %cst_93 = arith.constant 0.000000e+00 : f32
    %389 = vector.broadcast %cst_93 : f32 to vector<4x16xf32>
    %390 = vector.extract_strided_slice %379 {offsets = [0, 0], sizes = [4, 240], strides = [1, 1]} : vector<4x256xf32> to vector<4x240xf32>
    %391 = tpu.concatenate %389, %390 in 1 : vector<4x16xf32>, vector<4x240xf32> -> vector<4x256xf32>
    %392 = vector.extract_strided_slice %380 {offsets = [0, 1], sizes = [4, 1], strides = [1, 1]} : vector<4x9xf32> to vector<4x1xf32>
    %393 = vector.broadcast %392 : vector<4x1xf32> to vector<4x256xf32>
    %394 = arith.mulf %393, %391 : vector<4x256xf32>
    %395 = arith.addf %388, %394 : vector<4x256xf32>
    %cst_94 = arith.constant 0.000000e+00 : f32
    %396 = vector.broadcast %cst_94 : f32 to vector<4x15xf32>
    %397 = vector.extract_strided_slice %379 {offsets = [0, 0], sizes = [4, 241], strides = [1, 1]} : vector<4x256xf32> to vector<4x241xf32>
    %398 = tpu.concatenate %396, %397 in 1 : vector<4x15xf32>, vector<4x241xf32> -> vector<4x256xf32>
    %399 = vector.broadcast %3 : vector<1x256xf32> to vector<4x256xf32>
    %400 = arith.mulf %398, %399 : vector<4x256xf32>
    %401 = vector.extract_strided_slice %380 {offsets = [0, 2], sizes = [4, 1], strides = [1, 1]} : vector<4x9xf32> to vector<4x1xf32>
    %402 = vector.broadcast %401 : vector<4x1xf32> to vector<4x256xf32>
    %403 = arith.mulf %402, %400 : vector<4x256xf32>
    %404 = arith.addf %395, %403 : vector<4x256xf32>
    %cst_95 = arith.constant 0.000000e+00 : f32
    %405 = vector.broadcast %cst_95 : f32 to vector<4x1xf32>
    %406 = vector.extract_strided_slice %379 {offsets = [0, 0], sizes = [4, 255], strides = [1, 1]} : vector<4x256xf32> to vector<4x255xf32>
    %407 = tpu.concatenate %405, %406 in 1 : vector<4x1xf32>, vector<4x255xf32> -> vector<4x256xf32>
    %408 = vector.broadcast %2 : vector<1x256xf32> to vector<4x256xf32>
    %409 = arith.mulf %407, %408 : vector<4x256xf32>
    %410 = vector.extract_strided_slice %380 {offsets = [0, 3], sizes = [4, 1], strides = [1, 1]} : vector<4x9xf32> to vector<4x1xf32>
    %411 = vector.broadcast %410 : vector<4x1xf32> to vector<4x256xf32>
    %412 = arith.mulf %411, %409 : vector<4x256xf32>
    %413 = arith.addf %404, %412 : vector<4x256xf32>
    %414 = vector.extract_strided_slice %380 {offsets = [0, 4], sizes = [4, 1], strides = [1, 1]} : vector<4x9xf32> to vector<4x1xf32>
    %415 = vector.broadcast %414 : vector<4x1xf32> to vector<4x256xf32>
    %416 = arith.mulf %415, %379 : vector<4x256xf32>
    %417 = arith.addf %413, %416 : vector<4x256xf32>
    %cst_96 = arith.constant 0.000000e+00 : f32
    %418 = vector.broadcast %cst_96 : f32 to vector<4x1xf32>
    %419 = vector.extract_strided_slice %379 {offsets = [0, 1], sizes = [4, 255], strides = [1, 1]} : vector<4x256xf32> to vector<4x255xf32>
    %420 = tpu.concatenate %419, %418 in 1 : vector<4x255xf32>, vector<4x1xf32> -> vector<4x256xf32>
    %421 = vector.broadcast %3 : vector<1x256xf32> to vector<4x256xf32>
    %422 = arith.mulf %420, %421 : vector<4x256xf32>
    %423 = vector.extract_strided_slice %380 {offsets = [0, 5], sizes = [4, 1], strides = [1, 1]} : vector<4x9xf32> to vector<4x1xf32>
    %424 = vector.broadcast %423 : vector<4x1xf32> to vector<4x256xf32>
    %425 = arith.mulf %424, %422 : vector<4x256xf32>
    %426 = arith.addf %417, %425 : vector<4x256xf32>
    %cst_97 = arith.constant 0.000000e+00 : f32
    %427 = vector.broadcast %cst_97 : f32 to vector<4x15xf32>
    %428 = vector.extract_strided_slice %379 {offsets = [0, 15], sizes = [4, 241], strides = [1, 1]} : vector<4x256xf32> to vector<4x241xf32>
    %429 = tpu.concatenate %428, %427 in 1 : vector<4x241xf32>, vector<4x15xf32> -> vector<4x256xf32>
    %430 = vector.broadcast %2 : vector<1x256xf32> to vector<4x256xf32>
    %431 = arith.mulf %429, %430 : vector<4x256xf32>
    %432 = vector.extract_strided_slice %380 {offsets = [0, 6], sizes = [4, 1], strides = [1, 1]} : vector<4x9xf32> to vector<4x1xf32>
    %433 = vector.broadcast %432 : vector<4x1xf32> to vector<4x256xf32>
    %434 = arith.mulf %433, %431 : vector<4x256xf32>
    %435 = arith.addf %426, %434 : vector<4x256xf32>
    %cst_98 = arith.constant 0.000000e+00 : f32
    %436 = vector.broadcast %cst_98 : f32 to vector<4x16xf32>
    %437 = vector.extract_strided_slice %379 {offsets = [0, 16], sizes = [4, 240], strides = [1, 1]} : vector<4x256xf32> to vector<4x240xf32>
    %438 = tpu.concatenate %437, %436 in 1 : vector<4x240xf32>, vector<4x16xf32> -> vector<4x256xf32>
    %439 = vector.extract_strided_slice %380 {offsets = [0, 7], sizes = [4, 1], strides = [1, 1]} : vector<4x9xf32> to vector<4x1xf32>
    %440 = vector.broadcast %439 : vector<4x1xf32> to vector<4x256xf32>
    %441 = arith.mulf %440, %438 : vector<4x256xf32>
    %442 = arith.addf %435, %441 : vector<4x256xf32>
    %cst_99 = arith.constant 0.000000e+00 : f32
    %443 = vector.broadcast %cst_99 : f32 to vector<4x17xf32>
    %444 = vector.extract_strided_slice %379 {offsets = [0, 17], sizes = [4, 239], strides = [1, 1]} : vector<4x256xf32> to vector<4x239xf32>
    %445 = tpu.concatenate %444, %443 in 1 : vector<4x239xf32>, vector<4x17xf32> -> vector<4x256xf32>
    %446 = vector.broadcast %3 : vector<1x256xf32> to vector<4x256xf32>
    %447 = arith.mulf %445, %446 : vector<4x256xf32>
    %448 = vector.extract_strided_slice %380 {offsets = [0, 8], sizes = [4, 1], strides = [1, 1]} : vector<4x9xf32> to vector<4x1xf32>
    %449 = vector.broadcast %448 : vector<4x1xf32> to vector<4x256xf32>
    %450 = arith.mulf %449, %447 : vector<4x256xf32>
    %451 = arith.addf %442, %450 : vector<4x256xf32>
    %452 = vector.extract_strided_slice %126 {offsets = [16, 0], sizes = [4, 9], strides = [1, 1]} : vector<36x9xf32> to vector<4x9xf32>
    %cst_100 = arith.constant 0.000000e+00 : f32
    %453 = vector.broadcast %cst_100 : f32 to vector<4x34xf32>
    %454 = vector.extract_strided_slice %379 {offsets = [0, 0], sizes = [4, 222], strides = [1, 1]} : vector<4x256xf32> to vector<4x222xf32>
    %455 = tpu.concatenate %453, %454 in 1 : vector<4x34xf32>, vector<4x222xf32> -> vector<4x256xf32>
    %456 = vector.broadcast %1 : vector<1x256xf32> to vector<4x256xf32>
    %457 = arith.mulf %455, %456 : vector<4x256xf32>
    %458 = vector.extract_strided_slice %452 {offsets = [0, 0], sizes = [4, 1], strides = [1, 1]} : vector<4x9xf32> to vector<4x1xf32>
    %459 = vector.broadcast %458 : vector<4x1xf32> to vector<4x256xf32>
    %460 = arith.mulf %459, %457 : vector<4x256xf32>
    %cst_101 = arith.constant 0.000000e+00 : f32
    %461 = vector.broadcast %cst_101 : f32 to vector<4x32xf32>
    %462 = vector.extract_strided_slice %379 {offsets = [0, 0], sizes = [4, 224], strides = [1, 1]} : vector<4x256xf32> to vector<4x224xf32>
    %463 = tpu.concatenate %461, %462 in 1 : vector<4x32xf32>, vector<4x224xf32> -> vector<4x256xf32>
    %464 = vector.extract_strided_slice %452 {offsets = [0, 1], sizes = [4, 1], strides = [1, 1]} : vector<4x9xf32> to vector<4x1xf32>
    %465 = vector.broadcast %464 : vector<4x1xf32> to vector<4x256xf32>
    %466 = arith.mulf %465, %463 : vector<4x256xf32>
    %467 = arith.addf %460, %466 : vector<4x256xf32>
    %cst_102 = arith.constant 0.000000e+00 : f32
    %468 = vector.broadcast %cst_102 : f32 to vector<4x30xf32>
    %469 = vector.extract_strided_slice %379 {offsets = [0, 0], sizes = [4, 226], strides = [1, 1]} : vector<4x256xf32> to vector<4x226xf32>
    %470 = tpu.concatenate %468, %469 in 1 : vector<4x30xf32>, vector<4x226xf32> -> vector<4x256xf32>
    %471 = vector.broadcast %4 : vector<1x256xf32> to vector<4x256xf32>
    %472 = arith.mulf %470, %471 : vector<4x256xf32>
    %473 = vector.extract_strided_slice %452 {offsets = [0, 2], sizes = [4, 1], strides = [1, 1]} : vector<4x9xf32> to vector<4x1xf32>
    %474 = vector.broadcast %473 : vector<4x1xf32> to vector<4x256xf32>
    %475 = arith.mulf %474, %472 : vector<4x256xf32>
    %476 = arith.addf %467, %475 : vector<4x256xf32>
    %cst_103 = arith.constant 0.000000e+00 : f32
    %477 = vector.broadcast %cst_103 : f32 to vector<4x2xf32>
    %478 = vector.extract_strided_slice %379 {offsets = [0, 0], sizes = [4, 254], strides = [1, 1]} : vector<4x256xf32> to vector<4x254xf32>
    %479 = tpu.concatenate %477, %478 in 1 : vector<4x2xf32>, vector<4x254xf32> -> vector<4x256xf32>
    %480 = vector.broadcast %1 : vector<1x256xf32> to vector<4x256xf32>
    %481 = arith.mulf %479, %480 : vector<4x256xf32>
    %482 = vector.extract_strided_slice %452 {offsets = [0, 3], sizes = [4, 1], strides = [1, 1]} : vector<4x9xf32> to vector<4x1xf32>
    %483 = vector.broadcast %482 : vector<4x1xf32> to vector<4x256xf32>
    %484 = arith.mulf %483, %481 : vector<4x256xf32>
    %485 = arith.addf %476, %484 : vector<4x256xf32>
    %486 = vector.extract_strided_slice %452 {offsets = [0, 4], sizes = [4, 1], strides = [1, 1]} : vector<4x9xf32> to vector<4x1xf32>
    %487 = vector.broadcast %486 : vector<4x1xf32> to vector<4x256xf32>
    %488 = arith.mulf %487, %379 : vector<4x256xf32>
    %489 = arith.addf %485, %488 : vector<4x256xf32>
    %cst_104 = arith.constant 0.000000e+00 : f32
    %490 = vector.broadcast %cst_104 : f32 to vector<4x2xf32>
    %491 = vector.extract_strided_slice %379 {offsets = [0, 2], sizes = [4, 254], strides = [1, 1]} : vector<4x256xf32> to vector<4x254xf32>
    %492 = tpu.concatenate %491, %490 in 1 : vector<4x254xf32>, vector<4x2xf32> -> vector<4x256xf32>
    %493 = vector.broadcast %4 : vector<1x256xf32> to vector<4x256xf32>
    %494 = arith.mulf %492, %493 : vector<4x256xf32>
    %495 = vector.extract_strided_slice %452 {offsets = [0, 5], sizes = [4, 1], strides = [1, 1]} : vector<4x9xf32> to vector<4x1xf32>
    %496 = vector.broadcast %495 : vector<4x1xf32> to vector<4x256xf32>
    %497 = arith.mulf %496, %494 : vector<4x256xf32>
    %498 = arith.addf %489, %497 : vector<4x256xf32>
    %cst_105 = arith.constant 0.000000e+00 : f32
    %499 = vector.broadcast %cst_105 : f32 to vector<4x30xf32>
    %500 = vector.extract_strided_slice %379 {offsets = [0, 30], sizes = [4, 226], strides = [1, 1]} : vector<4x256xf32> to vector<4x226xf32>
    %501 = tpu.concatenate %500, %499 in 1 : vector<4x226xf32>, vector<4x30xf32> -> vector<4x256xf32>
    %502 = vector.broadcast %1 : vector<1x256xf32> to vector<4x256xf32>
    %503 = arith.mulf %501, %502 : vector<4x256xf32>
    %504 = vector.extract_strided_slice %452 {offsets = [0, 6], sizes = [4, 1], strides = [1, 1]} : vector<4x9xf32> to vector<4x1xf32>
    %505 = vector.broadcast %504 : vector<4x1xf32> to vector<4x256xf32>
    %506 = arith.mulf %505, %503 : vector<4x256xf32>
    %507 = arith.addf %498, %506 : vector<4x256xf32>
    %cst_106 = arith.constant 0.000000e+00 : f32
    %508 = vector.broadcast %cst_106 : f32 to vector<4x32xf32>
    %509 = vector.extract_strided_slice %379 {offsets = [0, 32], sizes = [4, 224], strides = [1, 1]} : vector<4x256xf32> to vector<4x224xf32>
    %510 = tpu.concatenate %509, %508 in 1 : vector<4x224xf32>, vector<4x32xf32> -> vector<4x256xf32>
    %511 = vector.extract_strided_slice %452 {offsets = [0, 7], sizes = [4, 1], strides = [1, 1]} : vector<4x9xf32> to vector<4x1xf32>
    %512 = vector.broadcast %511 : vector<4x1xf32> to vector<4x256xf32>
    %513 = arith.mulf %512, %510 : vector<4x256xf32>
    %514 = arith.addf %507, %513 : vector<4x256xf32>
    %cst_107 = arith.constant 0.000000e+00 : f32
    %515 = vector.broadcast %cst_107 : f32 to vector<4x34xf32>
    %516 = vector.extract_strided_slice %379 {offsets = [0, 34], sizes = [4, 222], strides = [1, 1]} : vector<4x256xf32> to vector<4x222xf32>
    %517 = tpu.concatenate %516, %515 in 1 : vector<4x222xf32>, vector<4x34xf32> -> vector<4x256xf32>
    %518 = vector.broadcast %4 : vector<1x256xf32> to vector<4x256xf32>
    %519 = arith.mulf %517, %518 : vector<4x256xf32>
    %520 = vector.extract_strided_slice %452 {offsets = [0, 8], sizes = [4, 1], strides = [1, 1]} : vector<4x9xf32> to vector<4x1xf32>
    %521 = vector.broadcast %520 : vector<4x1xf32> to vector<4x256xf32>
    %522 = arith.mulf %521, %519 : vector<4x256xf32>
    %523 = arith.addf %514, %522 : vector<4x256xf32>
    %524 = arith.addf %523, %451 : vector<4x256xf32>
    %525 = vector.extract_strided_slice %126 {offsets = [20, 0], sizes = [4, 9], strides = [1, 1]} : vector<36x9xf32> to vector<4x9xf32>
    %cst_108 = arith.constant 0.000000e+00 : f32
    %526 = vector.broadcast %cst_108 : f32 to vector<4x68xf32>
    %527 = vector.extract_strided_slice %379 {offsets = [0, 0], sizes = [4, 188], strides = [1, 1]} : vector<4x256xf32> to vector<4x188xf32>
    %528 = tpu.concatenate %526, %527 in 1 : vector<4x68xf32>, vector<4x188xf32> -> vector<4x256xf32>
    %529 = vector.broadcast %0 : vector<1x256xf32> to vector<4x256xf32>
    %530 = arith.mulf %528, %529 : vector<4x256xf32>
    %531 = vector.extract_strided_slice %525 {offsets = [0, 0], sizes = [4, 1], strides = [1, 1]} : vector<4x9xf32> to vector<4x1xf32>
    %532 = vector.broadcast %531 : vector<4x1xf32> to vector<4x256xf32>
    %533 = arith.mulf %532, %530 : vector<4x256xf32>
    %cst_109 = arith.constant 0.000000e+00 : f32
    %534 = vector.broadcast %cst_109 : f32 to vector<4x64xf32>
    %535 = vector.extract_strided_slice %379 {offsets = [0, 0], sizes = [4, 192], strides = [1, 1]} : vector<4x256xf32> to vector<4x192xf32>
    %536 = tpu.concatenate %534, %535 in 1 : vector<4x64xf32>, vector<4x192xf32> -> vector<4x256xf32>
    %537 = vector.extract_strided_slice %525 {offsets = [0, 1], sizes = [4, 1], strides = [1, 1]} : vector<4x9xf32> to vector<4x1xf32>
    %538 = vector.broadcast %537 : vector<4x1xf32> to vector<4x256xf32>
    %539 = arith.mulf %538, %536 : vector<4x256xf32>
    %540 = arith.addf %533, %539 : vector<4x256xf32>
    %cst_110 = arith.constant 0.000000e+00 : f32
    %541 = vector.broadcast %cst_110 : f32 to vector<4x60xf32>
    %542 = vector.extract_strided_slice %379 {offsets = [0, 0], sizes = [4, 196], strides = [1, 1]} : vector<4x256xf32> to vector<4x196xf32>
    %543 = tpu.concatenate %541, %542 in 1 : vector<4x60xf32>, vector<4x196xf32> -> vector<4x256xf32>
    %544 = vector.broadcast %5 : vector<1x256xf32> to vector<4x256xf32>
    %545 = arith.mulf %543, %544 : vector<4x256xf32>
    %546 = vector.extract_strided_slice %525 {offsets = [0, 2], sizes = [4, 1], strides = [1, 1]} : vector<4x9xf32> to vector<4x1xf32>
    %547 = vector.broadcast %546 : vector<4x1xf32> to vector<4x256xf32>
    %548 = arith.mulf %547, %545 : vector<4x256xf32>
    %549 = arith.addf %540, %548 : vector<4x256xf32>
    %cst_111 = arith.constant 0.000000e+00 : f32
    %550 = vector.broadcast %cst_111 : f32 to vector<4x4xf32>
    %551 = vector.extract_strided_slice %379 {offsets = [0, 0], sizes = [4, 252], strides = [1, 1]} : vector<4x256xf32> to vector<4x252xf32>
    %552 = tpu.concatenate %550, %551 in 1 : vector<4x4xf32>, vector<4x252xf32> -> vector<4x256xf32>
    %553 = vector.broadcast %0 : vector<1x256xf32> to vector<4x256xf32>
    %554 = arith.mulf %552, %553 : vector<4x256xf32>
    %555 = vector.extract_strided_slice %525 {offsets = [0, 3], sizes = [4, 1], strides = [1, 1]} : vector<4x9xf32> to vector<4x1xf32>
    %556 = vector.broadcast %555 : vector<4x1xf32> to vector<4x256xf32>
    %557 = arith.mulf %556, %554 : vector<4x256xf32>
    %558 = arith.addf %549, %557 : vector<4x256xf32>
    %559 = vector.extract_strided_slice %525 {offsets = [0, 4], sizes = [4, 1], strides = [1, 1]} : vector<4x9xf32> to vector<4x1xf32>
    %560 = vector.broadcast %559 : vector<4x1xf32> to vector<4x256xf32>
    %561 = arith.mulf %560, %379 : vector<4x256xf32>
    %562 = arith.addf %558, %561 : vector<4x256xf32>
    %cst_112 = arith.constant 0.000000e+00 : f32
    %563 = vector.broadcast %cst_112 : f32 to vector<4x4xf32>
    %564 = vector.extract_strided_slice %379 {offsets = [0, 4], sizes = [4, 252], strides = [1, 1]} : vector<4x256xf32> to vector<4x252xf32>
    %565 = tpu.concatenate %564, %563 in 1 : vector<4x252xf32>, vector<4x4xf32> -> vector<4x256xf32>
    %566 = vector.broadcast %5 : vector<1x256xf32> to vector<4x256xf32>
    %567 = arith.mulf %565, %566 : vector<4x256xf32>
    %568 = vector.extract_strided_slice %525 {offsets = [0, 5], sizes = [4, 1], strides = [1, 1]} : vector<4x9xf32> to vector<4x1xf32>
    %569 = vector.broadcast %568 : vector<4x1xf32> to vector<4x256xf32>
    %570 = arith.mulf %569, %567 : vector<4x256xf32>
    %571 = arith.addf %562, %570 : vector<4x256xf32>
    %cst_113 = arith.constant 0.000000e+00 : f32
    %572 = vector.broadcast %cst_113 : f32 to vector<4x60xf32>
    %573 = vector.extract_strided_slice %379 {offsets = [0, 60], sizes = [4, 196], strides = [1, 1]} : vector<4x256xf32> to vector<4x196xf32>
    %574 = tpu.concatenate %573, %572 in 1 : vector<4x196xf32>, vector<4x60xf32> -> vector<4x256xf32>
    %575 = vector.broadcast %0 : vector<1x256xf32> to vector<4x256xf32>
    %576 = arith.mulf %574, %575 : vector<4x256xf32>
    %577 = vector.extract_strided_slice %525 {offsets = [0, 6], sizes = [4, 1], strides = [1, 1]} : vector<4x9xf32> to vector<4x1xf32>
    %578 = vector.broadcast %577 : vector<4x1xf32> to vector<4x256xf32>
    %579 = arith.mulf %578, %576 : vector<4x256xf32>
    %580 = arith.addf %571, %579 : vector<4x256xf32>
    %cst_114 = arith.constant 0.000000e+00 : f32
    %581 = vector.broadcast %cst_114 : f32 to vector<4x64xf32>
    %582 = vector.extract_strided_slice %379 {offsets = [0, 64], sizes = [4, 192], strides = [1, 1]} : vector<4x256xf32> to vector<4x192xf32>
    %583 = tpu.concatenate %582, %581 in 1 : vector<4x192xf32>, vector<4x64xf32> -> vector<4x256xf32>
    %584 = vector.extract_strided_slice %525 {offsets = [0, 7], sizes = [4, 1], strides = [1, 1]} : vector<4x9xf32> to vector<4x1xf32>
    %585 = vector.broadcast %584 : vector<4x1xf32> to vector<4x256xf32>
    %586 = arith.mulf %585, %583 : vector<4x256xf32>
    %587 = arith.addf %580, %586 : vector<4x256xf32>
    %cst_115 = arith.constant 0.000000e+00 : f32
    %588 = vector.broadcast %cst_115 : f32 to vector<4x68xf32>
    %589 = vector.extract_strided_slice %379 {offsets = [0, 68], sizes = [4, 188], strides = [1, 1]} : vector<4x256xf32> to vector<4x188xf32>
    %590 = tpu.concatenate %589, %588 in 1 : vector<4x188xf32>, vector<4x68xf32> -> vector<4x256xf32>
    %591 = vector.broadcast %5 : vector<1x256xf32> to vector<4x256xf32>
    %592 = arith.mulf %590, %591 : vector<4x256xf32>
    %593 = vector.extract_strided_slice %525 {offsets = [0, 8], sizes = [4, 1], strides = [1, 1]} : vector<4x9xf32> to vector<4x1xf32>
    %594 = vector.broadcast %593 : vector<4x1xf32> to vector<4x256xf32>
    %595 = arith.mulf %594, %592 : vector<4x256xf32>
    %596 = arith.addf %587, %595 : vector<4x256xf32>
    %597 = arith.addf %596, %524 : vector<4x256xf32>
    %598 = tpu.concatenate %451, %524, %597 in 0 : vector<4x256xf32>, vector<4x256xf32>, vector<4x256xf32> -> vector<12x256xf32>
    %599 = vector.extract_strided_slice %127 {offsets = [12, 0], sizes = [12, 1], strides = [1, 1]} : vector<36x1xf32> to vector<12x1xf32>
    %cst_116 = arith.constant 0.000000e+00 : f32
    %600 = vector.broadcast %cst_116 : f32 to vector<12x256xf32>
    %601 = arith.cmpf oge, %598, %600 : vector<12x256xf32>
    %602 = vector.broadcast %599 : vector<12x1xf32> to vector<12x256xf32>
    %603 = arith.mulf %602, %598 : vector<12x256xf32>
    %604 = arith.select %601, %598, %603 : vector<12x256xi1>, vector<12x256xf32>
    %605 = vector.extract_strided_slice %128 {offsets = [12, 0], sizes = [12, 12], strides = [1, 1]} : vector<36x12xf32> to vector<12x12xf32>
    %cst_117 = arith.constant dense<0.000000e+00> : vector<12x256xf32>
    %606 = tpu.matmul %605, %604, %cst_117 {dimension_numbers = #tpu.dot_dimension_numbers<[1], [0], [0], [1], [0, 0, 1, 1], [], []>, precision = #tpu.contract_precision<fp32>} : vector<12x12xf32>, vector<12x256xf32>, vector<12x256xf32> -> vector<12x256xf32>
    %607 = arith.addf %606, %371 : vector<12x256xf32>
    %608 = vector.extract_strided_slice %129 {offsets = [12, 0], sizes = [12, 1], strides = [1, 1]} : vector<36x1xf32> to vector<12x1xf32>
    %cst_118 = arith.constant 0.000000e+00 : f32
    %609 = vector.broadcast %cst_118 : f32 to vector<12x256xf32>
    %610 = arith.cmpf oge, %607, %609 : vector<12x256xf32>
    %611 = vector.broadcast %608 : vector<12x1xf32> to vector<12x256xf32>
    %612 = arith.mulf %611, %607 : vector<12x256xf32>
    %613 = arith.select %610, %607, %612 : vector<12x256xi1>, vector<12x256xf32>
    %614 = vector.extract_strided_slice %124 {offsets = [8, 0], sizes = [4, 12], strides = [1, 1]} : vector<12x12xf32> to vector<4x12xf32>
    %cst_119 = arith.constant dense<0.000000e+00> : vector<4x256xf32>
    %615 = tpu.matmul %614, %613, %cst_119 {dimension_numbers = #tpu.dot_dimension_numbers<[1], [0], [0], [1], [0, 0, 1, 1], [], []>, precision = #tpu.contract_precision<fp32>} : vector<4x12xf32>, vector<12x256xf32>, vector<4x256xf32> -> vector<4x256xf32>
    %616 = vector.extract_strided_slice %125 {offsets = [8, 0], sizes = [4, 1], strides = [1, 1]} : vector<12x1xf32> to vector<4x1xf32>
    %cst_120 = arith.constant 0.000000e+00 : f32
    %617 = vector.broadcast %cst_120 : f32 to vector<4x256xf32>
    %618 = arith.cmpf oge, %615, %617 : vector<4x256xf32>
    %619 = vector.broadcast %616 : vector<4x1xf32> to vector<4x256xf32>
    %620 = arith.mulf %619, %615 : vector<4x256xf32>
    %621 = arith.select %618, %615, %620 : vector<4x256xi1>, vector<4x256xf32>
    %622 = vector.extract_strided_slice %126 {offsets = [24, 0], sizes = [4, 9], strides = [1, 1]} : vector<36x9xf32> to vector<4x9xf32>
    %cst_121 = arith.constant 0.000000e+00 : f32
    %623 = vector.broadcast %cst_121 : f32 to vector<4x17xf32>
    %624 = vector.extract_strided_slice %621 {offsets = [0, 0], sizes = [4, 239], strides = [1, 1]} : vector<4x256xf32> to vector<4x239xf32>
    %625 = tpu.concatenate %623, %624 in 1 : vector<4x17xf32>, vector<4x239xf32> -> vector<4x256xf32>
    %626 = vector.broadcast %2 : vector<1x256xf32> to vector<4x256xf32>
    %627 = arith.mulf %625, %626 : vector<4x256xf32>
    %628 = vector.extract_strided_slice %622 {offsets = [0, 0], sizes = [4, 1], strides = [1, 1]} : vector<4x9xf32> to vector<4x1xf32>
    %629 = vector.broadcast %628 : vector<4x1xf32> to vector<4x256xf32>
    %630 = arith.mulf %629, %627 : vector<4x256xf32>
    %cst_122 = arith.constant 0.000000e+00 : f32
    %631 = vector.broadcast %cst_122 : f32 to vector<4x16xf32>
    %632 = vector.extract_strided_slice %621 {offsets = [0, 0], sizes = [4, 240], strides = [1, 1]} : vector<4x256xf32> to vector<4x240xf32>
    %633 = tpu.concatenate %631, %632 in 1 : vector<4x16xf32>, vector<4x240xf32> -> vector<4x256xf32>
    %634 = vector.extract_strided_slice %622 {offsets = [0, 1], sizes = [4, 1], strides = [1, 1]} : vector<4x9xf32> to vector<4x1xf32>
    %635 = vector.broadcast %634 : vector<4x1xf32> to vector<4x256xf32>
    %636 = arith.mulf %635, %633 : vector<4x256xf32>
    %637 = arith.addf %630, %636 : vector<4x256xf32>
    %cst_123 = arith.constant 0.000000e+00 : f32
    %638 = vector.broadcast %cst_123 : f32 to vector<4x15xf32>
    %639 = vector.extract_strided_slice %621 {offsets = [0, 0], sizes = [4, 241], strides = [1, 1]} : vector<4x256xf32> to vector<4x241xf32>
    %640 = tpu.concatenate %638, %639 in 1 : vector<4x15xf32>, vector<4x241xf32> -> vector<4x256xf32>
    %641 = vector.broadcast %3 : vector<1x256xf32> to vector<4x256xf32>
    %642 = arith.mulf %640, %641 : vector<4x256xf32>
    %643 = vector.extract_strided_slice %622 {offsets = [0, 2], sizes = [4, 1], strides = [1, 1]} : vector<4x9xf32> to vector<4x1xf32>
    %644 = vector.broadcast %643 : vector<4x1xf32> to vector<4x256xf32>
    %645 = arith.mulf %644, %642 : vector<4x256xf32>
    %646 = arith.addf %637, %645 : vector<4x256xf32>
    %cst_124 = arith.constant 0.000000e+00 : f32
    %647 = vector.broadcast %cst_124 : f32 to vector<4x1xf32>
    %648 = vector.extract_strided_slice %621 {offsets = [0, 0], sizes = [4, 255], strides = [1, 1]} : vector<4x256xf32> to vector<4x255xf32>
    %649 = tpu.concatenate %647, %648 in 1 : vector<4x1xf32>, vector<4x255xf32> -> vector<4x256xf32>
    %650 = vector.broadcast %2 : vector<1x256xf32> to vector<4x256xf32>
    %651 = arith.mulf %649, %650 : vector<4x256xf32>
    %652 = vector.extract_strided_slice %622 {offsets = [0, 3], sizes = [4, 1], strides = [1, 1]} : vector<4x9xf32> to vector<4x1xf32>
    %653 = vector.broadcast %652 : vector<4x1xf32> to vector<4x256xf32>
    %654 = arith.mulf %653, %651 : vector<4x256xf32>
    %655 = arith.addf %646, %654 : vector<4x256xf32>
    %656 = vector.extract_strided_slice %622 {offsets = [0, 4], sizes = [4, 1], strides = [1, 1]} : vector<4x9xf32> to vector<4x1xf32>
    %657 = vector.broadcast %656 : vector<4x1xf32> to vector<4x256xf32>
    %658 = arith.mulf %657, %621 : vector<4x256xf32>
    %659 = arith.addf %655, %658 : vector<4x256xf32>
    %cst_125 = arith.constant 0.000000e+00 : f32
    %660 = vector.broadcast %cst_125 : f32 to vector<4x1xf32>
    %661 = vector.extract_strided_slice %621 {offsets = [0, 1], sizes = [4, 255], strides = [1, 1]} : vector<4x256xf32> to vector<4x255xf32>
    %662 = tpu.concatenate %661, %660 in 1 : vector<4x255xf32>, vector<4x1xf32> -> vector<4x256xf32>
    %663 = vector.broadcast %3 : vector<1x256xf32> to vector<4x256xf32>
    %664 = arith.mulf %662, %663 : vector<4x256xf32>
    %665 = vector.extract_strided_slice %622 {offsets = [0, 5], sizes = [4, 1], strides = [1, 1]} : vector<4x9xf32> to vector<4x1xf32>
    %666 = vector.broadcast %665 : vector<4x1xf32> to vector<4x256xf32>
    %667 = arith.mulf %666, %664 : vector<4x256xf32>
    %668 = arith.addf %659, %667 : vector<4x256xf32>
    %cst_126 = arith.constant 0.000000e+00 : f32
    %669 = vector.broadcast %cst_126 : f32 to vector<4x15xf32>
    %670 = vector.extract_strided_slice %621 {offsets = [0, 15], sizes = [4, 241], strides = [1, 1]} : vector<4x256xf32> to vector<4x241xf32>
    %671 = tpu.concatenate %670, %669 in 1 : vector<4x241xf32>, vector<4x15xf32> -> vector<4x256xf32>
    %672 = vector.broadcast %2 : vector<1x256xf32> to vector<4x256xf32>
    %673 = arith.mulf %671, %672 : vector<4x256xf32>
    %674 = vector.extract_strided_slice %622 {offsets = [0, 6], sizes = [4, 1], strides = [1, 1]} : vector<4x9xf32> to vector<4x1xf32>
    %675 = vector.broadcast %674 : vector<4x1xf32> to vector<4x256xf32>
    %676 = arith.mulf %675, %673 : vector<4x256xf32>
    %677 = arith.addf %668, %676 : vector<4x256xf32>
    %cst_127 = arith.constant 0.000000e+00 : f32
    %678 = vector.broadcast %cst_127 : f32 to vector<4x16xf32>
    %679 = vector.extract_strided_slice %621 {offsets = [0, 16], sizes = [4, 240], strides = [1, 1]} : vector<4x256xf32> to vector<4x240xf32>
    %680 = tpu.concatenate %679, %678 in 1 : vector<4x240xf32>, vector<4x16xf32> -> vector<4x256xf32>
    %681 = vector.extract_strided_slice %622 {offsets = [0, 7], sizes = [4, 1], strides = [1, 1]} : vector<4x9xf32> to vector<4x1xf32>
    %682 = vector.broadcast %681 : vector<4x1xf32> to vector<4x256xf32>
    %683 = arith.mulf %682, %680 : vector<4x256xf32>
    %684 = arith.addf %677, %683 : vector<4x256xf32>
    %cst_128 = arith.constant 0.000000e+00 : f32
    %685 = vector.broadcast %cst_128 : f32 to vector<4x17xf32>
    %686 = vector.extract_strided_slice %621 {offsets = [0, 17], sizes = [4, 239], strides = [1, 1]} : vector<4x256xf32> to vector<4x239xf32>
    %687 = tpu.concatenate %686, %685 in 1 : vector<4x239xf32>, vector<4x17xf32> -> vector<4x256xf32>
    %688 = vector.broadcast %3 : vector<1x256xf32> to vector<4x256xf32>
    %689 = arith.mulf %687, %688 : vector<4x256xf32>
    %690 = vector.extract_strided_slice %622 {offsets = [0, 8], sizes = [4, 1], strides = [1, 1]} : vector<4x9xf32> to vector<4x1xf32>
    %691 = vector.broadcast %690 : vector<4x1xf32> to vector<4x256xf32>
    %692 = arith.mulf %691, %689 : vector<4x256xf32>
    %693 = arith.addf %684, %692 : vector<4x256xf32>
    %694 = vector.extract_strided_slice %126 {offsets = [28, 0], sizes = [4, 9], strides = [1, 1]} : vector<36x9xf32> to vector<4x9xf32>
    %cst_129 = arith.constant 0.000000e+00 : f32
    %695 = vector.broadcast %cst_129 : f32 to vector<4x34xf32>
    %696 = vector.extract_strided_slice %621 {offsets = [0, 0], sizes = [4, 222], strides = [1, 1]} : vector<4x256xf32> to vector<4x222xf32>
    %697 = tpu.concatenate %695, %696 in 1 : vector<4x34xf32>, vector<4x222xf32> -> vector<4x256xf32>
    %698 = vector.broadcast %1 : vector<1x256xf32> to vector<4x256xf32>
    %699 = arith.mulf %697, %698 : vector<4x256xf32>
    %700 = vector.extract_strided_slice %694 {offsets = [0, 0], sizes = [4, 1], strides = [1, 1]} : vector<4x9xf32> to vector<4x1xf32>
    %701 = vector.broadcast %700 : vector<4x1xf32> to vector<4x256xf32>
    %702 = arith.mulf %701, %699 : vector<4x256xf32>
    %cst_130 = arith.constant 0.000000e+00 : f32
    %703 = vector.broadcast %cst_130 : f32 to vector<4x32xf32>
    %704 = vector.extract_strided_slice %621 {offsets = [0, 0], sizes = [4, 224], strides = [1, 1]} : vector<4x256xf32> to vector<4x224xf32>
    %705 = tpu.concatenate %703, %704 in 1 : vector<4x32xf32>, vector<4x224xf32> -> vector<4x256xf32>
    %706 = vector.extract_strided_slice %694 {offsets = [0, 1], sizes = [4, 1], strides = [1, 1]} : vector<4x9xf32> to vector<4x1xf32>
    %707 = vector.broadcast %706 : vector<4x1xf32> to vector<4x256xf32>
    %708 = arith.mulf %707, %705 : vector<4x256xf32>
    %709 = arith.addf %702, %708 : vector<4x256xf32>
    %cst_131 = arith.constant 0.000000e+00 : f32
    %710 = vector.broadcast %cst_131 : f32 to vector<4x30xf32>
    %711 = vector.extract_strided_slice %621 {offsets = [0, 0], sizes = [4, 226], strides = [1, 1]} : vector<4x256xf32> to vector<4x226xf32>
    %712 = tpu.concatenate %710, %711 in 1 : vector<4x30xf32>, vector<4x226xf32> -> vector<4x256xf32>
    %713 = vector.broadcast %4 : vector<1x256xf32> to vector<4x256xf32>
    %714 = arith.mulf %712, %713 : vector<4x256xf32>
    %715 = vector.extract_strided_slice %694 {offsets = [0, 2], sizes = [4, 1], strides = [1, 1]} : vector<4x9xf32> to vector<4x1xf32>
    %716 = vector.broadcast %715 : vector<4x1xf32> to vector<4x256xf32>
    %717 = arith.mulf %716, %714 : vector<4x256xf32>
    %718 = arith.addf %709, %717 : vector<4x256xf32>
    %cst_132 = arith.constant 0.000000e+00 : f32
    %719 = vector.broadcast %cst_132 : f32 to vector<4x2xf32>
    %720 = vector.extract_strided_slice %621 {offsets = [0, 0], sizes = [4, 254], strides = [1, 1]} : vector<4x256xf32> to vector<4x254xf32>
    %721 = tpu.concatenate %719, %720 in 1 : vector<4x2xf32>, vector<4x254xf32> -> vector<4x256xf32>
    %722 = vector.broadcast %1 : vector<1x256xf32> to vector<4x256xf32>
    %723 = arith.mulf %721, %722 : vector<4x256xf32>
    %724 = vector.extract_strided_slice %694 {offsets = [0, 3], sizes = [4, 1], strides = [1, 1]} : vector<4x9xf32> to vector<4x1xf32>
    %725 = vector.broadcast %724 : vector<4x1xf32> to vector<4x256xf32>
    %726 = arith.mulf %725, %723 : vector<4x256xf32>
    %727 = arith.addf %718, %726 : vector<4x256xf32>
    %728 = vector.extract_strided_slice %694 {offsets = [0, 4], sizes = [4, 1], strides = [1, 1]} : vector<4x9xf32> to vector<4x1xf32>
    %729 = vector.broadcast %728 : vector<4x1xf32> to vector<4x256xf32>
    %730 = arith.mulf %729, %621 : vector<4x256xf32>
    %731 = arith.addf %727, %730 : vector<4x256xf32>
    %cst_133 = arith.constant 0.000000e+00 : f32
    %732 = vector.broadcast %cst_133 : f32 to vector<4x2xf32>
    %733 = vector.extract_strided_slice %621 {offsets = [0, 2], sizes = [4, 254], strides = [1, 1]} : vector<4x256xf32> to vector<4x254xf32>
    %734 = tpu.concatenate %733, %732 in 1 : vector<4x254xf32>, vector<4x2xf32> -> vector<4x256xf32>
    %735 = vector.broadcast %4 : vector<1x256xf32> to vector<4x256xf32>
    %736 = arith.mulf %734, %735 : vector<4x256xf32>
    %737 = vector.extract_strided_slice %694 {offsets = [0, 5], sizes = [4, 1], strides = [1, 1]} : vector<4x9xf32> to vector<4x1xf32>
    %738 = vector.broadcast %737 : vector<4x1xf32> to vector<4x256xf32>
    %739 = arith.mulf %738, %736 : vector<4x256xf32>
    %740 = arith.addf %731, %739 : vector<4x256xf32>
    %cst_134 = arith.constant 0.000000e+00 : f32
    %741 = vector.broadcast %cst_134 : f32 to vector<4x30xf32>
    %742 = vector.extract_strided_slice %621 {offsets = [0, 30], sizes = [4, 226], strides = [1, 1]} : vector<4x256xf32> to vector<4x226xf32>
    %743 = tpu.concatenate %742, %741 in 1 : vector<4x226xf32>, vector<4x30xf32> -> vector<4x256xf32>
    %744 = vector.broadcast %1 : vector<1x256xf32> to vector<4x256xf32>
    %745 = arith.mulf %743, %744 : vector<4x256xf32>
    %746 = vector.extract_strided_slice %694 {offsets = [0, 6], sizes = [4, 1], strides = [1, 1]} : vector<4x9xf32> to vector<4x1xf32>
    %747 = vector.broadcast %746 : vector<4x1xf32> to vector<4x256xf32>
    %748 = arith.mulf %747, %745 : vector<4x256xf32>
    %749 = arith.addf %740, %748 : vector<4x256xf32>
    %cst_135 = arith.constant 0.000000e+00 : f32
    %750 = vector.broadcast %cst_135 : f32 to vector<4x32xf32>
    %751 = vector.extract_strided_slice %621 {offsets = [0, 32], sizes = [4, 224], strides = [1, 1]} : vector<4x256xf32> to vector<4x224xf32>
    %752 = tpu.concatenate %751, %750 in 1 : vector<4x224xf32>, vector<4x32xf32> -> vector<4x256xf32>
    %753 = vector.extract_strided_slice %694 {offsets = [0, 7], sizes = [4, 1], strides = [1, 1]} : vector<4x9xf32> to vector<4x1xf32>
    %754 = vector.broadcast %753 : vector<4x1xf32> to vector<4x256xf32>
    %755 = arith.mulf %754, %752 : vector<4x256xf32>
    %756 = arith.addf %749, %755 : vector<4x256xf32>
    %cst_136 = arith.constant 0.000000e+00 : f32
    %757 = vector.broadcast %cst_136 : f32 to vector<4x34xf32>
    %758 = vector.extract_strided_slice %621 {offsets = [0, 34], sizes = [4, 222], strides = [1, 1]} : vector<4x256xf32> to vector<4x222xf32>
    %759 = tpu.concatenate %758, %757 in 1 : vector<4x222xf32>, vector<4x34xf32> -> vector<4x256xf32>
    %760 = vector.broadcast %4 : vector<1x256xf32> to vector<4x256xf32>
    %761 = arith.mulf %759, %760 : vector<4x256xf32>
    %762 = vector.extract_strided_slice %694 {offsets = [0, 8], sizes = [4, 1], strides = [1, 1]} : vector<4x9xf32> to vector<4x1xf32>
    %763 = vector.broadcast %762 : vector<4x1xf32> to vector<4x256xf32>
    %764 = arith.mulf %763, %761 : vector<4x256xf32>
    %765 = arith.addf %756, %764 : vector<4x256xf32>
    %766 = arith.addf %765, %693 : vector<4x256xf32>
    %767 = vector.extract_strided_slice %126 {offsets = [32, 0], sizes = [4, 9], strides = [1, 1]} : vector<36x9xf32> to vector<4x9xf32>
    %cst_137 = arith.constant 0.000000e+00 : f32
    %768 = vector.broadcast %cst_137 : f32 to vector<4x68xf32>
    %769 = vector.extract_strided_slice %621 {offsets = [0, 0], sizes = [4, 188], strides = [1, 1]} : vector<4x256xf32> to vector<4x188xf32>
    %770 = tpu.concatenate %768, %769 in 1 : vector<4x68xf32>, vector<4x188xf32> -> vector<4x256xf32>
    %771 = vector.broadcast %0 : vector<1x256xf32> to vector<4x256xf32>
    %772 = arith.mulf %770, %771 : vector<4x256xf32>
    %773 = vector.extract_strided_slice %767 {offsets = [0, 0], sizes = [4, 1], strides = [1, 1]} : vector<4x9xf32> to vector<4x1xf32>
    %774 = vector.broadcast %773 : vector<4x1xf32> to vector<4x256xf32>
    %775 = arith.mulf %774, %772 : vector<4x256xf32>
    %cst_138 = arith.constant 0.000000e+00 : f32
    %776 = vector.broadcast %cst_138 : f32 to vector<4x64xf32>
    %777 = vector.extract_strided_slice %621 {offsets = [0, 0], sizes = [4, 192], strides = [1, 1]} : vector<4x256xf32> to vector<4x192xf32>
    %778 = tpu.concatenate %776, %777 in 1 : vector<4x64xf32>, vector<4x192xf32> -> vector<4x256xf32>
    %779 = vector.extract_strided_slice %767 {offsets = [0, 1], sizes = [4, 1], strides = [1, 1]} : vector<4x9xf32> to vector<4x1xf32>
    %780 = vector.broadcast %779 : vector<4x1xf32> to vector<4x256xf32>
    %781 = arith.mulf %780, %778 : vector<4x256xf32>
    %782 = arith.addf %775, %781 : vector<4x256xf32>
    %cst_139 = arith.constant 0.000000e+00 : f32
    %783 = vector.broadcast %cst_139 : f32 to vector<4x60xf32>
    %784 = vector.extract_strided_slice %621 {offsets = [0, 0], sizes = [4, 196], strides = [1, 1]} : vector<4x256xf32> to vector<4x196xf32>
    %785 = tpu.concatenate %783, %784 in 1 : vector<4x60xf32>, vector<4x196xf32> -> vector<4x256xf32>
    %786 = vector.broadcast %5 : vector<1x256xf32> to vector<4x256xf32>
    %787 = arith.mulf %785, %786 : vector<4x256xf32>
    %788 = vector.extract_strided_slice %767 {offsets = [0, 2], sizes = [4, 1], strides = [1, 1]} : vector<4x9xf32> to vector<4x1xf32>
    %789 = vector.broadcast %788 : vector<4x1xf32> to vector<4x256xf32>
    %790 = arith.mulf %789, %787 : vector<4x256xf32>
    %791 = arith.addf %782, %790 : vector<4x256xf32>
    %cst_140 = arith.constant 0.000000e+00 : f32
    %792 = vector.broadcast %cst_140 : f32 to vector<4x4xf32>
    %793 = vector.extract_strided_slice %621 {offsets = [0, 0], sizes = [4, 252], strides = [1, 1]} : vector<4x256xf32> to vector<4x252xf32>
    %794 = tpu.concatenate %792, %793 in 1 : vector<4x4xf32>, vector<4x252xf32> -> vector<4x256xf32>
    %795 = vector.broadcast %0 : vector<1x256xf32> to vector<4x256xf32>
    %796 = arith.mulf %794, %795 : vector<4x256xf32>
    %797 = vector.extract_strided_slice %767 {offsets = [0, 3], sizes = [4, 1], strides = [1, 1]} : vector<4x9xf32> to vector<4x1xf32>
    %798 = vector.broadcast %797 : vector<4x1xf32> to vector<4x256xf32>
    %799 = arith.mulf %798, %796 : vector<4x256xf32>
    %800 = arith.addf %791, %799 : vector<4x256xf32>
    %801 = vector.extract_strided_slice %767 {offsets = [0, 4], sizes = [4, 1], strides = [1, 1]} : vector<4x9xf32> to vector<4x1xf32>
    %802 = vector.broadcast %801 : vector<4x1xf32> to vector<4x256xf32>
    %803 = arith.mulf %802, %621 : vector<4x256xf32>
    %804 = arith.addf %800, %803 : vector<4x256xf32>
    %cst_141 = arith.constant 0.000000e+00 : f32
    %805 = vector.broadcast %cst_141 : f32 to vector<4x4xf32>
    %806 = vector.extract_strided_slice %621 {offsets = [0, 4], sizes = [4, 252], strides = [1, 1]} : vector<4x256xf32> to vector<4x252xf32>
    %807 = tpu.concatenate %806, %805 in 1 : vector<4x252xf32>, vector<4x4xf32> -> vector<4x256xf32>
    %808 = vector.broadcast %5 : vector<1x256xf32> to vector<4x256xf32>
    %809 = arith.mulf %807, %808 : vector<4x256xf32>
    %810 = vector.extract_strided_slice %767 {offsets = [0, 5], sizes = [4, 1], strides = [1, 1]} : vector<4x9xf32> to vector<4x1xf32>
    %811 = vector.broadcast %810 : vector<4x1xf32> to vector<4x256xf32>
    %812 = arith.mulf %811, %809 : vector<4x256xf32>
    %813 = arith.addf %804, %812 : vector<4x256xf32>
    %cst_142 = arith.constant 0.000000e+00 : f32
    %814 = vector.broadcast %cst_142 : f32 to vector<4x60xf32>
    %815 = vector.extract_strided_slice %621 {offsets = [0, 60], sizes = [4, 196], strides = [1, 1]} : vector<4x256xf32> to vector<4x196xf32>
    %816 = tpu.concatenate %815, %814 in 1 : vector<4x196xf32>, vector<4x60xf32> -> vector<4x256xf32>
    %817 = vector.broadcast %0 : vector<1x256xf32> to vector<4x256xf32>
    %818 = arith.mulf %816, %817 : vector<4x256xf32>
    %819 = vector.extract_strided_slice %767 {offsets = [0, 6], sizes = [4, 1], strides = [1, 1]} : vector<4x9xf32> to vector<4x1xf32>
    %820 = vector.broadcast %819 : vector<4x1xf32> to vector<4x256xf32>
    %821 = arith.mulf %820, %818 : vector<4x256xf32>
    %822 = arith.addf %813, %821 : vector<4x256xf32>
    %cst_143 = arith.constant 0.000000e+00 : f32
    %823 = vector.broadcast %cst_143 : f32 to vector<4x64xf32>
    %824 = vector.extract_strided_slice %621 {offsets = [0, 64], sizes = [4, 192], strides = [1, 1]} : vector<4x256xf32> to vector<4x192xf32>
    %825 = tpu.concatenate %824, %823 in 1 : vector<4x192xf32>, vector<4x64xf32> -> vector<4x256xf32>
    %826 = vector.extract_strided_slice %767 {offsets = [0, 7], sizes = [4, 1], strides = [1, 1]} : vector<4x9xf32> to vector<4x1xf32>
    %827 = vector.broadcast %826 : vector<4x1xf32> to vector<4x256xf32>
    %828 = arith.mulf %827, %825 : vector<4x256xf32>
    %829 = arith.addf %822, %828 : vector<4x256xf32>
    %cst_144 = arith.constant 0.000000e+00 : f32
    %830 = vector.broadcast %cst_144 : f32 to vector<4x68xf32>
    %831 = vector.extract_strided_slice %621 {offsets = [0, 68], sizes = [4, 188], strides = [1, 1]} : vector<4x256xf32> to vector<4x188xf32>
    %832 = tpu.concatenate %831, %830 in 1 : vector<4x188xf32>, vector<4x68xf32> -> vector<4x256xf32>
    %833 = vector.broadcast %5 : vector<1x256xf32> to vector<4x256xf32>
    %834 = arith.mulf %832, %833 : vector<4x256xf32>
    %835 = vector.extract_strided_slice %767 {offsets = [0, 8], sizes = [4, 1], strides = [1, 1]} : vector<4x9xf32> to vector<4x1xf32>
    %836 = vector.broadcast %835 : vector<4x1xf32> to vector<4x256xf32>
    %837 = arith.mulf %836, %834 : vector<4x256xf32>
    %838 = arith.addf %829, %837 : vector<4x256xf32>
    %839 = arith.addf %838, %766 : vector<4x256xf32>
    %840 = tpu.concatenate %693, %766, %839 in 0 : vector<4x256xf32>, vector<4x256xf32>, vector<4x256xf32> -> vector<12x256xf32>
    %841 = vector.extract_strided_slice %127 {offsets = [24, 0], sizes = [12, 1], strides = [1, 1]} : vector<36x1xf32> to vector<12x1xf32>
    %cst_145 = arith.constant 0.000000e+00 : f32
    %842 = vector.broadcast %cst_145 : f32 to vector<12x256xf32>
    %843 = arith.cmpf oge, %840, %842 : vector<12x256xf32>
    %844 = vector.broadcast %841 : vector<12x1xf32> to vector<12x256xf32>
    %845 = arith.mulf %844, %840 : vector<12x256xf32>
    %846 = arith.select %843, %840, %845 : vector<12x256xi1>, vector<12x256xf32>
    %847 = vector.extract_strided_slice %128 {offsets = [24, 0], sizes = [12, 12], strides = [1, 1]} : vector<36x12xf32> to vector<12x12xf32>
    %cst_146 = arith.constant dense<0.000000e+00> : vector<12x256xf32>
    %848 = tpu.matmul %847, %846, %cst_146 {dimension_numbers = #tpu.dot_dimension_numbers<[1], [0], [0], [1], [0, 0, 1, 1], [], []>, precision = #tpu.contract_precision<fp32>} : vector<12x12xf32>, vector<12x256xf32>, vector<12x256xf32> -> vector<12x256xf32>
    %849 = arith.addf %848, %613 : vector<12x256xf32>
    %850 = vector.extract_strided_slice %129 {offsets = [24, 0], sizes = [12, 1], strides = [1, 1]} : vector<36x1xf32> to vector<12x1xf32>
    %cst_147 = arith.constant 0.000000e+00 : f32
    %851 = vector.broadcast %cst_147 : f32 to vector<12x256xf32>
    %852 = arith.cmpf oge, %849, %851 : vector<12x256xf32>
    %853 = vector.broadcast %850 : vector<12x1xf32> to vector<12x256xf32>
    %854 = arith.mulf %853, %849 : vector<12x256xf32>
    %855 = arith.select %852, %849, %854 : vector<12x256xi1>, vector<12x256xf32>
    %c0_148 = arith.constant 0 : index
    %c0_149 = arith.constant 0 : index
    %856 = vector.load %arg27[%c0_148, %c0_149] : memref<1x4xf32, #tpu.memory_space<vmem>>, vector<1x4xf32>
    %cst_150 = arith.constant dense<0.000000e+00> : vector<12xf32>
    %857 = vector.multi_reduction <add>, %855, %cst_150 [1] : vector<12x256xf32> to vector<12xf32>
    %858 = vector.shape_cast %857 : vector<12xf32> to vector<12x1xf32>
    %cst_151 = arith.constant 2.560000e+02 : f32
    %859 = vector.broadcast %cst_151 : f32 to vector<12x1xf32>
    %860 = arith.divf %858, %859 : vector<12x1xf32>
    %cst_152 = arith.constant 0.000000e+00 : f32
    %861 = vector.broadcast %cst_152 : f32 to vector<1x1xf32>
    %862 = vector.extract_strided_slice %860 {offsets = [0, 0], sizes = [11, 1], strides = [1, 1]} : vector<12x1xf32> to vector<11x1xf32>
    %863 = tpu.concatenate %861, %862 in 0 : vector<1x1xf32>, vector<11x1xf32> -> vector<12x1xf32>
    %864 = vector.extract_strided_slice %860 {offsets = [1, 0], sizes = [11, 1], strides = [1, 1]} : vector<12x1xf32> to vector<11x1xf32>
    %865 = tpu.concatenate %864, %861 in 0 : vector<11x1xf32>, vector<1x1xf32> -> vector<12x1xf32>
    %866 = vector.extract_strided_slice %856 {offsets = [0, 0], sizes = [1, 1], strides = [1, 1]} : vector<1x4xf32> to vector<1x1xf32>
    %867 = vector.broadcast %866 : vector<1x1xf32> to vector<12x1xf32>
    %868 = arith.mulf %867, %863 : vector<12x1xf32>
    %869 = vector.extract_strided_slice %856 {offsets = [0, 1], sizes = [1, 1], strides = [1, 1]} : vector<1x4xf32> to vector<1x1xf32>
    %870 = vector.broadcast %869 : vector<1x1xf32> to vector<12x1xf32>
    %871 = arith.mulf %870, %860 : vector<12x1xf32>
    %872 = arith.addf %868, %871 : vector<12x1xf32>
    %873 = vector.extract_strided_slice %856 {offsets = [0, 2], sizes = [1, 1], strides = [1, 1]} : vector<1x4xf32> to vector<1x1xf32>
    %874 = vector.broadcast %873 : vector<1x1xf32> to vector<12x1xf32>
    %875 = arith.mulf %874, %865 : vector<12x1xf32>
    %876 = arith.addf %872, %875 : vector<12x1xf32>
    %877 = vector.extract_strided_slice %856 {offsets = [0, 3], sizes = [1, 1], strides = [1, 1]} : vector<1x4xf32> to vector<1x1xf32>
    %878 = vector.broadcast %877 : vector<1x1xf32> to vector<12x1xf32>
    %879 = arith.addf %876, %878 : vector<12x1xf32>
    %880 = arith.negf %879 : vector<12x1xf32>
    %881 = math.exp %880 : vector<12x1xf32>
    %cst_153 = arith.constant 1.000000e+00 : f32
    %882 = vector.broadcast %cst_153 : f32 to vector<12x1xf32>
    %883 = arith.addf %882, %881 : vector<12x1xf32>
    %884 = arith.divf %882, %883 : vector<12x1xf32>
    %885 = vector.broadcast %884 : vector<12x1xf32> to vector<12x256xf32>
    %886 = arith.mulf %855, %885 : vector<12x256xf32>
    %c0_154 = arith.constant 0 : index
    %c0_155 = arith.constant 0 : index
    %887 = vector.load %arg17[%c0_154, %c0_155] : memref<12x12xf32, #tpu.memory_space<vmem>>, vector<12x12xf32>
    %c0_156 = arith.constant 0 : index
    %c0_157 = arith.constant 0 : index
    %c0_158 = arith.constant 0 : index
    %888 = vector.load %arg7[%c0_156, %c0_157, %c0_158] : memref<1x12x1xf32, #tpu.memory_space<vmem>>, vector<1x12x1xf32>
    %889 = vector.shape_cast %888 : vector<1x12x1xf32> to vector<12x1xf32>
    %890 = vector.broadcast %889 : vector<12x1xf32> to vector<12x256xf32>
    %891 = arith.mulf %886, %890 : vector<12x256xf32>
    %c0_159 = arith.constant 0 : index
    %c0_160 = arith.constant 0 : index
    %892 = vector.load %arg16[%c0_159, %c0_160] : memref<12x9xf32, #tpu.memory_space<vmem>>, vector<12x9xf32>
    %cst_161 = arith.constant 0.000000e+00 : f32
    %893 = vector.broadcast %cst_161 : f32 to vector<12x17xf32>
    %894 = vector.extract_strided_slice %891 {offsets = [0, 0], sizes = [12, 239], strides = [1, 1]} : vector<12x256xf32> to vector<12x239xf32>
    %895 = tpu.concatenate %893, %894 in 1 : vector<12x17xf32>, vector<12x239xf32> -> vector<12x256xf32>
    %896 = vector.broadcast %2 : vector<1x256xf32> to vector<12x256xf32>
    %897 = arith.mulf %895, %896 : vector<12x256xf32>
    %898 = vector.extract_strided_slice %892 {offsets = [0, 0], sizes = [12, 1], strides = [1, 1]} : vector<12x9xf32> to vector<12x1xf32>
    %899 = vector.broadcast %898 : vector<12x1xf32> to vector<12x256xf32>
    %900 = arith.mulf %899, %897 : vector<12x256xf32>
    %cst_162 = arith.constant 0.000000e+00 : f32
    %901 = vector.broadcast %cst_162 : f32 to vector<12x16xf32>
    %902 = vector.extract_strided_slice %891 {offsets = [0, 0], sizes = [12, 240], strides = [1, 1]} : vector<12x256xf32> to vector<12x240xf32>
    %903 = tpu.concatenate %901, %902 in 1 : vector<12x16xf32>, vector<12x240xf32> -> vector<12x256xf32>
    %904 = vector.extract_strided_slice %892 {offsets = [0, 1], sizes = [12, 1], strides = [1, 1]} : vector<12x9xf32> to vector<12x1xf32>
    %905 = vector.broadcast %904 : vector<12x1xf32> to vector<12x256xf32>
    %906 = arith.mulf %905, %903 : vector<12x256xf32>
    %907 = arith.addf %900, %906 : vector<12x256xf32>
    %cst_163 = arith.constant 0.000000e+00 : f32
    %908 = vector.broadcast %cst_163 : f32 to vector<12x15xf32>
    %909 = vector.extract_strided_slice %891 {offsets = [0, 0], sizes = [12, 241], strides = [1, 1]} : vector<12x256xf32> to vector<12x241xf32>
    %910 = tpu.concatenate %908, %909 in 1 : vector<12x15xf32>, vector<12x241xf32> -> vector<12x256xf32>
    %911 = vector.broadcast %3 : vector<1x256xf32> to vector<12x256xf32>
    %912 = arith.mulf %910, %911 : vector<12x256xf32>
    %913 = vector.extract_strided_slice %892 {offsets = [0, 2], sizes = [12, 1], strides = [1, 1]} : vector<12x9xf32> to vector<12x1xf32>
    %914 = vector.broadcast %913 : vector<12x1xf32> to vector<12x256xf32>
    %915 = arith.mulf %914, %912 : vector<12x256xf32>
    %916 = arith.addf %907, %915 : vector<12x256xf32>
    %cst_164 = arith.constant 0.000000e+00 : f32
    %917 = vector.broadcast %cst_164 : f32 to vector<12x1xf32>
    %918 = vector.extract_strided_slice %891 {offsets = [0, 0], sizes = [12, 255], strides = [1, 1]} : vector<12x256xf32> to vector<12x255xf32>
    %919 = tpu.concatenate %917, %918 in 1 : vector<12x1xf32>, vector<12x255xf32> -> vector<12x256xf32>
    %920 = vector.broadcast %2 : vector<1x256xf32> to vector<12x256xf32>
    %921 = arith.mulf %919, %920 : vector<12x256xf32>
    %922 = vector.extract_strided_slice %892 {offsets = [0, 3], sizes = [12, 1], strides = [1, 1]} : vector<12x9xf32> to vector<12x1xf32>
    %923 = vector.broadcast %922 : vector<12x1xf32> to vector<12x256xf32>
    %924 = arith.mulf %923, %921 : vector<12x256xf32>
    %925 = arith.addf %916, %924 : vector<12x256xf32>
    %926 = vector.extract_strided_slice %892 {offsets = [0, 4], sizes = [12, 1], strides = [1, 1]} : vector<12x9xf32> to vector<12x1xf32>
    %927 = vector.broadcast %926 : vector<12x1xf32> to vector<12x256xf32>
    %928 = arith.mulf %927, %891 : vector<12x256xf32>
    %929 = arith.addf %925, %928 : vector<12x256xf32>
    %cst_165 = arith.constant 0.000000e+00 : f32
    %930 = vector.broadcast %cst_165 : f32 to vector<12x1xf32>
    %931 = vector.extract_strided_slice %891 {offsets = [0, 1], sizes = [12, 255], strides = [1, 1]} : vector<12x256xf32> to vector<12x255xf32>
    %932 = tpu.concatenate %931, %930 in 1 : vector<12x255xf32>, vector<12x1xf32> -> vector<12x256xf32>
    %933 = vector.broadcast %3 : vector<1x256xf32> to vector<12x256xf32>
    %934 = arith.mulf %932, %933 : vector<12x256xf32>
    %935 = vector.extract_strided_slice %892 {offsets = [0, 5], sizes = [12, 1], strides = [1, 1]} : vector<12x9xf32> to vector<12x1xf32>
    %936 = vector.broadcast %935 : vector<12x1xf32> to vector<12x256xf32>
    %937 = arith.mulf %936, %934 : vector<12x256xf32>
    %938 = arith.addf %929, %937 : vector<12x256xf32>
    %cst_166 = arith.constant 0.000000e+00 : f32
    %939 = vector.broadcast %cst_166 : f32 to vector<12x15xf32>
    %940 = vector.extract_strided_slice %891 {offsets = [0, 15], sizes = [12, 241], strides = [1, 1]} : vector<12x256xf32> to vector<12x241xf32>
    %941 = tpu.concatenate %940, %939 in 1 : vector<12x241xf32>, vector<12x15xf32> -> vector<12x256xf32>
    %942 = vector.broadcast %2 : vector<1x256xf32> to vector<12x256xf32>
    %943 = arith.mulf %941, %942 : vector<12x256xf32>
    %944 = vector.extract_strided_slice %892 {offsets = [0, 6], sizes = [12, 1], strides = [1, 1]} : vector<12x9xf32> to vector<12x1xf32>
    %945 = vector.broadcast %944 : vector<12x1xf32> to vector<12x256xf32>
    %946 = arith.mulf %945, %943 : vector<12x256xf32>
    %947 = arith.addf %938, %946 : vector<12x256xf32>
    %cst_167 = arith.constant 0.000000e+00 : f32
    %948 = vector.broadcast %cst_167 : f32 to vector<12x16xf32>
    %949 = vector.extract_strided_slice %891 {offsets = [0, 16], sizes = [12, 240], strides = [1, 1]} : vector<12x256xf32> to vector<12x240xf32>
    %950 = tpu.concatenate %949, %948 in 1 : vector<12x240xf32>, vector<12x16xf32> -> vector<12x256xf32>
    %951 = vector.extract_strided_slice %892 {offsets = [0, 7], sizes = [12, 1], strides = [1, 1]} : vector<12x9xf32> to vector<12x1xf32>
    %952 = vector.broadcast %951 : vector<12x1xf32> to vector<12x256xf32>
    %953 = arith.mulf %952, %950 : vector<12x256xf32>
    %954 = arith.addf %947, %953 : vector<12x256xf32>
    %cst_168 = arith.constant 0.000000e+00 : f32
    %955 = vector.broadcast %cst_168 : f32 to vector<12x17xf32>
    %956 = vector.extract_strided_slice %891 {offsets = [0, 17], sizes = [12, 239], strides = [1, 1]} : vector<12x256xf32> to vector<12x239xf32>
    %957 = tpu.concatenate %956, %955 in 1 : vector<12x239xf32>, vector<12x17xf32> -> vector<12x256xf32>
    %958 = vector.broadcast %3 : vector<1x256xf32> to vector<12x256xf32>
    %959 = arith.mulf %957, %958 : vector<12x256xf32>
    %960 = vector.extract_strided_slice %892 {offsets = [0, 8], sizes = [12, 1], strides = [1, 1]} : vector<12x9xf32> to vector<12x1xf32>
    %961 = vector.broadcast %960 : vector<12x1xf32> to vector<12x256xf32>
    %962 = arith.mulf %961, %959 : vector<12x256xf32>
    %963 = arith.addf %954, %962 : vector<12x256xf32>
    %cst_169 = arith.constant dense<0.000000e+00> : vector<12x256xf32>
    %964 = tpu.matmul %887, %963, %cst_169 {dimension_numbers = #tpu.dot_dimension_numbers<[1], [0], [0], [1], [0, 0, 1, 1], [], []>, precision = #tpu.contract_precision<fp32>} : vector<12x12xf32>, vector<12x256xf32>, vector<12x256xf32> -> vector<12x256xf32>
    %c0_170 = arith.constant 0 : index
    %c0_171 = arith.constant 0 : index
    %c0_172 = arith.constant 0 : index
    %965 = vector.load %arg10[%c0_170, %c0_171, %c0_172] : memref<1x12x1xf32, #tpu.memory_space<vmem>>, vector<1x12x1xf32>
    %966 = vector.shape_cast %965 : vector<1x12x1xf32> to vector<12x1xf32>
    %967 = vector.broadcast %966 : vector<12x1xf32> to vector<12x256xf32>
    %968 = arith.mulf %964, %967 : vector<12x256xf32>
    %c0_173 = arith.constant 0 : index
    %c0_174 = arith.constant 0 : index
    %c0_175 = arith.constant 0 : index
    %969 = vector.load %arg4[%c0_173, %c0_174, %c0_175] : memref<1x1x256xf32, #tpu.memory_space<vmem>>, vector<1x1x256xf32>
    %970 = vector.shape_cast %969 : vector<1x1x256xf32> to vector<1x256xf32>
    %971 = vector.broadcast %970 : vector<1x256xf32> to vector<12x256xf32>
    %972 = arith.addf %968, %971 : vector<12x256xf32>
    %c0_176 = arith.constant 0 : index
    %c0_177 = arith.constant 0 : index
    %973 = vector.load %arg18[%c0_176, %c0_177] : memref<12x1xf32, #tpu.memory_space<vmem>>, vector<12x1xf32>
    %974 = vector.broadcast %973 : vector<12x1xf32> to vector<12x256xf32>
    %975 = arith.addf %972, %974 : vector<12x256xf32>
    %cst_178 = arith.constant 0.000000e+00 : f32
    %976 = vector.broadcast %cst_178 : f32 to vector<12x256xf32>
    %977 = arith.cmpf oge, %975, %976 : vector<12x256xf32>
    %cst_179 = arith.constant 2.000000e-01 : f32
    %978 = vector.broadcast %cst_179 : f32 to vector<12x256xf32>
    %979 = arith.mulf %978, %975 : vector<12x256xf32>
    %980 = arith.select %977, %975, %979 : vector<12x256xi1>, vector<12x256xf32>
    %c0_180 = arith.constant 0 : index
    %c0_181 = arith.constant 0 : index
    %c0_182 = arith.constant 0 : index
    %981 = vector.load %arg28[%c0_180, %c0_181, %c0_182] : memref<1x12x256xf32, #tpu.memory_space<vmem>>, vector<1x12x256xf32>
    %982 = vector.shape_cast %981 : vector<1x12x256xf32> to vector<12x256xf32>
    %983 = vector.shape_cast %980 : vector<12x256xf32> to vector<1x12x256xf32>
    tpu.vector_store %arg28[%c0_180, %c0_181, %c0_182], %983 {strides = array<i32>} : memref<1x12x256xf32, #tpu.memory_space<vmem>>, vector<1x12x256xf32>,
    %c0_183 = arith.constant 0 : index
    %c0_184 = arith.constant 0 : index
    %984 = vector.load %arg19[%c0_183, %c0_184] : memref<12x12xf32, #tpu.memory_space<vmem>>, vector<12x12xf32>
    %c0_185 = arith.constant 0 : index
    %c0_186 = arith.constant 0 : index
    %c0_187 = arith.constant 0 : index
    %985 = vector.load %arg8[%c0_185, %c0_186, %c0_187] : memref<1x12x1xf32, #tpu.memory_space<vmem>>, vector<1x12x1xf32>
    %986 = vector.shape_cast %985 : vector<1x12x1xf32> to vector<12x1xf32>
    %987 = vector.broadcast %986 : vector<12x1xf32> to vector<12x256xf32>
    %988 = arith.mulf %980, %987 : vector<12x256xf32>
    %cst_188 = arith.constant dense<0.000000e+00> : vector<12x256xf32>
    %989 = tpu.matmul %984, %988, %cst_188 {dimension_numbers = #tpu.dot_dimension_numbers<[1], [0], [0], [1], [0, 0, 1, 1], [], []>, precision = #tpu.contract_precision<fp32>} : vector<12x12xf32>, vector<12x256xf32>, vector<12x256xf32> -> vector<12x256xf32>
    %c0_189 = arith.constant 0 : index
    %c0_190 = arith.constant 0 : index
    %990 = vector.load %arg20[%c0_189, %c0_190] : memref<12x1xf32, #tpu.memory_space<vmem>>, vector<12x1xf32>
    %991 = vector.broadcast %990 : vector<12x1xf32> to vector<12x256xf32>
    %992 = arith.addf %989, %991 : vector<12x256xf32>
    %c0_191 = arith.constant 0 : index
    %c0_192 = arith.constant 0 : index
    %c0_193 = arith.constant 0 : index
    %993 = vector.load %arg29[%c0_191, %c0_192, %c0_193] : memref<1x12x256xf32, #tpu.memory_space<vmem>>, vector<1x12x256xf32>
    %994 = vector.shape_cast %993 : vector<1x12x256xf32> to vector<12x256xf32>
    %995 = vector.shape_cast %992 : vector<12x256xf32> to vector<1x12x256xf32>
    tpu.vector_store %arg29[%c0_191, %c0_192, %c0_193], %995 {strides = array<i32>} : memref<1x12x256xf32, #tpu.memory_space<vmem>>, vector<1x12x256xf32>,
    return
  }
  func.func @transform_0(%arg0: i32) -> (i32, i32, i32) {
    %c0_i32 = arith.constant 0 : i32
    %c0_i32_0 = arith.constant 0 : i32
    %c0_i32_1 = arith.constant 0 : i32
    return %arg0, %c0_i32, %c0_i32_0 : i32, i32, i32
  }
  func.func @transform_1(%arg0: i32) -> (i32, i32, i32) {
    %c0_i32 = arith.constant 0 : i32
    %c0_i32_0 = arith.constant 0 : i32
    %c0_i32_1 = arith.constant 0 : i32
    return %arg0, %c0_i32, %c0_i32_0 : i32, i32, i32
  }
  func.func @transform_2(%arg0: i32) -> (i32, i32, i32) {
    %c0_i32 = arith.constant 0 : i32
    %c0_i32_0 = arith.constant 0 : i32
    %c0_i32_1 = arith.constant 0 : i32
    return %arg0, %c0_i32, %c0_i32_0 : i32, i32, i32
  }
  func.func @transform_3(%arg0: i32) -> (i32, i32, i32) {
    %c0_i32 = arith.constant 0 : i32
    %c0_i32_0 = arith.constant 0 : i32
    %c0_i32_1 = arith.constant 0 : i32
    return %arg0, %c0_i32, %c0_i32_0 : i32, i32, i32
  }
  func.func @transform_4(%arg0: i32) -> (i32, i32, i32) {
    %c0_i32 = arith.constant 0 : i32
    %c0_i32_0 = arith.constant 0 : i32
    %c0_i32_1 = arith.constant 0 : i32
    return %arg0, %c0_i32, %c0_i32_0 : i32, i32, i32
  }
  func.func @transform_5(%arg0: i32) -> (i32, i32, i32) {
    %c0_i32 = arith.constant 0 : i32
    %c0_i32_0 = arith.constant 0 : i32
    %c0_i32_1 = arith.constant 0 : i32
    return %arg0, %c0_i32, %c0_i32_0 : i32, i32, i32
  }
  func.func @transform_6(%arg0: i32) -> (i32, i32, i32) {
    %c0_i32 = arith.constant 0 : i32
    %c0_i32_0 = arith.constant 0 : i32
    %c0_i32_1 = arith.constant 0 : i32
    return %arg0, %c0_i32, %c0_i32_0 : i32, i32, i32
  }
  func.func @transform_7(%arg0: i32) -> (i32, i32, i32) {
    %c0_i32 = arith.constant 0 : i32
    %c0_i32_0 = arith.constant 0 : i32
    %c0_i32_1 = arith.constant 0 : i32
    return %arg0, %c0_i32, %c0_i32_0 : i32, i32, i32
  }
  func.func @transform_8(%arg0: i32) -> (i32, i32, i32) {
    %c0_i32 = arith.constant 0 : i32
    %c0_i32_0 = arith.constant 0 : i32
    %c0_i32_1 = arith.constant 0 : i32
    return %arg0, %c0_i32, %c0_i32_0 : i32, i32, i32
  }
  func.func @transform_9(%arg0: i32) -> (i32, i32, i32) {
    %c0_i32 = arith.constant 0 : i32
    %c0_i32_0 = arith.constant 0 : i32
    %c0_i32_1 = arith.constant 0 : i32
    return %arg0, %c0_i32, %c0_i32_0 : i32, i32, i32
  }
  func.func @transform_10(%arg0: i32) -> (i32, i32) {
    %c0_i32 = arith.constant 0 : i32
    %c0_i32_0 = arith.constant 0 : i32
    %c0_i32_1 = arith.constant 0 : i32
    return %c0_i32, %c0_i32_0 : i32, i32
  }
  func.func @transform_11(%arg0: i32) -> (i32, i32) {
    %c0_i32 = arith.constant 0 : i32
    %c0_i32_0 = arith.constant 0 : i32
    %c0_i32_1 = arith.constant 0 : i32
    return %c0_i32, %c0_i32_0 : i32, i32
  }
  func.func @transform_12(%arg0: i32) -> (i32, i32) {
    %c0_i32 = arith.constant 0 : i32
    %c0_i32_0 = arith.constant 0 : i32
    %c0_i32_1 = arith.constant 0 : i32
    return %c0_i32, %c0_i32_0 : i32, i32
  }
  func.func @transform_13(%arg0: i32) -> (i32, i32) {
    %c0_i32 = arith.constant 0 : i32
    %c0_i32_0 = arith.constant 0 : i32
    %c0_i32_1 = arith.constant 0 : i32
    return %c0_i32, %c0_i32_0 : i32, i32
  }
  func.func @transform_14(%arg0: i32) -> (i32, i32) {
    %c0_i32 = arith.constant 0 : i32
    %c0_i32_0 = arith.constant 0 : i32
    %c0_i32_1 = arith.constant 0 : i32
    return %c0_i32, %c0_i32_0 : i32, i32
  }
  func.func @transform_15(%arg0: i32) -> (i32, i32) {
    %c0_i32 = arith.constant 0 : i32
    %c0_i32_0 = arith.constant 0 : i32
    %c0_i32_1 = arith.constant 0 : i32
    return %c0_i32, %c0_i32_0 : i32, i32
  }
  func.func @transform_16(%arg0: i32) -> (i32, i32) {
    %c0_i32 = arith.constant 0 : i32
    %c0_i32_0 = arith.constant 0 : i32
    %c0_i32_1 = arith.constant 0 : i32
    return %c0_i32, %c0_i32_0 : i32, i32
  }
  func.func @transform_17(%arg0: i32) -> (i32, i32) {
    %c0_i32 = arith.constant 0 : i32
    %c0_i32_0 = arith.constant 0 : i32
    %c0_i32_1 = arith.constant 0 : i32
    return %c0_i32, %c0_i32_0 : i32, i32
  }
  func.func @transform_18(%arg0: i32) -> (i32, i32) {
    %c0_i32 = arith.constant 0 : i32
    %c0_i32_0 = arith.constant 0 : i32
    %c0_i32_1 = arith.constant 0 : i32
    return %c0_i32, %c0_i32_0 : i32, i32
  }
  func.func @transform_19(%arg0: i32) -> (i32, i32) {
    %c0_i32 = arith.constant 0 : i32
    %c0_i32_0 = arith.constant 0 : i32
    %c0_i32_1 = arith.constant 0 : i32
    return %c0_i32, %c0_i32_0 : i32, i32
  }
  func.func @transform_20(%arg0: i32) -> (i32, i32) {
    %c0_i32 = arith.constant 0 : i32
    %c0_i32_0 = arith.constant 0 : i32
    %c0_i32_1 = arith.constant 0 : i32
    return %c0_i32, %c0_i32_0 : i32, i32
  }
  func.func @transform_21(%arg0: i32) -> (i32, i32) {
    %c0_i32 = arith.constant 0 : i32
    %c0_i32_0 = arith.constant 0 : i32
    %c0_i32_1 = arith.constant 0 : i32
    return %c0_i32, %c0_i32_0 : i32, i32
  }
  func.func @transform_22(%arg0: i32) -> (i32, i32) {
    %c0_i32 = arith.constant 0 : i32
    %c0_i32_0 = arith.constant 0 : i32
    %c0_i32_1 = arith.constant 0 : i32
    return %c0_i32, %c0_i32_0 : i32, i32
  }
  func.func @transform_23(%arg0: i32) -> (i32, i32) {
    %c0_i32 = arith.constant 0 : i32
    %c0_i32_0 = arith.constant 0 : i32
    %c0_i32_1 = arith.constant 0 : i32
    return %c0_i32, %c0_i32_0 : i32, i32
  }
  func.func @transform_24(%arg0: i32) -> (i32, i32) {
    %c0_i32 = arith.constant 0 : i32
    %c0_i32_0 = arith.constant 0 : i32
    %c0_i32_1 = arith.constant 0 : i32
    return %c0_i32, %c0_i32_0 : i32, i32
  }
  func.func @transform_25(%arg0: i32) -> (i32, i32) {
    %c0_i32 = arith.constant 0 : i32
    %c0_i32_0 = arith.constant 0 : i32
    %c0_i32_1 = arith.constant 0 : i32
    return %c0_i32, %c0_i32_0 : i32, i32
  }
  func.func @transform_26(%arg0: i32) -> (i32, i32) {
    %c0_i32 = arith.constant 0 : i32
    %c0_i32_0 = arith.constant 0 : i32
    %c0_i32_1 = arith.constant 0 : i32
    return %c0_i32, %c0_i32_0 : i32, i32
  }
  func.func @transform_27(%arg0: i32) -> (i32, i32, i32) {
    %c0_i32 = arith.constant 0 : i32
    %c0_i32_0 = arith.constant 0 : i32
    %c0_i32_1 = arith.constant 0 : i32
    return %arg0, %c0_i32, %c0_i32_0 : i32, i32, i32
  }
  func.func @transform_28(%arg0: i32) -> (i32, i32, i32) {
    %c0_i32 = arith.constant 0 : i32
    %c0_i32_0 = arith.constant 0 : i32
    %c0_i32_1 = arith.constant 0 : i32
    return %arg0, %c0_i32, %c0_i32_0 : i32, i32, i32
  }
}

</mosaic_0001>

<bundles_post_ra>
// kernel: mobile_synthesis_block_v5.1
= control target key start
LH: loop header
LB: loop body
LE: loop exit
PB: predicated region body
PF: predicated region fallthrough
CT: control target
= control target key end

     0   :  { %s15695_s0 = inlined_call_operand.vmem [shape: f32[2,16,64], index: 0, kind: input, shape index: {}]   ;;  %s15696_s1 = inlined_call_operand.vmem [shape: f32[2,12,256], index: 1, kind: input, shape index: {}]   ;;  %s15697_s2 = inlined_call_operand.vmem [shape: f32[2,1,256], index: 2, kind: input, shape index: {}]   ;;  %s15698_s3 = inlined_call_operand.vmem [shape: f32[2,1,256], index: 3, kind: input, shape index: {}]   ;;  %s15699_s4 = inlined_call_operand.vmem [shape: f32[2,16,1], index: 4, kind: input, shape index: {}]   ;;  %s15700_s5 = inlined_call_operand.vmem [shape: f32[2,4,1], index: 5, kind: input, shape index: {}]   ;;  %s15701_s6 = inlined_call_operand.vmem [shape: f32[2,12,1], index: 6, kind: input, shape index: {}]   ;;  %s15702_s7 = inlined_call_operand.vmem [shape: f32[2,12,1], index: 7, kind: input, shape index: {}]   ;;  %s15703_s8 = inlined_call_operand.vmem [shape: f32[2,12,1], index: 8, kind: input, shape index: {}]   ;;  %s15704_s9 = inlined_call_operand.vmem [shape: f32[2,12,1], index: 9, kind: input, shape index: {}]   ;;  %s15705_s10 = inlined_call_operand.vmem [shape: f32[256,256], index: 10, kind: input, shape index: {}]   ;;  %s15706_s11 = inlined_call_operand.vmem [shape: f32[7,256], index: 11, kind: input, shape index: {}]   ;;  %s15707_s12 = inlined_call_operand.vmem [shape: f32[4,9], index: 12, kind: input, shape index: {}]   ;;  %s15708_s13 = inlined_call_operand.vmem [shape: f32[12,4], index: 13, kind: input, shape index: {}]   ;;  %s15709_s14 = inlined_call_operand.vmem [shape: f32[12,1], index: 14, kind: input, shape index: {}]   ;;  %s15710_s15 = inlined_call_operand.vmem [shape: f32[12,9], index: 15, kind: input, shape index: {}]   ;;  %s15711_s16 = inlined_call_operand.vmem [shape: f32[12,12], index: 16, kind: input, shape index: {}]   ;;  %s15712_s17 = inlined_call_operand.vmem [shape: f32[12,1], index: 17, kind: input, shape index: {}]   ;;  %s15713_s18 = inlined_call_operand.vmem [shape: f32[12,12], index: 18, kind: input, shape index: {}]   ;;  %s15714_s19 = inlined_call_operand.vmem [shape: f32[12,1], index: 19, kind: input, shape index: {}]   ;;  %s15715_s20 = inlined_call_operand.vmem [shape: f32[12,12], index: 20, kind: input, shape index: {}]   ;;  %s15716_s21 = inlined_call_operand.vmem [shape: f32[12,1], index: 21, kind: input, shape index: {}]   ;;  %s15717_s22 = inlined_call_operand.vmem [shape: f32[36,9], index: 22, kind: input, shape index: {}]   ;;  %s15718_s23 = inlined_call_operand.vmem [shape: f32[36,1], index: 23, kind: input, shape index: {}]   ;;  %s15719_s24 = inlined_call_operand.vmem [shape: f32[36,12], index: 24, kind: input, shape index: {}]   ;;  %s15720_s25 = inlined_call_operand.vmem [shape: f32[36,1], index: 25, kind: input, shape index: {}]   ;;  %s15721_s26 = inlined_call_operand.vmem [shape: f32[1,4], index: 26, kind: input, shape index: {}]   ;;  %s15722_s27 = inlined_call_operand.vmem [shape: f32[2,12,256], index: 27, kind: output, shape index: {0}]   ;;  %s15723_s28 = inlined_call_operand.vmem [shape: f32[2,12,256], index: 28, kind: output, shape index: {1}]  }
   0x1   :  { %15908 = sst [smem:[#allocation38_spill]] %s15695_s0 }
   0x2   :  { %15909 = sst [smem:[#allocation39_spill]] %s15696_s1 }
   0x3   :  { %15910 = sst [smem:[#allocation40_spill]] %s15697_s2 }
   0x4   :  { %15911 = sst [smem:[#allocation41_spill]] %s15698_s3 }
   0x5   :  { %15912 = sst [smem:[#allocation42_spill]] %s15699_s4 }
   0x6   :  { %15913 = sst [smem:[#allocation43_spill]] %s15700_s5 }
   0x7   :  { %15914 = sst [smem:[#allocation44_spill]] %s15701_s6 }
   0x8   :  { %15915 = sst [smem:[#allocation45_spill]] %s15702_s7 }
   0x9   :  { %15916 = sst [smem:[#allocation46_spill]] %s15703_s8  ;;  %s12297_s8 = smov 0  }
   0xa   :  { %15917 = sst [smem:[#allocation47_spill]] %s15704_s9 }
   0xb   :  { %15918 = sst [smem:[#allocation48_spill]] %s15705_s10 }
   0xc   :  { %15919 = sst [smem:[#allocation49_spill]] %s15706_s11 }
   0xd   :  { %15920 = sst [smem:[#allocation50_spill]] %s15707_s12 }
   0xe   :  { %15921 = sst [smem:[#allocation51_spill]] %s15708_s13 }
   0xf   :  { %15922 = sst [smem:[#allocation52_spill]] %s15709_s14 }
  0x10   :  { %15923 = sst [smem:[#allocation53_spill]] %s15710_s15 }
  0x11   :  { %15924 = sst [smem:[#allocation54_spill]] %s15711_s16 }
  0x12   :  { %15925 = sst [smem:[#allocation55_spill]] %s15712_s17 }
  0x13   :  { %15926 = sst [smem:[#allocation56_spill]] %s15713_s18 }
  0x14   :  { %15927 = sst [smem:[#allocation57_spill]] %s15714_s19 }
  0x15   :  { %15928 = sst [smem:[#allocation58_spill]] %s15716_s21 }
  0x16   :  { %15929 = sst [smem:[#allocation59_spill]] %s15721_s26 }
  0x17   :  { %15930 = sst [smem:[#allocation60_spill]] %s15722_s27 }
  0x18   :  { %15931 = sst [smem:[#allocation61_spill]] %s15723_s28 }
  0x19 LB: > { %15932 = sst [smem:[#allocation2_spill]] %s12118_s8  ;;  %s11154_s5 = sadd.s32 4294967295, %s12118_s8   ;;  %s12118_s8 = sphi %s12297_s8, %s39_s8  }
  0x1a   : > { %p11158_p0 = scmp.ge.s32.totalorder %s12118_s8, 1  ;;  %p852_p1 = scmp.lt.s32.totalorder %s12118_s8, 3 }
  0x1c   : > { %p853_p2 = pnand %p11158_p0, %p852_p1 }
  0x1e   : > { %856 = sbr.rel (%p853_p2) target bundleno = 4766 (0x129e), region = 128 }
  0x25   : > { %p973_p3 = scmp.lt.s32.totalorder %s11154_s5, 1  ;;  %s15933_s3 = sld [smem:[#allocation48_spill]]  ;;  %v15726_v3 = vmov 0   ;;  %vm15887_vm0 = vcmask 523264   ;;  %vm15834_vm1 = vcmask 138240   ;;  %vm3789_vm2 = vcmask 121856  }
  0x26   : > { %12029 = vset.pattern.permute.xlu0 %v15726_v3  ;;  %12030 = vset.pattern.permute.xlu1 %v15726_v3  ;;  %s15936_s2 = sld [smem:[#allocation42_spill]]  ;;  %s15937_s11 = sld [smem:[#allocation38_spill]]  ;;  %vm3772_vm3 = vcmask 130048   ;;  %vm3819_vm4 = vcmask 7168   ;;  %vm15886_vm5 = vcmask 31744   ;;  %vm15837_vm6 = vcmask 1039360  }
  0x27   : > { %s16272_s5 = smov (!%p973_p3, %s11154_s5), 1  ;;  %s15939_s1 = sld [smem:[#allocation43_spill]]  ;;  %vm15885_vm7 = vcmask 908288   ;;  %vm15838_vm8 = vcmask 924672   ;;  %vm15842_vm9 = vcmask 916480   ;;  %vm15817_vm10 = vcmask 1043456  }
  0x28   : > { %15934 = sst [smem:[#allocation3_spill]] %s16272_s5  ;;  %s12372_s0 = sshll.u32 %s16272_s5, 4  ;;  %vm15823_vm11 = vcmask 97280  }
  0x29   : > { %15935 = sst [smem:[#allocation4_spill]] %s12372_s0  ;;  %s11167_s8 = sshll.u32 %s16272_s5, 2 }
  0x2a   : > { %s15786_s12 = smov 17   ;;  %s15750_s9 = smov 127  }
  0x2b   : > { %v12308_v0 = vld [vmem:[%s15933_s3 + $0x88] sm:$0xff]  ;;  %v12313_v1 = vld [vmem:[%s15933_s3 + $0x98] sm:$0xff]  ;;  %v12318_v2 = vld [vmem:[%s15933_s3 + $0x80] sm:$0xff]  ;;  %s15752_s30 = smov 113   ;;  %s15748_s6 = smov 111  }
  0x2c   : > { %v1094_v4 = vand.u32 4294901760, %v12308_v0  ;;  %v1098_v5 = vand.u32 4294901760, %v12313_v1  ;;  %v12326_v6 = vld [vmem:[%s15933_s3 + $0x90] sm:$0xff]  ;;  %v1096_v7 = vand.u32 4294901760, %v12318_v2  ;;  %v12332_v8 = vld [vmem:[%s15933_s3 + $0xa8] sm:$0xff]  ;;  %v12337_v9 = vld [vmem:[%s15933_s3 + $0xb8] sm:$0xff]  ;;  %s995_s7 = scalar_lea.vmem %s15936_s2, %s12372_s0  ;;  %s12606_s29 = scalar_lea.vmem %s15937_s11, %s12372_s0 }
  0x2d   : > { %v1100_v10 = vand.u32 4294901760, %v12326_v6  ;;  %v1102_v11 = vand.u32 4294901760, %v12332_v8  ;;  %v1106_v12 = vand.u32 4294901760, %v12337_v9  ;;  %v12348_v13 = vld [vmem:[%s15933_s3 + $0xa0] sm:$0xff]  ;;  %v12353_v14 = vld [vmem:[%s15933_s3 + $0xb0] sm:$0xff]  ;;  %v1044_v36 = vld [vmem:[%s995_s7 + $0x8] sm:$0xff]  ;;  %s999_s4 = scalar_lea.vmem %s15939_s1, %s11167_s8 }
  0x2e   : > { %v12358_v15 = vsub.f32 %v12308_v0, %v1094_v4  ;;  %v12363_v16 = vsub.f32 %v12313_v1, %v1098_v5  ;;  %v12368_v17 = vsub.f32 %v12318_v2, %v1096_v7  ;;  %v1104_v18 = vand.u32 4294901760, %v12348_v13  ;;  %v1043_v27 = vld [vmem:[%s995_s7] sm:$0xff]  ;;  %v12433_v41 = vld [vmem:[%s15933_s3 + $0xc8] sm:$0xff]  ;;  %v12438_v42 = vld [vmem:[%s15933_s3 + $0xd8] sm:$0xff]  ;;  %s15938_s7 = sld [smem:[#allocation50_spill]]  ;;  %s15758_s1 = smov 15  }
  0x2f   : > { %v12377_v19 = vsub.f32 %v12326_v6, %v1100_v10  ;;  %v12382_v20 = vsub.f32 %v12332_v8, %v1102_v11  ;;  %v12387_v21 = vsub.f32 %v12337_v9, %v1106_v12  ;;  %v1108_v22 = vand.u32 4294901760, %v12353_v14  ;;  %1047 = vperm.xlu0 %12029, %v1043_v27   ;;  %v12449_v51 = vld [vmem:[%s15933_s3 + $0xc0] sm:$0xff]  ;;  %v12454_v52 = vld [vmem:[%s15933_s3 + $0xd0] sm:$0xff]  ;;  %v12461_v57 = vld [vmem:[%s15933_s3 + $0xe8] sm:$0xff]  ;;  %s15756_s10 = smov 112   ;;  %s15946_s2 = sld [smem:[#allocation46_spill]] }
  0x30   : > { %v1188_v23 = vand.u32 4294901760, %v12358_v15  ;;  %v1200_v24 = vand.u32 4294901760, %v12363_v16  ;;  %v1194_v25 = vand.u32 4294901760, %v12368_v17  ;;  %v12400_v26 = vsub.f32 %v12348_v13, %v1104_v18  ;;  %v12466_v58 = vld [vmem:[%s15933_s3 + $0xf8] sm:$0xff]  ;;  %v1087_v2 = vld [vmem:[%s15933_s3 + $0xf0] sm:$0xff]  ;;  %s15947_s14 = sld [smem:[#allocation52_spill]] }
  0x31   : > { %v1206_v28 = vand.u32 4294901760, %v12377_v19  ;;  %v1212_v29 = vand.u32 4294901760, %v12382_v20  ;;  %v1224_v30 = vand.u32 4294901760, %v12387_v21  ;;  %v12408_v31 = vsub.f32 %v12353_v14, %v1108_v22  ;;  %s15956_s13 = sld [smem:[#allocation51_spill]]  ;;  %s15959_s21 = sld [smem:[#allocation58_spill]] }
  0x32   : > { %v1189_v32 = vsub.f32 %v12358_v15, %v1188_v23  ;;  %v1201_v33 = vsub.f32 %v12363_v16, %v1200_v24  ;;  %v1195_v34 = vsub.f32 %v12368_v17, %v1194_v25  ;;  %v1218_v35 = vand.u32 4294901760, %v12400_v26  ;;  %s15961_s11 = sld [smem:[#allocation40_spill]]  ;;  %s15963_s8 = sld [smem:[#allocation39_spill]] }
  0x33   : > { %v1207_v37 = vsub.f32 %v12377_v19, %v1206_v28  ;;  %v1213_v38 = vsub.f32 %v12382_v20, %v1212_v29  ;;  %v1225_v39 = vsub.f32 %v12387_v21, %v1224_v30  ;;  %v1230_v40 = vand.u32 4294901760, %v12408_v31  ;;  %1052 = vperm.xlu0 %12029, %v1044_v36   ;;  %s15984_s28 = smov 60   ;;  %s15985_s27 = smov 2  }
  0x34   : > { %v1190_v43 = vand.u32 4294901760, %v1189_v32  ;;  %v1202_v44 = vand.u32 4294901760, %v1201_v33  ;;  %v1196_v45 = vand.u32 4294901760, %v1195_v34  ;;  %v1219_v46 = vsub.f32 %v12400_v26, %v1218_v35  ;;  %v12485_v34 = vld [vmem:[%s15933_s3 + $0xe0] sm:$0xff]  ;;  %s15987_s18 = smov 4   ;;  %s15990_s16 = smov 96  }
  0x35   : > { %v1208_v47 = vand.u32 4294901760, %v1207_v37  ;;  %v1214_v48 = vand.u32 4294901760, %v1213_v38  ;;  %v1226_v49 = vand.u32 4294901760, %v1225_v39  ;;  %v1231_v50 = vsub.f32 %v12408_v31, %v1230_v40  ;;  %s15843_s19 = smov 124   ;;  %s16046_s15 = smov 17  }
  0x36   : > { %v11215_v53 = vpack.c.bf16 %v1202_v44, %v1190_v43  ;;  %v1220_v54 = vand.u32 4294901760, %v1219_v46  ;;  %v1110_v55 = vand.u32 4294901760, %v12433_v41  ;;  %v1114_v56 = vand.u32 4294901760, %v12438_v42  ;;  %s16047_s17 = smov 98  }
  0x37   : > { %v11217_v59 = vpack.c.bf16 %v1208_v47, %v1196_v45  ;;  %v11219_v60 = vpack.c.bf16 %v1226_v49, %v1214_v48  ;;  %v1232_v61 = vand.u32 4294901760, %v1231_v50  ;;  %v12472_v62 = vpack.c.bf16 %v1098_v5, %v1094_v4 }
  0x38   : > { %11216 = vmatprep.subr.bf16.mxu0 %v11215_v53  ;;  %v12475_v63 = vsub.f32 %v12433_v41, %v1110_v55  ;;  %v12478_v27 = vsub.f32 %v12438_v42, %v1114_v56  ;;  %v1112_v32 = vand.u32 4294901760, %v12449_v51  ;;  %v1116_v33 = vand.u32 4294901760, %v12454_v52 }
  0x39   : > { %11218 = vmatpush1.bf16.msra.mxu0 %v11217_v59  ;;  %v11221_v0 = vpack.c.bf16 %v1232_v61, %v1220_v54  ;;  %11200 = vmatprep.subr.bf16.mxu1 %v12472_v62  ;;  %v12492_v1 = vpack.c.bf16 %v1100_v10, %v1096_v7  ;;  %v1118_v4 = vand.u32 4294901760, %v12461_v57  ;;  %v1122_v5 = vand.u32 4294901760, %v12466_v58 }
  0x3a   : > { %11220 = vmatprep.subr.bf16.mxu0 %v11219_v60  ;;  %v1236_v36 = vand.u32 4294901760, %v12475_v63  ;;  %v1248_v37 = vand.u32 4294901760, %v12478_v27  ;;  %v12499_v38 = vsub.f32 %v12449_v51, %v1112_v32  ;;  %v12502_v39 = vsub.f32 %v12454_v52, %v1116_v33 }
  0x3b   : > { %11202 = vmatpush1.bf16.msra.mxu1 %v12492_v1  ;;  %v12509_v6 = vsub.f32 %v12461_v57, %v1118_v4  ;;  %v12512_v7 = vsub.f32 %v12466_v58, %v1122_v5  ;;  %v12518_v10 = vpack.c.bf16 %v1106_v12, %v1102_v11  ;;  %v1120_v41 = vand.u32 4294901760, %v12485_v34 }
  0x3c   : > { %v1237_v42 = vsub.f32 %v12475_v63, %v1236_v36  ;;  %v1249_v43 = vsub.f32 %v12478_v27, %v1248_v37  ;;  %v1242_v44 = vand.u32 4294901760, %v12499_v38  ;;  %v1254_v45 = vand.u32 4294901760, %v12502_v39 }
  0x3d   : > { %11222 = vmatpush1.bf16.msra.mxu0 %v11221_v0  ;;  %v1260_v8 = vand.u32 4294901760, %v12509_v6  ;;  %v1272_v9 = vand.u32 4294901760, %v12512_v7  ;;  %11204 = vmatprep.subr.bf16.mxu1 %v12518_v10  ;;  %v1124_v11 = vand.u32 4294901760, %v1087_v2  ;;  %v12533_v12 = vsub.f32 %v12485_v34, %v1120_v41 }
  0x3e   : > { %v1238_v46 = vand.u32 4294901760, %v1237_v42  ;;  %v1250_v47 = vand.u32 4294901760, %v1249_v43  ;;  %v1243_v48 = vsub.f32 %v12499_v38, %v1242_v44  ;;  %v1255_v49 = vsub.f32 %v12502_v39, %v1254_v45 }
  0x3f   : > { %v1261_v50 = vsub.f32 %v12509_v6, %v1260_v8  ;;  %v1273_v51 = vsub.f32 %v12512_v7, %v1272_v9  ;;  %v1266_v52 = vand.u32 4294901760, %v12533_v12  ;;  %v12540_v53 = vsub.f32 %v1087_v2, %v1124_v11 }
  0x40   : > { %v11223_v54 = vpack.c.bf16 %v1250_v47, %v1238_v46  ;;  %v1244_v57 = vand.u32 4294901760, %v1243_v48  ;;  %v1256_v58 = vand.u32 4294901760, %v1255_v49  ;;  %v12546_v59 = vpack.c.bf16 %v1108_v22, %v1104_v18 }
  0x41   : > { %v1262_v60 = vand.u32 4294901760, %v1261_v50  ;;  %v1274_v61 = vand.u32 4294901760, %v1273_v51  ;;  %v1267_v34 = vsub.f32 %v12533_v12, %v1266_v52  ;;  %v1278_v0 = vand.u32 4294901760, %v12540_v53 }
  0x42   : > { %11224 = vmatprep.subr.bf16.mxu0 %v11223_v54  ;;  %v11225_v42 = vpack.c.bf16 %v1256_v58, %v1244_v57  ;;  %11206 = vmatpush1.bf16.msra.mxu1 %v12546_v59  ;;  %v12551_v2 = vpack.c.bf16 %v1114_v56, %v1110_v55  ;;  %v15802_v47 = vmov 0.0   ;;  %v11233_v14 = vpack.c.bf16 %v12377_v19, %v12368_v17  ;;  %v1041_v19 = vld [vmem:[%s12606_s29] sm:$0xff] }
  0x43   : > { %v11227_v43 = vpack.c.bf16 %v1274_v61, %v1262_v60  ;;  %v1268_v46 = vand.u32 4294901760, %v1267_v34  ;;  %v1279_v13 = vsub.f32 %v12540_v53, %v1278_v0  ;;  %1330 = vmatprep.mubr.f32.mxu0 %v15802_v47  ;;  %1174 = vmatprep.mubr.f32.mxu1 %v15802_v47  ;;  %v12559_v18 = vpack.c.bf16 %v1116_v33, %v1112_v32  ;;  %v1065_v61 = vld [vmem:[%s15933_s3 + $0x40] sm:$0xff]  ;;  %v1067_v34 = vld [vmem:[%s15933_s3 + $0x50] sm:$0xff] }
  0x44   : > { %11226 = vmatpush1.bf16.msra.mxu0 %v11225_v42  ;;  %11208 = vmatprep.subr.bf16.mxu1 %v12551_v2  ;;  %v11235_v22 = vpack.c.bf16 %v12387_v21, %v12382_v20  ;;  %v12563_v55 = vpack.c.bf16 %v1122_v5, %v1118_v4  ;;  %v11231_v48 = vpack.c.bf16 %v12363_v16, %v12358_v15 }
  0x45   : > { %11228 = vmatprep.subr.bf16.mxu0 %v11227_v43  ;;  %v1280_v56 = vand.u32 4294901760, %v1279_v13  ;;  %v11237_v49 = vpack.c.bf16 %v12408_v31, %v12400_v26  ;;  %v11239_v50 = vpack.c.bf16 %v12478_v27, %v12475_v63  ;;  %v12572_v32 = vpack.c.bf16 %v1124_v11, %v1120_v41  ;;  %v1059_v63 = vld [vmem:[%s15933_s3 + $0x10] sm:$0xff]  ;;  %v1062_v27 = vld [vmem:[%s15933_s3 + $0x28] sm:$0xff] }
  0x46   : > { %11210 = vmatpush1.bf16.msra.mxu1 %v12559_v18  ;;  %v11241_v33 = vpack.c.bf16 %v12502_v39, %v12499_v38  ;;  %v11243_v4 = vpack.c.bf16 %v12512_v7, %v12509_v6  ;;  %v11245_v5 = vpack.c.bf16 %v12540_v53, %v12533_v12  ;;  %v11263_v41 = vpack.c.bf16 %v1200_v24, %v1188_v23 }
  0x47   : > { %v11229_v51 = vpack.c.bf16 %v1280_v56, %v1268_v46  ;;  %11212 = vmatprep.subr.bf16.mxu1 %v12563_v55  ;;  %v11265_v38 = vpack.c.bf16 %v1206_v28, %v1194_v25  ;;  %v11267_v39 = vpack.c.bf16 %v1224_v30, %v1212_v29  ;;  %v11269_v6 = vpack.c.bf16 %v1230_v40, %v1218_v35  ;;  %v1058_v35 = vld [vmem:[%s15933_s3 + $0x8] sm:$0xff]  ;;  %v1060_v40 = vld [vmem:[%s15933_s3 + $0x18] sm:$0xff] }
  0x48   : > { %v11271_v15 = vpack.c.bf16 %v1248_v37, %v1236_v36  ;;  %v11273_v16 = vpack.c.bf16 %v1254_v45, %v1242_v44  ;;  %v11275_v17 = vpack.c.bf16 %v1272_v9, %v1260_v8  ;;  %v11277_v23 = vpack.c.bf16 %v1278_v0, %v1266_v52  ;;  %v1061_v36 = vld [vmem:[%s15933_s3 + $0x20] sm:$0xff]  ;;  %v1063_v37 = vld [vmem:[%s15933_s3 + $0x30] sm:$0xff]  ;;  %v1066_v8 = vld [vmem:[%s15933_s3 + $0x48] sm:$0xff] }
  0x49   : > { %11230 = vmatpush1.bf16.msra.mxu0 %v11229_v51  ;;  %v1743_v7 = vand.u32 4294901760, %v1058_v35  ;;  %v1749_v45 = vand.u32 4294901760, %v1059_v63  ;;  %v1068_v9 = vld [vmem:[%s15933_s3 + $0x58] sm:$0xff]  ;;  %v1751_v11 = vand.u32 4294901760, %v1062_v27  ;;  %v1753_v52 = vand.u32 4294901760, %v1061_v36  ;;  %v1070_v56 = vld [vmem:[%s15933_s3 + $0x68] sm:$0xff] }
  0x4a   : > { %11232 = vmatprep.subr.bf16.mxu0 %v11231_v48  ;;  %11214 = vmatpush1.bf16.msra.mxu1 %v12572_v32  ;;  %v1757_v53 = vand.u32 4294901760, %v1063_v37  ;;  %v1763_v60 = vand.u32 4294901760, %v1068_v9  ;;  %v1072_v48 = vld [vmem:[%s15933_s3 + $0x78] sm:$0xff] }
  0x4b   : > { %v12667_v54 = vsub.f32 %v1058_v35, %v1743_v7  ;;  %v12686_v43 = vsub.f32 %v1062_v27, %v1751_v11 }
  0xae   : > { %v1048_v20 = vpop.permute.xlu0 %1047 }
  0xaf   : > { %v12609_v21 = vmul.f32 %v1048_v20, %v1041_v19 }
  0xb1   : > { %v1090_v24 = vrot.slane %v12609_v21, 4  ;;  %v1741_v0 = vsel %vm15887_vm0, %v12609_v21, 0 }
  0xb3   : > { %v1092_v25 = vsel %vm15887_vm0, %v1090_v24, 0 }
  0xb4   : > { %v12613_v26 = vand.u32 4294901760, %v1092_v25 }
  0xb6   : > { %v1176_v28 = vsub.f32 %v1092_v25, %v12613_v26  ;;  %1332 = vmatmul.mubr.f32.vlgmr.msra.gmra.mrb[0].mxu0 %v12613_v26 }
  0xb7   : > { %11234 = vmatpush1.bf16.msra.mxu0 %v11233_v14  ;;  %1434 = vmatprep.mubr.f32.mxu0 %v15802_v47 }
  0xb8   : > { %11236 = vmatprep.subr.bf16.mxu0 %v11235_v22  ;;  %v1177_v29 = vand.u32 4294901760, %v1176_v28  ;;  %v1761_v22 = vand.u32 4294901760, %v1065_v61 }
  0xba   : > { %v1178_v30 = vsub.f32 %v1176_v28, %v1177_v29 }
  0xbb   : > { %11238 = vmatpush1.bf16.msra.mxu0 %v11237_v49  ;;  %v1837_v49 = vand.u32 4294901760, %v12667_v54 }
  0xbc   : > { %11240 = vmatprep.subr.bf16.mxu0 %v11239_v50  ;;  %v1179_v31 = vand.u32 4294901760, %v1178_v30 }
  0xbd   : > { %v1838_v21 = vsub.f32 %v12667_v54, %v1837_v49 }
  0xbe   : > { %1180 = vmatmul.mubr.f32.vlgmr.msra.gmra.mrb[0].mxu1 %v1179_v31 }
  0xbf   : > { %11242 = vmatpush1.bf16.msra.mxu0 %v11241_v33  ;;  %4007 = vmatprep.mubr.f32.mxu1 %v15802_v47  ;;  %v12705_v33 = vand.u32 4294901760, %v1741_v0 }
  0xc0   : > { %11244 = vmatprep.subr.bf16.mxu0 %v11243_v4  ;;  %v12708_v4 = vsub.f32 %v1061_v36, %v1753_v52 }
  0xc1   : > { %v12740_v25 = vsub.f32 %v1741_v0, %v12705_v33 }
  0xc2   : > { %v1867_v27 = vand.u32 4294901760, %v12708_v4 }
  0xc3   : > { %11246 = vmatpush1.bf16.msra.mxu0 %v11245_v5 }
  0xc4   : > { %11248 = vmatprep.subr.bf16.mxu0 %v12472_v62 }
  0xc6   : > { %1437 = vmatmul.mubr.f32.vlgmr.msra.gmra.mrb[0].mxu0 %v1176_v28 }
  0xc7   : > { %11250 = vmatpush1.bf16.msra.mxu0 %v12492_v1  ;;  %1523 = vmatprep.mubr.f32.mxu0 %v15802_v47 }
  0xc8   : > { %11252 = vmatprep.subr.bf16.mxu0 %v12518_v10 }
  0xcb   : > { %11254 = vmatpush1.bf16.msra.mxu0 %v12546_v59 }
  0xcc   : > { %11256 = vmatprep.subr.bf16.mxu0 %v12551_v2 }
  0xcf   : > { %11258 = vmatpush1.bf16.msra.mxu0 %v12559_v18 }
  0xd0   : > { %11260 = vmatprep.subr.bf16.mxu0 %v12563_v55 }
  0xd3   : > { %11262 = vmatpush1.bf16.msra.mxu0 %v12572_v32 }
  0xd4   : > { %11264 = vmatprep.subr.bf16.mxu0 %v11263_v41  ;;  %v1069_v41 = vld [vmem:[%s15933_s3 + $0x60] sm:$0xff] }
  0xd5   : > { %v1769_v28 = vand.u32 4294901760, %v1069_v41 }
  0xd6   : > { %1527 = vmatmul.mubr.f32.vlgmr.msra.gmra.mrb[0].mxu0 %v1177_v29 }
  0xd7   : > { %11266 = vmatpush1.bf16.msra.mxu0 %v11265_v38  ;;  %1645 = vmatprep.mubr.f32.mxu0 %v15802_v47  ;;  %v1071_v38 = vld [vmem:[%s15933_s3 + $0x70] sm:$0xff] }
  0xd8   : > { %11268 = vmatprep.subr.bf16.mxu0 %v11267_v39  ;;  %v1773_v29 = vand.u32 4294901760, %v1071_v38 }
  0xda   : > { %v12784_v0 = vsub.f32 %v1071_v38, %v1773_v29 }
  0xdb   : > { %11270 = vmatpush1.bf16.msra.mxu0 %v11269_v6 }
  0xdc   : > { %11272 = vmatprep.subr.bf16.mxu0 %v11271_v15  ;;  %v1861_v15 = vand.u32 4294901760, %v12686_v43 }
  0xdf   : > { %11274 = vmatpush1.bf16.msra.mxu0 %v11273_v16  ;;  %v12726_v16 = vsub.f32 %v1068_v9, %v1763_v60 }
  0xe0   : > { %11276 = vmatprep.subr.bf16.mxu0 %v11275_v17  ;;  %v1767_v17 = vand.u32 4294901760, %v1070_v56 }
  0xe1   : > { %v1897_v9 = vand.u32 4294901760, %v12726_v16 }
  0xe2   : > { %v12764_v36 = vsub.f32 %v1070_v56, %v1767_v17 }
  0xe3   : > { %11278 = vmatpush1.bf16.msra.mxu0 %v11277_v23  ;;  %v1771_v23 = vand.u32 4294901760, %v1072_v48 }
  0xe4   : > { %11280 = vmatprep.subr.bf16.mxu0 %v12472_v62  ;;  %v1057_v62 = vld [vmem:[%s15933_s3] sm:$0xff]  ;;  %v1909_v38 = vand.u32 4294901760, %v12764_v36 }
  0xe5   : > { %v1745_v44 = vand.u32 4294901760, %v1057_v62 }
  0xe6   : > { %1647 = vmatmul.mubr.f32.vlgmr.msra.gmra.mrb[0].mxu0 %v12613_v26 }
  0xe7   : > { %11282 = vmatpush1.bf16.msra.mxu0 %v12492_v1  ;;  %1733 = vmatprep.mubr.f32.mxu0 %v15802_v47  ;;  %v1064_v1 = vld [vmem:[%s15933_s3 + $0x38] sm:$0xff]  ;;  %v12682_v42 = vsub.f32 %v1057_v62, %v1745_v44  ;;  %v12688_v46 = vpack.c.bf16 %v1749_v45, %v1745_v44  ;;  %v12756_v62 = vpack.c.bf16 %v1771_v23, %v1767_v17  ;;  %v1826_v44 = vand.u32 4294901760, %v12740_v25 }
  0xe8   : > { %11284 = vmatprep.subr.bf16.mxu0 %v12518_v10  ;;  %v1747_v10 = vand.u32 4294901760, %v1060_v40  ;;  %v1755_v12 = vand.u32 4294901760, %v1064_v1 }
  0xe9   : > { %v1843_v39 = vand.u32 4294901760, %v12682_v42 }
  0xea   : > { %v12669_v57 = vsub.f32 %v1060_v40, %v1747_v10  ;;  %v12672_v58 = vpack.c.bf16 %v1747_v10, %v1743_v7  ;;  %v12690_v13 = vpack.c.bf16 %v1755_v12, %v1751_v11  ;;  %v12692_v14 = vsub.f32 %v1064_v1, %v1755_v12 }
  0xeb   : > { %11286 = vmatpush1.bf16.msra.mxu0 %v12546_v59  ;;  %v1759_v59 = vand.u32 4294901760, %v1066_v8  ;;  %v1844_v31 = vsub.f32 %v12682_v42, %v1843_v39  ;;  %v1862_v40 = vsub.f32 %v12686_v43, %v1861_v15  ;;  %v12774_v11 = vsub.f32 %v1069_v41, %v1769_v28 }
  0xec   : > { %11288 = vmatprep.subr.bf16.mxu0 %v12551_v2  ;;  %v12684_v2 = vsub.f32 %v1059_v63, %v1749_v45  ;;  %v1849_v50 = vand.u32 4294901760, %v12669_v57  ;;  %v1873_v19 = vand.u32 4294901760, %v12692_v14  ;;  %v12769_v45 = vsub.f32 %v1072_v48, %v1771_v23 }
  0xed   : > { %v12712_v5 = vpack.c.bf16 %v1763_v60, %v1759_v59  ;;  %v12714_v51 = vsub.f32 %v1066_v8, %v1759_v59  ;;  %v12771_v8 = vpack.c.bf16 %v1773_v29, %v1769_v28  ;;  %v1845_v12 = vand.u32 4294901760, %v1844_v31 }
  0xee   : > { %v1855_v6 = vand.u32 4294901760, %v12684_v2  ;;  %v1850_v24 = vsub.f32 %v12669_v57, %v1849_v50  ;;  %v1874_v63 = vsub.f32 %v12692_v14, %v1873_v19  ;;  %v1868_v60 = vsub.f32 %v12708_v4, %v1867_v27 }
  0xef   : > { %11290 = vmatpush1.bf16.msra.mxu0 %v12559_v18  ;;  %v12694_v18 = vpack.c.bf16 %v1757_v53, %v1753_v52  ;;  %v1885_v10 = vand.u32 4294901760, %v12714_v51  ;;  %v1827_v48 = vsub.f32 %v12740_v25, %v1826_v44  ;;  %v1898_v41 = vsub.f32 %v12726_v16, %v1897_v9 }
  0xf0   : > { %11292 = vmatprep.subr.bf16.mxu0 %v12563_v55  ;;  %v1765_v55 = vand.u32 4294901760, %v1067_v34  ;;  %v1856_v35 = vsub.f32 %v12684_v2, %v1855_v6  ;;  %v1851_v7 = vand.u32 4294901760, %v1850_v24  ;;  %v1875_v59 = vand.u32 4294901760, %v1874_v63 }
  0xf1   : > { %v1921_v17 = vand.u32 4294901760, %v12769_v45  ;;  %v1869_v24 = vand.u32 4294901760, %v1868_v60  ;;  %v1927_v63 = vand.u32 4294901760, %v12784_v0  ;;  %v11329_v3 = vpack.c.bf16 %v12684_v2, %v12682_v42 }
  0xf2   : > { %v12730_v20 = vpack.c.bf16 %v1765_v55, %v1761_v22  ;;  %v12745_v30 = vsub.f32 %v1067_v34, %v1765_v55  ;;  %v1857_v52 = vand.u32 4294901760, %v1856_v35  ;;  %v1886_v55 = vsub.f32 %v12714_v51, %v1885_v10 }
  0xf3   : > { %11294 = vmatpush1.bf16.msra.mxu0 %v12572_v32  ;;  %v12710_v32 = vsub.f32 %v1063_v37, %v1757_v53  ;;  %v1839_v37 = vand.u32 4294901760, %v1838_v21  ;;  %v1863_v53 = vand.u32 4294901760, %v1862_v40  ;;  %v1915_v40 = vand.u32 4294901760, %v12774_v11 }
  0xf4   : > { %11296 = vmatprep.subr.bf16.mxu0 %v12672_v58  ;;  %v1903_v56 = vand.u32 4294901760, %v12745_v30  ;;  %v11313_v23 = vpack.c.bf16 %v1857_v52, %v1845_v12  ;;  %v1887_v31 = vand.u32 4294901760, %v1886_v55  ;;  %v1910_v12 = vsub.f32 %v12764_v36, %v1909_v38 }
  0xf5   : > { %v1879_v1 = vand.u32 4294901760, %v12710_v32  ;;  %v11315_v21 = vpack.c.bf16 %v1875_v59, %v1863_v53  ;;  %v1922_v52 = vsub.f32 %v12769_v45, %v1921_v17  ;;  %v11371_v2 = vpack.c.bf16 %v1921_v17, %v1909_v38  ;;  %v2400_v38 = vld [vmem:[%s15933_s3 + $0x150] sm:$0xff] }
  0xf6   : > { %1735 = vmatmul.mubr.f32.vlgmr.msra.gmra.mrb[0].mxu0 %v12613_v26  ;;  %v12743_v26 = vsub.f32 %v1065_v61, %v1761_v22  ;;  %v11311_v22 = vpack.c.bf16 %v1851_v7, %v1839_v37  ;;  %v1904_v35 = vsub.f32 %v12745_v30, %v1903_v56  ;;  %v1828_v37 = vand.u32 4294901760, %v1827_v48 }
  0xf7   : > { %11298 = vmatpush1.bf16.msra.mxu0 %v12688_v46  ;;  %1823 = vmatprep.mubr.f32.mxu0 %v15802_v47  ;;  %v1880_v61 = vsub.f32 %v12710_v32, %v1879_v1  ;;  %v1899_v7 = vand.u32 4294901760, %v1898_v41  ;;  %v1911_v48 = vand.u32 4294901760, %v1910_v12  ;;  %v1923_v41 = vand.u32 4294901760, %v1922_v52 }
  0xf8   : > { %11300 = vmatprep.subr.bf16.mxu0 %v12690_v13  ;;  %v1891_v34 = vand.u32 4294901760, %v12743_v26  ;;  %v1905_v60 = vand.u32 4294901760, %v1904_v35  ;;  %v11327_v35 = vpack.c.bf16 %v12669_v57, %v12667_v54  ;;  %v11337_v12 = vpack.c.bf16 %v12745_v30, %v12743_v26 }
  0xf9   : > { %v1881_v28 = vand.u32 4294901760, %v1880_v61  ;;  %v1916_v61 = vsub.f32 %v12774_v11, %v1915_v40  ;;  %v11319_v55 = vpack.c.bf16 %v1899_v7, %v1887_v31  ;;  %v11333_v31 = vpack.c.bf16 %v12710_v32, %v12708_v4 }
  0xfa   : > { %v1892_v29 = vsub.f32 %v12743_v26, %v1891_v34  ;;  %v11335_v7 = vpack.c.bf16 %v12726_v16, %v12714_v51  ;;  %v11339_v52 = vpack.c.bf16 %v12769_v45, %v12764_v36  ;;  %v11365_v54 = vpack.c.bf16 %v1879_v1, %v1867_v27  ;;  %v2391_v51 = vld [vmem:[%s15933_s3 + $0x108] sm:$0xff]  ;;  %v2401_v36 = vld [vmem:[%s15933_s3 + $0x158] sm:$0xff] }
  0xfb   : > { %11302 = vmatpush1.bf16.msra.mxu0 %v12694_v18  ;;  %v11317_v53 = vpack.c.bf16 %v1881_v28, %v1869_v24  ;;  %v1917_v24 = vand.u32 4294901760, %v1916_v61  ;;  %v11323_v28 = vpack.c.bf16 %v1923_v41, %v1911_v48  ;;  %v11367_v57 = vpack.c.bf16 %v1897_v9, %v1885_v10  ;;  %v2395_v16 = vld [vmem:[%s15933_s3 + $0x128] sm:$0xff] }
  0xfc   : > { %11304 = vmatprep.subr.bf16.mxu0 %v12712_v5  ;;  %v1893_v59 = vand.u32 4294901760, %v1892_v29  ;;  %v11369_v42 = vpack.c.bf16 %v1903_v56, %v1891_v34  ;;  %v2399_v1 = vld [vmem:[%s15933_s3 + $0x148] sm:$0xff]  ;;  %v2398_v56 = vld [vmem:[%s15933_s3 + $0x140] sm:$0xff] }
  0xfd   : > { %v2427_v41 = vand.u32 4294901760, %v2398_v56 }
  0xff   : > { %11306 = vmatpush1.bf16.msra.mxu0 %v12730_v20 }
 0x100   : > { %11308 = vmatprep.subr.bf16.mxu0 %v12756_v62 }
 0x103   : > { %11310 = vmatpush1.bf16.msra.mxu0 %v12771_v8 }
 0x104   : > { %11312 = vmatprep.subr.bf16.mxu0 %v11311_v22  ;;  %v1928_v22 = vsub.f32 %v12784_v0, %v1927_v63 }
 0x106   : > { %1829 = vmatmul.mubr.f32.vlgmr.msra.gmra.mrb[0].mxu0 %v1828_v37  ;;  %v11321_v37 = vpack.c.bf16 %v1905_v60, %v1893_v59  ;;  %v11361_v59 = vpack.c.bf16 %v1855_v6, %v1843_v39  ;;  %v11363_v60 = vpack.c.bf16 %v1873_v19, %v1861_v15  ;;  %v2392_v15 = vld [vmem:[%s15933_s3 + $0x110] sm:$0xff] }
 0x107   : > { %11314 = vmatpush1.bf16.msra.mxu0 %v11313_v23  ;;  %1979 = vmatprep.mubr.f32.mxu0 %v15802_v47  ;;  %v1929_v23 = vand.u32 4294901760, %v1928_v22  ;;  %v2396_v19 = vld [vmem:[%s15933_s3 + $0x130] sm:$0xff]  ;;  %v2415_v27 = vand.u32 4294901760, %v2392_v15 }
 0x108   : > { %11316 = vmatprep.subr.bf16.mxu0 %v11315_v21  ;;  %v11331_v21 = vpack.c.bf16 %v12692_v14, %v12686_v43  ;;  %v1053_v43 = vpop.permute.xlu0 %1052  ;;  %v1042_v14 = vld [vmem:[%s12606_s29 + $0x8] sm:$0xff]  ;;  %s15763_s29 = smov 16  }
 0x109   : > { %v11325_v29 = vpack.c.bf16 %v1929_v23, %v1917_v24  ;;  %v2403_v24 = vld [vmem:[%s15933_s3 + $0x168] sm:$0xff] }
 0x10b   : > { %11318 = vmatpush1.bf16.msra.mxu0 %v11317_v53  ;;  %v11359_v53 = vpack.c.bf16 %v1849_v50, %v1837_v49  ;;  %v11373_v49 = vpack.c.bf16 %v1927_v63, %v1915_v40  ;;  %v12885_v50 = vmul.f32 %v1053_v43, %v1042_v14  ;;  %v2425_v40 = vand.u32 4294901760, %v2399_v1 }
 0x10c   : > { %11320 = vmatprep.subr.bf16.mxu0 %v11319_v55  ;;  %v2429_v63 = vand.u32 4294901760, %v2401_v36  ;;  %v13007_v43 = vsub.f32 %v2398_v56, %v2427_v41 }
 0x10d   : > { %v2407_v4 = vsel %vm15887_vm0, %v12885_v50, 0 }
 0x10e   : > { %v12893_v32 = vand.u32 4294901760, %v2407_v4 }
 0x10f   : > { %11322 = vmatpush1.bf16.msra.mxu0 %v11321_v37  ;;  %v2431_v37 = vand.u32 4294901760, %v2400_v38 }
 0x110   : > { %11324 = vmatprep.subr.bf16.mxu0 %v11323_v28  ;;  %v12904_v39 = vsub.f32 %v2407_v4, %v12893_v32 }
 0x112   : > { %v2492_v10 = vand.u32 4294901760, %v12904_v39 }
 0x113   : > { %11326 = vmatpush1.bf16.msra.mxu0 %v11325_v29 }
 0x114   : > { %11328 = vmatprep.subr.bf16.mxu0 %v11327_v35  ;;  %v12971_v23 = vsub.f32 %v12904_v39, %v2492_v10 }
 0x116   : > { %1981 = vmatmul.mubr.f32.vlgmr.msra.gmra.mrb[0].mxu0 %v12705_v33 }
 0x117   : > { %11330 = vmatpush1.bf16.msra.mxu0 %v11329_v3  ;;  %2083 = vmatprep.mubr.f32.mxu0 %v15802_v47  ;;  %v11341_v3 = vpack.c.bf16 %v12784_v0, %v12774_v11  ;;  %v12942_v11 = vsub.f32 %v2392_v15, %v2415_v27  ;;  %v2423_v0 = vand.u32 4294901760, %v2396_v19  ;;  %v13024_v15 = vsub.f32 %v2400_v38, %v2431_v37 }
 0x118   : > { %11332 = vmatprep.subr.bf16.mxu0 %v11331_v21 }
 0x119   : > { %v2521_v21 = vand.u32 4294901760, %v12942_v11 }
 0x11b   : > { %11334 = vmatpush1.bf16.msra.mxu0 %v11333_v31  ;;  %v12980_v31 = vsub.f32 %v2396_v19, %v2423_v0 }
 0x11c   : > { %11336 = vmatprep.subr.bf16.mxu0 %v11335_v7  ;;  %v12982_v7 = vpack.c.bf16 %v2429_v63, %v2425_v40 }
 0x11f   : > { %11338 = vmatpush1.bf16.msra.mxu0 %v11337_v12  ;;  %v2402_v12 = vld [vmem:[%s15933_s3 + $0x160] sm:$0xff] }
 0x120   : > { %11340 = vmatprep.subr.bf16.mxu0 %v11339_v52  ;;  %v2404_v52 = vld [vmem:[%s15933_s3 + $0x170] sm:$0xff]  ;;  %v2435_v14 = vand.u32 4294901760, %v2402_v12 }
 0x123   : > { %11342 = vmatpush1.bf16.msra.mxu0 %v11341_v3 }
 0x124   : > { %11344 = vmatprep.subr.bf16.mxu0 %v12672_v58 }
 0x126   : > { %2086 = vmatmul.mubr.f32.vlgmr.msra.gmra.mrb[0].mxu0 %v12740_v25 }
 0x127   : > { %11346 = vmatpush1.bf16.msra.mxu0 %v12688_v46  ;;  %2172 = vmatprep.mubr.f32.mxu0 %v15802_v47 }
 0x128   : > { %11348 = vmatprep.subr.bf16.mxu0 %v12690_v13 }
 0x12b   : > { %11350 = vmatpush1.bf16.msra.mxu0 %v12694_v18 }
 0x12c   : > { %11352 = vmatprep.subr.bf16.mxu0 %v12712_v5 }
 0x12f   : > { %11354 = vmatpush1.bf16.msra.mxu0 %v12730_v20 }
 0x130   : > { %11356 = vmatprep.subr.bf16.mxu0 %v12756_v62 }
 0x133   : > { %11358 = vmatpush1.bf16.msra.mxu0 %v12771_v8 }
 0x134   : > { %11360 = vmatprep.subr.bf16.mxu0 %v11359_v53 }
 0x136   : > { %2176 = vmatmul.mubr.f32.vlgmr.msra.gmra.mrb[0].mxu0 %v1826_v44 }
 0x137   : > { %11362 = vmatpush1.bf16.msra.mxu0 %v11361_v59  ;;  %2294 = vmatprep.mubr.f32.mxu0 %v15802_v47  ;;  %v2433_v59 = vand.u32 4294901760, %v2403_v24 }
 0x138   : > { %11364 = vmatprep.subr.bf16.mxu0 %v11363_v60 }
 0x139   : > { %v13029_v19 = vsub.f32 %v2403_v24, %v2433_v59  ;;  %v2569_v24 = vand.u32 4294901760, %v13024_v15 }
 0x13b   : > { %11366 = vmatpush1.bf16.msra.mxu0 %v11365_v54 }
 0x13c   : > { %11368 = vmatprep.subr.bf16.mxu0 %v11367_v57  ;;  %v13001_v57 = vsub.f32 %v2399_v1, %v2425_v40 }
 0x13f   : > { %11370 = vmatpush1.bf16.msra.mxu0 %v11369_v42  ;;  %v13003_v42 = vsub.f32 %v2401_v36, %v2429_v63 }
 0x140   : > { %11372 = vmatprep.subr.bf16.mxu0 %v11371_v2  ;;  %v13005_v2 = vpack.c.bf16 %v2431_v37, %v2427_v41  ;;  %v2557_v37 = vand.u32 4294901760, %v13007_v43 }
 0x141   : > { %v2563_v1 = vand.u32 4294901760, %v13003_v42 }
 0x143   : > { %11374 = vmatpush1.bf16.msra.mxu0 %v11373_v49  ;;  %v2439_v49 = vand.u32 4294901760, %v2404_v52 }
 0x144   : > { %11376 = vmatprep.subr.bf16.mxu0 %v12672_v58  ;;  %v2393_v58 = vld [vmem:[%s15933_s3 + $0x118] sm:$0xff] }
 0x145   : > { %v2413_v6 = vand.u32 4294901760, %v2393_v58  ;;  %v13035_v36 = vpack.c.bf16 %v2439_v49, %v2435_v14  ;;  %v13046_v63 = vsub.f32 %v2404_v52, %v2439_v49 }
 0x146   : > { %2296 = vmatmul.mubr.f32.vlgmr.msra.gmra.mrb[0].mxu0 %v12705_v33 }
 0x147   : > { %11378 = vmatpush1.bf16.msra.mxu0 %v12688_v46  ;;  %2382 = vmatprep.mubr.f32.mxu0 %v15802_v47  ;;  %v2409_v46 = vand.u32 4294901760, %v2391_v51  ;;  %v12928_v26 = vsub.f32 %v2393_v58, %v2413_v6 }
 0x148   : > { %11380 = vmatprep.subr.bf16.mxu0 %v12690_v13  ;;  %v2390_v13 = vld [vmem:[%s15933_s3 + $0x100] sm:$0xff] }
 0x149   : > { %v12926_v25 = vsub.f32 %v2391_v51, %v2409_v46  ;;  %v2411_v30 = vand.u32 4294901760, %v2390_v13  ;;  %v12938_v44 = vpack.c.bf16 %v2413_v6, %v2409_v46  ;;  %v2515_v55 = vand.u32 4294901760, %v12928_v26 }
 0x14a   : > { %v2522_v51 = vsub.f32 %v12942_v11, %v2521_v21 }
 0x14b   : > { %11382 = vmatpush1.bf16.msra.mxu0 %v12694_v18  ;;  %v2397_v18 = vld [vmem:[%s15933_s3 + $0x138] sm:$0xff]  ;;  %v12940_v9 = vsub.f32 %v2390_v13, %v2411_v30  ;;  %v12955_v61 = vpack.c.bf16 %v2415_v27, %v2411_v30  ;;  %v2503_v22 = vand.u32 4294901760, %v12926_v25  ;;  %v2516_v54 = vsub.f32 %v12928_v26, %v2515_v55 }
 0x14c   : > { %11384 = vmatprep.subr.bf16.mxu0 %v12712_v5  ;;  %v2394_v5 = vld [vmem:[%s15933_s3 + $0x120] sm:$0xff]  ;;  %v2421_v45 = vand.u32 4294901760, %v2397_v18  ;;  %v2545_v13 = vand.u32 4294901760, %v12980_v31  ;;  %v2551_v27 = vand.u32 4294901760, %v13001_v57 }
 0x14d   : > { %v2419_v34 = vand.u32 4294901760, %v2394_v5  ;;  %v2509_v35 = vand.u32 4294901760, %v12940_v9  ;;  %v2504_v60 = vsub.f32 %v12926_v25, %v2503_v22 }
 0x14e   : > { %v2546_v40 = vsub.f32 %v12980_v31, %v2545_v13 }
 0x14f   : > { %11386 = vmatpush1.bf16.msra.mxu0 %v12730_v20  ;;  %v2417_v20 = vand.u32 4294901760, %v2395_v16  ;;  %v12973_v28 = vpack.c.bf16 %v2423_v0, %v2419_v34  ;;  %v12975_v29 = vsub.f32 %v2394_v5, %v2419_v34  ;;  %v2510_v4 = vsub.f32 %v12940_v9, %v2509_v35 }
 0x150   : > { %11388 = vmatprep.subr.bf16.mxu0 %v12756_v62  ;;  %v12952_v62 = vsub.f32 %v2397_v18, %v2421_v45  ;;  %v2505_v18 = vand.u32 4294901760, %v2504_v60  ;;  %v2517_v5 = vand.u32 4294901760, %v2516_v54  ;;  %v2523_v34 = vand.u32 4294901760, %v2522_v51 }
 0x151   : > { %v12950_v17 = vsub.f32 %v2395_v16, %v2417_v20  ;;  %v12960_v48 = vpack.c.bf16 %v2421_v45, %v2417_v20  ;;  %v2533_v6 = vand.u32 4294901760, %v12975_v29  ;;  %v13037_v20 = vsub.f32 %v2402_v12, %v2435_v14 }
 0x152   : > { %v2539_v53 = vand.u32 4294901760, %v12952_v62  ;;  %v2511_v45 = vand.u32 4294901760, %v2510_v4  ;;  %v11407_v41 = vpack.c.bf16 %v2517_v5, %v2505_v18  ;;  %v2564_v12 = vsub.f32 %v13003_v42, %v2563_v1 }
 0x153   : > { %11390 = vmatpush1.bf16.msra.mxu0 %v12771_v8  ;;  %v2405_v8 = vld [vmem:[%s15933_s3 + $0x178] sm:$0xff]  ;;  %v2527_v3 = vand.u32 4294901760, %v12950_v17  ;;  %v2534_v38 = vsub.f32 %v12975_v29, %v2533_v6  ;;  %v2547_v49 = vand.u32 4294901760, %v2546_v40  ;;  %v2558_v4 = vsub.f32 %v13007_v43, %v2557_v37 }
 0x154   : > { %11392 = vmatprep.subr.bf16.mxu0 %v12938_v44  ;;  %v2540_v46 = vsub.f32 %v12952_v62, %v2539_v53  ;;  %v11409_v60 = vpack.c.bf16 %v2523_v34, %v2511_v45  ;;  %v2570_v51 = vsub.f32 %v13024_v15, %v2569_v24  ;;  %v2565_v18 = vand.u32 4294901760, %v2564_v12 }
 0x155   : > { %v2528_v58 = vsub.f32 %v12950_v17, %v2527_v3  ;;  %v2535_v14 = vand.u32 4294901760, %v2534_v38 }
 0x156   : > { %2384 = vmatmul.mubr.f32.vlgmr.msra.gmra.mrb[0].mxu0 %v12705_v33  ;;  %v2437_v33 = vand.u32 4294901760, %v2405_v8  ;;  %v2541_v56 = vand.u32 4294901760, %v2540_v46  ;;  %v15729_v46 = vand.u32 4294901760, %v13046_v63 }
 0x157   : > { %11394 = vmatpush1.bf16.msra.mxu0 %v12955_v61  ;;  %2489 = vmatprep.mubr.f32.mxu0 %v15802_v47  ;;  %v2529_v0 = vand.u32 4294901760, %v2528_v58  ;;  %v2581_v58 = vand.u32 4294901760, %v13037_v20  ;;  %v11413_v34 = vpack.c.bf16 %v2547_v49, %v2535_v14 }
 0x158   : > { %11396 = vmatprep.subr.bf16.mxu0 %v12960_v48  ;;  %v13026_v16 = vpack.c.bf16 %v2437_v33, %v2433_v59  ;;  %v13031_v30 = vsub.f32 %v2405_v8, %v2437_v33  ;;  %v2552_v8 = vsub.f32 %v13001_v57, %v2551_v27  ;;  %v2575_v59 = vand.u32 4294901760, %v13029_v19 }
 0x159   : > { %v2494_v33 = vand.u32 4294901760, %v12971_v23  ;;  %v11411_v54 = vpack.c.bf16 %v2541_v56, %v2529_v0  ;;  %v2559_v0 = vand.u32 4294901760, %v2558_v4  ;;  %v2571_v56 = vand.u32 4294901760, %v2570_v51 }
 0x15a   : > { %v2587_v52 = vand.u32 4294901760, %v13031_v30  ;;  %v2553_v23 = vand.u32 4294901760, %v2552_v8  ;;  %v2576_v5 = vsub.f32 %v13029_v19, %v2575_v59  ;;  %v2582_v38 = vsub.f32 %v13037_v20, %v2581_v58 }
 0x15b   : > { %11398 = vmatpush1.bf16.msra.mxu0 %v12973_v28  ;;  %v2594_v40 = vsub.f32 %v13046_v63, %v15729_v46  ;;  %v11423_v51 = vpack.c.bf16 %v12928_v26, %v12926_v25  ;;  %v11425_v46 = vpack.c.bf16 %v12942_v11, %v12940_v9  ;;  %v11459_v25 = vpack.c.bf16 %v2539_v53, %v2527_v3  ;;  %v13132_v26 = vld [vmem:[%s15938_s7] sm:$0xf]  ;;  %s1014_s7 = scalar_lea.vmem %s15946_s2, %s12372_s0  ;;  %s16261_s0 = sld [smem:[#allocation56_spill]] }
 0x15c   : > { %11400 = vmatprep.subr.bf16.mxu0 %v12982_v7  ;;  %v2588_v45 = vsub.f32 %v13031_v30, %v2587_v52  ;;  %v2577_v8 = vand.u32 4294901760, %v2576_v5  ;;  %v2583_v14 = vand.u32 4294901760, %v2582_v38  ;;  %v11433_v5 = vpack.c.bf16 %v13024_v15, %v13007_v43 }
 0x15d   : > { %v11457_v38 = vpack.c.bf16 %v2521_v21, %v2509_v35  ;;  %v11461_v9 = vpack.c.bf16 %v2545_v13, %v2533_v6  ;;  %v15742_v11 = vmov 1   ;;  %v3074_v35 = vrot.slane %v12885_v50, 4  ;;  %v3058_v6 = vld [vmem:[%s15933_s3 + $0x180] sm:$0xff]  ;;  %v3060_v13 = vld [vmem:[%s15933_s3 + $0x190] sm:$0xff] }
 0x15e   : > { %v2589_v12 = vand.u32 4294901760, %v2588_v45  ;;  %v11435_v45 = vpack.c.bf16 %v13031_v30, %v13029_v19  ;;  %12031 = vset.pattern.permute.xlu0 %v15742_v11  ;;  %v15738_v21 = vmov 2   ;;  %v15736_v53 = vmov 3   ;;  %v3062_v19 = vld [vmem:[%s15933_s3 + $0x1a0] sm:$0xff]  ;;  %v3064_v30 = vld [vmem:[%s15933_s3 + $0x1b0] sm:$0xff] }
 0x15f   : > { %11402 = vmatpush1.bf16.msra.mxu0 %v13005_v2  ;;  %3778 = vperm.xlu0 %12031, %v13132_v26   ;;  %v3075_v3 = vsel %vm15887_vm0, %v3074_v35, 0  ;;  %v15732_v15 = vmov 6  }
 0x160   : > { %11404 = vmatprep.subr.bf16.mxu0 %v13026_v16  ;;  %v11419_v49 = vpack.c.bf16 %v2589_v12, %v2577_v8  ;;  %v13174_v50 = vand.u32 4294901760, %v3075_v3  ;;  %v3087_v8 = vand.u32 4294901760, %v3062_v19  ;;  %v3091_v12 = vand.u32 4294901760, %v3064_v30 }
 0x163   : > { %11406 = vmatpush1.bf16.msra.mxu0 %v13035_v36 }
 0x164   : > { %11408 = vmatprep.subr.bf16.mxu0 %v11407_v41  ;;  %v11415_v41 = vpack.c.bf16 %v2565_v18, %v2553_v23  ;;  %v11429_v23 = vpack.c.bf16 %v12980_v31, %v12975_v29  ;;  %v11431_v18 = vpack.c.bf16 %v13003_v42, %v13001_v57  ;;  %v15734_v31 = vmov 5   ;;  %v3061_v57 = vld [vmem:[%s15933_s3 + $0x198] sm:$0xff] }
 0x165   : > { %v15730_v42 = vmov 7   ;;  %v3081_v43 = vand.u32 4294901760, %v3061_v57 }
 0x166   : > { %2495 = vmatmul.mubr.f32.vlgmr.msra.gmra.mrb[0].mxu0 %v2494_v33  ;;  %v11417_v33 = vpack.c.bf16 %v2571_v56, %v2559_v0 }
 0x167   : > { %11410 = vmatpush1.bf16.msra.mxu0 %v11409_v60  ;;  %2645 = vmatprep.mubr.f32.mxu0 %v15802_v47  ;;  %v2595_v60 = vand.u32 4294901760, %v2594_v40 }
 0x168   : > { %11412 = vmatprep.subr.bf16.mxu0 %v11411_v54  ;;  %v11427_v54 = vpack.c.bf16 %v12952_v62, %v12950_v17  ;;  %v11465_v17 = vpack.c.bf16 %v2569_v24, %v2557_v37  ;;  %v11467_v62 = vpack.c.bf16 %v2587_v52, %v2575_v59  ;;  %v3067_v37 = vld [vmem:[%s15933_s3 + $0x1c8] sm:$0xff]  ;;  %v3069_v24 = vld [vmem:[%s15933_s3 + $0x1d8] sm:$0xff] }
 0x169   : > { %v11421_v4 = vpack.c.bf16 %v2595_v60, %v2583_v14  ;;  %v15941_v14 = vmov 0  }
 0x16b   : > { %11414 = vmatpush1.bf16.msra.mxu0 %v11413_v34  ;;  %v11455_v34 = vpack.c.bf16 %v2515_v55, %v2503_v22  ;;  %v15740_v22 = vmov 4   ;;  %v15940_v55 = vand.u32 4294901760, %v13046_v63 }
 0x16c   : > { %11416 = vmatprep.subr.bf16.mxu0 %v11415_v41  ;;  %12034 = vset.pattern.permute.xlu0 %v15740_v22 }
 0x16d   : > { %3835 = vperm.xlu0 %12034, %v13132_v26   ;;  %v11469_v29 = vpack.c.bf16 %v15940_v55, %v2581_v58  ;;  %v3070_v55 = vld [vmem:[%s15933_s3 + $0x1e0] sm:$0xff] }
 0x16f   : > { %11418 = vmatpush1.bf16.msra.mxu0 %v11417_v33  ;;  %v3066_v33 = vld [vmem:[%s15933_s3 + $0x1c0] sm:$0xff] }
 0x170   : > { %11420 = vmatprep.subr.bf16.mxu0 %v11419_v49 }
 0x171   : > { %12035 = vset.pattern.permute.xlu0 %v15734_v31 }
 0x172   : > { %3854 = vperm.xlu0 %12035, %v13132_v26  }
 0x173   : > { %11422 = vmatpush1.bf16.msra.mxu0 %v11421_v4  ;;  %v3093_v4 = vand.u32 4294901760, %v3067_v37 }
 0x174   : > { %11424 = vmatprep.subr.bf16.mxu0 %v11423_v51  ;;  %v3097_v51 = vand.u32 4294901760, %v3069_v24 }
 0x176   : > { %2647 = vmatmul.mubr.f32.vlgmr.msra.gmra.mrb[0].mxu0 %v12893_v32  ;;  %12037 = vset.pattern.permute.xlu0 %v15730_v42 }
 0x177   : > { %11426 = vmatpush1.bf16.msra.mxu0 %v11425_v46  ;;  %2749 = vmatprep.mubr.f32.mxu0 %v15802_v47  ;;  %v11437_v46 = vpack.c.bf16 %v13046_v63, %v13037_v20  ;;  %v3079_v20 = vand.u32 4294901760, %v3058_v6  ;;  %v3083_v63 = vand.u32 4294901760, %v3060_v13 }
 0x178   : > { %11428 = vmatprep.subr.bf16.mxu0 %v11427_v54  ;;  %3890 = vperm.xlu0 %12037, %v13132_v26  }
 0x179   : > { %v13226_v40 = vsub.f32 %v3058_v6, %v3079_v20  ;;  %v13228_v41 = vsub.f32 %v3060_v13, %v3083_v63  ;;  %v13242_v54 = vpack.c.bf16 %v3083_v63, %v3079_v20  ;;  %v13290_v6 = vsub.f32 %v3069_v24, %v3097_v51 }
 0x17b   : > { %11430 = vmatpush1.bf16.msra.mxu0 %v11429_v23  ;;  %v15744_v42 = vand.u32 4294901760, %v13290_v6 }
 0x17c   : > { %11432 = vmatprep.subr.bf16.mxu0 %v11431_v18 }
 0x17f   : > { %11434 = vmatpush1.bf16.msra.mxu0 %v11433_v5 }
 0x180   : > { %11436 = vmatprep.subr.bf16.mxu0 %v11435_v45  ;;  %v3095_v45 = vand.u32 4294901760, %v3066_v33 }
 0x183   : > { %11438 = vmatpush1.bf16.msra.mxu0 %v11437_v46 }
 0x184   : > { %11440 = vmatprep.subr.bf16.mxu0 %v12938_v44 }
 0x186   : > { %2752 = vmatmul.mubr.f32.vlgmr.msra.gmra.mrb[0].mxu0 %v12904_v39  ;;  %v11463_v39 = vpack.c.bf16 %v2563_v1, %v2551_v27  ;;  %v13214_v1 = vsub.f32 %v3061_v57, %v3081_v43 }
 0x187   : > { %11442 = vmatpush1.bf16.msra.mxu0 %v12955_v61  ;;  %2838 = vmatprep.mubr.f32.mxu0 %v15802_v47 }
 0x188   : > { %11444 = vmatprep.subr.bf16.mxu0 %v12960_v48  ;;  %v3183_v18 = vand.u32 4294901760, %v13214_v1 }
 0x18b   : > { %11446 = vmatpush1.bf16.msra.mxu0 %v12973_v28 }
 0x18c   : > { %11448 = vmatprep.subr.bf16.mxu0 %v12982_v7 }
 0x18f   : > { %11450 = vmatpush1.bf16.msra.mxu0 %v13005_v2 }
 0x190   : > { %11452 = vmatprep.subr.bf16.mxu0 %v13026_v16 }
 0x191   : > { %v13113_v0 = vpop.f32.mrb[0].mxu1 }
 0x192   : > { %v13115_v56 = vpop.f32.mrb[1].mxu1 }
 0x193   : > { %11454 = vmatpush1.bf16.msra.mxu0 %v13035_v36 }
 0x194   : > { %11456 = vmatprep.subr.bf16.mxu0 %v11455_v34  ;;  %v3071_v34 = vld [vmem:[%s15933_s3 + $0x1e8] sm:$0xff] }
 0x196   : > { %2842 = vmatmul.mubr.f32.vlgmr.msra.gmra.mrb[0].mxu0 %v2492_v10  ;;  %v3728_v10 = vld [vmem:[%s999_s4] sm:$0xf]  ;;  %s15754_s4 = smov 1  }
 0x197   : > { %11458 = vmatpush1.bf16.msra.mxu0 %v11457_v38  ;;  %2960 = vmatprep.mubr.f32.mxu0 %v15802_v47 }
 0x198   : > { %11460 = vmatprep.subr.bf16.mxu0 %v11459_v25  ;;  %3731 = vperm.xlu1 %12030, %v3728_v10   ;;  %v13260_v25 = vpack.c.bf16 %v3091_v12, %v3087_v8  ;;  %v3189_v10 = vand.u32 4294901760, %v13228_v41 }
 0x19a   : > { %v3190_v20 = vsub.f32 %v13228_v41, %v3189_v10 }
 0x19b   : > { %11462 = vmatpush1.bf16.msra.mxu0 %v11461_v9  ;;  %v13262_v9 = vsub.f32 %v3062_v19, %v3087_v8 }
 0x19c   : > { %11464 = vmatprep.subr.bf16.mxu0 %v11463_v39  ;;  %3763 = vperm.xlu1 %12030, %v13132_v26   ;;  %v3177_v39 = vand.u32 4294901760, %v13226_v40 }
 0x19d   : > { %v3201_v24 = vand.u32 4294901760, %v13262_v9 }
 0x19f   : > { %11466 = vmatpush1.bf16.msra.mxu0 %v11465_v17  ;;  %v13267_v17 = vsub.f32 %v3064_v30, %v3091_v12  ;;  %v3178_v30 = vsub.f32 %v13226_v40, %v3177_v39 }
 0x1a0   : > { %11468 = vmatprep.subr.bf16.mxu0 %v11467_v62  ;;  %12032 = vset.pattern.permute.xlu1 %v15738_v21  ;;  %v13269_v62 = vpack.c.bf16 %v3097_v51, %v3093_v4 }
 0x1a1   : > { %3808 = vperm.xlu1 %12032, %v13132_v26  }
 0x1a3   : > { %11470 = vmatpush1.bf16.msra.mxu0 %v11469_v29  ;;  %v3072_v29 = vld [vmem:[%s15933_s3 + $0x1f0] sm:$0xff] }
 0x1a4   : > { %11472 = vmatprep.subr.bf16.mxu0 %v12938_v44  ;;  %v3059_v44 = vld [vmem:[%s15933_s3 + $0x188] sm:$0xff]  ;;  %v3107_v19 = vand.u32 4294901760, %v3072_v29 }
 0x1a5   : > { %12033 = vset.pattern.permute.xlu1 %v15736_v53 }
 0x1a6   : > { %2962 = vmatmul.mubr.f32.vlgmr.msra.gmra.mrb[0].mxu0 %v12893_v32  ;;  %3827 = vperm.xlu1 %12033, %v13132_v26  }
 0x1a7   : > { %11474 = vmatpush1.bf16.msra.mxu0 %v12955_v61  ;;  %3048 = vmatprep.mubr.f32.mxu0 %v15802_v47  ;;  %v13188_v61 = vsub.f32 %v3075_v3, %v13174_v50 }
 0x1a8   : > { %11476 = vmatprep.subr.bf16.mxu0 %v12960_v48  ;;  %v3077_v48 = vand.u32 4294901760, %v3059_v44 }
 0x1a9   : > { %v3160_v58 = vand.u32 4294901760, %v13188_v61 }
 0x1aa   : > { %12036 = vset.pattern.permute.xlu1 %v15732_v15  ;;  %v13212_v27 = vsub.f32 %v3059_v44, %v3077_v48  ;;  %v13223_v59 = vpack.c.bf16 %v3081_v43, %v3077_v48  ;;  %v3101_v44 = vand.u32 4294901760, %v3071_v34  ;;  %v3184_v48 = vsub.f32 %v13214_v1, %v3183_v18 }
 0x1ab   : > { %11478 = vmatpush1.bf16.msra.mxu0 %v12973_v28  ;;  %v3063_v28 = vld [vmem:[%s15933_s3 + $0x1a8] sm:$0xff]  ;;  %3873 = vperm.xlu1 %12036, %v13132_v26   ;;  %v13258_v38 = vsub.f32 %v13188_v61, %v3160_v58  ;;  %v13288_v43 = vsub.f32 %v3067_v37, %v3093_v4 }
 0x1ac   : > { %11480 = vmatprep.subr.bf16.mxu0 %v12982_v7  ;;  %v3065_v7 = vld [vmem:[%s15933_s3 + $0x1b8] sm:$0xff]  ;;  %v3085_v52 = vand.u32 4294901760, %v3063_v28  ;;  %v3171_v23 = vand.u32 4294901760, %v13212_v27  ;;  %v13316_v4 = vsub.f32 %v3071_v34, %v3101_v44 }
 0x1ae   : > { %v13237_v60 = vsub.f32 %v3063_v28, %v3085_v52  ;;  %v3172_v57 = vsub.f32 %v13212_v27, %v3171_v23  ;;  %v13294_v28 = vsub.f32 %v3066_v33, %v3095_v45  ;;  %v3185_v33 = vand.u32 4294901760, %v3184_v48 }
 0x1af   : > { %11482 = vmatpush1.bf16.msra.mxu0 %v13005_v2  ;;  %v3089_v2 = vand.u32 4294901760, %v3065_v7  ;;  %12039 = vset.pattern.permute.xlu1 %v15941_v14 }
 0x1b0   : > { %11484 = vmatprep.subr.bf16.mxu0 %v13026_v16  ;;  %v3068_v16 = vld [vmem:[%s15933_s3 + $0x1d0] sm:$0xff]  ;;  %v3195_v35 = vand.u32 4294901760, %v13237_v60  ;;  %v3173_v12 = vand.u32 4294901760, %v3172_v57  ;;  %v3202_v57 = vsub.f32 %v13262_v9, %v3201_v24 }
 0x1b1   : > { %v13239_v49 = vsub.f32 %v3065_v7, %v3089_v2  ;;  %v13247_v5 = vpack.c.bf16 %v3089_v2, %v3085_v52  ;;  %v3099_v46 = vand.u32 4294901760, %v3068_v16  ;;  %v3103_v7 = vand.u32 4294901760, %v3070_v55 }
 0x1b2   : > { %v3196_v63 = vsub.f32 %v13237_v60, %v3195_v35  ;;  %v3213_v52 = vand.u32 4294901760, %v13267_v17 }
 0x1b3   : > { %11486 = vmatpush1.bf16.msra.mxu0 %v13035_v36  ;;  %v3073_v36 = vld [vmem:[%s15933_s3 + $0x1f8] sm:$0xff]  ;;  %v3207_v3 = vand.u32 4294901760, %v13239_v49  ;;  %v13292_v13 = vpack.c.bf16 %v3099_v46, %v3095_v45  ;;  %v13311_v2 = vsub.f32 %v3068_v16, %v3099_v46  ;;  %v3219_v45 = vand.u32 4294901760, %v13288_v43  ;;  %s15978_s3 = smov 68  }
 0x1b4   : > { %11488 = vmatprep.subr.bf16.mxu0 %v13223_v59  ;;  %v13322_v15 = vpack.c.bf16 %v3107_v19, %v3103_v7  ;;  %v13324_v31 = vsub.f32 %v3070_v55, %v3103_v7  ;;  %v3179_v16 = vand.u32 4294901760, %v3178_v30  ;;  %v3191_v46 = vand.u32 4294901760, %v3190_v20 }
 0x1b5   : > { %v3208_v37 = vsub.f32 %v13239_v49, %v3207_v3  ;;  %v3197_v53 = vand.u32 4294901760, %v3196_v63  ;;  %v3214_v34 = vsub.f32 %v13267_v17, %v3213_v52  ;;  %v3225_v55 = vand.u32 4294901760, %v13294_v28 }
 0x1b6   : > { %3050 = vmatmul.mubr.f32.vlgmr.msra.gmra.mrb[0].mxu0 %v12893_v32  ;;  %v3105_v32 = vand.u32 4294901760, %v3073_v36  ;;  %v3220_v48 = vsub.f32 %v13288_v43, %v3219_v45  ;;  %v3232_v7 = vsub.f32 %v13290_v6, %v15744_v42  ;;  %v15746_v30 = vand.u32 4294901760, %v13316_v4 }
 0x1b7   : > { %11490 = vmatpush1.bf16.msra.mxu0 %v13242_v54  ;;  %3157 = vmatprep.mubr.f32.mxu0 %v15802_v47  ;;  %v3209_v21 = vand.u32 4294901760, %v3208_v37  ;;  %v11505_v20 = vpack.c.bf16 %v3191_v46, %v3179_v16  ;;  %v3203_v37 = vand.u32 4294901760, %v3202_v57  ;;  %v3249_v11 = vand.u32 4294901760, %v13324_v31 }
 0x1b8   : > { %11492 = vmatprep.subr.bf16.mxu0 %v13247_v5  ;;  %v13313_v8 = vpack.c.bf16 %v3105_v32, %v3101_v44  ;;  %v13318_v51 = vsub.f32 %v3073_v36, %v3105_v32  ;;  %v13333_v36 = vsub.f32 %v3072_v29, %v3107_v19  ;;  %v11503_v44 = vpack.c.bf16 %v3185_v33, %v3173_v12 }
 0x1b9   : > { %v15745_v32 = vand.u32 4294901760, %v13311_v2  ;;  %v3162_v19 = vand.u32 4294901760, %v13258_v38  ;;  %v11507_v63 = vpack.c.bf16 %v3209_v21, %v3197_v53  ;;  %v3215_v12 = vand.u32 4294901760, %v3214_v34 }
 0x1ba   : > { %v3255_v29 = vand.u32 4294901760, %v13318_v51  ;;  %v3226_v33 = vsub.f32 %v13294_v28, %v3225_v55  ;;  %v15747_v42 = vand.u32 4294901760, %v13333_v36  ;;  %v3221_v38 = vand.u32 4294901760, %v3220_v48 }
 0x1bb   : > { %11494 = vmatpush1.bf16.msra.mxu0 %v13260_v25  ;;  %v3238_v22 = vsub.f32 %v13311_v2, %v15745_v32  ;;  %v3233_v16 = vand.u32 4294901760, %v3232_v7  ;;  %v3244_v21 = vsub.f32 %v13316_v4, %v15746_v30  ;;  %v11509_v46 = vpack.c.bf16 %v3215_v12, %v3203_v37 }
 0x1bc   : > { %11496 = vmatprep.subr.bf16.mxu0 %v13269_v62  ;;  %v3256_v53 = vsub.f32 %v13318_v51, %v3255_v29  ;;  %v3227_v57 = vand.u32 4294901760, %v3226_v33  ;;  %v3250_v32 = vsub.f32 %v13324_v31, %v3249_v11  ;;  %v11519_v33 = vpack.c.bf16 %v13214_v1, %v13212_v27 }
 0x1bd   : > { %v3239_v34 = vand.u32 4294901760, %v3238_v22  ;;  %v11511_v48 = vpack.c.bf16 %v3233_v16, %v3221_v38  ;;  %v3245_v7 = vand.u32 4294901760, %v3244_v21  ;;  %v11529_v38 = vpack.c.bf16 %v13311_v2, %v13294_v28 }
 0x1be   : > { %v3257_v30 = vand.u32 4294901760, %v3256_v53  ;;  %v3251_v37 = vand.u32 4294901760, %v3250_v32  ;;  %v11525_v32 = vpack.c.bf16 %v13267_v17, %v13262_v9  ;;  %v11531_v16 = vpack.c.bf16 %v13318_v51, %v13316_v4 }
 0x1bf   : > { %11498 = vmatpush1.bf16.msra.mxu0 %v13292_v13  ;;  %v11551_v21 = vpack.c.bf16 %v3183_v18, %v3171_v23  ;;  %v11553_v53 = vpack.c.bf16 %v3189_v10, %v3177_v39  ;;  %v11557_v27 = vpack.c.bf16 %v3213_v52, %v3201_v24  ;;  %v15942_v1 = vand.u32 4294901760, %v13290_v6  ;;  %v4476_v39 = vld [vmem:[%s15947_s14] sm:$0xff] }
 0x1c0   : > { %11500 = vmatprep.subr.bf16.mxu0 %v13313_v8  ;;  %v11515_v22 = vpack.c.bf16 %v3257_v30, %v3245_v7  ;;  %v11527_v30 = vpack.c.bf16 %v13290_v6, %v13288_v43  ;;  %v15948_v9 = vmov 1   ;;  %v15949_v17 = vmov 4  }
 0x1c1   : > { %v15951_v28 = vmov 3  }
 0x1c3   : > { %11502 = vmatpush1.bf16.msra.mxu0 %v13322_v15 }
 0x1c4   : > { %11504 = vmatprep.subr.bf16.mxu0 %v11503_v44  ;;  %v3262_v44 = vsub.f32 %v13333_v36, %v15747_v42  ;;  %v11521_v42 = vpack.c.bf16 %v13228_v41, %v13226_v40  ;;  %v11559_v40 = vpack.c.bf16 %v15942_v1, %v3219_v45  ;;  %v15944_v41 = vand.u32 4294901760, %v13316_v4 }
 0x1c5   : > { %v3749_v4 = vlaneseq }
 0x1c6   : > { %3163 = vmatmul.mubr.f32.vlgmr.msra.gmra.mrb[0].mxu0 %v3162_v19  ;;  %v11513_v19 = vpack.c.bf16 %v3239_v34, %v3227_v57 }
 0x1c7   : > { %11506 = vmatpush1.bf16.msra.mxu0 %v11505_v20  ;;  %3313 = vmatprep.mubr.f32.mxu0 %v15802_v47  ;;  %v3263_v20 = vand.u32 4294901760, %v3262_v44  ;;  %v3750_v45 = vshrl.u32 %v3749_v4, 7 }
 0x1c8   : > { %11508 = vmatprep.subr.bf16.mxu0 %v11507_v63  ;;  %v11523_v63 = vpack.c.bf16 %v13239_v49, %v13237_v60  ;;  %v11563_v60 = vpack.c.bf16 %v3255_v29, %v15944_v41  ;;  %v15945_v49 = vand.u32 4294901760, %v13333_v36 }
 0x1c9   : > { %v11517_v12 = vpack.c.bf16 %v3263_v20, %v3251_v37  ;;  %v13521_v29 = vsub.s32 0, %v3750_v45  ;;  %v13523_v57 = vsub.s32 1, %v3750_v45 }
 0x1ca   : > { %v11565_v23 = vpack.c.bf16 %v15945_v49, %v3249_v11  ;;  %v15800_v11 = vmov 8  }
 0x1cb   : > { %11510 = vmatpush1.bf16.msra.mxu0 %v11509_v46  ;;  %v11555_v46 = vpack.c.bf16 %v3207_v3, %v3195_v35  ;;  %12038 = vset.pattern.permute.xlu0 %v15800_v11  ;;  %v15950_v3 = vmov 2   ;;  %15952 = vst [vmem:[#allocation5_spill] sm:$0xff] %v13521_v29  ;;  %15953 = vst [vmem:[#allocation6_spill] sm:$0xff] %v13523_v57 }
 0x1cc   : > { %11512 = vmatprep.subr.bf16.mxu0 %v11511_v48 }
 0x1cf   : > { %11514 = vmatpush1.bf16.msra.mxu0 %v11513_v19 }
 0x1d0   : > { %11516 = vmatprep.subr.bf16.mxu0 %v11515_v22 }
 0x1d3   : > { %11518 = vmatpush1.bf16.msra.mxu0 %v11517_v12 }
 0x1d4   : > { %11520 = vmatprep.subr.bf16.mxu0 %v11519_v33 }
 0x1d6   : > { %3315 = vmatmul.mubr.f32.vlgmr.msra.gmra.mrb[0].mxu0 %v13174_v50 }
 0x1d7   : > { %11522 = vmatpush1.bf16.msra.mxu0 %v11521_v42  ;;  %3417 = vmatprep.mubr.f32.mxu0 %v15802_v47  ;;  %v11533_v42 = vpack.c.bf16 %v13333_v36, %v13324_v31 }
 0x1d8   : > { %11524 = vmatprep.subr.bf16.mxu0 %v11523_v63 }
 0x1db   : > { %11526 = vmatpush1.bf16.msra.mxu0 %v11525_v32 }
 0x1dc   : > { %11528 = vmatprep.subr.bf16.mxu0 %v11527_v30 }
 0x1df   : > { %11530 = vmatpush1.bf16.msra.mxu0 %v11529_v38 }
 0x1e0   : > { %11532 = vmatprep.subr.bf16.mxu0 %v11531_v16 }
 0x1e3   : > { %11534 = vmatpush1.bf16.msra.mxu0 %v11533_v42 }
 0x1e4   : > { %11536 = vmatprep.subr.bf16.mxu0 %v13223_v59 }
 0x1e6   : > { %3420 = vmatmul.mubr.f32.vlgmr.msra.gmra.mrb[0].mxu0 %v13188_v61  ;;  %v15943_v61 = vand.u32 4294901760, %v13311_v2 }
 0x1e7   : > { %11538 = vmatpush1.bf16.msra.mxu0 %v13242_v54  ;;  %3506 = vmatprep.mubr.f32.mxu0 %v15802_v47 }
 0x1e8   : > { %11540 = vmatprep.subr.bf16.mxu0 %v13247_v5 }
 0x1eb   : > { %11542 = vmatpush1.bf16.msra.mxu0 %v13260_v25 }
 0x1ec   : > { %11544 = vmatprep.subr.bf16.mxu0 %v13269_v62 }
 0x1ef   : > { %11546 = vmatpush1.bf16.msra.mxu0 %v13292_v13 }
 0x1f0   : > { %11548 = vmatprep.subr.bf16.mxu0 %v13313_v8 }
 0x1f3   : > { %11550 = vmatpush1.bf16.msra.mxu0 %v13322_v15 }
 0x1f4   : > { %11552 = vmatprep.subr.bf16.mxu0 %v11551_v21 }
 0x1f6   : > { %3510 = vmatmul.mubr.f32.vlgmr.msra.gmra.mrb[0].mxu0 %v3160_v58  ;;  %v11561_v58 = vpack.c.bf16 %v15943_v61, %v3225_v55 }
 0x1f7   : > { %11554 = vmatpush1.bf16.msra.mxu0 %v11553_v53  ;;  %3628 = vmatprep.mubr.f32.mxu0 %v15802_v47 }
 0x1f8   : > { %11556 = vmatprep.subr.bf16.mxu0 %v11555_v46 }
 0x1fb   : > { %11558 = vmatpush1.bf16.msra.mxu0 %v11557_v27 }
 0x1fc   : > { %11560 = vmatprep.subr.bf16.mxu0 %v11559_v40 }
 0x1ff   : > { %11562 = vmatpush1.bf16.msra.mxu0 %v11561_v58 }
 0x200   : > { %11564 = vmatprep.subr.bf16.mxu0 %v11563_v60  ;;  %v3727_v60 = vld [vmem:[%s15956_s13 + $0x8] sm:$0xf] }
 0x203   : > { %11566 = vmatpush1.bf16.msra.mxu0 %v11565_v23 }
 0x204   : > { %11568 = vmatprep.subr.bf16.mxu0 %v13223_v59 }
 0x206   : > { %3630 = vmatmul.mubr.f32.vlgmr.msra.gmra.mrb[0].mxu0 %v13174_v50 }
 0x207   : > { %11570 = vmatpush1.bf16.msra.mxu0 %v13242_v54  ;;  %3716 = vmatprep.mubr.f32.mxu0 %v15802_v47 }
 0x208   : > { %11572 = vmatprep.subr.bf16.mxu0 %v13247_v5 }
 0x20b   : > { %11574 = vmatpush1.bf16.msra.mxu0 %v13260_v25 }
 0x20c   : > { %11576 = vmatprep.subr.bf16.mxu0 %v13269_v62  ;;  %v3779_v62 = vpop.permute.xlu0 %3778 }
 0x20f   : > { %11578 = vmatpush1.bf16.msra.mxu0 %v13292_v13 }
 0x210   : > { %11580 = vmatprep.subr.bf16.mxu0 %v13313_v8  ;;  %v13506_v43 = vpop.permute.xlu0 %3835 }
 0x213   : > { %11582 = vmatpush1.bf16.msra.mxu0 %v13322_v15  ;;  %v13495_v15 = vld [vmem:[%s15717_s22] sm:$0xff] }
 0x214   : > { %v13512_v13 = vpop.permute.xlu0 %3854 }
 0x216   : > { %3718 = vmatmul.mubr.f32.vlgmr.msra.gmra.mrb[0].mxu0 %v13174_v50  ;;  %v4477_v50 = vld [vmem:[%s15947_s14 + $0x8] sm:$0xf]  ;;  %s15983_s14 = smov 30  }
 0x217   : > { %3996 = vmatprep.mubr.f32.mxu0 %v15802_v47  ;;  %v3732_v18 = vpop.permute.xlu1 %3731 }
 0x218   : > { %v13518_v52 = vpop.permute.xlu0 %3890 }
 0x21b   : > { %v3764_v10 = vpop.permute.xlu1 %3763 }
 0x220   : > { %v3809_v35 = vpop.permute.xlu1 %3808 }
 0x225   : > { %v13510_v6 = vpop.permute.xlu1 %3827 }
 0x22a   : > { %v13516_v24 = vpop.permute.xlu1 %3873 }
 0x2e9   : > { %v3719_v31 = vpop.f32.mrb[0].mxu0 }
 0x2ea   : > { %v11777_v59 = vadd.f32 %v3719_v31, %v13113_v0  ;;  %v3721_v54 = vpop.f32.mrb[1].mxu0 }
 0x2eb   : > { %v11778_v5 = vadd.f32 %v3721_v54, %v13115_v56  ;;  %v4445_v56 = vld [vmem:[%s1014_s7 + $0x8] sm:$0xf] }
 0x2ec   : > { %v13447_v25 = vmul.f32 %v11777_v59, %v3732_v18 }
 0x2ed   : > { %v13457_v0 = vmul.f32 %v11778_v5, %v3732_v18 }
 0x2ee   : > { %3768 = vrot.lane.b32.xlu0 %v13447_v25, %s15763_s29  ;;  %3739 = vrot.lane.b32.xlu1 %v13447_v25, %s15786_s12 }
 0x2f2   : > { %3785 = vrot.lane.b32.xlu0 %v13447_v25, %s15758_s1  ;;  %3815 = vrot.lane.b32.xlu1 %v13447_v25, %s15754_s4 }
 0x2f6   : > { %3842 = vrot.lane.b32.xlu1 %v13447_v25, %s15750_s9  ;;  %3741 = vrot.lane.b32.xlu0 %v13457_v0, %s15786_s12 }
 0x2fa   : > { %3861 = vrot.lane.b32.xlu1 %v13447_v25, %s15752_s30  ;;  %3909 = vperm.xlu0 %12038, %v13132_v26   ;;  %v4444_v26 = vld [vmem:[%s1014_s7] sm:$0xff]  ;;  %s15761_s7 = smov 32  }
 0x2fe   : > { %3770 = vrot.lane.b32.xlu1 %v13457_v0, %s15763_s29  ;;  %3899 = vrot.lane.b32.xlu0 %v13457_v0, %s15748_s6 }
 0x2ff   : > { %12040 = vset.pattern.permute.xlu0 %v15941_v14 }
 0x302   : > { %3787 = vrot.lane.b32.xlu1 %v13457_v0, %s15758_s1  ;;  %3897 = vrot.lane.b32.xlu0 %v13447_v25, %s15748_s6  ;;  %s15760_s6 = sshll.u32 %s16272_s5, 1  ;;  %s15971_s1 = smov 15  }
 0x303   : > { %s986_s2 = scalar_lea.vmem %s15961_s11, %s15760_s6  ;;  %s15773_s6 = smov 64  }
 0x306   : > { %3817 = vrot.lane.b32.xlu1 %v13457_v0, %s15754_s4  ;;  %4448 = vperm.xlu0 %12040, %v4444_v26   ;;  %s13671_s4 = sshll.u32 %s16272_s5, 5  ;;  %s15989_s5 = smov 94  }
 0x307   : > { %15962 = sst [smem:[#allocation8_spill]] %s13671_s4  ;;  %s982_s11 = scalar_lea.vmem %s15963_s8, %s13671_s4 }
 0x308   : > { %s15769_s8 = smov 68   ;;  %s15986_s4 = smov 98  }
 0x30a   : > { %3844 = vrot.lane.b32.xlu1 %v13457_v0, %s15750_s9  ;;  %12041 = vset.pattern.permute.xlu0 %v15948_v9  ;;  %s15954_s9 = sld [smem:[#allocation49_spill]] }
 0x30b   : > { %5076 = vperm.xlu0 %12041, %v13495_v15  }
 0x30e   : > { %3863 = vrot.lane.b32.xlu1 %v13457_v0, %s15752_s30  ;;  %s15972_s30 = smov 1  }
 0x30f   : > { %12044 = vset.pattern.permute.xlu0 %v15949_v17 }
 0x310   : > { %5120 = vperm.xlu0 %12044, %v13495_v15   ;;  %v11181_v44 = vld [vmem:[%s15954_s9 + $0x2] ss:$8 sm:$0x3]  ;;  %v11182_v7 = vld [vmem:[%s15954_s9 + $0x4] ss:$8 sm:$0x3] }
 0x311   : > { %v13534_v19 = vrot.slane %v11181_v44, %v13521_v29  ;;  %v13537_v37 = vrot.slane %v11181_v44, %v13523_v57  ;;  %v13542_v33 = vrot.slane %v11182_v7, %v13521_v29  ;;  %v13545_v63 = vrot.slane %v11182_v7, %v13523_v57 }
 0x312   : > { %3882 = vrot.lane.b32.xlu1 %v13457_v0, %s15756_s10 }
 0x313   : > { %15955 = vst [vmem:[#allocation7_spill] sm:$0xff] %v13534_v19 }
 0x314   : > { %12047 = vset.pattern.permute.xlu0 %v15950_v3 }
 0x316   : > { %3880 = vrot.lane.b32.xlu1 %v13447_v25, %s15756_s10  ;;  %s15765_s10 = smov 30  }
 0x31a   : > { %4453 = vperm.xlu1 %12039, %v4445_v56   ;;  %v3921_v56 = vsel %vm15886_vm5, %v3727_v60, 0 }
 0x31b   : > { %v13571_v44 = vand.u32 4294901760, %v3921_v56 }
 0x31e   : > { %4485 = vperm.xlu1 %12039, %v4477_v50  }
 0x322   : > { %4480 = vperm.xlu1 %12039, %v4476_v39  }
 0x326   : > { %5062 = vperm.xlu1 %12039, %v13495_v15  }
 0x32a   : > { %12042 = vset.pattern.permute.xlu1 %v15950_v3 }
 0x32b   : > { %5094 = vperm.xlu1 %12042, %v13495_v15  }
 0x32f   : > { %12043 = vset.pattern.permute.xlu1 %v15951_v28 }
 0x330   : > { %5112 = vperm.xlu1 %12043, %v13495_v15  }
 0x334   : > { %12045 = vset.pattern.permute.xlu1 %v15948_v9 }
 0x360   : > { %v3740_v2 = vpop.permute.xlu1 %3739  ;;  %v3769_v8 = vpop.permute.xlu0 %3768 }
 0x361   : > { %v3747_v22 = vsel %vm15834_vm1, 0.0, %v3740_v2  ;;  %v3776_v1 = vsel %vm3772_vm3, 0.0, %v3769_v8 }
 0x362   : > { %v3759_v38 = vmul.f32 %v13534_v19, %v3747_v22  ;;  %v3781_v59 = vmul.f32 %v3779_v62, %v3776_v1 }
 0x364   : > { %v3816_v51 = vpop.permute.xlu1 %3815  ;;  %v3786_v36 = vpop.permute.xlu0 %3785  ;;  %v3766_v40 = vmul.f32 %v3764_v10, %v3759_v38 }
 0x365   : > { %v3793_v32 = vsel %vm3789_vm2, 0.0, %v3786_v36  ;;  %v3823_v49 = vsel %vm3819_vm4, 0.0, %v3816_v51 }
 0x366   : > { %v3805_v53 = vmul.f32 %v13542_v33, %v3793_v32  ;;  %v3783_v26 = vadd.f32 %v3781_v59, %v3766_v40  ;;  %v3824_v50 = vmul.f32 %v3823_v49, %v13534_v19 }
 0x368   : > { %v3843_v55 = vpop.permute.xlu1 %3842  ;;  %v3742_v48 = vpop.permute.xlu0 %3741  ;;  %v3811_v54 = vmul.f32 %v3809_v35, %v3805_v53  ;;  %v3830_v7 = vmul.f32 %v13510_v6, %v3824_v50  ;;  %v3838_v53 = vmul.f32 %v13506_v43, %v13447_v25 }
 0x369   : > { %v3744_v12 = vsel %vm15834_vm1, %v3740_v2, %v3742_v48  ;;  %v3726_v48 = vld [vmem:[%s15956_s13] sm:$0xff]  ;;  %s15982_s13 = smov 64  }
 0x36a   : > { %v3760_v16 = vmul.f32 %v13537_v37, %v3744_v12 }
 0x36c   : > { %v13525_v34 = vpop.permute.xlu1 %3861  ;;  %v3767_v61 = vmul.f32 %v3764_v10, %v3760_v16 }
 0x370   : > { %v3771_v20 = vpop.permute.xlu1 %3770 }
 0x371   : > { %v3773_v30 = vsel %vm3772_vm3, %v3769_v8, %v3771_v20  ;;  %v3839_v8 = vmul.f32 %v13506_v43, %v13457_v0 }
 0x372   : > { %v3782_v46 = vmul.f32 %v3779_v62, %v3773_v30 }
 0x374   : > { %v3788_v42 = vpop.permute.xlu1 %3787  ;;  %v3784_v18 = vadd.f32 %v3782_v46, %v3767_v61  ;;  %v13589_v46 = vsub.f32 %v3921_v56, %v13571_v44 }
 0x375   : > { %v3790_v21 = vsel %vm3789_vm2, %v3786_v36, %v3788_v42 }
 0x376   : > { %v3806_v27 = vmul.f32 %v13545_v63, %v3790_v21  ;;  %v3918_v21 = vsel %vm15886_vm5, %v3726_v48, 0 }
 0x377   : > { %v13596_v60 = vand.u32 4294901760, %v3918_v21 }
 0x378   : > { %v3812_v58 = vmul.f32 %v3809_v35, %v3806_v27  ;;  %v3818_v41 = vpop.permute.xlu1 %3817 }
 0x379   : > { %v3820_v23 = vsel %vm3819_vm4, %v3816_v51, %v3818_v41  ;;  %v13560_v31 = vpop.permute.xlu0 %3909  ;;  %v3813_v51 = vadd.f32 %v3811_v54, %v3783_v26  ;;  %v3998_v59 = vsub.f32 %v3918_v21, %v13596_v60  ;;  %v15960_v21 = vmov 7  }
 0x37a   : > { %v3825_v5 = vmul.f32 %v3820_v23, %v13537_v37  ;;  %v3814_v39 = vadd.f32 %v3812_v58, %v3784_v18 }
 0x37b   : > { %v3832_v38 = vadd.f32 %v3830_v7, %v3813_v51 }
 0x37c   : > { %v3831_v10 = vmul.f32 %v13510_v6, %v3825_v5  ;;  %v3845_v2 = vpop.permute.xlu1 %3844 }
 0x37d   : > { %v3847_v4 = vsel %vm15837_vm6, %v3843_v55, %v3845_v2  ;;  %v3850_v62 = vsel %vm15837_vm6, %v3845_v2, 0.0  ;;  %v3900_v35 = vpop.permute.xlu0 %3899  ;;  %v3840_v49 = vadd.f32 %v3838_v53, %v3832_v38  ;;  %v3999_v2 = vand.u32 4294901760, %v3998_v59 }
 0x37e   : > { %v3833_v45 = vadd.f32 %v3831_v10, %v3814_v39  ;;  %v3852_v36 = vmul.f32 %v3850_v62, %v13545_v63  ;;  %v3851_v55 = vmul.f32 %v3847_v4, %v13542_v33  ;;  %v3905_v12 = vsel %vm15885_vm7, %v3900_v35, 0.0 }
 0x37f   : > { %v3907_v1 = vmul.f32 %v3905_v12, %v13545_v63  ;;  %v4000_v51 = vsub.f32 %v3998_v59, %v3999_v2 }
 0x380   : > { %v3841_v0 = vadd.f32 %v3839_v8, %v3833_v45  ;;  %v3858_v20 = vmul.f32 %v13512_v13, %v3852_v36  ;;  %v3864_v22 = vpop.permute.xlu1 %3863  ;;  %v3857_v27 = vmul.f32 %v13512_v13, %v3851_v55  ;;  %v4010_v13 = vand.u32 4294901760, %v13589_v46 }
 0x381   : > { %v3866_v32 = vsel %vm15838_vm8, %v13525_v34, %v3864_v22  ;;  %v3869_v30 = vsel %vm15838_vm8, %v3864_v22, 0.0  ;;  %v3898_v6 = vpop.permute.xlu0 %3897  ;;  %v3913_v18 = vmul.f32 %v13560_v31, %v3907_v1  ;;  %v4001_v55 = vand.u32 4294901760, %v4000_v51 }
 0x382   : > { %v3870_v16 = vmul.f32 %v3866_v32, %v13534_v19  ;;  %v3871_v42 = vmul.f32 %v3869_v30, %v13537_v37  ;;  %v3860_v34 = vadd.f32 %v3858_v20, %v3841_v0  ;;  %v3902_v58 = vsel %vm15885_vm7, %v3898_v6, %v3900_v35 }
 0x383   : > { %v3859_v54 = vadd.f32 %v3857_v27, %v3840_v49  ;;  %v3906_v5 = vmul.f32 %v3902_v58, %v13542_v33  ;;  %v4011_v8 = vsub.f32 %v13589_v46, %v4010_v13  ;;  %v15958_v6 = vmov 6  }
 0x384   : > { %v3877_v40 = vmul.f32 %v13516_v24, %v3871_v42  ;;  %v3883_v61 = vpop.permute.xlu1 %3882  ;;  %v3876_v25 = vmul.f32 %v13516_v24, %v3870_v16  ;;  %v13631_v16 = vld [vmem:[%s15717_s22 + $0x8] sm:$0xff]  ;;  %v15957_v42 = vmov 5  }
 0x385   : > { %v3888_v41 = vsel %vm15842_vm9, %v3883_v61, 0.0  ;;  %v3912_v4 = vmul.f32 %v13560_v31, %v3906_v5  ;;  %v4012_v0 = vand.u32 4294901760, %v4011_v8  ;;  %5431 = vperm.xlu1 %12045, %v13631_v16   ;;  %5461 = vperm.xlu0 %12047, %v13631_v16  }
 0x386   : > { %v3879_v43 = vadd.f32 %v3877_v40, %v3860_v34  ;;  %v3894_v23 = vmul.f32 %v13518_v52, %v3888_v41  ;;  %v3878_v10 = vadd.f32 %v3876_v25, %v3859_v54  ;;  %v4460_v34 = vld [vmem:[%s986_s2] sm:$0x3]  ;;  %v4449_v40 = vpop.permute.xlu0 %4448  ;;  %s15767_s2 = smov 34  }
 0x387   : > { %v4469_v25 = vrot.slane %v4460_v34, %v13523_v57 }
 0x388   : > { %v3896_v56 = vadd.f32 %v3894_v23, %v3879_v43  ;;  %v3881_v26 = vpop.permute.xlu1 %3880 }
 0x389   : > { %v3885_v50 = vsel %vm15842_vm9, %v3881_v26, %v3883_v61  ;;  %12046 = vset.pattern.permute.xlu1 %v15957_v42  ;;  %12054 = vset.pattern.permute.xlu0 %v15958_v6  ;;  %v4512_v61 = vld [vmem:[%s15715_s20] sm:$0xff] }
 0x38a   : > { %v3915_v39 = vadd.f32 %v3913_v18, %v3896_v56  ;;  %v3893_v24 = vmul.f32 %v13518_v52, %v3885_v50  ;;  %5138 = vperm.xlu1 %12046, %v13495_v15   ;;  %5518 = vperm.xlu0 %12054, %v13631_v16   ;;  %v4538_v23 = vsel %vm15823_vm11, %v4512_v61, 0  ;;  %vm5442_vm11 = vcmask 490496  }
 0x38c   : > { %v3928_v62 = vsel %vm15817_vm10, %v3915_v39, 0  ;;  %v3895_v35 = vadd.f32 %v3893_v24, %v3878_v10  ;;  %v13678_v39 = vand.u32 4294901760, %v4538_v23 }
 0x38d   : > { %v3930_v45 = vand.u32 4294901760, %v3928_v62 }
 0x38e   : > { %v3914_v36 = vadd.f32 %v3912_v4, %v3895_v35  ;;  %12048 = vset.pattern.permute.xlu1 %v15958_v6  ;;  %12055 = vset.pattern.permute.xlu0 %v15941_v14  ;;  %v4504_v35 = vld [vmem:[%s982_s11] sm:$0xff] }
 0x38f   : > { %3931 = vmatprep.subr.mxu0 %v3930_v45  ;;  %11775 = vmatprep.subr.mxu1 %v3930_v45  ;;  %v4020_v48 = vsub.f32 %v3928_v62, %v3930_v45 }
 0x390   : > { %v3925_v7 = vsel %vm15817_vm10, %v3914_v36, 0  ;;  %5156 = vperm.xlu1 %12048, %v13495_v15   ;;  %v4505_v36 = vld [vmem:[%s982_s11 + $0x8] sm:$0xff] }
 0x391   : > { %v3932_v20 = vand.u32 4294901760, %v3925_v7  ;;  %v4021_v52 = vand.u32 4294901760, %v4020_v48 }
 0x393   : > { %v4026_v22 = vsub.f32 %v3925_v7, %v3932_v20  ;;  %3933 = vmatpush1.msra.mxu0 %v3932_v20  ;;  %11776 = vmatpush1.msra.mxu1 %v3932_v20  ;;  %v4022_v12 = vsub.f32 %v4020_v48, %v4021_v52 }
 0x394   : > { %4013 = vmatmul.mubr.f32.vlgmr.msra.gmra.mrb[2].mxu1 %v4012_v0  ;;  %4002 = vmatmul.mubr.f32.vlgmr.msra.gmra.mrb[2].mxu0 %v4001_v55  ;;  %v4506_v55 = vld [vmem:[%s982_s11 + $0x10] sm:$0xf] }
 0x395   : > { %v4023_v31 = vand.u32 4294901760, %v4022_v12  ;;  %v4027_v32 = vand.u32 4294901760, %v4026_v22  ;;  %4093 = vmatprep.mubr.f32.mxu1 %v15802_v47  ;;  %12049 = vset.pattern.permute.xlu1 %v15951_v28 }
 0x396   : > { %5479 = vperm.xlu1 %12049, %v13631_v16  }
 0x397   : > { %4024 = vmatprep.subr.mxu1 %v4023_v31  ;;  %v4028_v30 = vsub.f32 %v4026_v22, %v4027_v32 }
 0x399   : > { %v4029_v38 = vand.u32 4294901760, %v4028_v30  ;;  %v4454_v27 = vpop.permute.xlu1 %4453 }
 0x39a   : > { %12050 = vset.pattern.permute.xlu1 %v15960_v21 }
 0x39b   : > { %4030 = vmatpush1.msra.mxu1 %v4029_v38  ;;  %5172 = vperm.xlu1 %12050, %v13495_v15  }
 0x39c   : > { %4095 = vmatmul.mubr.f32.vlgmr.msra.gmra.mrb[4].mxu1 %v13596_v60  ;;  %4110 = vmatprep.subr.mxu1 %v4020_v48  ;;  %v13681_v48 = vsub.f32 %v4538_v23, %v13678_v39 }
 0x39d   : > { %4113 = vmatpush1.msra.mxu1 %v4026_v22  ;;  %4100 = vmatprep.mubr.f32.mxu1 %v15802_v47  ;;  %v4507_v22 = vld [vmem:[%s982_s11 + $0x18] sm:$0xf]  ;;  %s15771_s11 = smov 2  }
 0x39e   : > { %4194 = vmatprep.subr.mxu1 %v3930_v45 }
 0x39f   : > { %12051 = vset.pattern.permute.xlu1 %v15949_v17 }
 0x3a0   : > { %4102 = vmatmul.mubr.f32.gmra.mrb[2].mxu1 %v13571_v44  ;;  %5487 = vperm.xlu1 %12051, %v13631_v16  }
 0x3a1   : > { %4176 = vmatprep.mubr.f32.mxu1 %v15802_v47 }
 0x3a4   : > { %4179 = vmatmul.mubr.f32.vlgmr.msra.gmra.mrb[4].mxu1 %v3998_v59  ;;  %12052 = vset.pattern.permute.xlu1 %v15800_v11 }
 0x3a5   : > { %4196 = vmatpush1.msra.mxu1 %v3932_v20  ;;  %4184 = vmatprep.mubr.f32.mxu1 %v15802_v47 }
 0x3a6   : > { %4281 = vmatprep.subr.mxu1 %v4021_v52  ;;  %5190 = vperm.xlu1 %12052, %v13495_v15   ;;  %v4486_v15 = vpop.permute.xlu1 %4485 }
 0x3a8   : > { %4187 = vmatmul.mubr.f32.gmra.mrb[2].mxu1 %v13589_v46 }
 0x3a9   : > { %4259 = vmatprep.mubr.f32.mxu1 %v15802_v47 }
 0x3aa   : > { %12053 = vset.pattern.permute.xlu1 %v15957_v42  ;;  %v4481_v56 = vpop.permute.xlu1 %4480 }
 0x3ab   : > { %5506 = vperm.xlu1 %12053, %v13631_v16  }
 0x3ac   : > { %4263 = vmatmul.mubr.f32.vlgmr.msra.gmra.mrb[4].mxu1 %v3999_v2 }
 0x3ad   : > { %4285 = vmatpush1.msra.mxu1 %v4027_v32  ;;  %4268 = vmatprep.mubr.f32.mxu1 %v15802_v47 }
 0x3ae   : > { %4364 = vmatprep.subr.mxu1 %v3930_v45 }
 0x3af   : > { %12056 = vset.pattern.permute.xlu1 %v15960_v21 }
 0x3b0   : > { %4272 = vmatmul.mubr.f32.gmra.mrb[2].mxu1 %v4010_v13  ;;  %5528 = vperm.xlu1 %12056, %v13631_v16  }
 0x3b1   : > { %4348 = vmatprep.mubr.f32.mxu1 %v15802_v47 }
 0x3b4   : > { %4350 = vmatmul.mubr.f32.vlgmr.msra.gmra.mrb[4].mxu1 %v13596_v60  ;;  %12057 = vset.pattern.permute.xlu1 %v15800_v11 }
 0x3b5   : > { %4366 = vmatpush1.msra.mxu1 %v3932_v20  ;;  %4355 = vmatprep.mubr.f32.mxu1 %v15802_v47 }
 0x3b8   : > { %4357 = vmatmul.mubr.f32.gmra.mrb[2].mxu1 %v13571_v44 }
 0x3b9   : > { %4429 = vmatprep.mubr.f32.mxu1 %v15802_v47 }
 0x3bc   : > { %4431 = vmatmul.mubr.f32.vlgmr.msra.gmra.mrb[4].mxu1 %v13596_v60  ;;  %v4465_v60 = vrot.slane %v4460_v34, %v13521_v29 }
 0x3bd   : > { %4436 = vmatprep.mubr.f32.mxu1 %v15802_v47 }
 0x3c0   : > { %4438 = vmatmul.mubr.f32.gmra.mrb[2].mxu1 %v13571_v44  ;;  %v4514_v44 = vld [vmem:[%s15959_s21] sm:$0xff]  ;;  %s16050_s21 = smov 96  }
 0x3c1   : > { %4614 = vmatprep.mubr.f32.mxu1 %v15802_v47  ;;  %5041 = vperm.xlu0 %12055, %v4514_v44  }
 0x3c5   : > { %5417 = vperm.xlu0 %12055, %v13631_v16  }
 0x467   : > { %v4003_v53 = vpop.f32.mrb[2].mxu0 }
 0x468   : > { %v4005_v46 = vpop.f32.mrb[3].mxu0 }
 0x48f   : > { %v4432_v1 = vpop.f32.mrb[4].mxu1 }
 0x490   : > { %v11779_v58 = vadd.f32 %v4432_v1, %v4003_v53  ;;  %v4434_v41 = vpop.f32.mrb[5].mxu1  ;;  %v4617_v53 = vand.u32 4294901760, %v13681_v48 }
 0x491   : > { %v11780_v49 = vadd.f32 %v4434_v41, %v4005_v46 }
 0x492   : > { %v4456_v43 = vmul.f32 %v11779_v58, %v4449_v40  ;;  %v4618_v41 = vsub.f32 %v13681_v48, %v4617_v53 }
 0x493   : > { %v4457_v13 = vmul.f32 %v11780_v49, %v4449_v40  ;;  %v4439_v59 = vpop.f32.mrb[2].mxu1 }
 0x494   : > { %v4458_v54 = vmul.f32 %v4454_v27, %v4439_v59  ;;  %v4472_v18 = vadd.f32 %v4465_v60, %v4456_v43  ;;  %v4441_v5 = vpop.f32.mrb[3].mxu1 }
 0x495   : > { %v4459_v26 = vmul.f32 %v4454_v27, %v4441_v5  ;;  %v4473_v50 = vadd.f32 %v4469_v25, %v4457_v13 }
 0x496   : > { %v4474_v10 = vadd.f32 %v4465_v60, %v4458_v54  ;;  %v4488_v24 = vadd.f32 %v4481_v56, %v4472_v18  ;;  %v4619_v54 = vand.u32 4294901760, %v4618_v41  ;;  %v4522_v41 = vld [vmem:[%s15718_s23 + $0x8] sm:$0xff] }
 0x497   : > { %v4475_v2 = vadd.f32 %v4469_v25, %v4459_v26  ;;  %v4489_v8 = vadd.f32 %v4481_v56, %v4473_v50 }
 0x498   : > { %v4490_v4 = vadd.f32 %v4486_v15, %v4474_v10  ;;  %vm4492_vm12 = vcmp.ge.f32.partialorder %v4488_v24, 0.0  ;;  %v4496_v62 = vmul.f32 0.2, %v4488_v24 }
 0x499   : > { %v4491_v51 = vadd.f32 %v4486_v15, %v4475_v2  ;;  %vm4493_vm13 = vcmp.ge.f32.partialorder %v4489_v8, 0.0  ;;  %v4497_v45 = vmul.f32 0.2, %v4489_v8 }
 0x49a   : > { %vm4494_vm14 = vcmp.ge.f32.partialorder %v4490_v4, 0.0  ;;  %v4498_v7 = vmul.f32 0.2, %v4490_v4  ;;  %v4500_v0 = vsel %vm4492_vm12, %v4488_v24, %v4496_v62 }
 0x49b   : > { %vm4495_vm15 = vcmp.ge.f32.partialorder %v4491_v51, 0.0  ;;  %v4499_v20 = vmul.f32 0.2, %v4491_v51  ;;  %v4501_v52 = vsel %vm4493_vm13, %v4489_v8, %v4497_v45  ;;  %v13683_v12 = vadd.f32 %v4504_v35, %v4500_v0 }
 0x49c   : > { %v4502_v31 = vsel %vm4494_vm14, %v4490_v4, %v4498_v7  ;;  %v13685_v32 = vadd.f32 %v4505_v36, %v4501_v52  ;;  %vm15835_vm14 = vcmask 277504  }
 0x49d   : > { %15964 = vst [vmem:[#allocation9_spill] sm:$0xff] %v13683_v12  ;;  %v13687_v30 = vadd.f32 %v4506_v55, %v4502_v31  ;;  %v4503_v38 = vsel %vm4495_vm15, %v4491_v51, %v4499_v20  ;;  %v4548_v44 = vand.u32 4294901760, %v13683_v12  ;;  %vm5248_vm15 = vcmask 244736  }
 0x49e   : > { %15965 = vst [vmem:[#allocation10_spill] sm:$0xff] %v13685_v32  ;;  %v13691_v46 = vadd.f32 %v4507_v22, %v4503_v38  ;;  %v4546_v27 = vand.u32 4294901760, %v13685_v32 }
 0x49f   : > { %15966 = vst [vmem:[#allocation11_spill] sm:$0xff] %v13687_v30  ;;  %v4541_v34 = vsel %vm15817_vm10, %v13687_v30, 0  ;;  %v4633_v15 = vsub.f32 %v13683_v12, %v4548_v44 }
 0x4a0   : > { %15967 = vst [vmem:[#allocation12_spill] sm:$0xff] %v13691_v46  ;;  %v4544_v1 = vsel %vm15817_vm10, %v13691_v46, 0  ;;  %v4627_v40 = vsub.f32 %v13685_v32, %v4546_v27  ;;  %v4552_v61 = vand.u32 4294901760, %v4541_v34  ;;  %vm5397_vm10 = vcmask 556032  }
 0x4a1   : > { %v4550_v58 = vand.u32 4294901760, %v4544_v1  ;;  %v4634_v25 = vand.u32 4294901760, %v4633_v15 }
 0x4a2   : > { %v4645_v60 = vsub.f32 %v4541_v34, %v4552_v61  ;;  %v4628_v49 = vand.u32 4294901760, %v4627_v40  ;;  %v11585_v13 = vpack.c.bf16 %v4552_v61, %v4548_v44 }
 0x4a3   : > { %v11583_v43 = vpack.c.bf16 %v4550_v58, %v4546_v27  ;;  %v4639_v23 = vsub.f32 %v4544_v1, %v4550_v58  ;;  %v4635_v56 = vsub.f32 %v4633_v15, %v4634_v25  ;;  %v4521_v58 = vld [vmem:[%s15718_s23] sm:$0xff] }
 0x4a4   : > { %v4646_v59 = vand.u32 4294901760, %v4645_v60  ;;  %v4629_v18 = vsub.f32 %v4627_v40, %v4628_v49  ;;  %v11593_v51 = vpack.c.bf16 %v4645_v60, %v4633_v15 }
 0x4a5   : > { %11584 = vmatprep.subr.bf16.mxu1 %v11583_v43  ;;  %v4640_v5 = vand.u32 4294901760, %v4639_v23  ;;  %v4636_v8 = vand.u32 4294901760, %v4635_v56  ;;  %v11591_v35 = vpack.c.bf16 %v4639_v23, %v4627_v40 }
 0x4a6   : > { %11586 = vmatpush1.bf16.msra.mxu1 %v11585_v13  ;;  %v4647_v26 = vsub.f32 %v4645_v60, %v4646_v59  ;;  %v4630_v24 = vand.u32 4294901760, %v4629_v18  ;;  %v11601_v36 = vpack.c.bf16 %v4646_v59, %v4634_v25  ;;  %v4518_v25 = vld [vmem:[%s15717_s22 + $0x10] sm:$0xff] }
 0x4a7   : > { %v4641_v50 = vsub.f32 %v4639_v23, %v4640_v5  ;;  %v11599_v45 = vpack.c.bf16 %v4640_v5, %v4628_v49  ;;  %v4531_v49 = vld [vmem:[%s15720_s25] sm:$0xff] }
 0x4a8   : > { %v4648_v10 = vand.u32 4294901760, %v4647_v26 }
 0x4a9   : > { %4620 = vmatmul.mubr.f32.vlgmr.msra.gmra.mrb[6].mxu1 %v4619_v54  ;;  %v4642_v2 = vand.u32 4294901760, %v4641_v50 }
 0x4aa   : > { %4710 = vmatprep.mubr.f32.mxu1 %v15802_v47  ;;  %v11589_v62 = vpack.c.bf16 %v4648_v10, %v4636_v8 }
 0x4ab   : > { %v11587_v4 = vpack.c.bf16 %v4642_v2, %v4630_v24 }
 0x4ad   : > { %11588 = vmatprep.subr.bf16.mxu1 %v11587_v4 }
 0x4ae   : > { %11590 = vmatpush1.bf16.msra.mxu1 %v11589_v62 }
 0x4af   : > { %11592 = vmatprep.subr.bf16.mxu1 %v11591_v35 }
 0x4b1   : > { %4712 = vmatmul.mubr.f32.vlgmr.msra.gmra.mrb[6].mxu1 %v13678_v39 }
 0x4b2   : > { %11594 = vmatpush1.bf16.msra.mxu1 %v11593_v51  ;;  %4790 = vmatprep.mubr.f32.mxu1 %v15802_v47 }
 0x4b3   : > { %11596 = vmatprep.subr.bf16.mxu1 %v11583_v43 }
 0x4b9   : > { %4793 = vmatmul.mubr.f32.vlgmr.msra.gmra.mrb[6].mxu1 %v13681_v48  ;;  %v13711_v48 = vpop.permute.xlu0 %5076 }
 0x4ba   : > { %11598 = vmatpush1.bf16.msra.mxu1 %v11585_v13  ;;  %4867 = vmatprep.mubr.f32.mxu1 %v15802_v47 }
 0x4bb   : > { %11600 = vmatprep.subr.bf16.mxu1 %v11599_v45 }
 0x4bd   : > { %v13713_v7 = vpop.permute.xlu0 %5120 }
 0x4c1   : > { %4871 = vmatmul.mubr.f32.vlgmr.msra.gmra.mrb[6].mxu1 %v4617_v53  ;;  %v13715_v0 = vpop.permute.xlu0 %5461  ;;  %v13775_v53 = vpop.permute.xlu1 %5062 }
 0x4c2   : > { %11602 = vmatpush1.bf16.msra.mxu1 %v11601_v36  ;;  %4953 = vmatprep.mubr.f32.mxu1 %v15802_v47 }
 0x4c3   : > { %11604 = vmatprep.subr.bf16.mxu1 %v11583_v43 }
 0x4c5   : > { %v13717_v55 = vpop.permute.xlu0 %5518  ;;  %v13781_v27 = vpop.permute.xlu1 %5094 }
 0x4c6   : > { %15968 = vst [vmem:[#allocation13_spill] sm:$0xff] %v13717_v55 }
 0x4c9   : > { %4955 = vmatmul.mubr.f32.vlgmr.msra.gmra.mrb[6].mxu1 %v13678_v39  ;;  %v13719_v20 = vpop.permute.xlu0 %5041  ;;  %v13787_v34 = vpop.permute.xlu1 %5112 }
 0x4ca   : > { %11606 = vmatpush1.bf16.msra.mxu1 %v11585_v13  ;;  %5029 = vmatprep.mubr.f32.mxu1 %v15802_v47  ;;  %15969 = vst [vmem:[#allocation14_spill] sm:$0xff] %v13719_v20 }
 0x4cd   : > { %v13797_v15 = vpop.permute.xlu1 %5431  ;;  %v13857_v54 = vpop.permute.xlu0 %5417 }
 0x4d1   : > { %5031 = vmatmul.mubr.f32.vlgmr.msra.gmra.mrb[6].mxu1 %v13678_v39  ;;  %v13803_v1 = vpop.permute.xlu1 %5138 }
 0x4d2   : > { %5659 = vmatprep.mubr.f32.mxu1 %v15802_v47 }
 0x4d5   : > { %v13813_v40 = vpop.permute.xlu1 %5156 }
 0x4d6   : > { %15988 = vst [vmem:[#allocation16_spill] sm:$0xff] %v13813_v40 }
 0x4d9   : > { %v13819_v61 = vpop.permute.xlu1 %5479 }
 0x4dd   : > { %v13833_v60 = vpop.permute.xlu1 %5172 }
 0x4de   : > { %15991 = vst [vmem:[#allocation17_spill] sm:$0xff] %v13833_v60 }
 0x4e1   : > { %v13844_v43 = vpop.permute.xlu1 %5487 }
 0x4e2   : > { %15992 = vst [vmem:[#allocation18_spill] sm:$0xff] %v13844_v43 }
 0x4e5   : > { %v13846_v23 = vpop.permute.xlu1 %5190 }
 0x4e6   : > { %15993 = vst [vmem:[#allocation19_spill] sm:$0xff] %v13846_v23 }
 0x4e9   : > { %v13851_v13 = vpop.permute.xlu1 %5506 }
 0x4ea   : > { %15994 = vst [vmem:[#allocation20_spill] sm:$0xff] %v13851_v13 }
 0x4ed   : > { %v13855_v59 = vpop.permute.xlu1 %5528 }
 0x4ee   : > { %15995 = vst [vmem:[#allocation21_spill] sm:$0xff] %v13855_v59 }
 0x5a4   : > { %v5032_v52 = vpop.f32.mrb[6].mxu1 }
 0x5a5   : > { %vm5037_vm12 = vcmp.ge.f32.partialorder %v5032_v52, 0.0  ;;  %v5044_v22 = vmul.f32 %v13719_v20, %v5032_v52  ;;  %v5034_v31 = vpop.f32.mrb[7].mxu1 }
 0x5a6   : > { %v5045_v39 = vmul.f32 %v13719_v20, %v5034_v31  ;;  %vm5038_vm13 = vcmp.ge.f32.partialorder %v5034_v31, 0.0 }
 0x5a7   : > { %v13722_v38 = vsel %vm5037_vm12, %v5032_v52, %v5044_v22  ;;  %v13899_v22 = vld [vmem:[%s15954_s9 + $0x1] ss:$8 sm:$0x3]  ;;  %vm5231_vm12 = vcmask 261120  }
 0x5a8   : > { %15970 = vst [vmem:[#allocation15_spill] sm:$0xff] %v13722_v38  ;;  %5197 = vrot.lane.b32.xlu0 %v13722_v38, %s15767_s2  ;;  %5050 = vrot.lane.b32.xlu1 %v13722_v38, %s15786_s12  ;;  %s15777_s2 = smov 126   ;;  %v13761_v44 = vsel %vm5038_vm13, %v5034_v31, %v5045_v39  ;;  %vm5280_vm13 = vcmask 15360  }
 0x5a9   : > { %v5298_v60 = vrot.slane %v13761_v44, 4 }
 0x5ac   : > { %5067 = vrot.lane.b32.xlu0 %v13722_v38, %s15763_s29  ;;  %5227 = vrot.lane.b32.xlu1 %v13722_v38, %s15761_s7  ;;  %s15973_s7 = smov 127   ;;  %s15775_s29 = smov 60  }
 0x5b0   : > { %5083 = vrot.lane.b32.xlu0 %v13722_v38, %s15971_s1  ;;  %5101 = vrot.lane.b32.xlu1 %v13722_v38, %s15972_s30 }
 0x5b4   : > { %5244 = vrot.lane.b32.xlu0 %v13722_v38, %s15765_s10  ;;  %5393 = vrot.lane.b32.xlu1 %v13722_v38, %s15769_s8  ;;  %s15974_s10 = smov 113   ;;  %s15975_s8 = smov 112  }
 0x5b8   : > { %5276 = vrot.lane.b32.xlu0 %v13722_v38, %s15771_s11  ;;  %5422 = vrot.lane.b32.xlu1 %v13722_v38, %s15773_s6  ;;  %s15779_s11 = smov 4   ;;  %s15781_s6 = smov 96  }
 0x5bc   : > { %5127 = vrot.lane.b32.xlu0 %v13722_v38, %s15973_s7  ;;  %5438 = vrot.lane.b32.xlu1 %v13722_v38, %s15775_s29  ;;  %s15784_s29 = smov 98  }
 0x5c0   : > { %5145 = vrot.lane.b32.xlu0 %v13722_v38, %s15974_s10  ;;  %5305 = vrot.lane.b32.xlu1 %v13722_v38, %s15777_s2  ;;  %s15976_s2 = smov 111  }
 0x5c4   : > { %5163 = vrot.lane.b32.xlu0 %v13722_v38, %s15975_s8  ;;  %5468 = vrot.lane.b32.xlu1 %v13722_v38, %s15779_s11  ;;  %s15788_s11 = smov 94  }
 0x5c8   : > { %5347 = vrot.lane.b32.xlu0 %v13722_v38, %s15781_s6  ;;  %5326 = vrot.lane.b32.xlu1 %v13722_v38, %s15784_s29  ;;  %s15977_s6 = smov 34   ;;  %s15979_s29 = smov 16  }
 0x5cc   : > { %5179 = vrot.lane.b32.xlu1 %v13722_v38, %s15976_s2  ;;  %5052 = vrot.lane.b32.xlu0 %v13761_v44, %s15786_s12  ;;  %s15980_s12 = smov 126  }
 0x5d0   : > { %5364 = vrot.lane.b32.xlu1 %v13722_v38, %s15788_s11  ;;  %5103 = vrot.lane.b32.xlu0 %v13761_v44, %s15972_s30  ;;  %s15981_s11 = smov 32  }
 0x5d4   : > { %5199 = vrot.lane.b32.xlu1 %v13761_v44, %s15977_s6  ;;  %5395 = vrot.lane.b32.xlu0 %v13761_v44, %s15978_s3 }
 0x5d8   : > { %5069 = vrot.lane.b32.xlu1 %v13761_v44, %s15979_s29  ;;  %5129 = vrot.lane.b32.xlu0 %v13761_v44, %s15973_s7 }
 0x5dc   : > { %5085 = vrot.lane.b32.xlu1 %v13761_v44, %s15971_s1  ;;  %5307 = vrot.lane.b32.xlu0 %v13761_v44, %s15980_s12 }
 0x5e0   : > { %5229 = vrot.lane.b32.xlu1 %v13761_v44, %s15981_s11  ;;  %5424 = vrot.lane.b32.xlu0 %v13761_v44, %s15982_s13 }
 0x5e4   : > { %5246 = vrot.lane.b32.xlu1 %v13761_v44, %s15983_s14  ;;  %5440 = vrot.lane.b32.xlu0 %v13761_v44, %s15984_s28 }
 0x5e8   : > { %5278 = vrot.lane.b32.xlu1 %v13761_v44, %s15985_s27  ;;  %5147 = vrot.lane.b32.xlu0 %v13761_v44, %s15974_s10 }
 0x5ec   : > { %5165 = vrot.lane.b32.xlu1 %v13761_v44, %s15975_s8  ;;  %5328 = vrot.lane.b32.xlu0 %v13761_v44, %s15986_s4  ;;  %s16263_s4 = sld [smem:[#allocation8_spill]] }
 0x5f0   : > { %5181 = vrot.lane.b32.xlu1 %v13761_v44, %s15976_s2  ;;  %5470 = vrot.lane.b32.xlu0 %v13761_v44, %s15987_s18 }
 0x5f4   : > { %5366 = vrot.lane.b32.xlu1 %v13761_v44, %s15989_s5  ;;  %5349 = vrot.lane.b32.xlu0 %v13761_v44, %s15990_s16  ;;  %s16048_s16 = smov 94   ;;  %s16229_s5 = sld [smem:[#allocation55_spill]] }
 0x5f8   : > { %5540 = vperm.xlu1 %12057, %v13631_v16   ;;  %5496 = vrot.lane.b32.xlu0 %v13761_v44, %s15843_s19  ;;  %v4532_v16 = vld [vmem:[%s15720_s25 + $0x8] sm:$0xff] }
 0x5fc   : > { %12058 = vset.pattern.permute.xlu1 %v15941_v14  ;;  %5494 = vrot.lane.b32.xlu0 %v13722_v38, %s15843_s19 }
 0x5fd   : > { %5563 = vperm.xlu1 %12058, %v4521_v58   ;;  %v13908_v58 = vld [vmem:[%s15954_s9 + $0x5] ss:$8 sm:$0x3] }
 0x600   : > { %5568 = vperm.xlu0 %12055, %v4522_v41   ;;  %v13912_v41 = vrot.slane %v13899_v22, %v13521_v29 }
 0x601   : > { %6142 = vperm.xlu1 %12058, %v4532_v16  }
 0x602   : > { %15999 = vst [vmem:[#allocation25_spill] sm:$0xff] %v13912_v41 }
 0x604   : > { %6137 = vperm.xlu0 %12055, %v4531_v49   ;;  %v13918_v49 = vrot.slane %v13908_v58, %v13521_v29 }
 0x605   : > { %6843 = vperm.xlu1 %12058, %v4518_v25  }
 0x606   : > { %16000 = vst [vmem:[#allocation26_spill] sm:$0xff] %v13918_v49 }
 0x608   : > { %12059 = vset.pattern.permute.xlu0 %v15948_v9 }
 0x609   : > { %6857 = vperm.xlu0 %12059, %v4518_v25   ;;  %12063 = vset.pattern.permute.xlu1 %v15957_v42 }
 0x60a   : > { %6919 = vperm.xlu1 %12063, %v4518_v25  }
 0x60d   : > { %12060 = vset.pattern.permute.xlu0 %v15950_v3 }
 0x60e   : > { %6875 = vperm.xlu0 %12060, %v4518_v25   ;;  %12067 = vset.pattern.permute.xlu1 %v15941_v14 }
 0x612   : > { %12061 = vset.pattern.permute.xlu0 %v15951_v28 }
 0x613   : > { %6893 = vperm.xlu0 %12061, %v4518_v25  }
 0x617   : > { %12062 = vset.pattern.permute.xlu0 %v15949_v17 }
 0x618   : > { %6901 = vperm.xlu0 %12062, %v4518_v25  }
 0x61a   : > { %v13860_v18 = vpop.permute.xlu0 %5197  ;;  %v13862_v5 = vpop.permute.xlu1 %5050 }
 0x61b   : > { %v5205_v16 = vsel %vm15835_vm14, 0.0, %v13860_v18 }
 0x61c   : > { %12064 = vset.pattern.permute.xlu0 %v15958_v6  ;;  %v5057_v6 = vsel %vm15834_vm1, 0.0, %v13862_v5 }
 0x61d   : > { %6937 = vperm.xlu0 %12064, %v4518_v25   ;;  %v5058_v30 = vmul.f32 %v5057_v6, %v13534_v19  ;;  %v5297_v6 = vrot.slane %v13722_v38, 4 }
 0x61e   : > { %v13865_v56 = vpop.permute.xlu0 %5067  ;;  %v13867_v26 = vpop.permute.xlu1 %5227 }
 0x61f   : > { %v5074_v20 = vsel %vm3772_vm3, 0.0, %v13865_v56 }
 0x620   : > { %v5079_v59 = vmul.f32 %v13711_v48, %v5074_v20 }
 0x621   : > { %12065 = vset.pattern.permute.xlu0 %v15960_v21  ;;  %v5234_v21 = vsel %vm5231_vm12, 0.0, %v13867_v26 }
 0x622   : > { %v13870_v50 = vpop.permute.xlu0 %5083  ;;  %v13872_v10 = vpop.permute.xlu1 %5101  ;;  %6953 = vperm.xlu0 %12065, %v4518_v25   ;;  %v5236_v46 = vrot.slane %v5234_v21, 4  ;;  %v11184_v21 = vld [vmem:[%s15954_s9 + $0x6] ss:$8 sm:$0x3] }
 0x623   : > { %v5090_v42 = vsel %vm3789_vm2, 0.0, %v13870_v50 }
 0x624   : > { %v5091_v32 = vmul.f32 %v5090_v42, %v13542_v33  ;;  %v5065_v42 = vmul.f32 %v13775_v53, %v5058_v30 }
 0x626   : > { %v13874_v24 = vpop.permute.xlu0 %5244  ;;  %v13876_v2 = vpop.permute.xlu1 %5393  ;;  %12066 = vset.pattern.permute.xlu0 %v15800_v11  ;;  %v5097_v20 = vmul.f32 %v13781_v27, %v5091_v32 }
 0x627   : > { %6971 = vperm.xlu0 %12066, %v4518_v25   ;;  %v5252_v47 = vsel %vm5248_vm15, 0.0, %v13874_v24 }
 0x628   : > { %v5264_v17 = vmul.f32 %v13918_v49, %v5252_v47 }
 0x62a   : > { %v13879_v8 = vpop.permute.xlu0 %5276  ;;  %v13881_v4 = vpop.permute.xlu1 %5422  ;;  %v5268_v55 = vrot.slane %v5264_v17, 4  ;;  %v5108_v17 = vsel %vm3819_vm4, 0.0, %v13872_v10 }
 0x62b   : > { %12068 = vset.pattern.permute.xlu0 %v15941_v14  ;;  %v5217_v14 = vmul.f32 %v13912_v41, %v5205_v16  ;;  %v5284_v9 = vsel %vm5280_vm13, 0.0, %v13879_v8  ;;  %v1030_v16 = vld [vmem:[%s15954_s9] ss:$8 sm:$0x3]  ;;  %v5109_v40 = vmul.f32 %v5108_v17, %v13534_v19  ;;  %v13994_v19 = vrot.slane %v13899_v22, %v13523_v57  ;;  %s16146_s9 = smov 94  }
 0x62c   : > { %v5285_v12 = vmul.f32 %v5284_v9, %v13912_v41  ;;  %v13948_v13 = vrot.slane %v1030_v16, %v13521_v29  ;;  %v5240_v9 = vmul.f32 %v5236_v46, %v13711_v48  ;;  %v13972_v46 = vrot.slane %v11184_v21, %v13521_v29 }
 0x62d   : > { %v5221_v47 = vrot.slane %v5217_v14, 4  ;;  %v13958_v14 = vmul.f32 %v13844_v43, %v13761_v44  ;;  %v5401_v43 = vsel %vm5397_vm10, 0.0, %v13876_v2  ;;  %v5272_v30 = vmul.f32 %v5268_v55, %v13781_v27 }
 0x62e   : > { %v13884_v62 = vpop.permute.xlu0 %5127  ;;  %v13886_v35 = vpop.permute.xlu1 %5438  ;;  %16003 = vst [vmem:[#allocation29_spill] sm:$0xff] %v13948_v13  ;;  %16005 = vst [vmem:[#allocation31_spill] sm:$0xff] %v13972_v46  ;;  %v5301_v29 = vmul.f32 %v5297_v6, %v13713_v7  ;;  %v5413_v17 = vmul.f32 %v13948_v13, %v5401_v43 }
 0x62f   : > { %16004 = vst [vmem:[#allocation30_spill] sm:$0xff] %v13958_v14  ;;  %v5289_v14 = vrot.slane %v5285_v12, 4  ;;  %v5446_v32 = vsel %vm5442_vm11, 0.0, %v13886_v35  ;;  %v13982_v12 = vmul.f32 %v13713_v7, %v13761_v44  ;;  %v13997_v44 = vmul.f32 %v5298_v60, %v13713_v7 }
 0x632   : > { %v13888_v51 = vpop.permute.xlu0 %5145  ;;  %v13890_v45 = vpop.permute.xlu1 %5305 }
 0x636   : > { %v13892_v36 = vpop.permute.xlu0 %5163  ;;  %v13894_v52 = vpop.permute.xlu1 %5468 }
 0x637   : > { %15996 = vst [vmem:[#allocation22_spill] sm:$0xff] %v13892_v36  ;;  %v5081_v36 = vadd.f32 %v5079_v59, %v5065_v42  ;;  %v5475_v55 = vsel %vm15886_vm5, 0.0, %v13894_v52 }
 0x639   : > { %v5099_v59 = vadd.f32 %v5097_v20, %v5081_v36  ;;  %v5115_v36 = vmul.f32 %v13787_v34, %v5109_v40  ;;  %v5420_v40 = vmul.f32 %v13857_v54, %v5413_v17 }
 0x63a   : > { %v13901_v31 = vpop.permute.xlu0 %5347  ;;  %v13903_v39 = vpop.permute.xlu1 %5326 }
 0x63b   : > { %15997 = vst [vmem:[#allocation23_spill] sm:$0xff] %v13901_v31  ;;  %15998 = vst [vmem:[#allocation24_spill] sm:$0xff] %v13903_v39  ;;  %v5117_v60 = vadd.f32 %v5115_v36, %v5099_v59 }
 0x63e   : > { %v13920_v25 = vpop.permute.xlu1 %5179  ;;  %v5053_v11 = vpop.permute.xlu0 %5052 }
 0x63f   : > { %16001 = vst [vmem:[#allocation27_spill] sm:$0xff] %v13920_v25  ;;  %v5225_v25 = vmul.f32 %v5221_v47, %v13775_v53  ;;  %v5429_v47 = vsel %vm15887_vm0, 0.0, %v13881_v4  ;;  %v5054_v42 = vsel %vm15834_vm1, %v13862_v5, %v5053_v11  ;;  %vm15836_vm1 = vcmask 1031168  }
 0x640   : > { %v5434_v6 = vmul.f32 %v13797_v15, %v5429_v47 }
 0x641   : > { %v5242_v39 = vadd.f32 %v5240_v9, %v5225_v25  ;;  %v5293_v25 = vmul.f32 %v5289_v14, %v13787_v34  ;;  %v5458_v9 = vmul.f32 %v13972_v46, %v5446_v32  ;;  %v5476_v14 = vmul.f32 %v5475_v55, %v13948_v13 }
 0x642   : > { %v13934_v28 = vpop.permute.xlu1 %5364  ;;  %v13936_v3 = vpop.permute.xlu0 %5103  ;;  %v5059_v32 = vmul.f32 %v5054_v42, %v13537_v37  ;;  %v14027_v55 = vrot.slane %v11184_v21, %v13523_v57  ;;  %v5436_v42 = vadd.f32 %v5434_v6, %v5420_v40 }
 0x643   : > { %16002 = vst [vmem:[#allocation28_spill] sm:$0xff] %v13934_v28  ;;  %v5123_v28 = vmul.f32 %v13713_v7, %v13722_v38  ;;  %v5274_v43 = vadd.f32 %v5272_v30, %v5242_v39 }
 0x644   : > { %16008 = vst [vmem:[#allocation34_spill] sm:$0xff] %v14027_v55 }
 0x645   : > { %v5295_v30 = vadd.f32 %v5293_v25, %v5274_v43  ;;  %v5125_v6 = vadd.f32 %v5123_v28, %v5117_v60 }
 0x646   : > { %v5200_v23 = vpop.permute.xlu1 %5199  ;;  %v13953_v31 = vpop.permute.xlu0 %5395 }
 0x647   : > { %v5202_v20 = vsel %vm15835_vm14, %v13860_v18, %v5200_v23  ;;  %v5464_v23 = vmul.f32 %v13715_v0, %v5458_v9  ;;  %v5105_v18 = vsel %vm3819_vm4, %v13872_v10, %v13936_v3  ;;  %v5482_v3 = vmul.f32 %v13819_v61, %v5476_v14 }
 0x648   : > { %v5218_v47 = vmul.f32 %v13994_v19, %v5202_v20  ;;  %v5066_v10 = vmul.f32 %v13775_v53, %v5059_v32  ;;  %v5110_v25 = vmul.f32 %v5105_v18, %v13537_v37  ;;  %vm15841_vm14 = vcmask 801792  }
 0x649   : > { %v5466_v21 = vadd.f32 %v5464_v23, %v5436_v42  ;;  %v14039_v20 = vadd.f32 %v5301_v29, %v5295_v30 }
 0x64a   : > { %v5070_v38 = vpop.permute.xlu1 %5069  ;;  %v5130_v41 = vpop.permute.xlu0 %5129  ;;  %v5222_v43 = vrot.slane %v5218_v47, 4 }
 0x64b   : > { %v5071_v22 = vsel %vm3772_vm3, %v13865_v56, %v5070_v38  ;;  %v14017_v38 = vrot.slane %v1030_v16, %v13523_v57  ;;  %v14054_v60 = vadd.f32 %v5482_v3, %v5466_v21 }
 0x64c   : > { %v5080_v56 = vmul.f32 %v13711_v48, %v5071_v22 }
 0x64d   : > { %16006 = vst [vmem:[#allocation32_spill] sm:$0xff] %v14017_v38 }
 0x64e   : > { %v5086_v11 = vpop.permute.xlu1 %5085  ;;  %v5308_v5 = vpop.permute.xlu0 %5307 }
 0x64f   : > { %v5087_v7 = vsel %vm3789_vm2, %v13870_v50, %v5086_v11  ;;  %v14022_v50 = vrot.slane %v13908_v58, %v13523_v57  ;;  %v5131_v58 = vsel %vm15837_vm6, %v13884_v62, %v5130_v41  ;;  %v5310_v36 = vsel %vm15836_vm1, %v13890_v45, %v5308_v5 }
 0x650   : > { %v5092_v39 = vmul.f32 %v5087_v7, %v13545_v63  ;;  %v5082_v11 = vadd.f32 %v5080_v56, %v5066_v10  ;;  %v5313_v14 = vsel %vm15836_vm1, %v5308_v5, 0.0  ;;  %v5134_v45 = vsel %vm15837_vm6, %v5130_v41, 0.0 }
 0x651   : > { %16007 = vst [vmem:[#allocation33_spill] sm:$0xff] %v14022_v50  ;;  %v5135_v7 = vmul.f32 %v5131_v58, %v13542_v33  ;;  %v5314_v28 = vmul.f32 %v5310_v36, %v13918_v49  ;;  %v5514_v41 = vsel %vm5397_vm10, %v13953_v31, 0.0  ;;  %v5315_v23 = vmul.f32 %v5313_v14, %v14022_v50 }
 0x652   : > { %v5230_v59 = vpop.permute.xlu1 %5229  ;;  %v14024_v17 = vpop.permute.xlu0 %5424  ;;  %v5098_v9 = vmul.f32 %v13781_v27, %v5092_v39  ;;  %v5226_v39 = vmul.f32 %v5222_v43, %v13775_v53  ;;  %v5136_v18 = vmul.f32 %v5134_v45, %v13545_v63  ;;  %vm15884_vm1 = vcmask 769024  }
 0x653   : > { %v5232_v16 = vsel %vm5231_vm12, %v13867_v26, %v5230_v59  ;;  %v14044_v26 = vsel %vm5397_vm10, %v13876_v2, %v13953_v31  ;;  %v5116_v2 = vmul.f32 %v13787_v34, %v5110_v25  ;;  %v5141_v42 = vmul.f32 %v13803_v1, %v5135_v7  ;;  %v16010_v7 = vld [vmem:[#allocation24_spill] sm:$0xff] }
 0x654   : > { %v5237_v62 = vrot.slane %v5232_v16, 4  ;;  %v5100_v40 = vadd.f32 %v5098_v9, %v5082_v11  ;;  %v5414_v30 = vmul.f32 %v14017_v38, %v14044_v26  ;;  %v5318_v3 = vrot.slane %v5314_v28, 4 }
 0x655   : > { %v14085_v9 = vmul.f32 %v5514_v41, %v14017_v38  ;;  %vm15839_vm6 = vcmask 785408  }
 0x656   : > { %v5247_v32 = vpop.permute.xlu1 %5246  ;;  %v14047_v22 = vpop.permute.xlu0 %5440  ;;  %v5118_v16 = vadd.f32 %v5116_v2, %v5100_v40  ;;  %v5421_v58 = vmul.f32 %v13857_v54, %v5414_v30 }
 0x657   : > { %v5249_v29 = vsel %vm5248_vm15, %v13874_v24, %v5247_v32  ;;  %v5241_v24 = vmul.f32 %v5237_v62, %v13711_v48  ;;  %v14069_v56 = vsel %vm5442_vm11, %v13886_v35, %v14047_v22  ;;  %v14079_v48 = vsel %vm15887_vm0, %v13881_v4, %v14024_v17  ;;  %v16009_v4 = vld [vmem:[#allocation7_spill] sm:$0xff] }
 0x658   : > { %v5265_v5 = vmul.f32 %v14022_v50, %v5249_v29  ;;  %v5142_v62 = vmul.f32 %v13803_v1, %v5136_v18  ;;  %v5322_v32 = vmul.f32 %v5318_v3, %v13803_v1  ;;  %v5435_v45 = vmul.f32 %v13797_v15, %v14079_v48 }
 0x659   : > { %v5243_v36 = vadd.f32 %v5241_v24, %v5226_v39  ;;  %v5143_v29 = vadd.f32 %v5141_v42, %v5125_v6  ;;  %v5126_v2 = vadd.f32 %v13982_v12, %v5118_v16 }
 0x65a   : > { %v5269_v47 = vrot.slane %v5265_v5, 4  ;;  %v5279_v59 = vpop.permute.xlu1 %5278  ;;  %v5148_v53 = vpop.permute.xlu0 %5147  ;;  %v5437_v3 = vadd.f32 %v5435_v45, %v5421_v58 }
 0x65b   : > { %v5281_v31 = vsel %vm5280_vm13, %v13879_v8, %v5279_v59  ;;  %v5149_v10 = vsel %vm15838_vm8, %v13888_v51, %v5148_v53  ;;  %v5319_v8 = vrot.slane %v5315_v23, 4  ;;  %v5459_v51 = vmul.f32 %v14027_v55, %v14069_v56  ;;  %v16011_v23 = vld [vmem:[#allocation25_spill] sm:$0xff]  ;;  %v16012_v59 = vld [vmem:[#allocation16_spill] sm:$0xff] }
 0x65c   : > { %v5273_v35 = vmul.f32 %v5269_v47, %v13781_v27  ;;  %v5286_v25 = vmul.f32 %v5281_v31, %v13994_v19  ;;  %v5152_v43 = vsel %vm15838_vm8, %v5148_v53, 0.0  ;;  %v5153_v11 = vmul.f32 %v5149_v10, %v16009_v4  ;;  %v16013_v31 = vld [vmem:[#allocation22_spill] sm:$0xff] }
 0x65d   : > { %vm15840_vm8 = vcmask 1014784   ;;  %v5465_v39 = vmul.f32 %v13715_v0, %v5459_v51  ;;  %v5154_v30 = vmul.f32 %v5152_v43, %v13537_v37  ;;  %v5323_v24 = vmul.f32 %v5319_v8, %v13803_v1  ;;  %v16014_v1 = vld [vmem:[#allocation27_spill] sm:$0xff] }
 0x65e   : > { %v5290_v21 = vrot.slane %v5286_v25, 4  ;;  %v5166_v14 = vpop.permute.xlu1 %5165  ;;  %v5329_v27 = vpop.permute.xlu0 %5328  ;;  %v5275_v40 = vadd.f32 %v5273_v35, %v5243_v36  ;;  %v5159_v53 = vmul.f32 %v16012_v59, %v5153_v11  ;;  %v5144_v25 = vadd.f32 %v5142_v62, %v5126_v2  ;;  %v16015_v11 = vld [vmem:[#allocation17_spill] sm:$0xff] }
 0x65f   : > { %v5331_v28 = vsel %vm15841_vm14, %v16010_v7, %v5329_v27  ;;  %v5334_v41 = vsel %vm15841_vm14, %v5329_v27, 0.0  ;;  %v5167_v10 = vsel %vm15842_vm9, %v16013_v31, %v5166_v14  ;;  %v5170_v16 = vsel %vm15842_vm9, %v5166_v14, 0.0 }
 0x660   : > { %v5294_v5 = vmul.f32 %v5290_v21, %v13787_v34  ;;  %v5335_v18 = vmul.f32 %v5331_v28, %v16011_v23  ;;  %v5336_v6 = vmul.f32 %v5334_v41, %v13994_v19  ;;  %v5324_v34 = vadd.f32 %v5322_v32, %v14039_v20  ;;  %v16016_v28 = vld [vmem:[#allocation28_spill] sm:$0xff] }
 0x661   : > { %v5467_v36 = vadd.f32 %v5465_v39, %v5437_v3  ;;  %v5160_v21 = vmul.f32 %v16012_v59, %v5154_v30  ;;  %v5161_v58 = vadd.f32 %v5159_v53, %v5143_v29  ;;  %v5175_v27 = vmul.f32 %v16015_v11, %v5167_v10 }
 0x662   : > { %v5296_v47 = vadd.f32 %v5294_v5, %v5275_v40  ;;  %v5182_v12 = vpop.permute.xlu1 %5181  ;;  %v5471_v42 = vpop.permute.xlu0 %5470  ;;  %v5339_v51 = vrot.slane %v5335_v18, 4  ;;  %v5176_v14 = vmul.f32 %v16015_v11, %v5170_v16  ;;  %v5340_v32 = vrot.slane %v5336_v6, 4  ;;  %v16017_v18 = vld [vmem:[#allocation23_spill] sm:$0xff] }
 0x663   : > { %v5183_v8 = vsel %vm15885_vm7, %v16014_v1, %v5182_v12  ;;  %v5186_v43 = vsel %vm15885_vm7, %v5182_v12, 0.0  ;;  %v5472_v20 = vsel %vm15886_vm5, %v13894_v52, %v5471_v42  ;;  %v5162_v6 = vadd.f32 %v5160_v21, %v5144_v25  ;;  %v16018_v1 = vld [vmem:[#allocation19_spill] sm:$0xff] }
 0x664   : > { %v5304_v35 = vadd.f32 %v13997_v44, %v5296_v47  ;;  %v5187_v45 = vmul.f32 %v5183_v8, %v13542_v33  ;;  %v5477_v7 = vmul.f32 %v5472_v20, %v14017_v38  ;;  %v5343_v52 = vmul.f32 %v5339_v51, %v16012_v59 }
 0x665   : > { %v5188_v29 = vmul.f32 %v5186_v43, %v13545_v63  ;;  %v5344_v12 = vmul.f32 %v5340_v32, %v16012_v59  ;;  %v5177_v51 = vadd.f32 %v5175_v27, %v5161_v58  ;;  %v5178_v21 = vadd.f32 %v5176_v14, %v5162_v6  ;;  %v16019_v32 = vld [vmem:[#allocation30_spill] sm:$0xff] }
 0x666   : > { %v5367_v44 = vpop.permute.xlu1 %5366  ;;  %v5350_v62 = vpop.permute.xlu0 %5349  ;;  %v5325_v5 = vadd.f32 %v5323_v24, %v5304_v35  ;;  %v5483_v30 = vmul.f32 %v13819_v61, %v5477_v7  ;;  %v5193_v8 = vmul.f32 %v16018_v1, %v5187_v45 }
 0x667   : > { %v5369_v2 = vsel %vm15884_vm1, %v16016_v28, %v5367_v44  ;;  %v5372_v40 = vsel %vm15884_vm1, %v5367_v44, 0.0  ;;  %v5352_v47 = vsel %vm15839_vm6, %v16017_v18, %v5350_v62  ;;  %v5354_v53 = vsel %vm15839_vm6, %v5350_v62, 0.0  ;;  %v16020_v28 = vld [vmem:[#allocation20_spill] sm:$0xff] }
 0x668   : > { %v5373_v39 = vmul.f32 %v5369_v2, %v13918_v49  ;;  %v5374_v41 = vmul.f32 %v5372_v40, %v14022_v50  ;;  %v5356_v24 = vrot.slane %v5352_v47, 4  ;;  %v5485_v31 = vadd.f32 %v5483_v30, %v5467_v36  ;;  %v16023_v47 = vld [vmem:[#allocation13_spill] sm:$0xff] }
 0x669   : > { %v5357_v16 = vrot.slane %v5354_v53, 4  ;;  %v5345_v44 = vadd.f32 %v5343_v52, %v5324_v34  ;;  %v5346_v62 = vadd.f32 %v5344_v12, %v5325_v5  ;;  %v5194_v25 = vmul.f32 %v16018_v1, %v5188_v29  ;;  %v4526_v34 = vld [vmem:[%s15719_s24] sm:$0xff]  ;;  %v16021_v5 = vld [vmem:[#allocation15_spill] sm:$0xff] }
 0x66a   : > { %v5377_v42 = vrot.slane %v5373_v39, 4  ;;  %v5497_v3 = vpop.permute.xlu0 %5496  ;;  %v5378_v10 = vrot.slane %v5374_v41, 4  ;;  %v5360_v43 = vmul.f32 %v5356_v24, %v16015_v11  ;;  %v5493_v36 = vadd.f32 %v16019_v32, %v5485_v31 }
 0x66b   : > { %v5502_v35 = vsel %vm15840_vm8, %v5497_v3, 0.0  ;;  %v5361_v59 = vmul.f32 %v5357_v16, %v16015_v11  ;;  %v16022_v11 = vld [vmem:[#allocation18_spill] sm:$0xff]  ;;  %v5515_v52 = vmul.f32 %v13948_v13, %v14044_v26  ;;  %v5195_v41 = vadd.f32 %v5193_v8, %v5177_v51 }
 0x66c   : > { %v5504_v20 = vmul.f32 %v5502_v35, %v14027_v55  ;;  %v5381_v7 = vmul.f32 %v5377_v42, %v16018_v1  ;;  %v5382_v27 = vmul.f32 %v5378_v10, %v16018_v1  ;;  %v5362_v45 = vadd.f32 %v5360_v43, %v5345_v44 }
 0x66d   : > { %v5363_v40 = vadd.f32 %v5361_v59, %v5346_v62  ;;  %v5490_v14 = vmul.f32 %v16022_v11, %v16021_v5  ;;  %v5196_v18 = vadd.f32 %v5194_v25, %v5178_v21  ;;  %v5522_v53 = vmul.f32 %v16023_v47, %v14085_v9  ;;  %v16025_v9 = vld [vmem:[#allocation21_spill] sm:$0xff] }
 0x66e   : > { %v5510_v2 = vmul.f32 %v16020_v28, %v5504_v20  ;;  %v5495_v58 = vpop.permute.xlu0 %5494  ;;  %vm16024_vm6 = vcmask 97280   ;;  %v5526_v24 = vsel %vm15887_vm0, %v14024_v17, 0.0  ;;  %v5536_v26 = vsel %vm5442_vm11, %v14047_v22, 0.0 }
 0x66f   : > { %v5499_v39 = vsel %vm15840_vm8, %v5495_v58, %v5497_v3  ;;  %v5492_v6 = vadd.f32 %v5490_v14, %v14054_v60  ;;  %v5580_v42 = vsel %vm16024_vm6, %v4526_v34, 0  ;;  %v5383_v3 = vadd.f32 %v5381_v7, %v5362_v45  ;;  %v14165_v60 = vld [vmem:[%s15719_s24 + $0x8] sm:$0xff] }
 0x670   : > { %v5512_v29 = vadd.f32 %v5510_v2, %v5493_v36  ;;  %v5503_v30 = vmul.f32 %v5499_v39, %v13972_v46  ;;  %v5384_v31 = vadd.f32 %v5382_v27, %v5363_v40  ;;  %v5521_v10 = vmul.f32 %v16023_v47, %v5515_v52 }
 0x671   : > { %v5531_v51 = vmul.f32 %v16025_v9, %v14079_v48  ;;  %v5387_v1 = vrot.slane %v5195_v41, 4  ;;  %v5388_v8 = vrot.slane %v5196_v18, 4  ;;  %v14169_v17 = vand.u32 4294901760, %v5580_v42 }
 0x672   : > { %v5509_v12 = vmul.f32 %v16020_v28, %v5503_v30  ;;  %v5524_v16 = vadd.f32 %v5522_v53, %v5512_v29  ;;  %v5532_v22 = vmul.f32 %v16025_v9, %v5526_v24  ;;  %v5537_v43 = vmul.f32 %v13972_v46, %v14069_v56 }
 0x673   : > { %v5538_v20 = vmul.f32 %v5536_v26, %v14027_v55  ;;  %v5391_v25 = vadd.f32 %v5387_v1, %v5383_v3  ;;  %v5392_v59 = vadd.f32 %v5388_v8, %v5384_v31  ;;  %v5583_v21 = vsel %vm16024_vm6, %v14165_v60, 0 }
 0x674   : > { %v5511_v35 = vadd.f32 %v5509_v12, %v5492_v6  ;;  %v5534_v32 = vadd.f32 %v5532_v22, %v5524_v16  ;;  %v14182_v56 = vsub.f32 %v5580_v42, %v14169_v17  ;;  %v14184_v27 = vand.u32 4294901760, %v5583_v21 }
 0x675   : > { %v5549_v45 = vrot.slane %v5391_v25, 4  ;;  %v5550_v40 = vrot.slane %v5392_v59, 4  ;;  %vm16027_vm8 = vcmask 1043456  }
 0x676   : > { %v5523_v44 = vadd.f32 %v5521_v10, %v5511_v35  ;;  %v5555_v39 = vsel %vm16027_vm8, %v5195_v41, %v5391_v25  ;;  %vm16028_vm14 = vmmov %vm16027_vm8  ;;  %v5662_v42 = vand.u32 4294901760, %v14182_v56  ;;  %v14192_v24 = vsub.f32 %v5583_v21, %v14184_v27 }
 0x677   : > { %v14175_v62 = vpop.permute.xlu1 %5540  ;;  %v5556_v34 = vsel %vm16028_vm14, %v5196_v18, %v5392_v59  ;;  %vm5557_vm6 = vcmp.ge.f32.partialorder %v5555_v39, 0.0 }
 0x678   : > { %16026 = vst [vmem:[#allocation24_spill] sm:$0xff] %v14175_v62  ;;  %v5533_v48 = vadd.f32 %v5531_v51, %v5523_v44  ;;  %v5543_v36 = vmul.f32 %v14175_v62, %v5537_v43  ;;  %v5544_v7 = vmul.f32 %v14175_v62, %v5538_v20  ;;  %vm5558_vm9 = vcmp.ge.f32.partialorder %v5556_v34, 0.0 }
 0x679   : > { %v5663_v8 = vsub.f32 %v14182_v56, %v5662_v42  ;;  %v5673_v22 = vand.u32 4294901760, %v14192_v24 }
 0x67a   : > { %v5545_v2 = vadd.f32 %v5543_v36, %v5533_v48  ;;  %v5546_v58 = vadd.f32 %v5544_v7, %v5534_v32 }
 0x67b   : > { %v5664_v36 = vand.u32 4294901760, %v5663_v8  ;;  %v5674_v7 = vsub.f32 %v14192_v24, %v5673_v22  ;;  %v16035_v8 = vld [vmem:[#allocation10_spill] sm:$0xff] }
 0x67c   : > { %v5564_v5 = vpop.permute.xlu1 %5563  ;;  %v5553_v29 = vadd.f32 %v5549_v45, %v5545_v2  ;;  %v5554_v30 = vadd.f32 %v5550_v40, %v5546_v58 }
 0x67d   : > { %v5571_v14 = vmul.f32 %v5564_v5, %v5555_v39  ;;  %v5572_v52 = vmul.f32 %v5564_v5, %v5556_v34  ;;  %v5675_v5 = vand.u32 4294901760, %v5674_v7 }
 0x67e   : > { %vm5560_vm8 = vcmp.ge.f32.partialorder %v5554_v30, 0.0  ;;  %vm5559_vm14 = vcmp.ge.f32.partialorder %v5553_v29, 0.0 }
 0x67f   : > { %v5575_v53 = vsel %vm5557_vm6, %v5555_v39, %v5571_v14  ;;  %v14188_v6 = vpop.permute.xlu0 %5568  ;;  %v5576_v12 = vsel %vm5558_vm9, %v5556_v34, %v5572_v52  ;;  %vm16030_vm6 = vcmask 1043456  }
 0x680   : > { %16029 = vst [vmem:[#allocation16_spill] sm:$0xff] %v14188_v6  ;;  %v5593_v26 = vand.u32 4294901760, %v5575_v53  ;;  %v5573_v41 = vmul.f32 %v14188_v6, %v5553_v29  ;;  %v5574_v18 = vmul.f32 %v14188_v6, %v5554_v30  ;;  %v5591_v3 = vand.u32 4294901760, %v5576_v12  ;;  %vm16031_vm9 = vmmov %vm16030_vm6  ;;  %v4533_v6 = vld [vmem:[%s15720_s25 + $0x10] sm:$0xff] }
 0x682   : > { %v5689_v31 = vsub.f32 %v5575_v53, %v5593_v26  ;;  %v5578_v10 = vsel %vm5560_vm8, %v5554_v30, %v5574_v18  ;;  %v5683_v16 = vsub.f32 %v5576_v12, %v5591_v3  ;;  %v5577_v35 = vsel %vm5559_vm14, %v5553_v29, %v5573_v41 }
 0x683   : > { %v5589_v51 = vsel %vm16030_vm6, %v5578_v10, 0  ;;  %v5586_v1 = vsel %vm16031_vm9, %v5577_v35, 0  ;;  %v16032_v53 = vmov 0.0   ;;  %vm16033_vm8 = vcmask 97280   ;;  %v16034_v35 = vld [vmem:[#allocation9_spill] sm:$0xff] }
 0x684   : > { %v5595_v43 = vand.u32 4294901760, %v5589_v51  ;;  %v5597_v20 = vand.u32 4294901760, %v5586_v1  ;;  %v5684_v44 = vand.u32 4294901760, %v5683_v16  ;;  %v5690_v25 = vand.u32 4294901760, %v5689_v31 }
 0x686   : > { %v11607_v59 = vpack.c.bf16 %v5595_v43, %v5591_v3  ;;  %v5695_v21 = vsub.f32 %v5589_v51, %v5595_v43  ;;  %v11609_v48 = vpack.c.bf16 %v5597_v20, %v5593_v26  ;;  %v5701_v32 = vsub.f32 %v5586_v1, %v5597_v20 }
 0x687   : > { %v5685_v2 = vsub.f32 %v5683_v16, %v5684_v44  ;;  %v5691_v45 = vsub.f32 %v5689_v31, %v5690_v25 }
 0x688   : > { %11608 = vmatprep.subr.bf16.mxu1 %v11607_v59  ;;  %v5696_v58 = vand.u32 4294901760, %v5695_v21  ;;  %v5702_v40 = vand.u32 4294901760, %v5701_v32  ;;  %v11615_v41 = vpack.c.bf16 %v5695_v21, %v5683_v16  ;;  %v11617_v18 = vpack.c.bf16 %v5701_v32, %v5689_v31 }
 0x689   : > { %11610 = vmatpush1.bf16.msra.mxu1 %v11609_v48  ;;  %v5686_v14 = vand.u32 4294901760, %v5685_v2  ;;  %v5692_v29 = vand.u32 4294901760, %v5691_v45  ;;  %v16040_v2 = vld [vmem:[#allocation12_spill] sm:$0xff] }
 0x68a   : > { %v5697_v39 = vsub.f32 %v5695_v21, %v5696_v58  ;;  %v5703_v34 = vsub.f32 %v5701_v32, %v5702_v40  ;;  %v11623_v3 = vpack.c.bf16 %v5696_v58, %v5684_v44  ;;  %v11625_v31 = vpack.c.bf16 %v5702_v40, %v5690_v25  ;;  %v14237_v32 = vpop.permute.xlu1 %6142 }
 0x68b   : > { %16038 = vst [vmem:[#allocation27_spill] sm:$0xff] %v14237_v32 }
 0x68c   : > { %5665 = vmatmul.mubr.f32.vlgmr.msra.gmra.mrb[8].mxu1 %v5664_v36  ;;  %v5698_v52 = vand.u32 4294901760, %v5697_v39  ;;  %v5704_v30 = vand.u32 4294901760, %v5703_v34 }
 0x68d   : > { %5670 = vmatprep.mubr.f32.mxu1 %v16032_v53 }
 0x68e   : > { %v11611_v12 = vpack.c.bf16 %v5698_v52, %v5686_v14  ;;  %v11613_v26 = vpack.c.bf16 %v5704_v30, %v5692_v29 }
 0x690   : > { %5676 = vmatmul.mubr.f32.gmra.mrb[10].mxu1 %v5675_v5  ;;  %11612 = vmatprep.subr.bf16.mxu1 %v11611_v12 }
 0x691   : > { %11614 = vmatpush1.bf16.msra.mxu1 %v11613_v26  ;;  %5766 = vmatprep.mubr.f32.mxu1 %v16032_v53 }
 0x692   : > { %11616 = vmatprep.subr.bf16.mxu1 %v11615_v41 }
 0x694   : > { %5768 = vmatmul.mubr.f32.vlgmr.msra.gmra.mrb[8].mxu1 %v14169_v17 }
 0x695   : > { %11618 = vmatpush1.bf16.msra.mxu1 %v11617_v18  ;;  %5773 = vmatprep.mubr.f32.mxu1 %v16032_v53 }
 0x696   : > { %11620 = vmatprep.subr.bf16.mxu1 %v11607_v59 }
 0x698   : > { %5775 = vmatmul.mubr.f32.gmra.mrb[10].mxu1 %v14184_v27 }
 0x699   : > { %5853 = vmatprep.mubr.f32.mxu1 %v16032_v53 }
 0x69c   : > { %5856 = vmatmul.mubr.f32.vlgmr.msra.gmra.mrb[8].mxu1 %v14182_v56  ;;  %v12111_v56 = vld [vmem:[%s15715_s20] sm:$0xff] }
 0x69d   : > { %11622 = vmatpush1.bf16.msra.mxu1 %v11609_v48  ;;  %5861 = vmatprep.mubr.f32.mxu1 %v16032_v53 }
 0x69e   : > { %11624 = vmatprep.subr.bf16.mxu1 %v11623_v3 }
 0x6a0   : > { %5864 = vmatmul.mubr.f32.gmra.mrb[10].mxu1 %v14192_v24 }
 0x6a1   : > { %5938 = vmatprep.mubr.f32.mxu1 %v16032_v53 }
 0x6a4   : > { %5942 = vmatmul.mubr.f32.vlgmr.msra.gmra.mrb[8].mxu1 %v5662_v42  ;;  %v6153_v42 = vrot.slane %v12111_v56, 4 }
 0x6a5   : > { %11626 = vmatpush1.bf16.msra.mxu1 %v11625_v31  ;;  %5947 = vmatprep.mubr.f32.mxu1 %v16032_v53 }
 0x6a6   : > { %11628 = vmatprep.subr.bf16.mxu1 %v11607_v59  ;;  %v6154_v24 = vsel %vm16033_vm8, %v6153_v42, 0  ;;  %v16037_v59 = vld [vmem:[#allocation11_spill] sm:$0xff] }
 0x6a7   : > { %v14229_v16 = vand.u32 4294901760, %v6154_v24 }
 0x6a8   : > { %5951 = vmatmul.mubr.f32.gmra.mrb[10].mxu1 %v5673_v22 }
 0x6a9   : > { %6033 = vmatprep.mubr.f32.mxu1 %v16032_v53  ;;  %v6232_v44 = vsub.f32 %v6154_v24, %v14229_v16 }
 0x6ab   : > { %v6233_v34 = vand.u32 4294901760, %v6232_v44 }
 0x6ac   : > { %6035 = vmatmul.mubr.f32.vlgmr.msra.gmra.mrb[8].mxu1 %v14169_v17 }
 0x6ad   : > { %11630 = vmatpush1.bf16.msra.mxu1 %v11609_v48  ;;  %6040 = vmatprep.mubr.f32.mxu1 %v16032_v53  ;;  %v6234_v18 = vsub.f32 %v6232_v44, %v6233_v34 }
 0x6b0   : > { %6042 = vmatmul.mubr.f32.gmra.mrb[10].mxu1 %v14184_v27 }
 0x6b1   : > { %6116 = vmatprep.mubr.f32.mxu1 %v16032_v53 }
 0x6b4   : > { %6118 = vmatmul.mubr.f32.vlgmr.msra.gmra.mrb[8].mxu1 %v14169_v17  ;;  %v6138_v17 = vpop.permute.xlu0 %6137 }
 0x6b5   : > { %6123 = vmatprep.mubr.f32.mxu1 %v16032_v53 }
 0x6b8   : > { %6125 = vmatmul.mubr.f32.gmra.mrb[10].mxu1 %v14184_v27 }
 0x6b9   : > { %6230 = vmatprep.mubr.f32.mxu1 %v16032_v53 }
 0x787   : > { %v6119_v10 = vpop.f32.mrb[8].mxu1 }
 0x788   : > { %v11781_v51 = vadd.f32 %v6119_v10, %v16034_v35  ;;  %v6121_v1 = vpop.f32.mrb[9].mxu1 }
 0x789   : > { %v11782_v22 = vadd.f32 %v6121_v1, %v16035_v8 }
 0x78a   : > { %vm6131_vm14 = vcmp.ge.f32.partialorder %v11781_v51, 0.0  ;;  %v6145_v27 = vmul.f32 %v11781_v51, %v6138_v17 }
 0x78b   : > { %vm6132_vm6 = vcmp.ge.f32.partialorder %v11782_v22, 0.0  ;;  %v6146_v43 = vmul.f32 %v11782_v22, %v6138_v17  ;;  %v6126_v20 = vpop.f32.mrb[10].mxu1 }
 0x78c   : > { %v14234_v25 = vsel %vm6131_vm14, %v11781_v51, %v6145_v27  ;;  %v11783_v21 = vadd.f32 %v6126_v20, %v16037_v59  ;;  %v6128_v48 = vpop.f32.mrb[11].mxu1  ;;  %vm16042_vm14 = vcmask 1043456   ;;  %v6235_v51 = vand.u32 4294901760, %v6234_v18 }
 0x78d   : > { %16036 = vst [vmem:[#allocation22_spill] sm:$0xff] %v14234_v25  ;;  %v6164_v36 = vand.u32 4294901760, %v14234_v25  ;;  %v14240_v7 = vsel %vm6132_vm6, %v11782_v22, %v6146_v43  ;;  %v11784_v58 = vadd.f32 %v6128_v48, %v16040_v2  ;;  %vm16044_vm6 = vmmov %vm16042_vm14 }
 0x78e   : > { %16039 = vst [vmem:[#allocation17_spill] sm:$0xff] %v14240_v7  ;;  %vm6133_vm9 = vcmp.ge.f32.partialorder %v11783_v21, 0.0  ;;  %v6147_v45 = vmul.f32 %v11783_v21, %v14237_v32  ;;  %v6162_v40 = vand.u32 4294901760, %v14240_v7 }
 0x78f   : > { %vm6134_vm8 = vcmp.ge.f32.partialorder %v11784_v58, 0.0  ;;  %v6148_v39 = vmul.f32 %v11784_v58, %v14237_v32  ;;  %v6249_v5 = vsub.f32 %v14234_v25, %v6164_v36 }
 0x790   : > { %v14247_v14 = vsel %vm6133_vm9, %v11783_v21, %v6147_v45  ;;  %v6243_v52 = vsub.f32 %v14240_v7, %v6162_v40 }
 0x791   : > { %16041 = vst [vmem:[#allocation28_spill] sm:$0xff] %v14247_v14  ;;  %v6157_v29 = vsel %vm16042_vm14, %v14247_v14, 0  ;;  %v14252_v30 = vsel %vm6134_vm8, %v11784_v58, %v6148_v39  ;;  %v6250_v31 = vand.u32 4294901760, %v6249_v5  ;;  %vm16066_vm14 = vcmask 138240  }
 0x792   : > { %16043 = vst [vmem:[#allocation23_spill] sm:$0xff] %v14252_v30  ;;  %v6168_v12 = vand.u32 4294901760, %v6157_v29  ;;  %v6160_v26 = vsel %vm16044_vm6, %v14252_v30, 0  ;;  %v6244_v3 = vand.u32 4294901760, %v6243_v52  ;;  %vm16067_vm6 = vcmask 277504  }
 0x793   : > { %v6166_v41 = vand.u32 4294901760, %v6160_v26  ;;  %v6251_v8 = vsub.f32 %v6249_v5, %v6250_v31 }
 0x794   : > { %v6261_v56 = vsub.f32 %v6157_v29, %v6168_v12  ;;  %v11633_v35 = vpack.c.bf16 %v6168_v12, %v6164_v36  ;;  %v6245_v1 = vsub.f32 %v6243_v52, %v6244_v3 }
 0x795   : > { %v11631_v42 = vpack.c.bf16 %v6166_v41, %v6162_v40  ;;  %v6255_v24 = vsub.f32 %v6160_v26, %v6166_v41  ;;  %v6252_v21 = vand.u32 4294901760, %v6251_v8 }
 0x796   : > { %v6262_v10 = vand.u32 4294901760, %v6261_v56  ;;  %v6246_v20 = vand.u32 4294901760, %v6245_v1  ;;  %v11641_v36 = vpack.c.bf16 %v6261_v56, %v6249_v5 }
 0x797   : > { %11632 = vmatprep.subr.bf16.mxu1 %v11631_v42  ;;  %v6256_v17 = vand.u32 4294901760, %v6255_v24  ;;  %v11639_v58 = vpack.c.bf16 %v6255_v24, %v6243_v52  ;;  %v16045_v52 = vld [vmem:[#allocation14_spill] sm:$0xff] }
 0x798   : > { %11634 = vmatpush1.bf16.msra.mxu1 %v11633_v35  ;;  %v6263_v22 = vsub.f32 %v6261_v56, %v6262_v10  ;;  %v11649_v40 = vpack.c.bf16 %v6262_v10, %v6250_v31 }
 0x799   : > { %v6257_v27 = vsub.f32 %v6255_v24, %v6256_v17  ;;  %v11647_v45 = vpack.c.bf16 %v6256_v17, %v6244_v3  ;;  %v14339_v3 = vpop.permute.xlu0 %6857 }
 0x79a   : > { %v6264_v43 = vand.u32 4294901760, %v6263_v22  ;;  %v14382_v22 = vld [vmem:[%s15717_s22 + $0x18] sm:$0xff] }
 0x79b   : > { %6236 = vmatmul.mubr.f32.vlgmr.msra.gmra.mrb[12].mxu1 %v6235_v51  ;;  %v6258_v59 = vand.u32 4294901760, %v6257_v27  ;;  %v4523_v51 = vld [vmem:[%s15718_s23 + $0x10] sm:$0xff]  ;;  %16055 = vst [vmem:[#allocation18_spill] sm:$0xff] %v14382_v22 }
 0x79c   : > { %6326 = vmatprep.mubr.f32.mxu1 %v16032_v53  ;;  %v11637_v2 = vpack.c.bf16 %v6264_v43, %v6252_v21  ;;  %v16056_v21 = vmov 2  }
 0x79d   : > { %v11635_v48 = vpack.c.bf16 %v6258_v59, %v6246_v20  ;;  %v14343_v31 = vpop.permute.xlu0 %6875 }
 0x79f   : > { %11636 = vmatprep.subr.bf16.mxu1 %v11635_v48 }
 0x7a0   : > { %11638 = vmatpush1.bf16.msra.mxu1 %v11637_v2 }
 0x7a1   : > { %11640 = vmatprep.subr.bf16.mxu1 %v11639_v58  ;;  %v14349_v56 = vpop.permute.xlu0 %6893  ;;  %v16057_v58 = vmov 3  }
 0x7a3   : > { %6328 = vmatmul.mubr.f32.vlgmr.msra.gmra.mrb[12].mxu1 %v14229_v16 }
 0x7a4   : > { %11642 = vmatpush1.bf16.msra.mxu1 %v11641_v36  ;;  %6406 = vmatprep.mubr.f32.mxu1 %v16032_v53 }
 0x7a5   : > { %11644 = vmatprep.subr.bf16.mxu1 %v11631_v42 }
 0x7ab   : > { %6409 = vmatmul.mubr.f32.vlgmr.msra.gmra.mrb[12].mxu1 %v6232_v44 }
 0x7ac   : > { %11646 = vmatpush1.bf16.msra.mxu1 %v11633_v35  ;;  %6483 = vmatprep.mubr.f32.mxu1 %v16032_v53 }
 0x7ad   : > { %11648 = vmatprep.subr.bf16.mxu1 %v11647_v45 }
 0x7b3   : > { %6487 = vmatmul.mubr.f32.vlgmr.msra.gmra.mrb[12].mxu1 %v6233_v34 }
 0x7b4   : > { %11650 = vmatpush1.bf16.msra.mxu1 %v11649_v40  ;;  %6569 = vmatprep.mubr.f32.mxu1 %v16032_v53 }
 0x7b5   : > { %11652 = vmatprep.subr.bf16.mxu1 %v11631_v42  ;;  %v14353_v42 = vpop.permute.xlu0 %6901 }
 0x7b9   : > { %v14359_v24 = vpop.permute.xlu0 %6937 }
 0x7ba   : > { %16049 = vst [vmem:[#allocation19_spill] sm:$0xff] %v14359_v24 }
 0x7bb   : > { %6571 = vmatmul.mubr.f32.vlgmr.msra.gmra.mrb[12].mxu1 %v14229_v16 }
 0x7bc   : > { %11654 = vmatpush1.bf16.msra.mxu1 %v11633_v35  ;;  %6645 = vmatprep.mubr.f32.mxu1 %v16032_v53  ;;  %v14365_v35 = vpop.permute.xlu1 %6843 }
 0x7bd   : > { %v14363_v10 = vpop.permute.xlu0 %6953 }
 0x7be   : > { %16051 = vst [vmem:[#allocation30_spill] sm:$0xff] %v14363_v10 }
 0x7c0   : > { %v14372_v1 = vpop.permute.xlu1 %6919 }
 0x7c1   : > { %16052 = vst [vmem:[#allocation20_spill] sm:$0xff] %v14372_v1  ;;  %v14374_v17 = vpop.permute.xlu0 %6971 }
 0x7c2   : > { %16053 = vst [vmem:[#allocation15_spill] sm:$0xff] %v14374_v17 }
 0x7c3   : > { %6647 = vmatmul.mubr.f32.vlgmr.msra.gmra.mrb[12].mxu1 %v14229_v16 }
 0x7c4   : > { %7262 = vmatprep.mubr.f32.mxu1 %v16032_v53 }
 0x896   : > { %v6648_v44 = vpop.f32.mrb[12].mxu1 }
 0x897   : > { %v6657_v39 = vrot.slane %v6648_v44, 4  ;;  %v6650_v5 = vpop.f32.mrb[13].mxu1  ;;  %vm6653_vm9 = vcmp.ge.f32.partialorder %v6648_v44, 0.0 }
 0x898   : > { %v6658_v16 = vrot.slane %v6650_v5, 4  ;;  %vm6654_vm8 = vcmp.ge.f32.partialorder %v6650_v5, 0.0 }
 0x899   : > { %v6661_v29 = vmul.f32 %v6657_v39, %v16045_v52 }
 0x89a   : > { %v6662_v26 = vmul.f32 %v6658_v16, %v16045_v52 }
 0x89b   : > { %v6665_v12 = vrot.slane %v6661_v29, 4 }
 0x89c   : > { %v6666_v41 = vrot.slane %v6662_v26, 4 }
 0x89d   : > { %v14266_v34 = vsel %vm6653_vm9, %v6648_v44, %v6665_v12  ;;  %v16059_v44 = vmov 1   ;;  %vm16068_vm9 = vmmov %vm16066_vm14 }
 0x89e   : > { %6707 = vrot.lane.b32.xlu0 %v14266_v34, %s15971_s1  ;;  %6673 = vrot.lane.b32.xlu1 %v14266_v34, %s16046_s15  ;;  %v14305_v18 = vsel %vm6654_vm8, %v6650_v5, %v6666_v41  ;;  %vm16070_vm8 = vcmask 1039360  }
 0x8a2   : > { %6831 = vrot.lane.b32.xlu0 %v14266_v34, %s15977_s6  ;;  %6691 = vrot.lane.b32.xlu1 %v14266_v34, %s15979_s29 }
 0x8a6   : > { %6864 = vrot.lane.b32.xlu0 %v14266_v34, %s15983_s14  ;;  %6727 = vrot.lane.b32.xlu1 %v14266_v34, %s15972_s30 }
 0x8aa   : > { %7004 = vrot.lane.b32.xlu0 %v14266_v34, %s15982_s13  ;;  %6848 = vrot.lane.b32.xlu1 %v14266_v34, %s15981_s11 }
 0x8ae   : > { %7020 = vrot.lane.b32.xlu0 %v14266_v34, %s15984_s28  ;;  %6986 = vrot.lane.b32.xlu1 %v14266_v34, %s15978_s3 }
 0x8b2   : > { %6755 = vrot.lane.b32.xlu0 %v14266_v34, %s15973_s7  ;;  %6882 = vrot.lane.b32.xlu1 %v14266_v34, %s15985_s27 }
 0x8b6   : > { %6775 = vrot.lane.b32.xlu0 %v14266_v34, %s15974_s10  ;;  %7040 = vrot.lane.b32.xlu1 %v14266_v34, %s15987_s18 }
 0x8ba   : > { %6811 = vrot.lane.b32.xlu0 %v14266_v34, %s15976_s2  ;;  %6908 = vrot.lane.b32.xlu1 %v14266_v34, %s15980_s12 }
 0x8be   : > { %7064 = vrot.lane.b32.xlu0 %v14266_v34, %s15843_s19  ;;  %6795 = vrot.lane.b32.xlu1 %v14266_v34, %s15975_s8 }
 0x8c2   : > { %6926 = vrot.lane.b32.xlu1 %v14266_v34, %s16047_s17  ;;  %6675 = vrot.lane.b32.xlu0 %v14305_v18, %s16046_s15 }
 0x8c6   : > { %6693 = vrot.lane.b32.xlu1 %v14305_v18, %s15979_s29  ;;  %6757 = vrot.lane.b32.xlu0 %v14305_v18, %s15973_s7 }
 0x8ca   : > { %6709 = vrot.lane.b32.xlu1 %v14305_v18, %s15971_s1  ;;  %6884 = vrot.lane.b32.xlu0 %v14305_v18, %s15985_s27 }
 0x8ce   : > { %6729 = vrot.lane.b32.xlu1 %v14305_v18, %s15972_s30  ;;  %6813 = vrot.lane.b32.xlu0 %v14305_v18, %s15976_s2 }
 0x8d2   : > { %6833 = vrot.lane.b32.xlu1 %v14305_v18, %s15977_s6  ;;  %6962 = vrot.lane.b32.xlu0 %v14305_v18, %s16048_s16 }
 0x8d6   : > { %6850 = vrot.lane.b32.xlu1 %v14305_v18, %s15981_s11  ;;  %6960 = vrot.lane.b32.xlu0 %v14266_v34, %s16048_s16 }
 0x8da   : > { %6866 = vrot.lane.b32.xlu1 %v14305_v18, %s15983_s14  ;;  %7740 = vperm.xlu0 %12068, %v4533_v6  }
 0x8de   : > { %6988 = vrot.lane.b32.xlu1 %v14305_v18, %s15978_s3  ;;  %12069 = vset.pattern.permute.xlu0 %v16059_v44 }
 0x8df   : > { %8318 = vperm.xlu0 %12069, %v14382_v22  }
 0x8e2   : > { %7006 = vrot.lane.b32.xlu1 %v14305_v18, %s15982_s13 }
 0x8e6   : > { %7022 = vrot.lane.b32.xlu1 %v14305_v18, %s15984_s28 }
 0x8ea   : > { %6777 = vrot.lane.b32.xlu1 %v14305_v18, %s15974_s10 }
 0x8ee   : > { %7042 = vrot.lane.b32.xlu1 %v14305_v18, %s15987_s18 }
 0x8f2   : > { %6910 = vrot.lane.b32.xlu1 %v14305_v18, %s15980_s12 }
 0x8f6   : > { %6797 = vrot.lane.b32.xlu1 %v14305_v18, %s15975_s8 }
 0x8fa   : > { %6928 = vrot.lane.b32.xlu1 %v14305_v18, %s16047_s17 }
 0x8fe   : > { %7066 = vrot.lane.b32.xlu1 %v14305_v18, %s15843_s19  ;;  %s16054_s19 = sld [smem:[#allocation58_spill]] }
 0x902   : > { %6946 = vrot.lane.b32.xlu1 %v14305_v18, %s16050_s21 }
 0x904   : > { %v4515_v8 = vld [vmem:[%s16054_s19 + $0x8] sm:$0xf]  ;;  %s16230_s19 = sld [smem:[#allocation45_spill]] }
 0x906   : > { %6944 = vrot.lane.b32.xlu1 %v14266_v34, %s16050_s21 }
 0x90a   : > { %7143 = vperm.xlu1 %12067, %v4523_v51  }
 0x90e   : > { %8283 = vperm.xlu1 %12067, %v4515_v8  }
 0x910   : > { %v14384_v27 = vpop.permute.xlu0 %6707  ;;  %v14386_v43 = vpop.permute.xlu1 %6673 }
 0x911   : > { %v6714_v14 = vsel %vm3789_vm2, 0.0, %v14384_v27  ;;  %v6680_v25 = vsel %vm16066_vm14, 0.0, %v14386_v43  ;;  %vm16071_vm14 = vmmov %vm16070_vm8 }
 0x912   : > { %8304 = vperm.xlu1 %12067, %v14382_v22   ;;  %v6715_v10 = vmul.f32 %v6714_v14, %v13542_v33  ;;  %v6681_v24 = vmul.f32 %v6680_v25, %v16009_v4 }
 0x914   : > { %v14389_v20 = vpop.permute.xlu0 %6831  ;;  %v14391_v59 = vpop.permute.xlu1 %6691  ;;  %v6719_v25 = vrot.slane %v6715_v10, 4  ;;  %v6685_v55 = vrot.slane %v6681_v24, 4  ;;  %v6747_v10 = vrot.slane %v14266_v34, 4 }
 0x915   : > { %v6838_v9 = vsel %vm16067_vm6, 0.0, %v14389_v20  ;;  %vm16074_vm6 = vcmask 1043456  }
 0x916   : > { %12070 = vset.pattern.permute.xlu1 %v16056_v21 }
 0x917   : > { %8336 = vperm.xlu1 %12070, %v14382_v22  }
 0x918   : > { %v14395_v48 = vpop.permute.xlu1 %6727  ;;  %v14397_v2 = vpop.permute.xlu0 %6864 }
 0x91b   : > { %12071 = vset.pattern.permute.xlu1 %v16057_v58 }
 0x91c   : > { %v14400_v36 = vpop.permute.xlu1 %6848  ;;  %8354 = vperm.xlu1 %12071, %v14382_v22   ;;  %v14403_v45 = vpop.permute.xlu0 %7004 }
 0x91d   : > { %16058 = vst [vmem:[#allocation9_spill] sm:$0xff] %v14403_v45  ;;  %v7010_v14 = vsel %vm15887_vm0, 0.0, %v14403_v45  ;;  %v6855_v38 = vsel %vm5231_vm12, 0.0, %v14400_v36 }
 0x91e   : > { %v7012_v45 = vrot.slane %v7010_v14, 4 }
 0x920   : > { %v14405_v40 = vpop.permute.xlu1 %6986  ;;  %12073 = vset.pattern.permute.xlu1 %v16059_v44  ;;  %v14410_v5 = vpop.permute.xlu0 %7020  ;;  %v6860_v44 = vmul.f32 %v14339_v3, %v6855_v38 }
 0x921   : > { %v6993_v7 = vsel %vm5397_vm10, 0.0, %v14405_v40 }
 0x922   : > { %v6994_v1 = vmul.f32 %v6993_v7, %v13948_v13 }
 0x924   : > { %v14408_v39 = vpop.permute.xlu1 %6882  ;;  %v14414_v29 = vpop.permute.xlu0 %6755  ;;  %v6998_v62 = vrot.slane %v6994_v1, 4  ;;  %v14474_v1 = vmul.f32 %v14353_v42, %v14266_v34  ;;  %v6723_v34 = vmul.f32 %v6719_v25, %v13715_v0 }
 0x926   : > { %v7002_v14 = vmul.f32 %v6998_v62, %v14365_v35 }
 0x928   : > { %v14412_v52 = vpop.permute.xlu1 %7040  ;;  %v14420_v26 = vpop.permute.xlu0 %6775 }
 0x929   : > { %16060 = vst [vmem:[#allocation10_spill] sm:$0xff] %v14412_v52  ;;  %16063 = vst [vmem:[#allocation14_spill] sm:$0xff] %v14420_v26  ;;  %v7047_v7 = vsel %vm15886_vm5, 0.0, %v14412_v52 }
 0x92a   : > { %v7048_v50 = vmul.f32 %v7047_v7, %v13948_v13  ;;  %v6689_v13 = vmul.f32 %v6685_v55, %v13857_v54 }
 0x92c   : > { %v14416_v12 = vpop.permute.xlu1 %6908  ;;  %v14424_v51 = vpop.permute.xlu0 %6811 }
 0x92d   : > { %16061 = vst [vmem:[#allocation11_spill] sm:$0xff] %v14416_v12  ;;  %v7027_v12 = vsel %vm5442_vm11, 0.0, %v14410_v5 }
 0x92e   : > { %v7028_v52 = vmul.f32 %v7027_v12, %v13972_v46  ;;  %v6889_v12 = vsel %vm5280_vm13, 0.0, %v14408_v39 }
 0x92f   : > { %v6890_v38 = vmul.f32 %v6889_v12, %v16011_v23 }
 0x930   : > { %v14418_v16 = vpop.permute.xlu1 %6795  ;;  %v14426_v32 = vpop.permute.xlu0 %7064 }
 0x931   : > { %16062 = vst [vmem:[#allocation12_spill] sm:$0xff] %v14418_v16  ;;  %16065 = vst [vmem:[#allocation36_spill] sm:$0xff] %v14426_v32  ;;  %v6697_v32 = vsel %vm3772_vm3, 0.0, %v14391_v59  ;;  %v6871_v16 = vsel %vm5248_vm15, 0.0, %v14397_v2 }
 0x932   : > { %v6699_v6 = vrot.slane %v6697_v32, 4  ;;  %v6839_v32 = vmul.f32 %v6838_v9, %v16011_v23  ;;  %v6872_v24 = vmul.f32 %v6871_v16, %v13918_v49  ;;  %v7032_v16 = vrot.slane %v7028_v52, 4 }
 0x933   : > { %v7052_v49 = vrot.slane %v7048_v50, 4 }
 0x934   : > { %v14422_v41 = vpop.permute.xlu1 %6926  ;;  %v6676_v58 = vpop.permute.xlu0 %6675  ;;  %v6703_v9 = vmul.f32 %v6699_v6, %v13797_v15  ;;  %v6846_v6 = vmul.f32 %v14365_v35, %v6839_v32 }
 0x935   : > { %16064 = vst [vmem:[#allocation35_spill] sm:$0xff] %v14422_v41  ;;  %v6734_v41 = vsel %vm3819_vm4, 0.0, %v14395_v48  ;;  %v6677_v7 = vsel %vm16068_vm9, %v14386_v43, %v6676_v58  ;;  %vm16075_vm9 = vcmask 277504  }
 0x936   : > { %v6735_v17 = vmul.f32 %v6734_v41, %v16009_v4  ;;  %v16069_v4 = vmov 4   ;;  %v6682_v25 = vmul.f32 %v6677_v7, %v13537_v37  ;;  %v6862_v50 = vadd.f32 %v6860_v44, %v6846_v6 }
 0x937   : > { %12072 = vset.pattern.permute.xlu0 %v16069_v4  ;;  %v6705_v4 = vadd.f32 %v6703_v9, %v6689_v13 }
 0x938   : > { %v6694_v8 = vpop.permute.xlu1 %6693  ;;  %v6758_v26 = vpop.permute.xlu0 %6757  ;;  %v6739_v46 = vrot.slane %v6735_v17, 4  ;;  %8362 = vperm.xlu0 %12072, %v14382_v22   ;;  %v7016_v17 = vmul.f32 %v7012_v45, %v14339_v3  ;;  %v6878_v45 = vmul.f32 %v14343_v31, %v6872_v24  ;;  %v6748_v24 = vrot.slane %v14305_v18, 4 }
 0x939   : > { %v6695_v55 = vsel %vm3772_vm3, %v14391_v59, %v6694_v8  ;;  %v6759_v52 = vsel %vm16070_vm8, %v14414_v29, %v6758_v26  ;;  %v6896_v59 = vmul.f32 %v14349_v56, %v6890_v38  ;;  %v7056_v29 = vmul.f32 %v7052_v49, %v14349_v56 }
 0x93a   : > { %v6743_v32 = vmul.f32 %v6739_v46, %v13819_v61  ;;  %v7018_v12 = vadd.f32 %v7016_v17, %v7002_v14  ;;  %v6700_v8 = vrot.slane %v6695_v55, 4  ;;  %v6763_v46 = vmul.f32 %v6759_v52, %v13542_v33 }
 0x93b   : > { %v6686_v14 = vrot.slane %v6682_v25, 4  ;;  %v6880_v7 = vadd.f32 %v6878_v45, %v6862_v50  ;;  %v6751_v38 = vmul.f32 %v6747_v10, %v16022_v11  ;;  %v14533_v25 = vmul.f32 %v14353_v42, %v6748_v24 }
 0x93c   : > { %v6710_v57 = vpop.permute.xlu1 %6709  ;;  %v6885_v43 = vpop.permute.xlu0 %6884  ;;  %12075 = vset.pattern.permute.xlu0 %v16056_v21  ;;  %v6752_v50 = vmul.f32 %v6748_v24, %v16022_v11  ;;  %vm16078_vm8 = vcmask 924672  }
 0x93d   : > { %v6711_v62 = vsel %vm3789_vm2, %v14384_v27, %v6710_v57  ;;  %v7036_v57 = vmul.f32 %v7032_v16, %v14343_v31  ;;  %v6762_v27 = vsel %vm16071_vm14, %v6758_v26, 0.0  ;;  %v14517_v26 = vld [vmem:[%s15719_s24 + $0x10] sm:$0xff]  ;;  %v6898_v21 = vadd.f32 %v6896_v59, %v6880_v7  ;;  %vm16083_vm14 = vmmov %vm16078_vm8 }
 0x93e   : > { %v6716_v13 = vmul.f32 %v6711_v62, %v13545_v63  ;;  %v6764_v6 = vmul.f32 %v6762_v27, %v13545_v63  ;;  %v7182_v52 = vrot.slane %v14517_v26, 4  ;;  %v6690_v45 = vmul.f32 %v6686_v14, %v13857_v54 }
 0x93f   : > { %v7038_v49 = vadd.f32 %v7036_v57, %v7018_v12 }
 0x940   : > { %v14428_v30 = vpop.permute.xlu1 %6729  ;;  %v6814_v17 = vpop.permute.xlu0 %6813  ;;  %v6720_v55 = vrot.slane %v6716_v13, 4 }
 0x941   : > { %v6731_v9 = vsel %vm3819_vm4, %v14395_v48, %v14428_v30  ;;  %v14522_v30 = vmul.f32 %v14353_v42, %v14305_v18  ;;  %v6725_v48 = vadd.f32 %v6723_v34, %v6705_v4  ;;  %v7058_v22 = vadd.f32 %v7056_v29, %v7038_v49 }
 0x942   : > { %v6736_v16 = vmul.f32 %v6731_v9, %v13537_v37  ;;  %v6704_v18 = vmul.f32 %v6700_v8, %v13797_v15  ;;  %v7060_v34 = vmul.f32 %v14353_v42, %v6747_v10  ;;  %v6815_v57 = vsel %vm15885_vm7, %v14424_v51, %v6814_v17 }
 0x943   : > { %16072 = vst [vmem:[#allocation37_spill] sm:$0xff] %v14522_v30  ;;  %v6745_v62 = vadd.f32 %v6743_v32, %v6725_v48  ;;  %v6767_v30 = vrot.slane %v6763_v46, 4  ;;  %v6768_v32 = vrot.slane %v6764_v6, 4  ;;  %v6818_v27 = vsel %vm15885_vm7, %v6814_v17, 0.0  ;;  %v16080_v6 = vld [vmem:[#allocation10_spill] sm:$0xff] }
 0x944   : > { %v14436_v53 = vpop.permute.xlu1 %6833  ;;  %v6740_v12 = vrot.slane %v6736_v16, 4  ;;  %v6724_v13 = vmul.f32 %v6720_v55, %v13715_v0  ;;  %v6886_v10 = vsel %vm5280_vm13, %v14408_v39, %v6885_v43  ;;  %v16073_v42 = vrot.slane %v14165_v60, 4  ;;  %v6963_v59 = vpop.permute.xlu0 %6962 }
 0x945   : > { %v6753_v15 = vadd.f32 %v6751_v38, %v6745_v62  ;;  %v6706_v11 = vadd.f32 %v6704_v18, %v6690_v45  ;;  %v6771_v9 = vmul.f32 %v6767_v30, %v16020_v28  ;;  %v14552_v29 = vadd.f32 %v14474_v1, %v6898_v21  ;;  %v16081_v62 = vld [vmem:[#allocation34_spill] sm:$0xff] }
 0x946   : > { %v14548_v54 = vsel %vm16074_vm6, %v16073_v42, %v7182_v52  ;;  %v14554_v8 = vadd.f32 %v7060_v34, %v7058_v22  ;;  %v6819_v0 = vmul.f32 %v6815_v57, %v13542_v33  ;;  %v6820_v39 = vmul.f32 %v6818_v27, %v13545_v63 }
 0x947   : > { %v6835_v60 = vsel %vm16075_vm9, %v14389_v20, %v14436_v53  ;;  %v6772_v46 = vmul.f32 %v6768_v32, %v16020_v28  ;;  %v6891_v24 = vmul.f32 %v6886_v10, %v13994_v19  ;;  %v6744_v21 = vmul.f32 %v6740_v12, %v13819_v61 }
 0x948   : > { %v14452_v47 = vpop.permute.xlu1 %6850  ;;  %v6726_v1 = vadd.f32 %v6724_v13, %v6706_v11  ;;  %v6967_v30 = vsel %vm15884_vm1, %v6963_v59, 0.0  ;;  %v6840_v28 = vmul.f32 %v6835_v60, %v13994_v19  ;;  %v6823_v7 = vrot.slane %v6819_v0, 4  ;;  %v6961_v57 = vpop.permute.xlu0 %6960  ;;  %v16084_v11 = vld [vmem:[#allocation24_spill] sm:$0xff] }
 0x949   : > { %v6852_v53 = vsel %vm5231_vm12, %v14400_v36, %v14452_v47  ;;  %v6824_v49 = vrot.slane %v6820_v39, 4  ;;  %v16079_v47 = vld [vmem:[#allocation32_spill] sm:$0xff]  ;;  %v14590_v16 = vadd.f32 %v6771_v9, %v6753_v15  ;;  %v6897_v18 = vmul.f32 %v14349_v56, %v6891_v24  ;;  %v16082_v15 = vld [vmem:[#allocation14_spill] sm:$0xff] }
 0x94a   : > { %v6746_v17 = vadd.f32 %v6744_v21, %v6726_v1  ;;  %v6861_v38 = vmul.f32 %v14339_v3, %v6852_v53  ;;  %v6847_v12 = vmul.f32 %v14365_v35, %v6840_v28  ;;  %v14605_v9 = vmul.f32 %v6823_v7, %v16084_v11  ;;  %v16085_v21 = vld [vmem:[#allocation29_spill] sm:$0xff]  ;;  %v16086_v28 = vld [vmem:[#allocation7_spill] sm:$0xff] }
 0x94b   : > { %v14608_v0 = vmul.f32 %v6824_v49, %v16084_v11  ;;  %vm16088_vm6 = vcmask 1031168   ;;  %vm16090_vm9 = vcmask 916480  }
 0x94c   : > { %v14470_v41 = vpop.permute.xlu1 %6866  ;;  %v6863_v24 = vadd.f32 %v6861_v38, %v6847_v12 }
 0x94d   : > { %v6868_v43 = vsel %vm5248_vm15, %v14397_v2, %v14470_v41  ;;  %v16076_v2 = vld [vmem:[#allocation33_spill] sm:$0xff] }
 0x94e   : > { %v6873_v61 = vmul.f32 %v6868_v43, %v16076_v2  ;;  %v16077_v41 = vld [vmem:[#allocation9_spill] sm:$0xff]  ;;  %v6969_v34 = vmul.f32 %v6967_v30, %v16076_v2  ;;  %v6754_v43 = vadd.f32 %v6752_v50, %v6746_v17 }
 0x950   : > { %v14493_v58 = vpop.permute.xlu1 %6988  ;;  %v6879_v27 = vmul.f32 %v14343_v31, %v6873_v61 }
 0x951   : > { %v6990_v22 = vsel %vm5397_vm10, %v14405_v40, %v14493_v58  ;;  %v7085_v60 = vsel %vm5397_vm10, %v14493_v58, 0.0 }
 0x952   : > { %v6995_v36 = vmul.f32 %v6990_v22, %v16079_v47  ;;  %v7086_v1 = vmul.f32 %v6990_v22, %v16085_v21  ;;  %v6881_v7 = vadd.f32 %v6879_v27, %v6863_v24  ;;  %v14622_v58 = vmul.f32 %v7085_v60, %v16079_v47 }
 0x954   : > { %v14512_v44 = vpop.permute.xlu1 %7006  ;;  %v6999_v39 = vrot.slane %v6995_v36, 4  ;;  %v16089_v36 = vld [vmem:[#allocation12_spill] sm:$0xff]  ;;  %v7090_v38 = vrot.slane %v7086_v1, 4  ;;  %v6899_v24 = vadd.f32 %v6897_v18, %v6881_v7  ;;  %v7091_v1 = vrot.slane %v14622_v58, 4 }
 0x955   : > { %v14584_v40 = vsel %vm15887_vm0, %v16077_v41, %v14512_v44 }
 0x956   : > { %v7013_v45 = vrot.slane %v14584_v40, 4  ;;  %v7003_v22 = vmul.f32 %v6999_v39, %v14365_v35 }
 0x958   : > { %v14529_v4 = vpop.permute.xlu1 %7022  ;;  %v7017_v53 = vmul.f32 %v7013_v45, %v14339_v3 }
 0x959   : > { %v14577_v20 = vsel %vm5442_vm11, %v14410_v5, %v14529_v4  ;;  %v7108_v58 = vsel %vm5442_vm11, %v14529_v4, 0.0 }
 0x95a   : > { %v7029_v55 = vmul.f32 %v14577_v20, %v16081_v62 }
 0x95c   : > { %v6778_v51 = vpop.permute.xlu1 %6777  ;;  %v7033_v30 = vrot.slane %v7029_v55, 4 }
 0x95d   : > { %v6782_v48 = vsel %vm16078_vm8, %v6778_v51, 0.0  ;;  %v6779_v13 = vsel %vm16083_vm14, %v16082_v15, %v6778_v51  ;;  %v6964_v51 = vsel %vm15884_vm1, %v6961_v57, %v6963_v59  ;;  %vm16091_vm8 = vmmov %vm16090_vm9  ;;  %v16093_v57 = vld [vmem:[#allocation13_spill] sm:$0xff] }
 0x95e   : > { %v6784_v32 = vmul.f32 %v6782_v48, %v13537_v37  ;;  %v6783_v61 = vmul.f32 %v6779_v13, %v16086_v28  ;;  %v16087_v48 = vld [vmem:[#allocation15_spill] sm:$0xff]  ;;  %v7037_v55 = vmul.f32 %v7033_v30, %v14343_v31  ;;  %vm16095_vm14 = vmmov %vm16088_vm6 }
 0x95f   : > { %v16094_v13 = vld [vmem:[#allocation11_spill] sm:$0xff] }
 0x960   : > { %v7043_v14 = vpop.permute.xlu1 %7042  ;;  %v6788_v41 = vrot.slane %v6784_v32, 4  ;;  %v7019_v32 = vadd.f32 %v7017_v53, %v7003_v22  ;;  %v6787_v12 = vrot.slane %v6783_v61, 4  ;;  %v16098_v53 = vld [vmem:[#allocation35_spill] sm:$0xff]  ;;  %v16101_v22 = vld [vmem:[#allocation20_spill] sm:$0xff] }
 0x961   : > { %v7044_v5 = vsel %vm15886_vm5, %v16080_v6, %v7043_v14  ;;  %v14619_v14 = vmul.f32 %v16087_v48, %v6969_v34  ;;  %v6774_v34 = vadd.f32 %v6772_v46, %v6754_v43  ;;  %v7099_v43 = vsel %vm15887_vm0, %v14512_v44, 0.0  ;;  %v16100_v61 = vld [vmem:[#allocation19_spill] sm:$0xff] }
 0x962   : > { %v7049_v10 = vmul.f32 %v7044_v5, %v16079_v47  ;;  %v16092_v5 = vld [vmem:[#allocation26_spill] sm:$0xff]  ;;  %v6792_v27 = vmul.f32 %v6788_v41, %v16093_v57  ;;  %v7039_v30 = vadd.f32 %v7037_v55, %v7019_v32  ;;  %v7094_v41 = vmul.f32 %v7090_v38, %v16100_v61  ;;  %v16102_v55 = vld [vmem:[#allocation36_spill] sm:$0xff] }
 0x963   : > { %v14630_v17 = vmul.f32 %v6964_v51, %v16092_v5  ;;  %v16096_v51 = vld [vmem:[#allocation21_spill] sm:$0xff] }
 0x964   : > { %v6911_v42 = vpop.permute.xlu1 %6910  ;;  %v7053_v50 = vrot.slane %v7049_v10, 4  ;;  %v6794_v18 = vadd.f32 %v6792_v27, %v6774_v34  ;;  %v16105_v34 = vld [vmem:[#allocation37_spill] sm:$0xff]  ;;  %v16106_v27 = vld [vmem:[#allocation31_spill] sm:$0xff] }
 0x965   : > { %v6915_v59 = vsel %vm16088_vm6, %v6911_v42, 0.0  ;;  %v6912_v10 = vsel %vm16095_vm14, %v16094_v13, %v6911_v42  ;;  %vm16097_vm6 = vcmask 801792   ;;  %v7110_v13 = vmul.f32 %v7108_v58, %v16081_v62 }
 0x966   : > { %v7057_v35 = vmul.f32 %v7053_v50, %v14349_v56  ;;  %v6917_v11 = vmul.f32 %v6915_v59, %v16076_v2  ;;  %v6791_v50 = vmul.f32 %v6787_v12, %v16093_v57  ;;  %v6916_v7 = vmul.f32 %v6912_v10, %v16092_v5 }
 0x967   : > { %v6907_v12 = vadd.f32 %v16105_v34, %v6899_v24  ;;  %v7109_v58 = vmul.f32 %v14577_v20, %v16106_v27 }
 0x968   : > { %v6798_v49 = vpop.permute.xlu1 %6797  ;;  %v6923_v59 = vmul.f32 %v16101_v22, %v6917_v11  ;;  %v6793_v10 = vadd.f32 %v6791_v50, %v14590_v16  ;;  %v6922_v11 = vmul.f32 %v16101_v22, %v6916_v7  ;;  %v16108_v50 = vld [vmem:[#allocation30_spill] sm:$0xff] }
 0x969   : > { %v6799_v6 = vsel %vm16090_vm9, %v16089_v36, %v6798_v49  ;;  %v6801_v3 = vsel %vm16091_vm8, %v6798_v49, 0.0  ;;  %vm16099_vm9 = vmmov %vm16097_vm6  ;;  %v7059_v49 = vadd.f32 %v7057_v35, %v7039_v30  ;;  %vm16103_vm8 = vcmask 1014784  }
 0x96a   : > { %v6804_v15 = vrot.slane %v6801_v3, 4  ;;  %v6803_v39 = vrot.slane %v6799_v6, 4  ;;  %vm16104_vm14 = vmmov %vm16103_vm8  ;;  %v7101_v35 = vrot.slane %v7099_v43, 4  ;;  %v7113_v34 = vrot.slane %v7109_v58, 4 }
 0x96c   : > { %v6929_v60 = vpop.permute.xlu1 %6928  ;;  %v6808_v31 = vmul.f32 %v6804_v15, %v16096_v51  ;;  %v6807_v44 = vmul.f32 %v6803_v39, %v16096_v51  ;;  %v7063_v39 = vadd.f32 %v14533_v25, %v7059_v49  ;;  %v7095_v25 = vmul.f32 %v7091_v1, %v16100_v61 }
 0x96d   : > { %v6933_v46 = vsel %vm16097_vm6, %v6929_v60, 0.0  ;;  %v6930_v56 = vsel %vm16099_vm9, %v16098_v53, %v6929_v60  ;;  %v6925_v60 = vadd.f32 %v6923_v59, %v6907_v12  ;;  %vm16107_vm6 = vcmask 785408  }
 0x96e   : > { %v6935_v42 = vmul.f32 %v6933_v46, %v13994_v19  ;;  %v6810_v6 = vadd.f32 %v6808_v31, %v6794_v18  ;;  %v6934_v3 = vmul.f32 %v6930_v56, %v16011_v23  ;;  %v6809_v24 = vadd.f32 %v6807_v44, %v6793_v10  ;;  %vm16109_vm9 = vmmov %vm16107_vm6 }
 0x96f   : > { %v7104_v7 = vmul.f32 %v7101_v35, %v16108_v50  ;;  %v7114_v49 = vrot.slane %v7110_v13, 4 }
 0x970   : > { %v7067_v36 = vpop.permute.xlu1 %7066  ;;  %v6941_v57 = vmul.f32 %v16100_v61, %v6935_v42  ;;  %v6830_v30 = vadd.f32 %v14608_v0, %v6810_v6  ;;  %v6940_v53 = vmul.f32 %v16100_v61, %v6934_v3  ;;  %v6924_v0 = vadd.f32 %v6922_v11, %v14552_v29 }
 0x971   : > { %v7068_v38 = vsel %vm16103_vm8, %v16102_v55, %v7067_v36  ;;  %v7071_v32 = vsel %vm16104_vm14, %v7067_v36, 0.0  ;;  %v6974_v29 = vmul.f32 %v16087_v48, %v14630_v17  ;;  %vm16110_vm8 = vcmask 97280  }
 0x972   : > { %v7072_v4 = vmul.f32 %v7068_v38, %v16106_v27  ;;  %v7073_v15 = vmul.f32 %v7071_v32, %v16081_v62  ;;  %v6943_v16 = vadd.f32 %v6941_v57, %v6925_v60  ;;  %v6981_v3 = vrot.slane %v6830_v30, 4 }
 0x973   : > { %v6942_v55 = vadd.f32 %v6940_v53, %v6924_v0  ;;  %v7118_v12 = vmul.f32 %v7114_v49, %v16087_v48  ;;  %v7117_v17 = vmul.f32 %v7113_v34, %v16087_v48  ;;  %vm16111_vm14 = vcmask 1043456  }
 0x974   : > { %v7076_v51 = vrot.slane %v7072_v4, 4  ;;  %v7077_v31 = vrot.slane %v7073_v15, 4  ;;  %v6947_v46 = vpop.permute.xlu1 %6946 }
 0x975   : > { %v6951_v56 = vsel %vm16107_vm6, %v6947_v46, 0.0  ;;  %vm16112_vm6 = vmmov %vm16110_vm8 }
 0x976   : > { %v7080_v43 = vmul.f32 %v7076_v51, %v16101_v22  ;;  %v7081_v42 = vmul.f32 %v7077_v31, %v16101_v22  ;;  %v6957_v18 = vmul.f32 %v16108_v50, %v6951_v56  ;;  %v6829_v22 = vadd.f32 %v14605_v9, %v6809_v24 }
 0x977   : > { %v7184_v9 = vsel %vm16110_vm8, %v14548_v54, 0  ;;  %v7186_v54 = vsel %vm16112_vm6, %v7182_v52, 0 }
 0x978   : > { %v7082_v59 = vadd.f32 %v7080_v43, %v14554_v8  ;;  %v7083_v44 = vadd.f32 %v7081_v42, %v7063_v39  ;;  %v6959_v36 = vadd.f32 %v6957_v18, %v6943_v16  ;;  %v6945_v6 = vpop.permute.xlu1 %6944  ;;  %v7103_v8 = vmul.f32 %v7013_v45, %v16108_v50 }
 0x979   : > { %v6948_v38 = vsel %vm16109_vm9, %v6945_v6, %v6947_v46  ;;  %v6980_v15 = vrot.slane %v6829_v22, 4  ;;  %v14689_v11 = vand.u32 4294901760, %v7184_v9  ;;  %vm16113_vm9 = vmmov %vm16111_vm14  ;;  %v14700_v56 = vand.u32 4294901760, %v7186_v54 }
 0x97a   : > { %v7096_v1 = vadd.f32 %v7094_v41, %v7082_v59  ;;  %v7097_v61 = vadd.f32 %v7095_v25, %v7083_v44  ;;  %v6977_v32 = vadd.f32 %v14619_v14, %v6959_v36  ;;  %v6956_v20 = vmul.f32 %v16108_v50, %v6948_v38  ;;  %v16114_v50 = vld [vmem:[#allocation16_spill] sm:$0xff]  ;;  %vm16115_vm8 = vmmov %vm16113_vm9 }
 0x97b   : > { %v14697_v46 = vsub.f32 %v7184_v9, %v14689_v11  ;;  %v14705_v18 = vsub.f32 %v7186_v54, %v14700_v56  ;;  %vm16118_vm5 = vmmov %vm16115_vm8 }
 0x97c   : > { %v7106_v57 = vadd.f32 %v7104_v7, %v7097_v61  ;;  %v6985_v41 = vadd.f32 %v6981_v3, %v6977_v32  ;;  %v6958_v4 = vadd.f32 %v6956_v20, %v6942_v55  ;;  %v7105_v14 = vadd.f32 %v7103_v8, %v7096_v1  ;;  %vm16119_vm0 = vmmov %vm16118_vm5 }
 0x97d   : > { %v7265_v52 = vand.u32 4294901760, %v14697_v46  ;;  %v7276_v22 = vand.u32 4294901760, %v14705_v18 }
 0x97e   : > { %v7120_v35 = vadd.f32 %v7118_v12, %v7106_v57  ;;  %v7124_v13 = vrot.slane %v6985_v41, 4  ;;  %v6976_v10 = vadd.f32 %v6974_v29, %v6958_v4  ;;  %v7119_v60 = vadd.f32 %v7117_v17, %v7105_v14 }
 0x97f   : > { %v7266_v6 = vsub.f32 %v14697_v46, %v7265_v52 }
 0x980   : > { %v7128_v40 = vadd.f32 %v7124_v13, %v7120_v35  ;;  %v6984_v45 = vadd.f32 %v6980_v15, %v6976_v10  ;;  %v7136_v39 = vsel %vm16111_vm14, %v6981_v3, %v7124_v13  ;;  %vm16116_vm14 = vmmov %vm16115_vm8 }
 0x981   : > { %v7149_v53 = vrot.slane %v7136_v39, 4  ;;  %vm7138_vm6 = vcmp.ge.f32.partialorder %v7136_v39, 0.0  ;;  %v7267_v17 = vand.u32 4294901760, %v7266_v6  ;;  %v16128_v6 = vmov 8  }
 0x982   : > { %v7123_v51 = vrot.slane %v6984_v45, 4  ;;  %v7132_v31 = vrot.slane %v7128_v40, 4  ;;  %v7277_v40 = vsub.f32 %v14705_v18, %v7276_v22 }
 0x983   : > { %v7159_v26 = vmul.f32 %v7149_v53, %v16114_v50 }
 0x984   : > { %v7127_v24 = vadd.f32 %v7123_v51, %v7119_v60  ;;  %v7135_v30 = vsel %vm16113_vm9, %v6980_v15, %v7123_v51  ;;  %v7152_v43 = vrot.slane %v7132_v31, 4  ;;  %vm7140_vm9 = vcmp.ge.f32.partialorder %v7132_v31, 0.0 }
 0x985   : > { %v7148_v48 = vrot.slane %v7135_v30, 4  ;;  %v7169_v44 = vrot.slane %v7159_v26, 4  ;;  %vm7137_vm7 = vcmp.ge.f32.partialorder %v7135_v30, 0.0 }
 0x986   : > { %v7131_v42 = vrot.slane %v7127_v24, 4  ;;  %v7153_v7 = vsel %vm16115_vm8, %v7149_v53, %v7152_v43  ;;  %v7278_v53 = vand.u32 4294901760, %v7277_v40 }
 0x987   : > { %v7158_v58 = vmul.f32 %v7148_v48, %v16114_v50 }
 0x988   : > { %v7150_v16 = vrot.slane %v7131_v42, 4  ;;  %vm7139_vm1 = vcmp.ge.f32.partialorder %v7131_v42, 0.0 }
 0x989   : > { %v7144_v25 = vpop.permute.xlu1 %7143  ;;  %v7166_v3 = vrot.slane %v7158_v58, 4 }
 0x98a   : > { %v7151_v0 = vsel %vm16116_vm14, %v7148_v48, %v7150_v16  ;;  %v7161_v49 = vmul.f32 %v7153_v7, %v7144_v25  ;;  %vm16117_vm14 = vmmov %vm16115_vm8 }
 0x98b   : > { %v7160_v59 = vmul.f32 %v7151_v0, %v7144_v25 }
 0x98c   : > { %v7170_v36 = vrot.slane %v7161_v49, 4 }
 0x98d   : > { %v7167_v55 = vrot.slane %v7160_v59, 4  ;;  %v16125_v59 = vmov 3  }
 0x98e   : > { %v7171_v38 = vsel %vm16115_vm8, %v7169_v44, %v7170_v36  ;;  %v7179_v1 = vsel %vm7140_vm9, %v7132_v31, %v7170_v36  ;;  %v16126_v44 = vmov 7   ;;  %v16127_v36 = vmov 4  }
 0x98f   : > { %v7168_v61 = vsel %vm16117_vm14, %v7166_v3, %v7167_v55  ;;  %v7178_v32 = vsel %vm7139_vm1, %v7131_v42, %v7167_v55  ;;  %v7177_v20 = vsel %vm7138_vm6, %v7136_v39, %v7171_v38  ;;  %v7192_v29 = vsel %vm16118_vm5, %v7179_v1, 0  ;;  %v16129_v55 = vld [vmem:[#allocation22_spill] sm:$0xff]  ;;  %vm16135_vm1 = vmmov %vm16118_vm5 }
 0x990   : > { %v7189_v8 = vsel %vm16119_vm0, %v7178_v32, 0  ;;  %v7194_v34 = vand.u32 4294901760, %v7177_v20  ;;  %v7198_v9 = vand.u32 4294901760, %v7192_v29  ;;  %v7176_v12 = vsel %vm7137_vm7, %v7135_v30, %v7168_v61  ;;  %v16131_v32 = vld [vmem:[#allocation17_spill] sm:$0xff]  ;;  %vm16136_vm5 = vmmov %vm16135_vm1 }
 0x991   : > { %v7196_v57 = vand.u32 4294901760, %v7176_v12  ;;  %v7200_v41 = vand.u32 4294901760, %v7189_v8  ;;  %v16120_v42 = vmov 0.0   ;;  %vm16130_vm0 = vcmask 97280   ;;  %vm16137_vm14 = vmmov %vm16135_vm1 }
 0x992   : > { %v11655_v4 = vpack.c.bf16 %v7198_v9, %v7194_v34  ;;  %v7286_v15 = vsub.f32 %v7177_v20, %v7194_v34  ;;  %v7298_v14 = vsub.f32 %v7192_v29, %v7198_v9 }
 0x993   : > { %v11657_v35 = vpack.c.bf16 %v7200_v41, %v7196_v57  ;;  %v7292_v13 = vsub.f32 %v7176_v12, %v7196_v57  ;;  %v7304_v10 = vsub.f32 %v7189_v8, %v7200_v41  ;;  %v16132_v12 = vld [vmem:[#allocation28_spill] sm:$0xff] }
 0x994   : > { %11656 = vmatprep.subr.bf16.mxu1 %v11655_v4  ;;  %v7287_v45 = vand.u32 4294901760, %v7286_v15  ;;  %v7299_v39 = vand.u32 4294901760, %v7298_v14  ;;  %v11663_v7 = vpack.c.bf16 %v7298_v14, %v7286_v15 }
 0x995   : > { %11658 = vmatpush1.bf16.msra.mxu1 %v11657_v35  ;;  %v7293_v54 = vand.u32 4294901760, %v7292_v13  ;;  %v7305_v60 = vand.u32 4294901760, %v7304_v10  ;;  %v11665_v58 = vpack.c.bf16 %v7304_v10, %v7292_v13 }
 0x996   : > { %v7288_v51 = vsub.f32 %v7286_v15, %v7287_v45  ;;  %v7300_v31 = vsub.f32 %v7298_v14, %v7299_v39  ;;  %v11671_v0 = vpack.c.bf16 %v7299_v39, %v7287_v45 }
 0x997   : > { %v7294_v24 = vsub.f32 %v7292_v13, %v7293_v54  ;;  %v7306_v30 = vsub.f32 %v7304_v10, %v7305_v60  ;;  %v11673_v49 = vpack.c.bf16 %v7305_v60, %v7293_v54  ;;  %v16134_v13 = vld [vmem:[#allocation27_spill] sm:$0xff] }
 0x998   : > { %7268 = vmatmul.mubr.f32.vlgmr.msra.gmra.mrb[14].mxu1 %v7267_v17  ;;  %v7289_v48 = vand.u32 4294901760, %v7288_v51  ;;  %v7301_v43 = vand.u32 4294901760, %v7300_v31 }
 0x999   : > { %7273 = vmatprep.mubr.f32.mxu1 %v16120_v42  ;;  %v7295_v16 = vand.u32 4294901760, %v7294_v24  ;;  %v7307_v50 = vand.u32 4294901760, %v7306_v30 }
 0x99a   : > { %v11659_v26 = vpack.c.bf16 %v7301_v43, %v7289_v48 }
 0x99b   : > { %v11661_v25 = vpack.c.bf16 %v7307_v50, %v7295_v16 }
 0x99c   : > { %7279 = vmatmul.mubr.f32.gmra.mrb[16].mxu1 %v7278_v53  ;;  %11660 = vmatprep.subr.bf16.mxu1 %v11659_v26 }
 0x99d   : > { %11662 = vmatpush1.bf16.msra.mxu1 %v11661_v25  ;;  %7369 = vmatprep.mubr.f32.mxu1 %v16120_v42 }
 0x99e   : > { %11664 = vmatprep.subr.bf16.mxu1 %v11663_v7 }
 0x9a0   : > { %7371 = vmatmul.mubr.f32.vlgmr.msra.gmra.mrb[14].mxu1 %v14689_v11 }
 0x9a1   : > { %11666 = vmatpush1.bf16.msra.mxu1 %v11665_v58  ;;  %7376 = vmatprep.mubr.f32.mxu1 %v16120_v42 }
 0x9a2   : > { %11668 = vmatprep.subr.bf16.mxu1 %v11655_v4 }
 0x9a4   : > { %7378 = vmatmul.mubr.f32.gmra.mrb[16].mxu1 %v14700_v56 }
 0x9a5   : > { %7456 = vmatprep.mubr.f32.mxu1 %v16120_v42 }
 0x9a8   : > { %7459 = vmatmul.mubr.f32.vlgmr.msra.gmra.mrb[14].mxu1 %v14697_v46  ;;  %v14748_v46 = vld [vmem:[%s15717_s22 + $0x20] sm:$0xf] }
 0x9a9   : > { %11670 = vmatpush1.bf16.msra.mxu1 %v11657_v35  ;;  %7464 = vmatprep.mubr.f32.mxu1 %v16120_v42 }
 0x9aa   : > { %11672 = vmatprep.subr.bf16.mxu1 %v11671_v0  ;;  %8631 = vperm.xlu1 %12073, %v14748_v46  }
 0x9ab   : > { %8649 = vperm.xlu0 %12075, %v14748_v46  }
 0x9ac   : > { %7467 = vmatmul.mubr.f32.gmra.mrb[16].mxu1 %v14705_v18  ;;  %v16122_v18 = vmov 6  }
 0x9ad   : > { %7541 = vmatprep.mubr.f32.mxu1 %v16120_v42 }
 0x9af   : > { %12082 = vset.pattern.permute.xlu0 %v16122_v18 }
 0x9b0   : > { %7545 = vmatmul.mubr.f32.vlgmr.msra.gmra.mrb[14].mxu1 %v7265_v52  ;;  %v16121_v52 = vmov 5   ;;  %8705 = vperm.xlu0 %12082, %v14748_v46  }
 0x9b1   : > { %11674 = vmatpush1.bf16.msra.mxu1 %v11673_v49  ;;  %7550 = vmatprep.mubr.f32.mxu1 %v16120_v42 }
 0x9b2   : > { %11676 = vmatprep.subr.bf16.mxu1 %v11655_v4  ;;  %12074 = vset.pattern.permute.xlu1 %v16121_v52  ;;  %v16133_v4 = vld [vmem:[#allocation23_spill] sm:$0xff] }
 0x9b4   : > { %7554 = vmatmul.mubr.f32.gmra.mrb[16].mxu1 %v7276_v22  ;;  %v4513_v22 = vld [vmem:[%s15715_s20 + $0x8] sm:$0xf] }
 0x9b5   : > { %7636 = vmatprep.mubr.f32.mxu1 %v16120_v42  ;;  %v7780_v61 = vsel %vm16130_vm0, %v4513_v22, 0  ;;  %vm16139_vm0 = vmmov %vm16135_vm1 }
 0x9b6   : > { %v14779_v34 = vand.u32 4294901760, %v7780_v61 }
 0x9b8   : > { %7638 = vmatmul.mubr.f32.vlgmr.msra.gmra.mrb[14].mxu1 %v14689_v11  ;;  %v14785_v40 = vsub.f32 %v7780_v61, %v14779_v34 }
 0x9b9   : > { %11678 = vmatpush1.bf16.msra.mxu1 %v11657_v35  ;;  %7643 = vmatprep.mubr.f32.mxu1 %v16120_v42  ;;  %v7741_v35 = vpop.permute.xlu0 %7740 }
 0x9ba   : > { %v7859_v30 = vand.u32 4294901760, %v14785_v40 }
 0x9bc   : > { %7645 = vmatmul.mubr.f32.gmra.mrb[16].mxu1 %v14700_v56 }
 0x9bd   : > { %7719 = vmatprep.mubr.f32.mxu1 %v16120_v42 }
 0x9c0   : > { %7721 = vmatmul.mubr.f32.vlgmr.msra.gmra.mrb[14].mxu1 %v14689_v11  ;;  %v16123_v11 = vld [vmem:[#allocation18_spill] sm:$0xff] }
 0x9c1   : > { %7726 = vmatprep.mubr.f32.mxu1 %v16120_v42  ;;  %8380 = vperm.xlu1 %12074, %v16123_v11  }
 0x9c4   : > { %7728 = vmatmul.mubr.f32.gmra.mrb[16].mxu1 %v14700_v56  ;;  %v16124_v56 = vmov 0  }
 0x9c5   : > { %7856 = vmatprep.mubr.f32.mxu1 %v16120_v42  ;;  %12076 = vset.pattern.permute.xlu1 %v16122_v18 }
 0x9c6   : > { %12083 = vset.pattern.permute.xlu0 %v16124_v56  ;;  %8398 = vperm.xlu1 %12076, %v16123_v11  }
 0x9c7   : > { %8617 = vperm.xlu0 %12083, %v14748_v46  }
 0x9ca   : > { %12077 = vset.pattern.permute.xlu1 %v16125_v59 }
 0x9cb   : > { %8667 = vperm.xlu1 %12077, %v14748_v46  }
 0x9cf   : > { %12078 = vset.pattern.permute.xlu1 %v16126_v44 }
 0x9d0   : > { %8414 = vperm.xlu1 %12078, %v16123_v11  }
 0x9d4   : > { %12079 = vset.pattern.permute.xlu1 %v16127_v36 }
 0x9d5   : > { %8675 = vperm.xlu1 %12079, %v14748_v46  }
 0x9d9   : > { %12080 = vset.pattern.permute.xlu1 %v16128_v6 }
 0x9da   : > { %8432 = vperm.xlu1 %12080, %v16123_v11  }
 0x9de   : > { %12081 = vset.pattern.permute.xlu1 %v16121_v52 }
 0x9df   : > { %8693 = vperm.xlu1 %12081, %v14748_v46  }
 0x9e3   : > { %12084 = vset.pattern.permute.xlu1 %v16126_v44 }
 0x9e4   : > { %8715 = vperm.xlu1 %12084, %v14748_v46  }
 0x9e8   : > { %12085 = vset.pattern.permute.xlu1 %v16128_v6 }
 0xa93   : > { %v7722_v3 = vpop.f32.mrb[14].mxu1 }
 0xa94   : > { %v11785_v38 = vadd.f32 %v7722_v3, %v16129_v55  ;;  %v7724_v1 = vpop.f32.mrb[15].mxu1  ;;  %v7860_v55 = vsub.f32 %v14785_v40, %v7859_v30 }
 0xa95   : > { %v11786_v20 = vadd.f32 %v7724_v1, %v16131_v32 }
 0xa96   : > { %v7747_v29 = vrot.slane %v11785_v38, 4  ;;  %vm7734_vm7 = vcmp.ge.f32.partialorder %v11785_v38, 0.0 }
 0xa97   : > { %v7729_v8 = vpop.f32.mrb[16].mxu1  ;;  %v7748_v9 = vrot.slane %v11786_v20, 4  ;;  %vm7735_vm9 = vcmp.ge.f32.partialorder %v11786_v20, 0.0 }
 0xa98   : > { %v11787_v57 = vadd.f32 %v7729_v8, %v16132_v12  ;;  %v7731_v41 = vpop.f32.mrb[17].mxu1  ;;  %v7757_v10 = vmul.f32 %v7747_v29, %v16134_v13  ;;  %v7861_v12 = vand.u32 4294901760, %v7860_v55 }
 0xa99   : > { %v11788_v15 = vadd.f32 %v7731_v41, %v16133_v4  ;;  %v7758_v45 = vmul.f32 %v7748_v9, %v16134_v13 }
 0xa9a   : > { %v7749_v14 = vrot.slane %v11787_v57, 4  ;;  %v7765_v31 = vrot.slane %v7757_v10, 4  ;;  %vm7736_vm6 = vcmp.ge.f32.partialorder %v11787_v57, 0.0 }
 0xa9b   : > { %v7751_v17 = vrot.slane %v11788_v15, 4  ;;  %v7768_v53 = vrot.slane %v7758_v45, 4  ;;  %vm7737_vm8 = vcmp.ge.f32.partialorder %v11788_v15, 0.0 }
 0xa9c   : > { %v7750_v39 = vsel %vm16135_vm1, %v7747_v29, %v7749_v14  ;;  %vm16141_vm1 = vmmov %vm16139_vm0 }
 0xa9d   : > { %v7752_v54 = vsel %vm16136_vm5, %v7748_v9, %v7751_v17  ;;  %v7759_v60 = vmul.f32 %v7750_v39, %v7741_v35  ;;  %vm16144_vm5 = vmmov %vm16139_vm0 }
 0xa9e   : > { %v7760_v51 = vmul.f32 %v7752_v54, %v7741_v35 }
 0xa9f   : > { %v7766_v24 = vrot.slane %v7759_v60, 4 }
 0xaa0   : > { %v7769_v48 = vrot.slane %v7760_v51, 4 }
 0xaa1   : > { %v7767_v43 = vsel %vm16137_vm14, %v7765_v31, %v7766_v24  ;;  %v14792_v16 = vsel %vm7736_vm6, %v11787_v57, %v7766_v24  ;;  %vm16163_vm14 = vcmask 523264  }
 0xaa2   : > { %16138 = vst [vmem:[#allocation33_spill] sm:$0xff] %v14792_v16  ;;  %v7770_v50 = vsel %vm16139_vm0, %v7768_v53, %v7769_v48  ;;  %v14795_v26 = vsel %vm7734_vm7, %v11785_v38, %v7767_v43  ;;  %v7783_v25 = vsel %vm16141_vm1, %v14792_v16, 0  ;;  %v14799_v7 = vsel %vm7737_vm8, %v11788_v15, %v7769_v48 }
 0xaa3   : > { %16140 = vst [vmem:[#allocation9_spill] sm:$0xff] %v14795_v26  ;;  %16142 = vst [vmem:[#allocation32_spill] sm:$0xff] %v14799_v7  ;;  %v14801_v58 = vsel %vm7735_vm9, %v11786_v20, %v7770_v50  ;;  %v7786_v0 = vsel %vm16144_vm5, %v14799_v7, 0  ;;  %v7790_v49 = vand.u32 4294901760, %v14795_v26  ;;  %v7794_v11 = vand.u32 4294901760, %v7783_v25 }
 0xaa4   : > { %16143 = vst [vmem:[#allocation10_spill] sm:$0xff] %v14801_v58  ;;  %v7788_v22 = vand.u32 4294901760, %v14801_v58  ;;  %v7792_v3 = vand.u32 4294901760, %v7786_v0  ;;  %vm16159_vm9 = vcmask 277504   ;;  %vm16161_vm8 = vcmask 138240  }
 0xaa5   : > { %v7875_v38 = vsub.f32 %v14795_v26, %v7790_v49  ;;  %v7887_v1 = vsub.f32 %v7783_v25, %v7794_v11  ;;  %v11681_v20 = vpack.c.bf16 %v7794_v11, %v7790_v49  ;;  %vm16164_vm0 = vcmask 31744   ;;  %vm16165_vm1 = vmmov %vm16161_vm8 }
 0xaa6   : > { %v11679_v61 = vpack.c.bf16 %v7792_v3, %v7788_v22  ;;  %v7869_v32 = vsub.f32 %v14801_v58, %v7788_v22  ;;  %v7881_v29 = vsub.f32 %v7786_v0, %v7792_v3  ;;  %vm16166_vm5 = vmmov %vm16159_vm9 }
 0xaa7   : > { %v7876_v8 = vand.u32 4294901760, %v7875_v38  ;;  %v7888_v9 = vand.u32 4294901760, %v7887_v1  ;;  %v11689_v51 = vpack.c.bf16 %v7887_v1, %v7875_v38 }
 0xaa8   : > { %11680 = vmatprep.subr.bf16.mxu1 %v11679_v61  ;;  %v7870_v57 = vand.u32 4294901760, %v7869_v32  ;;  %v7882_v41 = vand.u32 4294901760, %v7881_v29  ;;  %v11687_v60 = vpack.c.bf16 %v7881_v29, %v7869_v32 }
 0xaa9   : > { %11682 = vmatpush1.bf16.msra.mxu1 %v11681_v20  ;;  %v7877_v4 = vsub.f32 %v7875_v38, %v7876_v8  ;;  %v7889_v15 = vsub.f32 %v7887_v1, %v7888_v9  ;;  %v11697_v24 = vpack.c.bf16 %v7888_v9, %v7876_v8  ;;  %v4524_v38 = vld [vmem:[%s15718_s23 + $0x18] sm:$0xff]  ;;  %v4525_v1 = vld [vmem:[%s15718_s23 + $0x20] sm:$0xf] }
 0xaaa   : > { %v7871_v14 = vsub.f32 %v7869_v32, %v7870_v57  ;;  %v7883_v35 = vsub.f32 %v7881_v29, %v7882_v41  ;;  %v11695_v31 = vpack.c.bf16 %v7882_v41, %v7870_v57  ;;  %v4535_v32 = vld [vmem:[%s15720_s25 + $0x20] sm:$0xf]  ;;  %v4534_v29 = vld [vmem:[%s15720_s25 + $0x18] sm:$0xff]  ;;  %v16151_v57 = vmov 2  }
 0xaab   : > { %v7878_v13 = vand.u32 4294901760, %v7877_v4  ;;  %v7890_v10 = vand.u32 4294901760, %v7889_v15 }
 0xaac   : > { %7862 = vmatmul.mubr.f32.vlgmr.msra.gmra.mrb[18].mxu1 %v7861_v12  ;;  %v7872_v17 = vand.u32 4294901760, %v7871_v14  ;;  %v7884_v45 = vand.u32 4294901760, %v7883_v35 }
 0xaad   : > { %7952 = vmatprep.mubr.f32.mxu1 %v16120_v42  ;;  %v11685_v54 = vpack.c.bf16 %v7890_v10, %v7878_v13 }
 0xaae   : > { %v11683_v39 = vpack.c.bf16 %v7884_v45, %v7872_v17 }
 0xab0   : > { %11684 = vmatprep.subr.bf16.mxu1 %v11683_v39 }
 0xab1   : > { %11686 = vmatpush1.bf16.msra.mxu1 %v11685_v54 }
 0xab2   : > { %11688 = vmatprep.subr.bf16.mxu1 %v11687_v60 }
 0xab4   : > { %7954 = vmatmul.mubr.f32.vlgmr.msra.gmra.mrb[18].mxu1 %v14779_v34 }
 0xab5   : > { %11690 = vmatpush1.bf16.msra.mxu1 %v11689_v51  ;;  %8032 = vmatprep.mubr.f32.mxu1 %v16120_v42 }
 0xab6   : > { %11692 = vmatprep.subr.bf16.mxu1 %v11679_v61 }
 0xabc   : > { %8035 = vmatmul.mubr.f32.vlgmr.msra.gmra.mrb[18].mxu1 %v14785_v40  ;;  %v8284_v40 = vpop.permute.xlu1 %8283 }
 0xabd   : > { %11694 = vmatpush1.bf16.msra.mxu1 %v11681_v20  ;;  %8109 = vmatprep.mubr.f32.mxu1 %v16120_v42 }
 0xabe   : > { %11696 = vmatprep.subr.bf16.mxu1 %v11695_v31 }
 0xac0   : > { %v14872_v25 = vpop.permute.xlu1 %8304 }
 0xac4   : > { %8113 = vmatmul.mubr.f32.vlgmr.msra.gmra.mrb[18].mxu1 %v7859_v30  ;;  %v14878_v0 = vpop.permute.xlu1 %8336 }
 0xac5   : > { %11698 = vmatpush1.bf16.msra.mxu1 %v11697_v24  ;;  %8195 = vmatprep.mubr.f32.mxu1 %v16120_v42 }
 0xac6   : > { %11700 = vmatprep.subr.bf16.mxu1 %v11679_v61 }
 0xac8   : > { %v14884_v49 = vpop.permute.xlu1 %8354 }
 0xacc   : > { %8197 = vmatmul.mubr.f32.vlgmr.msra.gmra.mrb[18].mxu1 %v14779_v34  ;;  %v14894_v11 = vpop.permute.xlu1 %8631 }
 0xacd   : > { %11702 = vmatpush1.bf16.msra.mxu1 %v11681_v20  ;;  %8271 = vmatprep.mubr.f32.mxu1 %v16120_v42 }
 0xad0   : > { %v14900_v22 = vpop.permute.xlu1 %8380 }
 0xad4   : > { %8273 = vmatmul.mubr.f32.vlgmr.msra.gmra.mrb[18].mxu1 %v14779_v34  ;;  %v14910_v3 = vpop.permute.xlu1 %8398 }
 0xad5   : > { %8846 = vmatprep.mubr.f32.mxu1 %v16120_v42  ;;  %16147 = vst [vmem:[#allocation14_spill] sm:$0xff] %v14910_v3 }
 0xad8   : > { %v14916_v55 = vpop.permute.xlu1 %8667 }
 0xadc   : > { %v14930_v61 = vpop.permute.xlu1 %8414 }
 0xadd   : > { %16149 = vst [vmem:[#allocation24_spill] sm:$0xff] %v14930_v61 }
 0xae0   : > { %v14940_v20 = vpop.permute.xlu1 %8675 }
 0xae4   : > { %v14944_v9 = vpop.permute.xlu1 %8432 }
 0xae5   : > { %16150 = vst [vmem:[#allocation29_spill] sm:$0xff] %v14944_v9 }
 0xae8   : > { %v14949_v41 = vpop.permute.xlu1 %8693 }
 0xae9   : > { %16152 = vst [vmem:[#allocation15_spill] sm:$0xff] %v14949_v41 }
 0xaec   : > { %v14953_v15 = vpop.permute.xlu1 %8715 }
 0xaed   : > { %16154 = vst [vmem:[#allocation26_spill] sm:$0xff] %v14953_v15 }
 0xba7   : > { %v8274_v53 = vpop.f32.mrb[18].mxu1 }
 0xba8   : > { %vm8279_vm7 = vcmp.ge.f32.partialorder %v8274_v53, 0.0  ;;  %v8286_v48 = vmul.f32 %v8284_v40, %v8274_v53  ;;  %v8276_v43 = vpop.f32.mrb[19].mxu1 }
 0xba9   : > { %v8287_v34 = vmul.f32 %v8284_v40, %v8276_v43  ;;  %vm8280_vm6 = vcmp.ge.f32.partialorder %v8276_v43, 0.0 }
 0xbaa   : > { %v14820_v50 = vsel %vm8279_vm7, %v8274_v53, %v8286_v48  ;;  %vm16167_vm7 = vcmask 1039360  }
 0xbab   : > { %16145 = vst [vmem:[#allocation34_spill] sm:$0xff] %v14820_v50  ;;  %8439 = vrot.lane.b32.xlu0 %v14820_v50, %s15977_s6  ;;  %8292 = vrot.lane.b32.xlu1 %v14820_v50, %s16046_s15  ;;  %v14858_v30 = vsel %vm8280_vm6, %v8276_v43, %v8287_v34  ;;  %vm16168_vm6 = vcmask 1031168  }
 0xbaf   : > { %8309 = vrot.lane.b32.xlu0 %v14820_v50, %s15979_s29  ;;  %8457 = vrot.lane.b32.xlu1 %v14820_v50, %s15981_s11 }
 0xbb3   : > { %8325 = vrot.lane.b32.xlu0 %v14820_v50, %s15971_s1  ;;  %8343 = vrot.lane.b32.xlu1 %v14820_v50, %s15972_s30 }
 0xbb7   : > { %8473 = vrot.lane.b32.xlu0 %v14820_v50, %s15983_s14  ;;  %8605 = vrot.lane.b32.xlu1 %v14820_v50, %s15978_s3 }
 0xbbb   : > { %8493 = vrot.lane.b32.xlu0 %v14820_v50, %s15985_s27  ;;  %8622 = vrot.lane.b32.xlu1 %v14820_v50, %s15982_s13 }
 0xbbf   : > { %8369 = vrot.lane.b32.xlu0 %v14820_v50, %s15973_s7  ;;  %8638 = vrot.lane.b32.xlu1 %v14820_v50, %s15984_s28 }
 0xbc3   : > { %8387 = vrot.lane.b32.xlu0 %v14820_v50, %s15974_s10  ;;  %8521 = vrot.lane.b32.xlu1 %v14820_v50, %s15980_s12 }
 0xbc7   : > { %8405 = vrot.lane.b32.xlu0 %v14820_v50, %s15975_s8  ;;  %8656 = vrot.lane.b32.xlu1 %v14820_v50, %s15987_s18 }
 0xbcb   : > { %8561 = vrot.lane.b32.xlu0 %v14820_v50, %s16050_s21  ;;  %8541 = vrot.lane.b32.xlu1 %v14820_v50, %s16047_s17 }
 0xbcf   : > { %8421 = vrot.lane.b32.xlu1 %v14820_v50, %s15976_s2  ;;  %8294 = vrot.lane.b32.xlu0 %v14858_v30, %s16046_s15 }
 0xbd3   : > { %8577 = vrot.lane.b32.xlu1 %v14820_v50, %s16146_s9  ;;  %8345 = vrot.lane.b32.xlu0 %v14858_v30, %s15972_s30 }
 0xbd7   : > { %8441 = vrot.lane.b32.xlu1 %v14858_v30, %s15977_s6  ;;  %8607 = vrot.lane.b32.xlu0 %v14858_v30, %s15978_s3  ;;  %s16242_s6 = sld [smem:[#allocation54_spill]] }
 0xbdb   : > { %8311 = vrot.lane.b32.xlu1 %v14858_v30, %s15979_s29  ;;  %8371 = vrot.lane.b32.xlu0 %v14858_v30, %s15973_s7 }
 0xbdf   : > { %8327 = vrot.lane.b32.xlu1 %v14858_v30, %s15971_s1  ;;  %8523 = vrot.lane.b32.xlu0 %v14858_v30, %s15980_s12 }
 0xbe3   : > { %8459 = vrot.lane.b32.xlu1 %v14858_v30, %s15981_s11  ;;  %8624 = vrot.lane.b32.xlu0 %v14858_v30, %s15982_s13  ;;  %s16148_s13 = smov 124   ;;  %s16218_s11 = sld [smem:[#allocation53_spill]] }
 0xbe7   : > { %8475 = vrot.lane.b32.xlu1 %v14858_v30, %s15983_s14  ;;  %8640 = vrot.lane.b32.xlu0 %v14858_v30, %s15984_s28  ;;  %s16231_s28 = sld [smem:[#allocation57_spill]] }
 0xbeb   : > { %8495 = vrot.lane.b32.xlu1 %v14858_v30, %s15985_s27  ;;  %8389 = vrot.lane.b32.xlu0 %v14858_v30, %s15974_s10 }
 0xbef   : > { %8407 = vrot.lane.b32.xlu1 %v14858_v30, %s15975_s8  ;;  %8543 = vrot.lane.b32.xlu0 %v14858_v30, %s16047_s17  ;;  %s12151_s17 = smov 125  }
 0xbf3   : > { %8423 = vrot.lane.b32.xlu1 %v14858_v30, %s15976_s2  ;;  %8658 = vrot.lane.b32.xlu0 %v14858_v30, %s15987_s18  ;;  %s16217_s18 = sld [smem:[#allocation44_spill]] }
 0xbf7   : > { %8579 = vrot.lane.b32.xlu1 %v14858_v30, %s16146_s9  ;;  %8563 = vrot.lane.b32.xlu0 %v14858_v30, %s16050_s21  ;;  %s16215_s9 = sld [smem:[#allocation59_spill]]  ;;  %s16257_s21 = sld [smem:[#allocation3_spill]] }
 0xbfb   : > { %8727 = vperm.xlu1 %12085, %v14748_v46   ;;  %8684 = vrot.lane.b32.xlu0 %v14858_v30, %s16148_s13  ;;  %v14932_v46 = vpop.permute.xlu0 %8318 }
 0xbfd   : > { %s16258_s16 = sshll.u32 %s16257_s21, 1 }
 0xbff   : > { %12086 = vset.pattern.permute.xlu1 %v16124_v56  ;;  %8682 = vrot.lane.b32.xlu0 %v14820_v50, %s16148_s13  ;;  %v14942_v8 = vpop.permute.xlu0 %8362  ;;  %s16216_s13 = sld [smem:[#allocation4_spill]] }
 0xc00   : > { %8750 = vperm.xlu1 %12086, %v4524_v38  }
 0xc03   : > { %8755 = vperm.xlu0 %12083, %v4525_v1   ;;  %v14946_v12 = vpop.permute.xlu0 %8649 }
 0xc04   : > { %9329 = vperm.xlu1 %12086, %v4535_v32  }
 0xc05   : > { %s1004_s3 = scalar_lea.vmem %s16217_s18, %s16216_s13  ;;  %s16269_s18 = sld [smem:[#allocation61_spill]] }
 0xc07   : > { %9324 = vperm.xlu0 %12083, %v4534_v29   ;;  %v14951_v4 = vpop.permute.xlu0 %8705 }
 0xc08   : > { %16153 = vst [vmem:[#allocation12_spill] sm:$0xff] %v14951_v4 }
 0xc0b   : > { %12088 = vset.pattern.permute.xlu0 %v16151_v57  ;;  %v14955_v14 = vpop.permute.xlu0 %8617 }
 0xc1d   : > { %v14957_v35 = vpop.permute.xlu0 %8439  ;;  %v8293_v13 = vpop.permute.xlu1 %8292 }
 0xc1e   : > { %v8446_v32 = vsel %vm16159_vm9, 0.0, %v14957_v35  ;;  %v8299_v56 = vsel %vm16161_vm8, 0.0, %v8293_v13  ;;  %vm16170_vm9 = vmmov %vm16167_vm7  ;;  %vm16176_vm8 = vcmask 801792  }
 0xc1f   : > { %v8447_v52 = vmul.f32 %v8446_v32, %v16011_v23  ;;  %v8300_v42 = vmul.f32 %v8299_v56, %v16086_v28 }
 0xc21   : > { %v14959_v10 = vpop.permute.xlu0 %8309  ;;  %v14961_v17 = vpop.permute.xlu1 %8457  ;;  %v8451_v15 = vrot.slane %v8447_v52, 4 }
 0xc22   : > { %v8463_v18 = vsel %vm5231_vm12, 0.0, %v14961_v17  ;;  %v8316_v58 = vsel %vm3772_vm3, 0.0, %v14959_v10 }
 0xc23   : > { %v8465_v26 = vrot.slane %v8463_v18, 4  ;;  %v8321_v41 = vmul.f32 %v14932_v46, %v8316_v58  ;;  %v8307_v18 = vmul.f32 %v14872_v25, %v8300_v42  ;;  %v8365_v42 = vmul.f32 %v14942_v8, %v14820_v50 }
 0xc25   : > { %v14963_v45 = vpop.permute.xlu0 %8325  ;;  %v14965_v39 = vpop.permute.xlu1 %8343  ;;  %v8323_v58 = vadd.f32 %v8321_v41, %v8307_v18  ;;  %v8514_v18 = vrot.slane %v14858_v30, 4 }
 0xc26   : > { %v8332_v57 = vsel %vm3789_vm2, 0.0, %v14963_v45  ;;  %v8350_v61 = vsel %vm3819_vm4, 0.0, %v14965_v39 }
 0xc27   : > { %v8333_v32 = vmul.f32 %v8332_v57, %v13542_v33  ;;  %v8455_v57 = vmul.f32 %v8451_v15, %v14872_v25 }
 0xc29   : > { %v14967_v54 = vpop.permute.xlu0 %8473  ;;  %v14969_v60 = vpop.permute.xlu1 %8605  ;;  %v8339_v56 = vmul.f32 %v14878_v0, %v8333_v32 }
 0xc2a   : > { %v8480_v44 = vsel %vm5248_vm15, 0.0, %v14967_v54  ;;  %v8612_v52 = vsel %vm5397_vm10, 0.0, %v14969_v60 }
 0xc2b   : > { %v8481_v36 = vmul.f32 %v8480_v44, %v16092_v5 }
 0xc2d   : > { %v14971_v51 = vpop.permute.xlu0 %8493  ;;  %v14973_v31 = vpop.permute.xlu1 %8622  ;;  %v8485_v44 = vrot.slane %v8481_v36, 4  ;;  %v8351_v36 = vmul.f32 %v8350_v61, %v16086_v28 }
 0xc2e   : > { %v8500_v59 = vsel %vm5280_vm13, 0.0, %v14971_v51  ;;  %v8629_v15 = vsel %vm16163_vm14, 0.0, %v14973_v31 }
 0xc2f   : > { %v8501_v4 = vmul.f32 %v8500_v59, %v16011_v23  ;;  %v8341_v23 = vadd.f32 %v8339_v56, %v8323_v58  ;;  %v8634_v56 = vmul.f32 %v14894_v11, %v8629_v15 }
 0xc31   : > { %v14975_v24 = vpop.permute.xlu0 %8369  ;;  %v14977_v40 = vpop.permute.xlu1 %8638  ;;  %v8505_v59 = vrot.slane %v8501_v4, 4  ;;  %v8613_v4 = vmul.f32 %v8612_v52, %v16085_v21 }
 0xc35   : > { %v14979_v53 = vpop.permute.xlu0 %8387  ;;  %v14981_v48 = vpop.permute.xlu1 %8521 }
 0xc39   : > { %v14983_v43 = vpop.permute.xlu0 %8405  ;;  %v14985_v34 = vpop.permute.xlu1 %8656 }
 0xc3a   : > { %16155 = vst [vmem:[#allocation13_spill] sm:$0xff] %v14983_v43  ;;  %16156 = vst [vmem:[#allocation11_spill] sm:$0xff] %v14985_v34  ;;  %v8663_v61 = vsel %vm16164_vm0, 0.0, %v14985_v34  ;;  %vm16181_vm0 = vcmask 916480  }
 0xc3d   : > { %v14987_v38 = vpop.permute.xlu0 %8561  ;;  %v14989_v1 = vpop.permute.xlu1 %8541 }
 0xc3e   : > { %16157 = vst [vmem:[#allocation21_spill] sm:$0xff] %v14987_v38  ;;  %16158 = vst [vmem:[#allocation35_spill] sm:$0xff] %v14989_v1  ;;  %v8509_v1 = vmul.f32 %v8505_v59, %v14884_v49 }
 0xc41   : > { %v14993_v29 = vpop.permute.xlu1 %8421  ;;  %v8295_v6 = vpop.permute.xlu0 %8294 }
 0xc42   : > { %16160 = vst [vmem:[#allocation19_spill] sm:$0xff] %v14993_v29  ;;  %v8489_v29 = vmul.f32 %v8485_v44, %v14878_v0  ;;  %v8296_v41 = vsel %vm16165_vm1, %v8293_v13, %v8295_v6  ;;  %v8513_v44 = vrot.slane %v14820_v50, 4  ;;  %v8664_v6 = vmul.f32 %v8663_v61, %v16085_v21  ;;  %vm16182_vm1 = vmmov %vm16181_vm0 }
 0xc43   : > { %v8301_v13 = vmul.f32 %v8296_v41, %v13537_v37 }
 0xc44   : > { %v8670_v41 = vmul.f32 %v14916_v55, %v8664_v6 }
 0xc45   : > { %v15006_v7 = vpop.permute.xlu1 %8577  ;;  %v8346_v16 = vpop.permute.xlu0 %8345 }
 0xc46   : > { %16162 = vst [vmem:[#allocation20_spill] sm:$0xff] %v15006_v7  ;;  %v8469_v7 = vmul.f32 %v8465_v26, %v14932_v46  ;;  %v8645_v26 = vsel %vm5442_vm11, 0.0, %v14977_v40  ;;  %v8347_v15 = vsel %vm3819_vm4, %v14965_v39, %v8346_v16  ;;  %v8308_v16 = vmul.f32 %v14872_v25, %v8301_v13 }
 0xc47   : > { %v8646_v28 = vmul.f32 %v8645_v26, %v16106_v27  ;;  %v8620_v26 = vmul.f32 %v14955_v14, %v8613_v4 }
 0xc48   : > { %v8471_v32 = vadd.f32 %v8469_v7, %v8455_v57  ;;  %v8357_v7 = vmul.f32 %v14884_v49, %v8351_v36 }
 0xc49   : > { %v8442_v9 = vpop.permute.xlu1 %8441  ;;  %v15014_v38 = vpop.permute.xlu0 %8607 }
 0xc4a   : > { %v8491_v57 = vadd.f32 %v8489_v29, %v8471_v32  ;;  %v8443_v52 = vsel %vm16166_vm5, %v14957_v35, %v8442_v9  ;;  %v15052_v29 = vmul.f32 %v14940_v20, %v14858_v30  ;;  %v8359_v36 = vadd.f32 %v8357_v7, %v8341_v23 }
 0xc4b   : > { %v8652_v32 = vmul.f32 %v14946_v12, %v8646_v28  ;;  %v15066_v23 = vmul.f32 %v8514_v18, %v14942_v8  ;;  %v8636_v28 = vadd.f32 %v8634_v56, %v8620_v26  ;;  %vm16184_vm5 = vcmask 908288  }
 0xc4c   : > { %v8511_v35 = vadd.f32 %v8509_v1, %v8491_v57  ;;  %v8367_v57 = vadd.f32 %v8365_v42, %v8359_v36 }
 0xc4d   : > { %v8312_v43 = vpop.permute.xlu1 %8311  ;;  %v8372_v3 = vpop.permute.xlu0 %8371  ;;  %v8654_v18 = vadd.f32 %v8652_v32, %v8636_v28 }
 0xc4e   : > { %v8313_v50 = vsel %vm3772_vm3, %v14959_v10, %v8312_v43  ;;  %v8448_v10 = vmul.f32 %v8443_v52, %v13994_v19  ;;  %v8517_v43 = vmul.f32 %v8513_v44, %v14942_v8  ;;  %v8373_v44 = vsel %vm16167_vm7, %v14975_v24, %v8372_v3  ;;  %vm16185_vm7 = vmmov %vm16184_vm5 }
 0xc4f   : > { %v8322_v4 = vmul.f32 %v14932_v46, %v8313_v50  ;;  %v15084_v52 = vsel %vm5397_vm10, %v14969_v60, %v15014_v38  ;;  %v15094_v36 = vadd.f32 %v8670_v41, %v8654_v18 }
 0xc50   : > { %v8452_v7 = vrot.slane %v8448_v10, 4  ;;  %v8519_v56 = vadd.f32 %v8517_v43, %v8511_v35  ;;  %v8614_v32 = vmul.f32 %v15084_v52, %v16079_v47 }
 0xc51   : > { %v8328_v58 = vpop.permute.xlu1 %8327  ;;  %v8524_v34 = vpop.permute.xlu0 %8523 }
 0xc52   : > { %v8329_v59 = vsel %vm3789_vm2, %v14963_v45, %v8328_v58  ;;  %v15062_v45 = vmul.f32 %v14942_v8, %v14858_v30  ;;  %v8352_v30 = vmul.f32 %v8347_v15, %v13537_v37  ;;  %v8525_v50 = vsel %vm16168_vm6, %v14981_v48, %v8524_v34 }
 0xc53   : > { %v8334_v9 = vmul.f32 %v8329_v59, %v13545_v63  ;;  %v8376_v59 = vsel %vm16170_vm9, %v8372_v3, 0.0  ;;  %v8377_v48 = vmul.f32 %v8373_v44, %v13542_v33  ;;  %v8529_v26 = vmul.f32 %v8525_v50, %v16092_v5 }
 0xc54   : > { %v8358_v60 = vmul.f32 %v14884_v49, %v8352_v30  ;;  %v8456_v35 = vmul.f32 %v8452_v7, %v14872_v25  ;;  %v8701_v3 = vsel %vm5397_vm10, %v15014_v38, 0.0  ;;  %v8378_v10 = vmul.f32 %v8376_v59, %v13545_v63  ;;  %v16175_v59 = vld [vmem:[#allocation35_spill] sm:$0xff] }
 0xc55   : > { %v8460_v61 = vpop.permute.xlu1 %8459  ;;  %v15069_v1 = vpop.permute.xlu0 %8624  ;;  %v8340_v8 = vmul.f32 %v14878_v0, %v8334_v9  ;;  %v8383_v28 = vmul.f32 %v14900_v22, %v8377_v48  ;;  %v8533_v41 = vrot.slane %v8529_v26, 4  ;;  %vm16171_vm10 = vcmask 924672  }
 0xc56   : > { %v8461_v39 = vsel %vm5231_vm12, %v14961_v17, %v8460_v61  ;;  %v8324_v17 = vadd.f32 %v8322_v4, %v8308_v16  ;;  %vm16169_vm12 = vmmov %vm16168_vm6  ;;  %v8621_v44 = vmul.f32 %v14955_v14, %v8614_v32  ;;  %vm16187_vm6 = vcmask 31744  }
 0xc57   : > { %v8528_v58 = vsel %vm16169_vm12, %v8524_v34, 0.0  ;;  %v8466_v6 = vrot.slane %v8461_v39, 4  ;;  %v8385_v26 = vadd.f32 %v8383_v28, %v8367_v57  ;;  %vm16190_vm12 = vcmask 769024  }
 0xc58   : > { %v8342_v9 = vadd.f32 %v8340_v8, %v8324_v17  ;;  %v8530_v15 = vmul.f32 %v8528_v58, %v16076_v2  ;;  %v15125_v8 = vmul.f32 %v8701_v3, %v16079_v47  ;;  %v16174_v17 = vld [vmem:[#allocation7_spill] sm:$0xff]  ;;  %v16178_v3 = vld [vmem:[#allocation25_spill] sm:$0xff]  ;;  %vm16191_vm9 = vmmov %vm16190_vm12 }
 0xc59   : > { %v8476_v13 = vpop.permute.xlu1 %8475  ;;  %v15087_v24 = vpop.permute.xlu0 %8640 }
 0xc5a   : > { %v8477_v42 = vsel %vm5248_vm15, %v14967_v54, %v8476_v13  ;;  %v8470_v54 = vmul.f32 %v8466_v6, %v14932_v46  ;;  %v15109_v4 = vsel %vm5442_vm11, %v14977_v40, %v15087_v24  ;;  %v8360_v39 = vadd.f32 %v8358_v60, %v8342_v9  ;;  %vm16172_vm15 = vmmov %vm16163_vm14 }
 0xc5b   : > { %v8482_v34 = vmul.f32 %v8477_v42, %v16076_v2  ;;  %v15119_v46 = vsel %vm16172_vm15, %v14973_v31, %v15069_v1  ;;  %v8534_v50 = vrot.slane %v8530_v15, 4  ;;  %v8537_v13 = vmul.f32 %v8533_v41, %v14900_v22  ;;  %vm16177_vm14 = vmmov %vm16176_vm8 }
 0xc5c   : > { %v8635_v14 = vmul.f32 %v14894_v11, %v15119_v46  ;;  %v8368_v9 = vadd.f32 %v15062_v45, %v8360_v39  ;;  %v16180_v45 = vld [vmem:[#allocation13_spill] sm:$0xff] }
 0xc5d   : > { %v8486_v43 = vrot.slane %v8482_v34, 4  ;;  %v8496_v61 = vpop.permute.xlu1 %8495  ;;  %v8390_v25 = vpop.permute.xlu0 %8389 }
 0xc5e   : > { %v8497_v38 = vsel %vm5280_vm13, %v14971_v51, %v8496_v61  ;;  %v8391_v16 = vsel %vm16171_vm10, %v14979_v53, %v8390_v25  ;;  %v8647_v51 = vmul.f32 %v15109_v4, %v16081_v62  ;;  %v8472_v53 = vadd.f32 %v8470_v54, %v8456_v35  ;;  %vm16173_vm13 = vmmov %vm16171_vm10  ;;  %v16179_v54 = vld [vmem:[#allocation14_spill] sm:$0xff] }
 0xc5f   : > { %v8490_v40 = vmul.f32 %v8486_v43, %v14878_v0  ;;  %v8502_v30 = vmul.f32 %v8497_v38, %v13994_v19  ;;  %v8394_v7 = vsel %vm16173_vm13, %v8390_v25, 0.0  ;;  %v8395_v31 = vmul.f32 %v8391_v16, %v16174_v17 }
 0xc60   : > { %v8384_v0 = vmul.f32 %v14900_v22, %v8378_v10  ;;  %v8653_v34 = vmul.f32 %v14946_v12, %v8647_v51  ;;  %v8396_v35 = vmul.f32 %v8394_v7, %v13537_v37  ;;  %v8538_v10 = vmul.f32 %v8534_v50, %v14900_v22  ;;  %v16186_v51 = vld [vmem:[#allocation11_spill] sm:$0xff] }
 0xc61   : > { %v8506_v18 = vrot.slane %v8502_v30, 4  ;;  %v8408_v58 = vpop.permute.xlu1 %8407  ;;  %v8544_v6 = vpop.permute.xlu0 %8543  ;;  %v8492_v42 = vadd.f32 %v8490_v40, %v8472_v53  ;;  %v8401_v43 = vmul.f32 %v16179_v54, %v8395_v31  ;;  %v8637_v28 = vadd.f32 %v8635_v14, %v8621_v44  ;;  %v16183_v40 = vld [vmem:[#allocation19_spill] sm:$0xff]  ;;  %v16188_v53 = vld [vmem:[#allocation24_spill] sm:$0xff] }
 0xc62   : > { %v8545_v48 = vsel %vm16176_vm8, %v16175_v59, %v8544_v6  ;;  %v8548_v32 = vsel %vm16177_vm14, %v8544_v6, 0.0  ;;  %v8409_v12 = vsel %vm16181_vm0, %v16180_v45, %v8408_v58  ;;  %v8412_v41 = vsel %vm16182_vm1, %v8408_v58, 0.0 }
 0xc63   : > { %v8510_v60 = vmul.f32 %v8506_v18, %v14884_v49  ;;  %v8549_v15 = vmul.f32 %v8545_v48, %v16178_v3  ;;  %v8550_v57 = vmul.f32 %v8548_v32, %v13994_v19  ;;  %v8539_v49 = vadd.f32 %v8537_v13, %v8519_v56  ;;  %v16189_v13 = vld [vmem:[#allocation20_spill] sm:$0xff] }
 0xc64   : > { %v8386_v16 = vadd.f32 %v8384_v0, %v8368_v9  ;;  %v8655_v30 = vadd.f32 %v8653_v34, %v8637_v28  ;;  %v8402_v50 = vmul.f32 %v16179_v54, %v8396_v35  ;;  %v8403_v44 = vadd.f32 %v8401_v43, %v8385_v26  ;;  %v16192_v35 = vld [vmem:[#allocation21_spill] sm:$0xff] }
 0xc65   : > { %v8512_v11 = vadd.f32 %v8510_v60, %v8492_v42  ;;  %v8424_v61 = vpop.permute.xlu1 %8423  ;;  %v8659_v25 = vpop.permute.xlu0 %8658  ;;  %v8553_v39 = vrot.slane %v8549_v15, 4  ;;  %v8417_v18 = vmul.f32 %v16188_v53, %v8409_v12  ;;  %v8418_v7 = vmul.f32 %v16188_v53, %v8412_v41 }
 0xc66   : > { %v8425_v22 = vsel %vm16184_vm5, %v16183_v40, %v8424_v61  ;;  %v8428_v19 = vsel %vm16185_vm7, %v8424_v61, 0.0  ;;  %v8660_v56 = vsel %vm16187_vm6, %v16186_v51, %v8659_v25  ;;  %v8554_v31 = vrot.slane %v8550_v57, 4 }
 0xc67   : > { %v8520_v38 = vadd.f32 %v15066_v23, %v8512_v11  ;;  %v8429_v6 = vmul.f32 %v8425_v22, %v13542_v33  ;;  %v8665_v0 = vmul.f32 %v8660_v56, %v16079_v47  ;;  %v8557_v42 = vmul.f32 %v8553_v39, %v16179_v54 }
 0xc68   : > { %v8430_v26 = vmul.f32 %v8428_v19, %v13545_v63  ;;  %vm16193_vm10 = vcmask 785408   ;;  %v8404_v3 = vadd.f32 %v8402_v50, %v8386_v16  ;;  %v8558_v15 = vmul.f32 %v8554_v31, %v16179_v54  ;;  %v16199_v31 = vld [vmem:[#allocation34_spill] sm:$0xff] }
 0xc69   : > { %v8580_v23 = vpop.permute.xlu1 %8579  ;;  %v8564_v58 = vpop.permute.xlu0 %8563  ;;  %v8540_v48 = vadd.f32 %v8538_v10, %v8520_v38  ;;  %v8671_v9 = vmul.f32 %v14916_v55, %v8665_v0  ;;  %vm16194_vm15 = vmmov %vm16193_vm10  ;;  %vm16195_vm13 = vcmask 1014784   ;;  %v8419_v28 = vadd.f32 %v8417_v18, %v8403_v44  ;;  %v16196_v55 = vld [vmem:[#allocation29_spill] sm:$0xff]  ;;  %v16200_v0 = vld [vmem:[#allocation12_spill] sm:$0xff] }
 0xc6a   : > { %v8581_v14 = vsel %vm16190_vm12, %v16189_v13, %v8580_v23  ;;  %v8584_v59 = vsel %vm16191_vm9, %v8580_v23, 0.0  ;;  %v8565_v32 = vsel %vm16193_vm10, %v16192_v35, %v8564_v58  ;;  %v8567_v47 = vsel %vm16194_vm15, %v8564_v58, 0.0  ;;  %vm16198_vm8 = vmmov %vm16195_vm13 }
 0xc6b   : > { %v8585_v60 = vmul.f32 %v8581_v14, %v16092_v5  ;;  %v8586_v34 = vmul.f32 %v8584_v59, %v16076_v2  ;;  %v8569_v10 = vrot.slane %v8565_v32, 4  ;;  %v8673_v57 = vadd.f32 %v8671_v9, %v8655_v30  ;;  %v16197_v30 = vld [vmem:[#allocation15_spill] sm:$0xff] }
 0xc6c   : > { %v8570_v25 = vrot.slane %v8567_v47, 4  ;;  %v8435_v45 = vmul.f32 %v16196_v55, %v8429_v6  ;;  %v8559_v41 = vadd.f32 %v8557_v42, %v8539_v49  ;;  %v8560_v38 = vadd.f32 %v8558_v15, %v8540_v48  ;;  %v4529_v49 = vld [vmem:[%s15719_s24 + $0x18] sm:$0xff] }
 0xc6d   : > { %v8589_v11 = vrot.slane %v8585_v60, 4  ;;  %v8685_v43 = vpop.permute.xlu0 %8684  ;;  %v8590_v61 = vrot.slane %v8586_v34, 4  ;;  %v8573_v2 = vmul.f32 %v8569_v10, %v16188_v53  ;;  %v8436_v16 = vmul.f32 %v16196_v55, %v8430_v26 }
 0xc6e   : > { %v8689_v5 = vsel %vm16195_vm13, %v8685_v43, 0.0  ;;  %v8574_v54 = vmul.f32 %v8570_v25, %v16188_v53  ;;  %v8420_v39 = vadd.f32 %v8418_v7, %v8404_v3  ;;  %v8681_v22 = vadd.f32 %v15052_v29, %v8673_v57 }
 0xc6f   : > { %v8691_v12 = vmul.f32 %v8689_v5, %v16081_v62  ;;  %v8593_v40 = vmul.f32 %v8589_v11, %v16196_v55  ;;  %v8594_v51 = vmul.f32 %v8590_v61, %v16196_v55  ;;  %v8575_v56 = vadd.f32 %v8573_v2, %v8559_v41 }
 0xc70   : > { %v8576_v44 = vadd.f32 %v8574_v54, %v8560_v38  ;;  %v8678_v53 = vmul.f32 %v14940_v20, %v16199_v31  ;;  %v8702_v7 = vmul.f32 %v15084_v52, %v16085_v21  ;;  %v8437_v58 = vadd.f32 %v8435_v45, %v8419_v28 }
 0xc71   : > { %v8697_v50 = vmul.f32 %v16197_v30, %v8691_v12  ;;  %v8683_v19 = vpop.permute.xlu0 %8682  ;;  %v8438_v6 = vadd.f32 %v8436_v16, %v8420_v39  ;;  %v8709_v13 = vmul.f32 %v16200_v0, %v15125_v8  ;;  %vm16201_vm14 = vcmask 97280   ;;  %v16203_v8 = vld [vmem:[#allocation26_spill] sm:$0xff] }
 0xc72   : > { %v8686_v18 = vsel %vm16198_vm8, %v8683_v19, %v8685_v43  ;;  %v8680_v14 = vadd.f32 %v8678_v53, %v15094_v36  ;;  %v8767_v48 = vsel %vm16201_vm14, %v4529_v49, 0  ;;  %vm16202_vm0 = vcmask 523264   ;;  %v4530_v36 = vld [vmem:[%s15719_s24 + $0x20] sm:$0xf] }
 0xc73   : > { %v8699_v29 = vadd.f32 %v8697_v50, %v8681_v22  ;;  %v8690_v23 = vmul.f32 %v8686_v18, %v16106_v27  ;;  %v8713_v20 = vsel %vm16202_vm0, %v15069_v1, 0.0  ;;  %v8723_v21 = vsel %vm5442_vm11, %v15087_v24, 0.0  ;;  %vm16204_vm11 = vmmov %vm16201_vm14 }
 0xc74   : > { %v8595_v52 = vadd.f32 %v8593_v40, %v8575_v56  ;;  %v8596_v42 = vadd.f32 %v8594_v51, %v8576_v44  ;;  %v8708_v26 = vmul.f32 %v16200_v0, %v8702_v7  ;;  %v8718_v34 = vmul.f32 %v16203_v8, %v15119_v46 }
 0xc75   : > { %v8696_v59 = vmul.f32 %v16197_v30, %v8690_v23  ;;  %v8711_v9 = vadd.f32 %v8709_v13, %v8699_v29  ;;  %v8599_v35 = vrot.slane %v8437_v58, 4  ;;  %v8600_v32 = vrot.slane %v8438_v6, 4 }
 0xc76   : > { %v15206_v47 = vand.u32 4294901760, %v8767_v48  ;;  %v8719_v1 = vmul.f32 %v16203_v8, %v8713_v20  ;;  %v8724_v24 = vmul.f32 %v15109_v4, %v16106_v27  ;;  %v8725_v3 = vmul.f32 %v8723_v21, %v16081_v62 }
 0xc77   : > { %v8698_v60 = vadd.f32 %v8696_v59, %v8680_v14  ;;  %v8603_v10 = vadd.f32 %v8599_v35, %v8595_v52  ;;  %v8604_v43 = vadd.f32 %v8600_v32, %v8596_v42  ;;  %v8770_v57 = vsel %vm16204_vm11, %v4530_v36, 0 }
 0xc78   : > { %v8721_v25 = vadd.f32 %v8719_v1, %v8711_v9  ;;  %v15214_v45 = vsub.f32 %v8767_v48, %v15206_v47  ;;  %v15216_v2 = vand.u32 4294901760, %v8770_v57  ;;  %vm16205_vm1 = vcmask 1043456  }
 0xc79   : > { %v8710_v15 = vadd.f32 %v8708_v26, %v8698_v60  ;;  %v8736_v27 = vrot.slane %v8603_v10, 4  ;;  %v8737_v4 = vrot.slane %v8604_v43, 4  ;;  %v8742_v62 = vsel %vm16205_vm1, %v8437_v58, %v8603_v10  ;;  %vm16206_vm5 = vmmov %vm16205_vm1 }
 0xc7a   : > { %v8728_v11 = vpop.permute.xlu1 %8727  ;;  %v8743_v12 = vsel %vm16206_vm5, %v8438_v6, %v8604_v43  ;;  %vm8744_vm7 = vcmp.ge.f32.partialorder %v8742_v62, 0.0  ;;  %v8849_v50 = vand.u32 4294901760, %v15214_v45  ;;  %v15222_v19 = vsub.f32 %v8770_v57, %v15216_v2  ;;  %vm16207_vm10 = vmmov %vm16205_vm1 }
 0xc7b   : > { %v8720_v61 = vadd.f32 %v8718_v34, %v8710_v15  ;;  %v8730_v46 = vmul.f32 %v8728_v11, %v8724_v24  ;;  %v8731_v5 = vmul.f32 %v8728_v11, %v8725_v3  ;;  %vm8745_vm6 = vcmp.ge.f32.partialorder %v8743_v12, 0.0  ;;  %vm16208_vm15 = vmmov %vm16205_vm1 }
 0xc7c   : > { %v8850_v58 = vsub.f32 %v15214_v45, %v8849_v50  ;;  %v8860_v6 = vand.u32 4294901760, %v15222_v19  ;;  %v16209_v11 = vmov 0.0   ;;  %vm16214_vm11 = vmmov %vm16205_vm1  ;;  %vm9366_vm5 = vcmask 1042432  }
 0xc7d   : > { %v8732_v28 = vadd.f32 %v8730_v46, %v8720_v61  ;;  %v8733_v55 = vadd.f32 %v8731_v5, %v8721_v25 }
 0xc7e   : > { %v8851_v42 = vand.u32 4294901760, %v8850_v58  ;;  %v8861_v26 = vsub.f32 %v15222_v19, %v8860_v6 }
 0xc7f   : > { %v8751_v41 = vpop.permute.xlu1 %8750  ;;  %v8740_v38 = vadd.f32 %v8736_v27, %v8732_v28  ;;  %v8741_v16 = vadd.f32 %v8737_v4, %v8733_v55  ;;  %v16210_v28 = vld [vmem:[#allocation9_spill] sm:$0xff]  ;;  %v16211_v4 = vld [vmem:[#allocation10_spill] sm:$0xff] }
 0xc80   : > { %v8758_v54 = vmul.f32 %v8751_v41, %v8742_v62  ;;  %v8759_v39 = vmul.f32 %v8751_v41, %v8743_v12  ;;  %v8862_v32 = vand.u32 4294901760, %v8861_v26 }
 0xc81   : > { %vm8746_vm12 = vcmp.ge.f32.partialorder %v8740_v38, 0.0  ;;  %vm8747_vm9 = vcmp.ge.f32.partialorder %v8741_v16, 0.0 }
 0xc82   : > { %v8762_v40 = vsel %vm8744_vm7, %v8742_v62, %v8758_v54  ;;  %v8763_v22 = vsel %vm8745_vm6, %v8743_v12, %v8759_v39  ;;  %v8756_v30 = vpop.permute.xlu0 %8755  ;;  %vm9361_vm7 = vcmask 1046528   ;;  %vm9354_vm6 = vcmask 1040384  }
 0xc83   : > { %v8780_v51 = vand.u32 4294901760, %v8762_v40  ;;  %v8760_v56 = vmul.f32 %v8756_v30, %v8740_v38  ;;  %v8761_v44 = vmul.f32 %v8756_v30, %v8741_v16  ;;  %v8778_v18 = vand.u32 4294901760, %v8763_v22 }
 0xc85   : > { %v8876_v49 = vsub.f32 %v8762_v40, %v8780_v51  ;;  %v8764_v31 = vsel %vm8746_vm12, %v8740_v38, %v8760_v56  ;;  %v8765_v53 = vsel %vm8747_vm9, %v8741_v16, %v8761_v44  ;;  %v8870_v7 = vsub.f32 %v8763_v22, %v8778_v18  ;;  %v16212_v16 = vld [vmem:[#allocation33_spill] sm:$0xff]  ;;  %v16213_v40 = vld [vmem:[#allocation32_spill] sm:$0xff] }
 0xc86   : > { %v8773_v29 = vsel %vm16207_vm10, %v8764_v31, 0  ;;  %v8776_v23 = vsel %vm16208_vm15, %v8765_v53, 0  ;;  %v9325_v27 = vpop.permute.xlu0 %9324  ;;  %vm16232_vm12 = vcmask 138240  }
 0xc87   : > { %v8877_v0 = vand.u32 4294901760, %v8876_v49  ;;  %v8784_v13 = vand.u32 4294901760, %v8773_v29  ;;  %v8782_v14 = vand.u32 4294901760, %v8776_v23  ;;  %v8871_v59 = vand.u32 4294901760, %v8870_v7  ;;  %vm16233_vm9 = vmmov %vm16232_vm12 }
 0xc88   : > { %vm16234_vm10 = vmmov %vm16233_vm9 }
 0xc89   : > { %v8888_v48 = vsub.f32 %v8773_v29, %v8784_v13  ;;  %v11703_v20 = vpack.c.bf16 %v8782_v14, %v8778_v18  ;;  %v8882_v21 = vsub.f32 %v8776_v23, %v8782_v14  ;;  %v11705_v52 = vpack.c.bf16 %v8784_v13, %v8780_v51  ;;  %v11185_v14 = vld [vmem:[%s16215_s9] ss:$0 sm:$0xff]  ;;  %s15416_s9 = scalar_lea.vmem %s16230_s19, %s16216_s13  ;;  %vm16235_vm15 = vmmov %vm16233_vm9 }
 0xc8a   : > { %v8872_v60 = vsub.f32 %v8870_v7, %v8871_v59  ;;  %v8878_v36 = vsub.f32 %v8876_v49, %v8877_v0 }
 0xc8b   : > { %11704 = vmatprep.subr.bf16.mxu1 %v11703_v20  ;;  %v8883_v9 = vand.u32 4294901760, %v8882_v21  ;;  %v8889_v8 = vand.u32 4294901760, %v8888_v48  ;;  %v11711_v57 = vpack.c.bf16 %v8882_v21, %v8870_v7  ;;  %v11713_v61 = vpack.c.bf16 %v8888_v48, %v8876_v49 }
 0xc8c   : > { %11706 = vmatpush1.bf16.msra.mxu1 %v11705_v52  ;;  %v8873_v1 = vand.u32 4294901760, %v8872_v60  ;;  %v8879_v3 = vand.u32 4294901760, %v8878_v36  ;;  %v15288_v36 = vld [vmem:[%s16218_s11 + $0x8] sm:$0xf] }
 0xc8d   : > { %v8884_v34 = vsub.f32 %v8882_v21, %v8883_v9  ;;  %v8890_v35 = vsub.f32 %v8888_v48, %v8889_v8  ;;  %v11719_v25 = vpack.c.bf16 %v8883_v9, %v8871_v59  ;;  %v11721_v46 = vpack.c.bf16 %v8889_v8, %v8877_v0  ;;  %v9440_v8 = vld [vmem:[%s1004_s3] sm:$0xff] }
 0xc8f   : > { %8852 = vmatmul.mubr.f32.vlgmr.msra.gmra.mrb[20].mxu1 %v8851_v42  ;;  %v8885_v24 = vand.u32 4294901760, %v8884_v34  ;;  %v8891_v15 = vand.u32 4294901760, %v8890_v35  ;;  %v9456_v34 = vld [vmem:[%s16218_s11] sm:$0xff]  ;;  %v16219_v35 = vmov 3  }
 0xc90   : > { %8857 = vmatprep.mubr.f32.mxu1 %v16209_v11 }
 0xc91   : > { %v11707_v10 = vpack.c.bf16 %v8885_v24, %v8873_v1  ;;  %v11709_v43 = vpack.c.bf16 %v8891_v15, %v8879_v3  ;;  %v16221_v1 = vmov 4   ;;  %v9441_v24 = vld [vmem:[%s1004_s3 + $0x8] sm:$0xf]  ;;  %v16222_v3 = vmov 2   ;;  %s1029_s3 = scalar_lea.vmem %s16269_s18, %s16263_s4 }
 0xc92   : > { %v16223_v15 = vmov 0  }
 0xc93   : > { %8863 = vmatmul.mubr.f32.gmra.mrb[22].mxu1 %v8862_v32  ;;  %11708 = vmatprep.subr.bf16.mxu1 %v11707_v10  ;;  %v16220_v32 = vmov 1   ;;  %v16224_v10 = vmov 5  }
 0xc94   : > { %11710 = vmatpush1.bf16.msra.mxu1 %v11709_v43  ;;  %8953 = vmatprep.mubr.f32.mxu1 %v16209_v11  ;;  %v16225_v43 = vmov 6  }
 0xc95   : > { %11712 = vmatprep.subr.bf16.mxu1 %v11711_v57 }
 0xc97   : > { %8955 = vmatmul.mubr.f32.vlgmr.msra.gmra.mrb[20].mxu1 %v15206_v47 }
 0xc98   : > { %11714 = vmatpush1.bf16.msra.mxu1 %v11713_v61  ;;  %8960 = vmatprep.mubr.f32.mxu1 %v16209_v11 }
 0xc99   : > { %11716 = vmatprep.subr.bf16.mxu1 %v11703_v20 }
 0xc9b   : > { %8962 = vmatmul.mubr.f32.gmra.mrb[22].mxu1 %v15216_v2 }
 0xc9c   : > { %9040 = vmatprep.mubr.f32.mxu1 %v16209_v11 }
 0xc9f   : > { %9043 = vmatmul.mubr.f32.vlgmr.msra.gmra.mrb[20].mxu1 %v15214_v45 }
 0xca0   : > { %11718 = vmatpush1.bf16.msra.mxu1 %v11705_v52  ;;  %9048 = vmatprep.mubr.f32.mxu1 %v16209_v11 }
 0xca1   : > { %11720 = vmatprep.subr.bf16.mxu1 %v11719_v25 }
 0xca3   : > { %9051 = vmatmul.mubr.f32.gmra.mrb[22].mxu1 %v15222_v19 }
 0xca4   : > { %9125 = vmatprep.mubr.f32.mxu1 %v16209_v11 }
 0xca7   : > { %9129 = vmatmul.mubr.f32.vlgmr.msra.gmra.mrb[20].mxu1 %v8849_v50 }
 0xca8   : > { %11722 = vmatpush1.bf16.msra.mxu1 %v11721_v46  ;;  %9134 = vmatprep.mubr.f32.mxu1 %v16209_v11 }
 0xca9   : > { %11724 = vmatprep.subr.bf16.mxu1 %v11703_v20 }
 0xcab   : > { %9138 = vmatmul.mubr.f32.gmra.mrb[22].mxu1 %v8860_v6 }
 0xcac   : > { %9220 = vmatprep.mubr.f32.mxu1 %v16209_v11 }
 0xcaf   : > { %9222 = vmatmul.mubr.f32.vlgmr.msra.gmra.mrb[20].mxu1 %v15206_v47 }
 0xcb0   : > { %11726 = vmatpush1.bf16.msra.mxu1 %v11705_v52  ;;  %9227 = vmatprep.mubr.f32.mxu1 %v16209_v11 }
 0xcb3   : > { %9229 = vmatmul.mubr.f32.gmra.mrb[22].mxu1 %v15216_v2 }
 0xcb4   : > { %9303 = vmatprep.mubr.f32.mxu1 %v16209_v11 }
 0xcb7   : > { %9305 = vmatmul.mubr.f32.vlgmr.msra.gmra.mrb[20].mxu1 %v15206_v47 }
 0xcb8   : > { %9310 = vmatprep.mubr.f32.mxu1 %v16209_v11 }
 0xcbb   : > { %9312 = vmatmul.mubr.f32.gmra.mrb[22].mxu1 %v15216_v2  ;;  %v9330_v2 = vpop.permute.xlu1 %9329 }
 0xcbc   : > { %9836 = vmatprep.mubr.f32.mxu1 %v16209_v11 }
 0xd8a   : > { %v9306_v5 = vpop.f32.mrb[20].mxu1 }
 0xd8b   : > { %v11789_v55 = vadd.f32 %v9306_v5, %v16210_v28  ;;  %v9308_v45 = vpop.f32.mrb[21].mxu1 }
 0xd8c   : > { %v11790_v62 = vadd.f32 %v9308_v45, %v16211_v4 }
 0xd8d   : > { %vm9318_vm13 = vcmp.ge.f32.partialorder %v11789_v55, 0.0  ;;  %v9332_v12 = vmul.f32 %v11789_v55, %v9325_v27 }
 0xd8e   : > { %vm9319_vm8 = vcmp.ge.f32.partialorder %v11790_v62, 0.0  ;;  %v9333_v41 = vmul.f32 %v11790_v62, %v9325_v27  ;;  %v9313_v38 = vpop.f32.mrb[22].mxu1 }
 0xd8f   : > { %v11791_v47 = vadd.f32 %v9313_v38, %v16212_v16  ;;  %v9315_v54 = vpop.f32.mrb[23].mxu1  ;;  %v15256_v39 = vsel %vm9318_vm13, %v11789_v55, %v9332_v12  ;;  %vm16236_vm13 = vcmask 1039360  }
 0xd90   : > { %v11792_v22 = vadd.f32 %v9315_v54, %v16213_v40  ;;  %v15259_v30 = vsel %vm9319_vm8, %v11790_v62, %v9333_v41  ;;  %vm16237_vm8 = vmmov %vm16236_vm13 }
 0xd91   : > { %vm9320_vm14 = vcmp.ge.f32.partialorder %v11791_v47, 0.0  ;;  %v9334_v50 = vmul.f32 %v11791_v47, %v9330_v2  ;;  %v9341_v19 = vadd.f32 %v15259_v30, %v15256_v39 }
 0xd92   : > { %vm9321_vm0 = vcmp.ge.f32.partialorder %v11792_v22, 0.0  ;;  %v9335_v51 = vmul.f32 %v11792_v22, %v9330_v2 }
 0xd93   : > { %v15263_v56 = vsel %vm9320_vm14, %v11791_v47, %v9334_v50  ;;  %9342 = vadd.xlane.f32.xlu0 %v9341_v19  ;;  %vm16238_vm14 = vcmask 908288  }
 0xd94   : > { %v15265_v44 = vsel %vm9321_vm0, %v11792_v22, %v9335_v51  ;;  %v9344_v18 = vsel %vm16214_vm11, %v15263_v56, 0.0  ;;  %v16226_v51 = vmov 7   ;;  %vm16239_vm0 = vcmask 924672  }
 0xd95   : > { %v9345_v49 = vsel %vm16205_vm1, %v15265_v44, 0.0  ;;  %vm16240_vm11 = vmmov %vm16239_vm0 }
 0xd96   : > { %v9346_v31 = vadd.f32 %v9345_v49, %v9344_v18  ;;  %v16227_v18 = vmov 8  }
 0xd98   : > { %9347 = vadd.xlane.f32.xlu1 %v9346_v31 }
 0xe20   : > { %v9343_v53 = vpop.xlane.xlu0 %9342 }
 0xe21   : > { %v9350_v7 = vmul.f32 0.00390625, %v9343_v53 }
 0xe23   : > { %v9355_v58 = vrot.slane %v9350_v7, 7  ;;  %v9362_v6 = vrot.slane %v9350_v7, 1  ;;  %v9376_v21 = vmul.f32 %v11185_v14, %v9350_v7 }
 0xe25   : > { %v9348_v29 = vpop.xlane.xlu1 %9347  ;;  %v9360_v61 = vsel %vm9354_vm6, 0.0, %v9355_v58 }
 0xe26   : > { %v9351_v23 = vmul.f32 0.00390625, %v9348_v29  ;;  %v9374_v5 = vmul.f32 %v11185_v14, %v9360_v61 }
 0xe28   : > { %v9356_v0 = vrot.slane %v9351_v23, 7  ;;  %v9363_v13 = vrot.slane %v9351_v23, 1  ;;  %v9377_v52 = vmul.f32 %v11185_v14, %v9351_v23 }
 0xe2a   : > { %v9367_v59 = vsel %vm9366_vm5, %v9363_v13, 0.0  ;;  %v9364_v48 = vsel %vm9361_vm7, %v9362_v6, %v9363_v13  ;;  %v9357_v20 = vsel %vm9354_vm6, %v9355_v58, %v9356_v0  ;;  %vm16246_vm5 = vmmov %vm16239_vm0  ;;  %vm16247_vm7 = vcmask 97280  }
 0xe2b   : > { %9391 = vrot.lane.b32.xlu0 %v9367_v59, %s15985_s27  ;;  %9389 = vrot.lane.b32.xlu1 %v9364_v48, %s15985_s27  ;;  %v9375_v46 = vmul.f32 %v11185_v14, %v9357_v20  ;;  %vm16248_vm6 = vmmov %vm16239_vm0 }
 0xe2f   : > { %9380 = vrot.lane.b32.xlu0 %v9376_v21, %s15973_s7  ;;  %9382 = vrot.lane.b32.xlu1 %v9377_v52, %s15973_s7 }
 0xe9d   : > { %v9390_v42 = vpop.permute.xlu1 %9389  ;;  %v9392_v26 = vpop.permute.xlu0 %9391 }
 0xe9e   : > { %v9395_v60 = vmul.f32 %v11185_v14, %v9390_v42  ;;  %v9396_v9 = vmul.f32 %v11185_v14, %v9392_v26 }
 0xea0   : > { %9399 = vrot.lane.b32.xlu0 %v9395_v60, %s15980_s12  ;;  %9401 = vrot.lane.b32.xlu1 %v9396_v9, %s15980_s12 }
 0xea1   : > { %v9383_v57 = vpop.permute.xlu1 %9382  ;;  %v9381_v25 = vpop.permute.xlu0 %9380 }
 0xea2   : > { %v9387_v45 = vadd.f32 %v9383_v57, %v9375_v46  ;;  %v9386_v27 = vadd.f32 %v9381_v25, %v9374_v5 }
 0xea4   : > { %9407 = vrot.lane.b32.xlu1 %v11185_v14, %s12151_s17  ;;  %9553 = vperm.xlu0 %12088, %v15288_v36  }
 0xea8   : > { %9444 = vperm.xlu1 %12086, %v9440_v8   ;;  %12091 = vset.pattern.permute.xlu0 %v16219_v35 }
 0xea9   : > { %9585 = vperm.xlu0 %12091, %v9456_v34  }
 0xeac   : > { %12087 = vset.pattern.permute.xlu1 %v16220_v32 }
 0xead   : > { %9517 = vperm.xlu1 %12087, %v15288_v36   ;;  %12092 = vset.pattern.permute.xlu0 %v16221_v1 }
 0xeae   : > { %9605 = vperm.xlu0 %12092, %v15288_v36  }
 0xeb1   : > { %9513 = vperm.xlu1 %12087, %v9456_v34  }
 0xeb2   : > { %9601 = vperm.xlu0 %12092, %v9456_v34  }
 0xeb5   : > { %12089 = vset.pattern.permute.xlu1 %v16222_v3 }
 0xeb6   : > { %9549 = vperm.xlu1 %12089, %v9456_v34   ;;  %12093 = vset.pattern.permute.xlu0 %v16223_v15 }
 0xeb7   : > { %9449 = vperm.xlu0 %12093, %v9441_v24  }
 0xeba   : > { %12090 = vset.pattern.permute.xlu1 %v16219_v35 }
 0xebb   : > { %9589 = vperm.xlu1 %12090, %v15288_v36  }
 0xebf   : > { %12094 = vset.pattern.permute.xlu1 %v16224_v10 }
 0xec0   : > { %9641 = vperm.xlu1 %12094, %v15288_v36  }
 0xec4   : > { %12096 = vset.pattern.permute.xlu1 %v16225_v43 }
 0xec5   : > { %9677 = vperm.xlu1 %12096, %v15288_v36  }
 0xec9   : > { %9673 = vperm.xlu1 %12096, %v9456_v34  }
 0xecd   : > { %12097 = vset.pattern.permute.xlu1 %v16223_v15 }
 0xf12   : > { %v9402_v28 = vpop.permute.xlu1 %9401  ;;  %v9400_v55 = vpop.permute.xlu0 %9399 }
 0xf13   : > { %v9406_v4 = vadd.f32 %v9402_v28, %v9387_v45  ;;  %v9405_v62 = vadd.f32 %v9400_v55, %v9386_v27  ;;  %v10341_v55 = vld [vmem:[%s16229_s5 + $0x8] sm:$0xf] }
 0xf16   : > { %v9408_v12 = vpop.permute.xlu1 %9407 }
 0xf17   : > { %v9410_v41 = vadd.f32 %v9408_v12, %v9405_v62  ;;  %v9411_v38 = vadd.f32 %v9408_v12, %v9406_v4  ;;  %v10375_v4 = vld [vmem:[%s15416_s9 + $0x8] sm:$0xf] }
 0xf19   : > { %v11186_v16 = vmul.f32 -1.442695, %v9410_v41  ;;  %v11187_v47 = vmul.f32 -1.442695, %v9411_v38  ;;  %v10390_v41 = vld [vmem:[%s16231_s28] sm:$0xff] }
 0xf1b   : > { %12103 = vpow2.f32 %v11186_v16 }
 0xf1c   : > { %12105 = vpow2.f32 %v11187_v47 }
 0xf23   : > { %v15324_v29 = vpop.permute.xlu0 %9553 }
 0xf25   : > { %v12104_v54 = vpop.eup %12103 }
 0xf26   : > { %v12106_v2 = vpop.eup %12105  ;;  %v9418_v40 = vadd.f32 1.0, %v12104_v54 }
 0xf27   : > { %v9419_v22 = vadd.f32 1.0, %v12106_v2  ;;  %v9445_v49 = vpop.permute.xlu1 %9444 }
 0xf28   : > { %12107 = vrcp.f32 %v9418_v40  ;;  %v15328_v58 = vpop.permute.xlu0 %9585 }
 0xf29   : > { %12109 = vrcp.f32 %v9419_v22 }
 0xf2c   : > { %v15318_v31 = vpop.permute.xlu1 %9517 }
 0xf2d   : > { %v15332_v0 = vpop.permute.xlu0 %9605 }
 0xf30   : > { %v15320_v53 = vpop.permute.xlu1 %9513 }
 0xf31   : > { %v15336_v14 = vpop.permute.xlu0 %9601 }
 0xf32   : > { %v12108_v50 = vpop.eup %12107 }
 0xf33   : > { %v12110_v19 = vpop.eup %12109  ;;  %9426 = vperm.xlu1 %12097, %v12108_v50  }
 0xf34   : > { %9431 = vperm.xlu0 %12093, %v12110_v19  }
 0xf35   : > { %v15322_v7 = vpop.permute.xlu1 %9549 }
 0xf36   : > { %v9450_v48 = vpop.permute.xlu0 %9449 }
 0xf37   : > { %12098 = vset.pattern.permute.xlu1 %v16226_v51 }
 0xf38   : > { %12095 = vset.pattern.permute.xlu0 %v16224_v10  ;;  %9709 = vperm.xlu1 %12098, %v15288_v36  }
 0xf39   : > { %9637 = vperm.xlu0 %12095, %v9456_v34  }
 0xf3a   : > { %v15326_v23 = vpop.permute.xlu1 %9589 }
 0xf3c   : > { %12102 = vset.pattern.permute.xlu1 %v16223_v15 }
 0xf3d   : > { %12099 = vset.pattern.permute.xlu0 %v16226_v51 }
 0xf3e   : > { %9705 = vperm.xlu0 %12099, %v9456_v34  }
 0xf3f   : > { %v15330_v6 = vpop.permute.xlu1 %9641 }
 0xf42   : > { %12100 = vset.pattern.permute.xlu0 %v16227_v18 }
 0xf43   : > { %9745 = vperm.xlu0 %12100, %v15288_v36  }
 0xf44   : > { %v15334_v13 = vpop.permute.xlu1 %9677 }
 0xf47   : > { %9741 = vperm.xlu0 %12100, %v9456_v34  }
 0xf48   : > { %v15338_v59 = vpop.permute.xlu1 %9673 }
 0xf4b   : > { %12101 = vset.pattern.permute.xlu0 %v16223_v15 }
 0xf4c   : > { %9489 = vperm.xlu0 %12101, %v15288_v36  }
 0xf50   : > { %9484 = vperm.xlu0 %12101, %v9456_v34  }
 0xfb2   : > { %v9427_v20 = vpop.permute.xlu1 %9426 }
 0xfb3   : > { %v9432_v21 = vpop.permute.xlu0 %9431  ;;  %v9434_v26 = vmul.f32 %v9427_v20, %v15256_v39  ;;  %v9435_v60 = vmul.f32 %v9427_v20, %v15259_v30  ;;  %v10340_v30 = vld [vmem:[%s16229_s5] sm:$0xff] }
 0xfb4   : > { %v9436_v52 = vmul.f32 %v9432_v21, %v15263_v56  ;;  %v9437_v42 = vmul.f32 %v9432_v21, %v15265_v44  ;;  %v10374_v56 = vld [vmem:[%s15416_s9] sm:$0xff]  ;;  %v10391_v44 = vld [vmem:[%s16231_s28 + $0x8] sm:$0xf] }
 0xfb5   : > { %v15352_v8 = vmul.f32 %v9445_v49, %v9434_v26  ;;  %v15354_v34 = vmul.f32 %v9445_v49, %v9435_v60 }
 0xfb6   : > { %v15344_v9 = vmul.f32 %v9450_v48, %v9436_v52  ;;  %v15346_v36 = vmul.f32 %v9450_v48, %v9437_v42 }
 0xfb7   : > { %v15446_v15 = vpop.permute.xlu1 %9709 }
 0xfb8   : > { %9468 = vrot.lane.b32.xlu0 %v15346_v36, %s16046_s15  ;;  %9466 = vrot.lane.b32.xlu1 %v15344_v9, %s16046_s15  ;;  %v15436_v35 = vpop.permute.xlu0 %9637 }
 0xfbc   : > { %9462 = vrot.lane.b32.xlu0 %v15352_v8, %s16046_s15  ;;  %9464 = vrot.lane.b32.xlu1 %v15354_v34, %s16046_s15 }
 0xfbd   : > { %v15438_v32 = vpop.permute.xlu0 %9705 }
 0xfc0   : > { %9532 = vrot.lane.b32.xlu0 %v15344_v9, %s15971_s1  ;;  %9500 = vrot.lane.b32.xlu1 %v15344_v9, %s15979_s29 }
 0xfc2   : > { %v15440_v1 = vpop.permute.xlu0 %9745 }
 0xfc4   : > { %9528 = vrot.lane.b32.xlu0 %v15352_v8, %s15971_s1  ;;  %9502 = vrot.lane.b32.xlu1 %v15346_v36, %s15979_s29 }
 0xfc6   : > { %v15442_v24 = vpop.permute.xlu0 %9741 }
 0xfc8   : > { %9570 = vrot.lane.b32.xlu0 %v15346_v36, %s15972_s30  ;;  %9534 = vrot.lane.b32.xlu1 %v15346_v36, %s15971_s1 }
 0xfcb   : > { %v15444_v3 = vpop.permute.xlu0 %9489 }
 0xfcc   : > { %9564 = vrot.lane.b32.xlu0 %v15352_v8, %s15972_s30  ;;  %9496 = vrot.lane.b32.xlu1 %v15352_v8, %s15979_s29 }
 0xfcf   : > { %v15448_v10 = vpop.permute.xlu0 %9484 }
 0xfd0   : > { %9622 = vrot.lane.b32.xlu0 %v15346_v36, %s15973_s7  ;;  %9498 = vrot.lane.b32.xlu1 %v15354_v34, %s15979_s29 }
 0xfd4   : > { %9618 = vrot.lane.b32.xlu0 %v15354_v34, %s15973_s7  ;;  %9530 = vrot.lane.b32.xlu1 %v15354_v34, %s15971_s1  ;;  %s16228_s1 = sld [smem:[#allocation47_spill]] }
 0xfd8   : > { %9694 = vrot.lane.b32.xlu0 %v15346_v36, %s15975_s8  ;;  %9568 = vrot.lane.b32.xlu1 %v15344_v9, %s15972_s30 }
 0xfda   : > { %s15400_s15 = scalar_lea.vmem %s16228_s1, %s16216_s13  ;;  %s16259_s1 = sld [smem:[#allocation41_spill]] }
 0xfdb   : > { %v10309_v39 = vld [vmem:[%s15400_s15 + $0x8] sm:$0xf]  ;;  %v10308_v46 = vld [vmem:[%s15400_s15] sm:$0xff] }
 0xfdc   : > { %9690 = vrot.lane.b32.xlu0 %v15354_v34, %s15975_s8  ;;  %9566 = vrot.lane.b32.xlu1 %v15354_v34, %s15972_s30 }
 0xfe0   : > { %9722 = vrot.lane.b32.xlu0 %v15354_v34, %s15976_s2  ;;  %9620 = vrot.lane.b32.xlu1 %v15344_v9, %s15973_s7  ;;  %s990_s15 = scalar_lea.vmem %s16259_s1, %s16258_s16 }
 0xfe4   : > { %9688 = vrot.lane.b32.xlu0 %v15352_v8, %s15975_s8  ;;  %9616 = vrot.lane.b32.xlu1 %v15352_v8, %s15973_s7 }
 0xfe8   : > { %10317 = vperm.xlu0 %12101, %v10309_v39   ;;  %9658 = vrot.lane.b32.xlu1 %v15346_v36, %s15974_s10 }
 0xfec   : > { %10344 = vperm.xlu0 %12101, %v10340_v30   ;;  %9654 = vrot.lane.b32.xlu1 %v15354_v34, %s15974_s10 }
 0xff0   : > { %10378 = vperm.xlu0 %12101, %v10374_v56   ;;  %9656 = vrot.lane.b32.xlu1 %v15344_v9, %s15974_s10 }
 0xff4   : > { %10399 = vperm.xlu0 %12101, %v10391_v44   ;;  %9652 = vrot.lane.b32.xlu1 %v15352_v8, %s15974_s10 }
 0xff8   : > { %9726 = vrot.lane.b32.xlu1 %v15346_v36, %s15976_s2 }
 0xffc   : > { %9692 = vrot.lane.b32.xlu1 %v15344_v9, %s15975_s8 }
0x1000   : > { %9724 = vrot.lane.b32.xlu1 %v15344_v9, %s15976_s2 }
0x1004   : > { %9720 = vrot.lane.b32.xlu1 %v15352_v8, %s15976_s2  ;;  %s16265_s2 = sld [smem:[#allocation60_spill]] }
0x1008   : > { %10312 = vperm.xlu1 %12102, %v10308_v46  }
0x100a   : > { %s15653_s10 = scalar_lea.vmem %s16265_s2, %s16263_s4 }
0x100c   : > { %10349 = vperm.xlu1 %12102, %v10341_v55  }
0x1010   : > { %10383 = vperm.xlu1 %12102, %v10375_v4  }
0x1014   : > { %10394 = vperm.xlu1 %12102, %v10390_v41  }
0x102a   : > { %v9467_v43 = vpop.permute.xlu1 %9466  ;;  %v9469_v57 = vpop.permute.xlu0 %9468 }
0x102b   : > { %v9471_v52 = vsel %vm16233_vm9, %v9467_v43, %v9469_v57 }
0x102c   : > { %v9481_v44 = vmul.f32 %v9471_v52, %v13537_v37 }
0x102e   : > { %v9465_v61 = vpop.permute.xlu1 %9464  ;;  %v9463_v25 = vpop.permute.xlu0 %9462 }
0x102f   : > { %v9470_v50 = vsel %vm16232_vm12, %v9463_v25, %v9465_v61  ;;  %vm16249_vm12 = vmmov %vm16238_vm14 }
0x1030   : > { %v9479_v48 = vmul.f32 %v9470_v50, %v13537_v37 }
0x1032   : > { %v9501_v5 = vpop.permute.xlu1 %9500  ;;  %v9533_v28 = vpop.permute.xlu0 %9532  ;;  %v9493_v30 = vmul.f32 %v15448_v10, %v9479_v48 }
0x1036   : > { %v9503_v45 = vpop.permute.xlu1 %9502  ;;  %v15454_v27 = vpop.permute.xlu0 %9528 }
0x1037   : > { %v9505_v61 = vsel %vm3772_vm3, %v9501_v5, %v9503_v45  ;;  %v9495_v45 = vmul.f32 %v15444_v3, %v9481_v44 }
0x103a   : > { %v9535_v62 = vpop.permute.xlu1 %9534  ;;  %v9571_v12 = vpop.permute.xlu0 %9570 }
0x103b   : > { %v9537_v39 = vsel %vm3789_vm2, %v9533_v28, %v9535_v62  ;;  %v9523_v62 = vmul.f32 %v15318_v31, %v9505_v61 }
0x103c   : > { %v9547_v57 = vmul.f32 %v9537_v39, %v13545_v63 }
0x103e   : > { %v9497_v38 = vpop.permute.xlu1 %9496  ;;  %v9565_v16 = vpop.permute.xlu0 %9564  ;;  %v9559_v48 = vmul.f32 %v15324_v29, %v9547_v57 }
0x1042   : > { %v9499_v47 = vpop.permute.xlu1 %9498  ;;  %v15460_v54 = vpop.permute.xlu0 %9622 }
0x1043   : > { %v9504_v18 = vsel %vm3772_vm3, %v9497_v38, %v9499_v47 }
0x1044   : > { %v9521_v42 = vmul.f32 %v15320_v53, %v9504_v18  ;;  %v9511_v18 = vsel %vm3772_vm3, 0.0, %v9501_v5 }
0x1046   : > { %v9531_v2 = vpop.permute.xlu1 %9530  ;;  %v15462_v40 = vpop.permute.xlu0 %9618  ;;  %v9525_v55 = vadd.f32 %v9521_v42, %v9493_v30  ;;  %v9609_v42 = vmul.f32 %v15336_v14, %v15354_v34  ;;  %v9510_v34 = vsel %vm3772_vm3, 0.0, %v9497_v38  ;;  %vm16243_vm3 = vmmov %vm16237_vm8 }
0x1047   : > { %v9536_v19 = vsel %vm3789_vm2, %v15454_v27, %v9531_v2  ;;  %vm16245_vm1 = vmmov %vm16243_vm3 }
0x1048   : > { %v9545_v20 = vmul.f32 %v9536_v19, %v13545_v63  ;;  %v9477_v19 = vsel %vm16234_vm10, 0.0, %v9467_v43  ;;  %vm16251_vm10 = vmmov %vm16247_vm7 }
0x1049   : > { %v9480_v5 = vmul.f32 %v9477_v19, %v16174_v17 }
0x104a   : > { %v9569_v22 = vpop.permute.xlu1 %9568  ;;  %v15471_v21 = vpop.permute.xlu0 %9694  ;;  %v9557_v56 = vmul.f32 %v15322_v7, %v9545_v20 }
0x104b   : > { %v9573_v46 = vsel %vm3819_vm4, %v9569_v22, %v9571_v12  ;;  %v9476_v12 = vsel %vm16235_vm15, 0.0, %v9463_v25  ;;  %v9611_v25 = vmul.f32 %v15332_v0, %v15346_v36  ;;  %vm16252_vm15 = vcmask 1043456  }
0x104c   : > { %v9561_v2 = vadd.f32 %v9557_v56, %v9525_v55  ;;  %v9583_v50 = vmul.f32 %v9573_v46, %v13537_v37  ;;  %v9522_v56 = vmul.f32 %v15318_v31, %v9511_v18  ;;  %v9631_v46 = vsel %vm16237_vm8, %v15460_v54, 0.0 }
0x104d   : > { %v9542_v55 = vsel %vm3789_vm2, 0.0, %v15454_v27  ;;  %v9579_v27 = vsel %vm3819_vm4, 0.0, %v9569_v22 }
0x104e   : > { %v9567_v51 = vpop.permute.xlu1 %9566  ;;  %v15486_v41 = vpop.permute.xlu0 %9690  ;;  %v9595_v39 = vmul.f32 %v15326_v23, %v9583_v50 }
0x104f   : > { %v9572_v49 = vsel %vm3819_vm4, %v9565_v16, %v9567_v51  ;;  %v9630_v51 = vsel %vm16236_vm13, %v15462_v40, 0.0  ;;  %vm16253_vm13 = vmmov %vm16249_vm12 }
0x1050   : > { %v9581_v26 = vmul.f32 %v9572_v49, %v13537_v37  ;;  %v9543_v49 = vsel %vm3789_vm2, 0.0, %v9533_v28  ;;  %v9633_v43 = vmul.f32 %v9630_v51, %v13545_v63  ;;  %v9478_v28 = vmul.f32 %v9476_v12, %v16174_v17 }
0x1051   : > { %v9546_v44 = vmul.f32 %v9543_v49, %v13542_v33  ;;  %v9635_v12 = vmul.f32 %v9631_v46, %v13545_v63  ;;  %vm16241_vm2 = vcmask 916480  }
0x1052   : > { %v15476_v60 = vpop.permute.xlu1 %9620  ;;  %v9593_v4 = vmul.f32 %v15328_v58, %v9581_v26  ;;  %v9527_v26 = vadd.f32 %v9523_v62, %v9495_v45  ;;  %v15506_v30 = vpop.permute.xlu0 %9722  ;;  %v9645_v50 = vmul.f32 %v15436_v35, %v9633_v43  ;;  %v9520_v45 = vmul.f32 %v15320_v53, %v9510_v34  ;;  %vm16250_vm9 = vmmov %vm16241_vm2 }
0x1053   : > { %v9702_v51 = vsel %vm16241_vm2, %v15486_v41, 0.0  ;;  %v9544_v53 = vmul.f32 %v9542_v55, %v13542_v33  ;;  %v9582_v43 = vmul.f32 %v9579_v27, %v16174_v17  ;;  %v9558_v46 = vmul.f32 %v15324_v29, %v9546_v44  ;;  %vm16254_vm8 = vmmov %vm16241_vm2 }
0x1054   : > { %v9597_v20 = vadd.f32 %v9593_v4, %v9561_v2  ;;  %v9563_v61 = vadd.f32 %v9559_v48, %v9527_v26  ;;  %v9734_v4 = vsel %vm16238_vm14, %v15506_v30, 0.0  ;;  %v9578_v2 = vsel %vm3819_vm4, 0.0, %v9565_v16  ;;  %vm16244_vm4 = vmmov %vm16241_vm2 }
0x1055   : > { %v9737_v18 = vmul.f32 %v9734_v4, %v13545_v63  ;;  %v9492_v26 = vmul.f32 %v15448_v10, %v9478_v28  ;;  %v9647_v4 = vmul.f32 %v15330_v6, %v9635_v12  ;;  %v9556_v55 = vmul.f32 %v15322_v7, %v9544_v53  ;;  %v9439_v53 = vld [vmem:[%s16242_s6 + $0x8] sm:$0xf]  ;;  %vm16255_vm14 = vmmov %vm16249_vm12 }
0x1056   : > { %v15488_v47 = vpop.permute.xlu1 %9616  ;;  %v9613_v57 = vadd.f32 %v9609_v42, %v9597_v20  ;;  %v9599_v38 = vadd.f32 %v9595_v39, %v9563_v61  ;;  %v9494_v42 = vmul.f32 %v15444_v3, %v9480_v5  ;;  %v9713_v39 = vmul.f32 %v15438_v32, %v9702_v51 }
0x1057   : > { %v9749_v3 = vmul.f32 %v15442_v24, %v9737_v18  ;;  %v9625_v29 = vsel %vm16243_vm3, %v15476_v60, %v15460_v54  ;;  %v9703_v44 = vsel %vm16244_vm4, %v15471_v21, 0.0  ;;  %vm16266_vm3 = vmmov %vm16247_vm7 }
0x1058   : > { %v9649_v48 = vadd.f32 %v9645_v50, %v9613_v57  ;;  %v9615_v22 = vadd.f32 %v9611_v25, %v9599_v38  ;;  %v9526_v34 = vadd.f32 %v9522_v56, %v9494_v42  ;;  %v9580_v57 = vmul.f32 %v9578_v2, %v16174_v17  ;;  %v9438_v25 = vld [vmem:[%s16242_s6] sm:$0xff] }
0x1059   : > { %v9594_v56 = vmul.f32 %v15326_v23, %v9582_v43  ;;  %v9624_v50 = vsel %vm16245_vm1, %v15488_v47, %v15462_v40  ;;  %v9757_v7 = vsel %vm16247_vm7, %v9438_v25, 0  ;;  %v9634_v54 = vmul.f32 %v9625_v29, %v13542_v33 }
0x105a   : > { %v9659_v52 = vpop.permute.xlu1 %9658  ;;  %v9715_v12 = vmul.f32 %v15446_v15, %v9703_v44  ;;  %v9632_v40 = vmul.f32 %v9624_v50, %v13542_v33  ;;  %v9608_v43 = vmul.f32 %v15336_v14, %v15352_v8 }
0x105b   : > { %v9667_v62 = vsel %vm16239_vm0, %v9659_v52, 0.0  ;;  %vm16256_vm0 = vmmov %vm16252_vm15 }
0x105c   : > { %v9671_v49 = vmul.f32 %v9667_v62, %v13537_v37  ;;  %v9651_v62 = vadd.f32 %v9647_v4, %v9615_v22 }
0x105e   : > { %v9655_v36 = vpop.permute.xlu1 %9654  ;;  %v9683_v10 = vmul.f32 %v15334_v13, %v9671_v49 }
0x105f   : > { %v9666_v31 = vsel %vm16240_vm11, %v9655_v36, 0.0  ;;  %vm16264_vm11 = vmmov %vm16247_vm7 }
0x1060   : > { %v9669_v19 = vmul.f32 %v9666_v31, %v13537_v37  ;;  %v9524_v37 = vadd.f32 %v9520_v45, %v9492_v26  ;;  %v9592_v45 = vmul.f32 %v15328_v58, %v9580_v57  ;;  %v9687_v23 = vadd.f32 %v9683_v10, %v9651_v62  ;;  %vm16267_vm7 = vmmov %vm16256_vm0 }
0x1061   : > { %v9610_v58 = vmul.f32 %v15332_v0, %v15344_v9  ;;  %v15579_v0 = vand.u32 4294901760, %v9757_v7 }
0x1062   : > { %v9681_v16 = vmul.f32 %v15338_v59, %v9669_v19  ;;  %v9657_v20 = vpop.permute.xlu1 %9656  ;;  %v9560_v2 = vadd.f32 %v9556_v55, %v9524_v37  ;;  %v9562_v19 = vadd.f32 %v9558_v46, %v9526_v34  ;;  %v9719_v42 = vadd.f32 %v9715_v12, %v9687_v23  ;;  %v9689_v37 = vpop.permute.xlu0 %9688 }
0x1063   : > { %v9661_v38 = vsel %vm16246_vm5, %v9657_v20, %v9659_v52  ;;  %v9760_v34 = vsel %vm16251_vm10, %v9439_v53, 0 }
0x1064   : > { %v9685_v61 = vadd.f32 %v9681_v16, %v9649_v48  ;;  %v9598_v49 = vadd.f32 %v9594_v56, %v9562_v19  ;;  %v9670_v47 = vmul.f32 %v9661_v38, %v16174_v17  ;;  %v9596_v48 = vadd.f32 %v9592_v45, %v9560_v2 }
0x1065   : > { %v9646_v16 = vmul.f32 %v15330_v6, %v9634_v54  ;;  %v15597_v55 = vand.u32 4294901760, %v9760_v34 }
0x1066   : > { %v9717_v5 = vadd.f32 %v9713_v39, %v9685_v61  ;;  %v9653_v28 = vpop.permute.xlu1 %9652  ;;  %v9614_v6 = vadd.f32 %v9610_v58, %v9598_v49  ;;  %v9682_v9 = vmul.f32 %v15334_v13, %v9670_v47  ;;  %v9612_v61 = vadd.f32 %v9608_v43, %v9596_v48 }
0x1067   : > { %v9660_v27 = vsel %vm16248_vm6, %v9653_v28, %v9655_v36  ;;  %v15591_v28 = vsub.f32 %v9757_v7, %v15579_v0  ;;  %vm16268_vm6 = vmmov %vm16256_vm0 }
0x1068   : > { %v9753_v31 = vadd.f32 %v9749_v3, %v9717_v5  ;;  %v9668_v20 = vmul.f32 %v9660_v27, %v16174_v17  ;;  %v9644_v17 = vmul.f32 %v15436_v35, %v9632_v40  ;;  %v9650_v46 = vadd.f32 %v9646_v16, %v9614_v6 }
0x1069   : > { %v9839_v54 = vand.u32 4294901760, %v15591_v28 }
0x106a   : > { %v9727_v60 = vpop.permute.xlu1 %9726  ;;  %v9768_v18 = vand.u32 4294901760, %v9753_v31  ;;  %v9680_v14 = vmul.f32 %v15338_v59, %v9668_v20  ;;  %v9648_v10 = vadd.f32 %v9644_v17, %v9612_v61  ;;  %v9686_v13 = vadd.f32 %v9682_v9, %v9650_v46  ;;  %v10324_v9 = vld [vmem:[%s990_s15] sm:$0x3] }
0x106b   : > { %v9735_v51 = vsel %vm16249_vm12, %v9727_v60, 0.0  ;;  %v9696_v59 = vsel %vm16254_vm8, %v9689_v37, %v15486_v41  ;;  %v9840_v47 = vsub.f32 %v15591_v28, %v9839_v54  ;;  %v16260_v61 = vld [vmem:[#allocation5_spill] sm:$0xff] }
0x106c   : > { %v9739_v52 = vmul.f32 %v9735_v51, %v13545_v63  ;;  %v15577_v22 = vsub.f32 %v9753_v31, %v9768_v18  ;;  %v9684_v29 = vadd.f32 %v9680_v14, %v9648_v10  ;;  %v9712_v38 = vmul.f32 %v15438_v32, %v9696_v59  ;;  %v10372_v46 = vld [vmem:[%s16261_s0] sm:$0xff]  ;;  %v16262_v14 = vld [vmem:[#allocation6_spill] sm:$0xff] }
0x106d   : > { %v9841_v20 = vand.u32 4294901760, %v9840_v47 }
0x106e   : > { %v9751_v36 = vmul.f32 %v15440_v1, %v9739_v52  ;;  %v9693_v26 = vpop.permute.xlu1 %9692  ;;  %v9861_v35 = vand.u32 4294901760, %v15577_v22 }
0x106f   : > { %v9697_v63 = vsel %vm16250_vm9, %v9693_v26, %v15471_v21 }
0x1070   : > { %v9755_v39 = vadd.f32 %v9751_v36, %v9719_v42  ;;  %v9714_v8 = vmul.f32 %v15446_v15, %v9697_v63  ;;  %v9862_v2 = vsub.f32 %v15577_v22, %v9861_v35 }
0x1072   : > { %v9725_v21 = vpop.permute.xlu1 %9724  ;;  %v9766_v57 = vsel %vm16252_vm15, %v9755_v39, 0  ;;  %v9718_v56 = vadd.f32 %v9714_v8, %v9686_v13  ;;  %v9863_v51 = vand.u32 4294901760, %v9862_v2  ;;  %v10318_v39 = vpop.permute.xlu0 %10317  ;;  %v10333_v8 = vrot.slane %v10324_v9, %v16262_v14 }
0x1073   : > { %v9729_v4 = vsel %vm16253_vm13, %v9725_v21, %v9727_v60  ;;  %v9772_v3 = vand.u32 4294901760, %v9766_v57  ;;  %v9716_v60 = vadd.f32 %v9712_v38, %v9684_v29 }
0x1074   : > { %v9738_v5 = vmul.f32 %v9729_v4, %v13542_v33 }
0x1075   : > { %v15595_v25 = vpack.c.bf16 %v9772_v3, %v9768_v18  ;;  %v9872_v15 = vsub.f32 %v9766_v57, %v9772_v3  ;;  %v10403_v3 = vsel %vm16264_vm11, %v10372_v46, 0 }
0x1076   : > { %v9750_v44 = vmul.f32 %v15440_v1, %v9738_v5  ;;  %v9721_v62 = vpop.permute.xlu1 %9720  ;;  %v9849_v1 = vsub.f32 %v9760_v34, %v15597_v55  ;;  %v10329_v34 = vrot.slane %v10324_v9, %v16260_v61 }
0x1077   : > { %v9728_v31 = vsel %vm16255_vm14, %v9721_v62, %v15506_v30  ;;  %11728 = vmatprep.subr.bf16.mxu1 %v15595_v25  ;;  %v9873_v50 = vand.u32 4294901760, %v9872_v15  ;;  %v11735_v41 = vpack.c.bf16 %v9872_v15, %v15577_v22 }
0x1078   : > { %v9754_v7 = vadd.f32 %v9750_v44, %v9718_v56  ;;  %v9736_v19 = vmul.f32 %v9728_v31, %v13542_v33  ;;  %v9850_v33 = vand.u32 4294901760, %v9849_v1 }
0x1079   : > { %v9874_v45 = vsub.f32 %v9872_v15, %v9873_v50  ;;  %v11743_v23 = vpack.c.bf16 %v9873_v50, %v9861_v35  ;;  %v10345_v35 = vpop.permute.xlu0 %10344 }
0x107a   : > { %v9763_v30 = vsel %vm16256_vm0, %v9754_v7, 0  ;;  %v9748_v12 = vmul.f32 %v15442_v24, %v9736_v19  ;;  %v9851_v42 = vsub.f32 %v9849_v1, %v9850_v33 }
0x107b   : > { %v9774_v27 = vand.u32 4294901760, %v9763_v30  ;;  %v9875_v18 = vand.u32 4294901760, %v9874_v45 }
0x107c   : > { %v9752_v49 = vadd.f32 %v9748_v12, %v9716_v60  ;;  %v9852_v53 = vand.u32 4294901760, %v9851_v42 }
0x107d   : > { %v9878_v40 = vsub.f32 %v9763_v30, %v9774_v27  ;;  %v11731_v32 = vpack.c.bf16 %v9875_v18, %v9863_v51  ;;  %v10379_v38 = vpop.permute.xlu0 %10378 }
0x107e   : > { %v9770_v52 = vand.u32 4294901760, %v9752_v49 }
0x107f   : > { %v9879_v48 = vand.u32 4294901760, %v9878_v40 }
0x1080   : > { %v9866_v58 = vsub.f32 %v9752_v49, %v9770_v52  ;;  %v11729_v16 = vpack.c.bf16 %v9774_v27, %v9770_v52 }
0x1081   : > { %v9880_v26 = vsub.f32 %v9878_v40, %v9879_v48 }
0x1082   : > { %11730 = vmatpush1.bf16.msra.mxu1 %v11729_v16  ;;  %v9867_v36 = vand.u32 4294901760, %v9866_v58  ;;  %v11737_v6 = vpack.c.bf16 %v9878_v40, %v9866_v58 }
0x1083   : > { %11732 = vmatprep.subr.bf16.mxu1 %v11731_v32  ;;  %v9881_v63 = vand.u32 4294901760, %v9880_v26 }
0x1084   : > { %v9868_v24 = vsub.f32 %v9866_v58, %v9867_v36  ;;  %v11745_v17 = vpack.c.bf16 %v9879_v48, %v9867_v36 }
0x1085   : > { %9842 = vmatmul.mubr.f32.vlgmr.msra.gmra.mrb[24].mxu1 %v9841_v20 }
0x1086   : > { %9847 = vmatprep.mubr.f32.mxu1 %v16209_v11  ;;  %v9869_v43 = vand.u32 4294901760, %v9868_v24 }
0x1088   : > { %v11733_v22 = vpack.c.bf16 %v9881_v63, %v9869_v43 }
0x1089   : > { %9853 = vmatmul.mubr.f32.gmra.mrb[26].mxu1 %v9852_v53 }
0x108a   : > { %11734 = vmatpush1.bf16.msra.mxu1 %v11733_v22  ;;  %9943 = vmatprep.mubr.f32.mxu1 %v16209_v11 }
0x108b   : > { %11736 = vmatprep.subr.bf16.mxu1 %v11735_v41 }
0x108d   : > { %9945 = vmatmul.mubr.f32.vlgmr.msra.gmra.mrb[24].mxu1 %v15579_v0 }
0x108e   : > { %11738 = vmatpush1.bf16.msra.mxu1 %v11737_v6  ;;  %9950 = vmatprep.mubr.f32.mxu1 %v16209_v11 }
0x108f   : > { %11740 = vmatprep.subr.bf16.mxu1 %v15595_v25 }
0x1091   : > { %9952 = vmatmul.mubr.f32.gmra.mrb[26].mxu1 %v15597_v55 }
0x1092   : > { %10030 = vmatprep.mubr.f32.mxu1 %v16209_v11 }
0x1095   : > { %10033 = vmatmul.mubr.f32.vlgmr.msra.gmra.mrb[24].mxu1 %v15591_v28  ;;  %v10373_v28 = vld [vmem:[%s16261_s0 + $0x8] sm:$0xf] }
0x1096   : > { %11742 = vmatpush1.bf16.msra.mxu1 %v11729_v16  ;;  %10038 = vmatprep.mubr.f32.mxu1 %v16209_v11  ;;  %v10406_v2 = vsel %vm16266_vm3, %v10373_v28, 0 }
0x1097   : > { %11744 = vmatprep.subr.bf16.mxu1 %v11743_v23  ;;  %v15660_v30 = vand.u32 4294901760, %v10406_v2 }
0x1099   : > { %10041 = vmatmul.mubr.f32.gmra.mrb[26].mxu1 %v9849_v1  ;;  %v10495_v48 = vsub.f32 %v10406_v2, %v15660_v30 }
0x109a   : > { %10115 = vmatprep.mubr.f32.mxu1 %v16209_v11 }
0x109b   : > { %v10496_v43 = vand.u32 4294901760, %v10495_v48 }
0x109d   : > { %10119 = vmatmul.mubr.f32.vlgmr.msra.gmra.mrb[24].mxu1 %v9839_v54 }
0x109e   : > { %11746 = vmatpush1.bf16.msra.mxu1 %v11745_v17  ;;  %10124 = vmatprep.mubr.f32.mxu1 %v16209_v11 }
0x109f   : > { %11748 = vmatprep.subr.bf16.mxu1 %v15595_v25 }
0x10a1   : > { %10128 = vmatmul.mubr.f32.gmra.mrb[26].mxu1 %v9850_v33 }
0x10a2   : > { %10210 = vmatprep.mubr.f32.mxu1 %v16209_v11 }
0x10a5   : > { %10212 = vmatmul.mubr.f32.vlgmr.msra.gmra.mrb[24].mxu1 %v15579_v0 }
0x10a6   : > { %11750 = vmatpush1.bf16.msra.mxu1 %v11729_v16  ;;  %10217 = vmatprep.mubr.f32.mxu1 %v16209_v11 }
0x10a9   : > { %10219 = vmatmul.mubr.f32.gmra.mrb[26].mxu1 %v15597_v55 }
0x10aa   : > { %10293 = vmatprep.mubr.f32.mxu1 %v16209_v11 }
0x10ad   : > { %10295 = vmatmul.mubr.f32.vlgmr.msra.gmra.mrb[24].mxu1 %v15579_v0  ;;  %v10313_v0 = vpop.permute.xlu1 %10312 }
0x10ae   : > { %10300 = vmatprep.mubr.f32.mxu1 %v16209_v11 }
0x10b1   : > { %10302 = vmatmul.mubr.f32.gmra.mrb[26].mxu1 %v15597_v55  ;;  %v15647_v55 = vand.u32 4294901760, %v10403_v3  ;;  %v10350_v44 = vpop.permute.xlu1 %10349 }
0x10b2   : > { %10482 = vmatprep.mubr.f32.mxu1 %v16209_v11 }
0x10b3   : > { %v15657_v45 = vsub.f32 %v10403_v3, %v15647_v55 }
0x10b5   : > { %v10384_v18 = vpop.permute.xlu1 %10383  ;;  %v10485_v32 = vand.u32 4294901760, %v15657_v45 }
0x10b7   : > { %v10486_v26 = vsub.f32 %v15657_v45, %v10485_v32 }
0x1180   : > { %v10296_v37 = vpop.f32.mrb[24].mxu1 }
0x1181   : > { %v10320_v21 = vmul.f32 %v10313_v0, %v10296_v37  ;;  %v10298_v57 = vpop.f32.mrb[25].mxu1 }
0x1182   : > { %v10321_v4 = vmul.f32 %v10313_v0, %v10298_v57  ;;  %v10497_v0 = vsub.f32 %v10495_v48, %v10496_v43 }
0x1183   : > { %v10336_v10 = vadd.f32 %v10329_v34, %v10320_v21 }
0x1184   : > { %v10337_v13 = vadd.f32 %v10333_v8, %v10321_v4  ;;  %v10303_v5 = vpop.f32.mrb[26].mxu1 }
0x1185   : > { %v10352_v59 = vadd.f32 %v10345_v35, %v10336_v10  ;;  %v10322_v25 = vmul.f32 %v10318_v39, %v10303_v5  ;;  %v10305_v15 = vpop.f32.mrb[27].mxu1 }
0x1186   : > { %v10353_v29 = vadd.f32 %v10345_v35, %v10337_v13  ;;  %v10323_v56 = vmul.f32 %v10318_v39, %v10305_v15  ;;  %v10487_v39 = vand.u32 4294901760, %v10486_v26  ;;  %v10498_v13 = vand.u32 4294901760, %v10497_v0  ;;  %v10395_v15 = vpop.permute.xlu1 %10394 }
0x1187   : > { %vm10356_vm2 = vcmp.ge.f32.partialorder %v10352_v59, 0.0  ;;  %v10360_v62 = vmul.f32 0.2, %v10352_v59  ;;  %v10338_v31 = vadd.f32 %v10329_v34, %v10322_v25 }
0x1188   : > { %vm10357_vm4 = vcmp.ge.f32.partialorder %v10353_v29, 0.0  ;;  %v10361_v50 = vmul.f32 0.2, %v10353_v29  ;;  %v10339_v41 = vadd.f32 %v10333_v8, %v10323_v56 }
0x1189   : > { %v10364_v7 = vsel %vm10356_vm2, %v10352_v59, %v10360_v62  ;;  %v10354_v19 = vadd.f32 %v10350_v44, %v10338_v31  ;;  %v10400_v31 = vpop.permute.xlu0 %10399 }
0x118a   : > { %10368 = vst [vmem:[%s15653_s10] sm:$0xff] %v10364_v7  ;;  %v10386_v54 = vmul.f32 %v10379_v38, %v10364_v7  ;;  %v10355_v1 = vadd.f32 %v10350_v44, %v10339_v41  ;;  %v10365_v23 = vsel %vm10357_vm4, %v10353_v29, %v10361_v50 }
0x118b   : > { %vm10358_vm1 = vcmp.ge.f32.partialorder %v10354_v19, 0.0  ;;  %v10362_v60 = vmul.f32 0.2, %v10354_v19  ;;  %10369 = vst [vmem:[%s15653_s10 + $0x8] sm:$0xff] %v10365_v23  ;;  %v10387_v12 = vmul.f32 %v10379_v38, %v10365_v23 }
0x118c   : > { %vm10359_vm5 = vcmp.ge.f32.partialorder %v10355_v1, 0.0  ;;  %v10363_v27 = vmul.f32 0.2, %v10355_v1  ;;  %v10416_v51 = vand.u32 4294901760, %v10386_v54 }
0x118d   : > { %v10366_v49 = vsel %vm10358_vm1, %v10354_v19, %v10362_v60  ;;  %v10414_v40 = vand.u32 4294901760, %v10387_v12 }
0x118e   : > { %10370 = vst [vmem:[%s15653_s10 + $0x10] sm:$0xf] %v10366_v49  ;;  %v10388_v47 = vmul.f32 %v10384_v18, %v10366_v49  ;;  %v10367_v33 = vsel %vm10359_vm5, %v10355_v1, %v10363_v27  ;;  %v10512_v52 = vsub.f32 %v10386_v54, %v10416_v51 }
0x118f   : > { %10371 = vst [vmem:[%s15653_s10 + $0x18] sm:$0xf] %v10367_v33  ;;  %v10389_v58 = vmul.f32 %v10384_v18, %v10367_v33  ;;  %v10506_v16 = vsub.f32 %v10387_v12, %v10414_v40 }
0x1190   : > { %v10409_v20 = vsel %vm16267_vm7, %v10388_v47, 0  ;;  %v10513_v24 = vand.u32 4294901760, %v10512_v52 }
0x1191   : > { %v10412_v42 = vsel %vm16268_vm6, %v10389_v58, 0  ;;  %v10420_v36 = vand.u32 4294901760, %v10409_v20  ;;  %v10507_v63 = vand.u32 4294901760, %v10506_v16 }
0x1192   : > { %v10418_v53 = vand.u32 4294901760, %v10412_v42  ;;  %v10514_v61 = vsub.f32 %v10512_v52, %v10513_v24 }
0x1193   : > { %v11753_v22 = vpack.c.bf16 %v10420_v36, %v10416_v51  ;;  %v10524_v6 = vsub.f32 %v10409_v20, %v10420_v36  ;;  %v10508_v37 = vsub.f32 %v10506_v16, %v10507_v63 }
0x1194   : > { %v11751_v17 = vpack.c.bf16 %v10418_v53, %v10414_v40  ;;  %v10518_v9 = vsub.f32 %v10412_v42, %v10418_v53  ;;  %v10515_v35 = vand.u32 4294901760, %v10514_v61 }
0x1195   : > { %v10525_v34 = vand.u32 4294901760, %v10524_v6  ;;  %v11761_v46 = vpack.c.bf16 %v10524_v6, %v10512_v52  ;;  %v10509_v5 = vand.u32 4294901760, %v10508_v37 }
0x1196   : > { %11752 = vmatprep.subr.bf16.mxu1 %v11751_v17  ;;  %v10519_v14 = vand.u32 4294901760, %v10518_v9  ;;  %v11759_v8 = vpack.c.bf16 %v10518_v9, %v10506_v16 }
0x1197   : > { %11754 = vmatpush1.bf16.msra.mxu1 %v11753_v22  ;;  %v10526_v21 = vsub.f32 %v10524_v6, %v10525_v34  ;;  %v11769_v57 = vpack.c.bf16 %v10525_v34, %v10513_v24 }
0x1198   : > { %v10520_v4 = vsub.f32 %v10518_v9, %v10519_v14  ;;  %v11767_v3 = vpack.c.bf16 %v10519_v14, %v10507_v63 }
0x1199   : > { %v10527_v10 = vand.u32 4294901760, %v10526_v21 }
0x119a   : > { %10488 = vmatmul.mubr.f32.vlgmr.msra.gmra.mrb[28].mxu1 %v10487_v39  ;;  %v10521_v28 = vand.u32 4294901760, %v10520_v4 }
0x119b   : > { %10493 = vmatprep.mubr.f32.mxu1 %v16209_v11  ;;  %v11757_v59 = vpack.c.bf16 %v10527_v10, %v10515_v35 }
0x119c   : > { %v11755_v25 = vpack.c.bf16 %v10521_v28, %v10509_v5 }
0x119e   : > { %10499 = vmatmul.mubr.f32.gmra.mrb[30].mxu1 %v10498_v13  ;;  %11756 = vmatprep.subr.bf16.mxu1 %v11755_v25 }
0x119f   : > { %11758 = vmatpush1.bf16.msra.mxu1 %v11757_v59  ;;  %10589 = vmatprep.mubr.f32.mxu1 %v16209_v11 }
0x11a0   : > { %11760 = vmatprep.subr.bf16.mxu1 %v11759_v8 }
0x11a2   : > { %10591 = vmatmul.mubr.f32.vlgmr.msra.gmra.mrb[28].mxu1 %v15647_v55 }
0x11a3   : > { %11762 = vmatpush1.bf16.msra.mxu1 %v11761_v46  ;;  %10596 = vmatprep.mubr.f32.mxu1 %v16209_v11 }
0x11a4   : > { %11764 = vmatprep.subr.bf16.mxu1 %v11751_v17 }
0x11a6   : > { %10598 = vmatmul.mubr.f32.gmra.mrb[30].mxu1 %v15660_v30 }
0x11a7   : > { %10676 = vmatprep.mubr.f32.mxu1 %v16209_v11 }
0x11aa   : > { %10679 = vmatmul.mubr.f32.vlgmr.msra.gmra.mrb[28].mxu1 %v15657_v45 }
0x11ab   : > { %11766 = vmatpush1.bf16.msra.mxu1 %v11753_v22  ;;  %10684 = vmatprep.mubr.f32.mxu1 %v16209_v11 }
0x11ac   : > { %11768 = vmatprep.subr.bf16.mxu1 %v11767_v3 }
0x11ae   : > { %10687 = vmatmul.mubr.f32.gmra.mrb[30].mxu1 %v10495_v48 }
0x11af   : > { %10761 = vmatprep.mubr.f32.mxu1 %v16209_v11 }
0x11b2   : > { %10765 = vmatmul.mubr.f32.vlgmr.msra.gmra.mrb[28].mxu1 %v10485_v32 }
0x11b3   : > { %11770 = vmatpush1.bf16.msra.mxu1 %v11769_v57  ;;  %10770 = vmatprep.mubr.f32.mxu1 %v16209_v11 }
0x11b4   : > { %11772 = vmatprep.subr.bf16.mxu1 %v11751_v17 }
0x11b6   : > { %10774 = vmatmul.mubr.f32.gmra.mrb[30].mxu1 %v10496_v43 }
0x11b7   : > { %10856 = vmatprep.mubr.f32.mxu1 %v16209_v11 }
0x11ba   : > { %10858 = vmatmul.mubr.f32.vlgmr.msra.gmra.mrb[28].mxu1 %v15647_v55 }
0x11bb   : > { %11774 = vmatpush1.bf16.msra.mxu1 %v11753_v22  ;;  %10863 = vmatprep.mubr.f32.mxu1 %v16209_v11 }
0x11be   : > { %10865 = vmatmul.mubr.f32.gmra.mrb[30].mxu1 %v15660_v30 }
0x11bf   : > { %10939 = vmatprep.mubr.f32.mxu1 %v16209_v11 }
0x11c2   : > { %10941 = vmatmul.mubr.f32.vlgmr.msra.gmra.mrb[28].mxu1 %v15647_v55 }
0x11c3   : > { %10946 = vmatprep.mubr.f32.mxu1 %v16209_v11 }
0x11c6   : > { %10948 = vmatmul.mubr.f32.gmra.mrb[30].mxu1 %v15660_v30 }
0x1295   : > { %v10942_v29 = vpop.f32.mrb[28].mxu1 }
0x1296   : > { %v11793_v56 = vadd.f32 %v10942_v29, %v10395_v15  ;;  %v10944_v44 = vpop.f32.mrb[29].mxu1 }
0x1297   : > { %v11794_v62 = vadd.f32 %v10944_v44, %v10395_v15 }
0x1298   : > { %10954 = vst [vmem:[%s1029_s3] sm:$0xff] %v11793_v56 }
0x1299   : > { %10955 = vst [vmem:[%s1029_s3 + $0x8] sm:$0xff] %v11794_v62  ;;  %v10949_v2 = vpop.f32.mrb[30].mxu1 }
0x129a   : > { %v11795_v50 = vadd.f32 %v10949_v2, %v10400_v31  ;;  %v10951_v41 = vpop.f32.mrb[31].mxu1 }
0x129b   : > { %v11796_v55 = vadd.f32 %v10951_v41, %v10400_v31 }
0x129c   : > { %10956 = vst [vmem:[%s1029_s3 + $0x10] sm:$0xf] %v11795_v50 }
0x129d   : > { %10957 = vst [vmem:[%s1029_s3 + $0x18] sm:$0xf] %v11796_v55 }
0x129e PF: > { %s16270_s27 = sld [smem:[#allocation2_spill]] }
0x12a4   : > { %s39_s8 = sadd.s32 1, %s16270_s27  }
0x12a5   : > { %p36_p4 = scmp.ge.s32.totalorder %s39_s8, 4  }
0x12a7   :  { %38 = sbr.rel (!%p36_p4) target bundleno = 25 (0x19), region = 202 }

</bundles_post_ra>
